<compile_context>
chip_gen: v7x
topology: tpu7x:2x2x1
jax: 0.10.0
libtpu: 0.0.40
codegen_flags: <defaults>
</compile_context>

<pallas_src>
import math
from functools import partial

import jax
import jax.numpy as jnp
from jax import lax
from jax.experimental import pallas as pl
from jax.experimental.pallas import tpu as pltpu

EPS = 1e-5  # nn.LayerNorm default (module passes eps=None; torch default applies)


# ----------------------------- in-kernel helpers -----------------------------

def _layer_norm(x, gamma, beta):
    mu = jnp.mean(x, axis=-1, keepdims=True)
    var = jnp.mean(jnp.square(x - mu), axis=-1, keepdims=True)
    return (x - mu) * lax.rsqrt(var + EPS) * gamma + beta


def _erf(x):
    # Abramowitz & Stegun 7.1.26 polynomial erf (|err| < 1.5e-7): keeps the
    # exact-GELU semantics of nn.GELU() using only exp/arith (no dependence on
    # an erf lowering inside Mosaic); the error is far below bf16 noise.
    p = 0.3275911
    a1, a2, a3, a4, a5 = (0.254829592, -0.284496736, 1.421413741,
                          -1.453152027, 1.061405429)
    ax = jnp.abs(x)
    t = 1.0 / (1.0 + p * ax)
    poly = ((((a5 * t + a4) * t + a3) * t + a2) * t + a1) * t
    y = 1.0 - poly * jnp.exp(-ax * ax)
    return jnp.where(x >= 0, y, -y)


def _gelu_exact(x):
    return 0.5 * x * (1.0 + _erf(x * (1.0 / math.sqrt(2.0))))


def _mha(q, k, v, wo_t, num_heads):
    """Multi-head attention with the output projection fused per head.

    q: (Lq, D) f32, k/v: (Lk, D) f32, wo_t: (D, D) bf16 -> (Lq, D) f32.
    Heads are static column slices; each head's (Lq, dh) attention output is
    folded straight into the output projection (no head concatenate). bf16
    MXU operands, f32 accumulation throughout.
    """
    Lq, D = q.shape
    dh = D // num_heads
    scale = 1.0 / math.sqrt(dh)
    out = jnp.zeros((Lq, D), jnp.float32)
    for h in range(num_heads):                       # static, unrolled at trace
        sl = slice(h * dh, (h + 1) * dh)
        q_h = q[:, sl].astype(jnp.bfloat16)
        k_h = k[:, sl].astype(jnp.bfloat16)
        v_h = v[:, sl].astype(jnp.bfloat16)
        # q @ k^T without materializing a transpose (contract on last dims).
        s = lax.dot_general(q_h, k_h, (((1,), (1,)), ((), ())),
                            preferred_element_type=jnp.float32) * scale
        s = s - jnp.max(s, axis=-1, keepdims=True)
        p = jnp.exp(s)
        # Normalize once on the (Lq, dh) result; reciprocal goes to the EUP.
        inv = pl.reciprocal(jnp.sum(p, axis=-1, keepdims=True), approx=True)
        o_h = jnp.dot(p.astype(jnp.bfloat16), v_h,
                      preferred_element_type=jnp.float32) * inv
        out = out + jnp.dot(o_h.astype(jnp.bfloat16), wo_t[sl, :],
                            preferred_element_type=jnp.float32)
    # TODO(synk): at production head dims (dh >= 128) replace the unrolled head
    # loop with a head-batched dot_general on an (H, Lq, dh) layout to fill the
    # 256-wide MXU contraction.
    return out


def _cross_attn(x_bf, cond_bf, wq_t, wkv_t, wo_t, num_heads):
    D = wq_t.shape[1]
    q = jnp.dot(x_bf, wq_t, preferred_element_type=jnp.float32)        # (Lq, D)
    kv = jnp.dot(cond_bf, wkv_t, preferred_element_type=jnp.float32)   # (Lk, 2D)
    return _mha(q, kv[:, :D], kv[:, D:], wo_t, num_heads)


# ----------------------------- Pallas kernels -----------------------------

def _cross_only_kernel(x_ref, cond_ref, wq_c_ref, wkv_c_ref, wo_c_ref,
                       o_ref, *, num_heads):
    wq_c, wkv_c, wo_c = wq_c_ref[...], wkv_c_ref[...], wo_c_ref[...]
    for b in range(x_ref.shape[0]):                  # static sub-batch tile loop
        out = _cross_attn(x_ref[b], cond_ref[b], wq_c, wkv_c, wo_c, num_heads)
        o_ref[b] = out.astype(o_ref.dtype)


def _fused_block_kernel(x_ref, cond_ref,
                        wq_c_ref, wkv_c_ref, wo_c_ref,
                        wqkv_s_ref, wo_s_ref,
                        g2_ref, b2_ref, g3_ref, b3_ref,
                        w1_ref, b1_ref, w2_ref, b2m_ref,
                        o_ref, *, num_heads):
    # Load weights once per grid step; they are shared by the whole sub-batch.
    wq_c, wkv_c, wo_c = wq_c_ref[...], wkv_c_ref[...], wo_c_ref[...]
    wqkv_s, wo_s = wqkv_s_ref[...], wo_s_ref[...]
    g2, b2, g3, b3 = g2_ref[...], b2_ref[...], g3_ref[...], b3_ref[...]
    w1, b1, w2, b2m = w1_ref[...], b1_ref[...], w2_ref[...], b2m_ref[...]
    D = wq_c.shape[1]

    for b in range(x_ref.shape[0]):                  # static sub-batch tile loop
        # ---- cross-attention (no residual, matching the module) ----
        x = _cross_attn(x_ref[b], cond_ref[b], wq_c, wkv_c, wo_c, num_heads)

        # ---- self-attention (pre-LN on the branch, residual add) ----
        before_sa = _layer_norm(x, g2, b2).astype(jnp.bfloat16)
        qkv = jnp.dot(before_sa, wqkv_s, preferred_element_type=jnp.float32)
        x = x + _mha(qkv[:, :D], qkv[:, D:2 * D], qkv[:, 2 * D:], wo_s, num_heads)

        # ---- MLP (pre-LN on the branch, residual add), exact-erf GELU ----
        h = _layer_norm(x, g3, b3).astype(jnp.bfloat16)
        h = jnp.dot(h, w1, preferred_element_type=jnp.float32) + b1
        h = _gelu_exact(h).astype(jnp.bfloat16)
        x = x + jnp.dot(h, w2, preferred_element_type=jnp.float32) + b2m

        o_ref[b] = x.astype(o_ref.dtype)


# ------------------------------ model wrapper ------------------------------

def pack_params(params, feedforward=True, weight_dtype=jnp.bfloat16):
    """One-time weight packing: transpose to x@W layout, concat the QKV
    projections and downcast matmul weights to bf16 (MXU operands)."""
    ca = params["cross_attn"]
    packed = {
        "wq_c": ca["wq"].T.astype(weight_dtype),                           # (D, D)
        "wkv_c": jnp.concatenate([ca["wk"], ca["wv"]],
                                 axis=0).T.astype(weight_dtype),           # (Ck, 2D)
        "wo_c": ca["wo"].T.astype(weight_dtype),                           # (D, D)
    }
    if feedforward:
        sa = params["self_attn"]
        packed.update({
            "wqkv_s": jnp.concatenate([sa["wq"], sa["wk"], sa["wv"]],
                                      axis=0).T.astype(weight_dtype),      # (D, 3D)
            "wo_s": sa["wo"].T.astype(weight_dtype),                       # (D, D)
            "g2": params["norm2"]["gamma"].reshape(1, -1).astype(jnp.float32),
            "b2": params["norm2"]["beta"].reshape(1, -1).astype(jnp.float32),
            "g3": params["norm3"]["gamma"].reshape(1, -1).astype(jnp.float32),
            "b3": params["norm3"]["beta"].reshape(1, -1).astype(jnp.float32),
            "w1": params["mlp"]["w1"].T.astype(weight_dtype),              # (D, Dh)
            "b1": params["mlp"]["b1"].reshape(1, -1).astype(jnp.float32),
            "w2": params["mlp"]["w2"].T.astype(weight_dtype),              # (Dh, D)
            "b2m": params["mlp"]["b2"].reshape(1, -1).astype(jnp.float32),
        })
    return packed


def _pick_batch_tile(batch):
    """Largest divisor of `batch` that still leaves >= 2 grid steps (keeps both
    v7x TensorCores busy); 1 for tiny batches."""
    if batch <= 2:
        return 1
    for bt in range(batch // 2, 0, -1):
        if batch % bt == 0:
            return bt
    return 1


def _vmem_limit_bytes(bt, lq, lk, d, ck, dh, feedforward):
    """Rough VMEM budget: bf16 weights (single copy) + double-buffered bf16
    activation blocks + live f32 intermediates, with 2x slack, clamped so it
    always fits v7x's 64 MiB physical VMEM with headroom."""
    bf16, f32 = 2, 4
    weights = (d * d + ck * 2 * d + d * d) * bf16
    if feedforward:
        weights += (d * 3 * d + d * d + 2 * d * dh) * bf16
        weights += (4 * d + dh + d) * f32
    act = 2 * bt * (2 * lq * d + lk * ck) * bf16
    interm = bt * lq * (4 * d + max(3 * d, dh) + 2 * lk) * f32
    est = weights + act + interm
    return int(min(max(2 * est + (4 << 20), 16 << 20), 48 << 20))


def cross_attn_block_forward(x, cond, packed, num_heads, feedforward=True,
                             batch_tile=None):
    """Whole CrossAttnBlock forward in a single pallas_call; grid over batch
    tiles, marked "parallel" for megacore sharding."""
    B, Lq, D = x.shape
    Lk, Ck = cond.shape[1], cond.shape[2]
    assert D % num_heads == 0
    if batch_tile is None:
        batch_tile = _pick_batch_tile(B)
    assert B % batch_tile == 0
    Bt = batch_tile

    # bf16 at the HBM boundary: halves activation DMA bytes (cheapest win on
    # v5e); all accumulation inside the kernel stays f32.
    x = x.astype(jnp.bfloat16)
    cond = cond.astype(jnp.bfloat16)

    seq_spec_x = pl.BlockSpec((Bt, Lq, D), lambda g: (g, 0, 0))
    seq_spec_c = pl.BlockSpec((Bt, Lk, Ck), lambda g: (g, 0, 0))
    out_spec = pl.BlockSpec((Bt, Lq, D), lambda g: (g, 0, 0))
    # NOTE: at production inner_dim (a multiple of 128) the output block is
    # lane-dense; the toy D used in the self-test necessarily uses partial-lane
    # stores (cannot pad D without changing the module's LayerNorm semantics).

    if feedforward:
        Dh = packed["w1"].shape[1]
        kernel = partial(_fused_block_kernel, num_heads=num_heads)
        args = (x, cond,
                packed["wq_c"], packed["wkv_c"], packed["wo_c"],
                packed["wqkv_s"], packed["wo_s"],
                packed["g2"], packed["b2"], packed["g3"], packed["b3"],
                packed["w1"], packed["b1"], packed["w2"], packed["b2m"])
        weight_shapes = [(D, D), (Ck, 2 * D), (D, D),
                         (D, 3 * D), (D, D),
                         (1, D), (1, D), (1, D), (1, D),
                         (D, Dh), (1, Dh), (Dh, D), (1, D)]
    else:
        Dh = 0
        kernel = partial(_cross_only_kernel, num_heads=num_heads)
        args = (x, cond, packed["wq_c"], packed["wkv_c"], packed["wo_c"])
        weight_shapes = [(D, D), (Ck, 2 * D), (D, D)]

    compiler_params = pltpu.CompilerParams(
        dimension_semantics=("parallel",),
        vmem_limit_bytes=_vmem_limit_bytes(Bt, Lq, Lk, D, Ck, Dh, feedforward))

    def run(single_buffer_weights):
        def w_spec(shape):
            idx = lambda g: (0,) * len(shape)
            if single_buffer_weights:
                # Grid-invariant weights: single-buffer so the resident weight
                # set is not doubled by the default 2-deep pipeline.
                return pl.BlockSpec(shape, idx, pipeline_mode=pl.Buffered(1))
            return pl.BlockSpec(shape, idx)

        in_specs = [seq_spec_x, seq_spec_c] + [w_spec(s) for s in weight_shapes]
        return pl.pallas_call(
            kernel,
            out_shape=jax.ShapeDtypeStruct((B, Lq, D), jnp.bfloat16),
            grid=(B // Bt,),
            in_specs=in_specs,
            out_specs=out_spec,
            compiler_params=compiler_params,
        )(*args)

    # TODO(synk): at production LAM shapes, additionally tile the Lq axis
    # (flash-style running max/sum for the self-attention, plain row tiles for
    # the cross-attn Q path and the MLP) so live f32 intermediates stay bounded
    # under v7x's 64 MiB VMEM.
    try:
        return run(single_buffer_weights=True)
    except Exception:
        # Fallback for JAX builds where pipeline_mode on the main pallas_call
        # pipeline is unsupported; only the weight single-buffering is lost.
        return run(single_buffer_weights=False)


# ------------------------------ pure-JAX reference ------------------------------

def _ref_mha(x_q, x_kv, p, num_heads):
    B, Lq, D = x_q.shape
    Lk = x_kv.shape[1]
    dh = D // num_heads
    q = (x_q @ p["wq"].T).reshape(B, Lq, num_heads, dh).transpose(0, 2, 1, 3)
    k = (x_kv @ p["wk"].T).reshape(B, Lk, num_heads, dh).transpose(0, 2, 1, 3)
    v = (x_kv @ p["wv"].T).reshape(B, Lk, num_heads, dh).transpose(0, 2, 1, 3)
    s = jnp.einsum("bhqd,bhkd->bhqk", q, k) / math.sqrt(dh)
    a = jax.nn.softmax(s, axis=-1)
    o = jnp.einsum("bhqk,bhkd->bhqd", a, v).transpose(0, 2, 1, 3).reshape(B, Lq, D)
    return o @ p["wo"].T


def _ref_ln(x, g, b):
    mu = jnp.mean(x, axis=-1, keepdims=True)
    var = jnp.mean(jnp.square(x - mu), axis=-1, keepdims=True)
    return (x - mu) * lax.rsqrt(var + EPS) * g + b


def ref_forward(x, cond, params, num_heads, feedforward=True):
    x = _ref_mha(x, cond, params["cross_attn"], num_heads)
    if feedforward:
        before_sa = _ref_ln(x, params["norm2"]["gamma"], params["norm2"]["beta"])
        x = x + _ref_mha(before_sa, before_sa, params["self_attn"], num_heads)
        h = _ref_ln(x, params["norm3"]["gamma"], params["norm3"]["beta"])
        h = h @ params["mlp"]["w1"].T + params["mlp"]["b1"]
        h = jax.nn.gelu(h, approximate=False)
        h = h @ params["mlp"]["w2"].T + params["mlp"]["b2"]
        x = x + h
    return x


# ------------------------------ param init ------------------------------

def init_params(key, inner_dim, cond_dim, mlp_ratio=4.0):
    ks = jax.random.split(key, 12)
    n = lambda k, shape: (0.02 * jax.random.normal(k, shape)).astype(jnp.float32)
    hidden = int(inner_dim * mlp_ratio)
    return {
        "cross_attn": {               # MultiheadAttention(kdim=vdim=cond_dim, bias=False)
            "wq": n(ks[0], (inner_dim, inner_dim)),
            "wk": n(ks[1], (inner_dim, cond_dim)),
            "wv": n(ks[2], (inner_dim, cond_dim)),
            "wo": n(ks[3], (inner_dim, inner_dim)),
        },
        "self_attn": {                # MultiheadAttention(bias=False)
            "wq": n(ks[4], (inner_dim, inner_dim)),
            "wk": n(ks[5], (inner_dim, inner_dim)),
            "wv": n(ks[6], (inner_dim, inner_dim)),
            "wo": n(ks[7], (inner_dim, inner_dim)),
        },
        "norm2": {"gamma": jnp.ones((inner_dim,), jnp.float32),
                  "beta": jnp.zeros((inner_dim,), jnp.float32)},
        "norm3": {"gamma": jnp.ones((inner_dim,), jnp.float32),
                  "beta": jnp.zeros((inner_dim,), jnp.float32)},
        "mlp": {"w1": n(ks[8], (hidden, inner_dim)),
                "b1": n(ks[9], (hidden,)),
                "w2": n(ks[10], (inner_dim, hidden)),
                "b2": n(ks[11], (inner_dim,))},
    }


# ------------------------------ main ------------------------------

if __name__ == "__main__":
    B, Lq, Lc = 4, 8, 12                     # B=4 -> batch_tile=2, grid=(2,)
    inner_dim, cond_dim, num_heads = 32, 16, 4

    key = jax.random.PRNGKey(0)
    kx, kc, kp = jax.random.split(key, 3)
    x = jax.random.normal(kx, (B, Lq, inner_dim), dtype=jnp.float32)
    cond = jax.random.normal(kc, (B, Lc, cond_dim), dtype=jnp.float32)
    params = init_params(kp, inner_dim, cond_dim, mlp_ratio=4.0)

    # Pack (transpose + concat + bf16 downcast) weights exactly once.
    packed_ff = pack_params(params, feedforward=True)
    packed_xo = pack_params(params, feedforward=False)

    # bf16 MXU operands / bf16 IO with f32 accumulation: compare against the
    # f32 reference with a correspondingly relaxed tolerance (math unchanged).
    TOL = dict(atol=2e-2, rtol=2e-2)

    # feedforward=True path (cross-attn -> +self-attn -> +MLP)
    out_ff = jax.block_until_ready(
        cross_attn_block_forward(x, cond, packed_ff, num_heads, feedforward=True))
    ref_ff = ref_forward(x, cond, params, num_heads, feedforward=True)
    assert out_ff.shape == (B, Lq, inner_dim)
    assert jnp.allclose(out_ff.astype(jnp.float32), ref_ff, **TOL), \
        float(jnp.max(jnp.abs(out_ff.astype(jnp.float32) - ref_ff)))

    # feedforward=False path (cross-attn only, the module default)
    out_xo = jax.block_until_ready(
        cross_attn_block_forward(x, cond, packed_xo, num_heads, feedforward=False))
    ref_xo = ref_forward(x, cond, params, num_heads, feedforward=False)
    assert jnp.allclose(out_xo.astype(jnp.float32), ref_xo, **TOL), \
        float(jnp.max(jnp.abs(out_xo.astype(jnp.float32) - ref_xo)))

    print("KERNEL_OK")
</pallas_src>

<mosaic_0001>
module attributes {stable_mosaic.version = 11 : i64} {
  func.func @_fused_block_kernel(%arg0: i32, %arg1: memref<2x8x32xbf16, #tpu.memory_space<vmem>>, %arg2: memref<2x12x16xbf16, #tpu.memory_space<vmem>>, %arg3: memref<32x32xbf16, #tpu.memory_space<vmem>>, %arg4: memref<16x64xbf16, #tpu.memory_space<vmem>>, %arg5: memref<32x32xbf16, #tpu.memory_space<vmem>>, %arg6: memref<32x96xbf16, #tpu.memory_space<vmem>>, %arg7: memref<32x32xbf16, #tpu.memory_space<vmem>>, %arg8: memref<1x32xf32, #tpu.memory_space<vmem>>, %arg9: memref<1x32xf32, #tpu.memory_space<vmem>>, %arg10: memref<1x32xf32, #tpu.memory_space<vmem>>, %arg11: memref<1x32xf32, #tpu.memory_space<vmem>>, %arg12: memref<32x128xbf16, #tpu.memory_space<vmem>>, %arg13: memref<1x128xf32, #tpu.memory_space<vmem>>, %arg14: memref<128x32xbf16, #tpu.memory_space<vmem>>, %arg15: memref<1x32xf32, #tpu.memory_space<vmem>>, %arg16: memref<2x8x32xbf16, #tpu.memory_space<vmem>>) attributes {dimension_semantics = [#tpu.dimension_semantics<parallel>], iteration_bounds = array<i64: 2>, scalar_prefetch = 0 : i64, scratch_operands = 0 : i64, tpu.core_type = #tpu.core_type<tc>, window_params = [{transform_indices = @transform_0, window_bounds = array<i64: 2, 8, 32>}, {transform_indices = @transform_1, window_bounds = array<i64: 2, 12, 16>}, {pipeline_mode = #tpu.pipeline_mode<synchronous>, transform_indices = @transform_2, window_bounds = array<i64: 32, 32>}, {pipeline_mode = #tpu.pipeline_mode<synchronous>, transform_indices = @transform_3, window_bounds = array<i64: 16, 64>}, {pipeline_mode = #tpu.pipeline_mode<synchronous>, transform_indices = @transform_4, window_bounds = array<i64: 32, 32>}, {pipeline_mode = #tpu.pipeline_mode<synchronous>, transform_indices = @transform_5, window_bounds = array<i64: 32, 96>}, {pipeline_mode = #tpu.pipeline_mode<synchronous>, transform_indices = @transform_6, window_bounds = array<i64: 32, 32>}, {pipeline_mode = #tpu.pipeline_mode<synchronous>, transform_indices = @transform_7, window_bounds = array<i64: 1, 32>}, {pipeline_mode = #tpu.pipeline_mode<synchronous>, transform_indices = @transform_8, window_bounds = array<i64: 1, 32>}, {pipeline_mode = #tpu.pipeline_mode<synchronous>, transform_indices = @transform_9, window_bounds = array<i64: 1, 32>}, {pipeline_mode = #tpu.pipeline_mode<synchronous>, transform_indices = @transform_10, window_bounds = array<i64: 1, 32>}, {pipeline_mode = #tpu.pipeline_mode<synchronous>, transform_indices = @transform_11, window_bounds = array<i64: 32, 128>}, {pipeline_mode = #tpu.pipeline_mode<synchronous>, transform_indices = @transform_12, window_bounds = array<i64: 1, 128>}, {pipeline_mode = #tpu.pipeline_mode<synchronous>, transform_indices = @transform_13, window_bounds = array<i64: 128, 32>}, {pipeline_mode = #tpu.pipeline_mode<synchronous>, transform_indices = @transform_14, window_bounds = array<i64: 1, 32>}, {transform_indices = @transform_15, window_bounds = array<i64: 2, 8, 32>}]} {
    %c0 = arith.constant 0 : index
    %c0_0 = arith.constant 0 : index
    %0 = vector.load %arg3[%c0, %c0_0] : memref<32x32xbf16, #tpu.memory_space<vmem>>, vector<32x32xbf16>
    %c0_1 = arith.constant 0 : index
    %c0_2 = arith.constant 0 : index
    %1 = vector.load %arg4[%c0_1, %c0_2] : memref<16x64xbf16, #tpu.memory_space<vmem>>, vector<16x64xbf16>
    %c0_3 = arith.constant 0 : index
    %c0_4 = arith.constant 0 : index
    %2 = vector.load %arg5[%c0_3, %c0_4] : memref<32x32xbf16, #tpu.memory_space<vmem>>, vector<32x32xbf16>
    %c0_5 = arith.constant 0 : index
    %c0_6 = arith.constant 0 : index
    %3 = vector.load %arg6[%c0_5, %c0_6] : memref<32x96xbf16, #tpu.memory_space<vmem>>, vector<32x96xbf16>
    %c0_7 = arith.constant 0 : index
    %c0_8 = arith.constant 0 : index
    %4 = vector.load %arg7[%c0_7, %c0_8] : memref<32x32xbf16, #tpu.memory_space<vmem>>, vector<32x32xbf16>
    %c0_9 = arith.constant 0 : index
    %c0_10 = arith.constant 0 : index
    %5 = vector.load %arg8[%c0_9, %c0_10] : memref<1x32xf32, #tpu.memory_space<vmem>>, vector<1x32xf32>
    %c0_11 = arith.constant 0 : index
    %c0_12 = arith.constant 0 : index
    %6 = vector.load %arg9[%c0_11, %c0_12] : memref<1x32xf32, #tpu.memory_space<vmem>>, vector<1x32xf32>
    %c0_13 = arith.constant 0 : index
    %c0_14 = arith.constant 0 : index
    %7 = vector.load %arg10[%c0_13, %c0_14] : memref<1x32xf32, #tpu.memory_space<vmem>>, vector<1x32xf32>
    %c0_15 = arith.constant 0 : index
    %c0_16 = arith.constant 0 : index
    %8 = vector.load %arg11[%c0_15, %c0_16] : memref<1x32xf32, #tpu.memory_space<vmem>>, vector<1x32xf32>
    %c0_17 = arith.constant 0 : index
    %c0_18 = arith.constant 0 : index
    %9 = vector.load %arg12[%c0_17, %c0_18] : memref<32x128xbf16, #tpu.memory_space<vmem>>, vector<32x128xbf16>
    %c0_19 = arith.constant 0 : index
    %c0_20 = arith.constant 0 : index
    %10 = vector.load %arg13[%c0_19, %c0_20] : memref<1x128xf32, #tpu.memory_space<vmem>>, vector<1x128xf32>
    %c0_21 = arith.constant 0 : index
    %c0_22 = arith.constant 0 : index
    %11 = vector.load %arg14[%c0_21, %c0_22] : memref<128x32xbf16, #tpu.memory_space<vmem>>, vector<128x32xbf16>
    %c0_23 = arith.constant 0 : index
    %c0_24 = arith.constant 0 : index
    %12 = vector.load %arg15[%c0_23, %c0_24] : memref<1x32xf32, #tpu.memory_space<vmem>>, vector<1x32xf32>
    %c0_25 = arith.constant 0 : index
    %c0_26 = arith.constant 0 : index
    %c0_27 = arith.constant 0 : index
    %13 = vector.load %arg1[%c0_25, %c0_26, %c0_27] : memref<2x8x32xbf16, #tpu.memory_space<vmem>>, vector<1x8x32xbf16>
    %14 = vector.shape_cast %13 : vector<1x8x32xbf16> to vector<8x32xbf16>
    %c0_28 = arith.constant 0 : index
    %c0_29 = arith.constant 0 : index
    %c0_30 = arith.constant 0 : index
    %15 = vector.load %arg2[%c0_28, %c0_29, %c0_30] : memref<2x12x16xbf16, #tpu.memory_space<vmem>>, vector<1x12x16xbf16>
    %16 = vector.shape_cast %15 : vector<1x12x16xbf16> to vector<12x16xbf16>
    %cst = arith.constant dense<0.000000e+00> : vector<8x32xf32>
    %17 = tpu.matmul %14, %0, %cst {dimension_numbers = #tpu.dot_dimension_numbers<[1], [0], [0], [1], [0, 0, 1, 1], [], []>} : vector<8x32xbf16>, vector<32x32xbf16>, vector<8x32xf32> -> vector<8x32xf32>
    %cst_31 = arith.constant dense<0.000000e+00> : vector<12x64xf32>
    %18 = tpu.matmul %16, %1, %cst_31 {dimension_numbers = #tpu.dot_dimension_numbers<[1], [0], [0], [1], [0, 0, 1, 1], [], []>} : vector<12x16xbf16>, vector<16x64xbf16>, vector<12x64xf32> -> vector<12x64xf32>
    %19 = vector.extract_strided_slice %18 {offsets = [0, 0], sizes = [12, 32], strides = [1, 1]} : vector<12x64xf32> to vector<12x32xf32>
    %20 = vector.extract_strided_slice %18 {offsets = [0, 32], sizes = [12, 32], strides = [1, 1]} : vector<12x64xf32> to vector<12x32xf32>
    %cst_32 = arith.constant 0.000000e+00 : f32
    %21 = vector.broadcast %cst_32 : f32 to vector<8x32xf32>
    %22 = vector.extract_strided_slice %17 {offsets = [0, 0], sizes = [8, 8], strides = [1, 1]} : vector<8x32xf32> to vector<8x8xf32>
    %23 = arith.truncf %22 : vector<8x8xf32> to vector<8x8xbf16>
    %24 = vector.extract_strided_slice %19 {offsets = [0, 0], sizes = [12, 8], strides = [1, 1]} : vector<12x32xf32> to vector<12x8xf32>
    %25 = arith.truncf %24 : vector<12x8xf32> to vector<12x8xbf16>
    %26 = vector.extract_strided_slice %20 {offsets = [0, 0], sizes = [12, 8], strides = [1, 1]} : vector<12x32xf32> to vector<12x8xf32>
    %27 = arith.truncf %26 : vector<12x8xf32> to vector<12x8xbf16>
    %cst_33 = arith.constant dense<0.000000e+00> : vector<8x12xf32>
    %28 = tpu.matmul %23, %25, %cst_33 {dimension_numbers = #tpu.dot_dimension_numbers<[1], [1], [0], [0], [0, 0, 1, 0], [], []>} : vector<8x8xbf16>, vector<12x8xbf16>, vector<8x12xf32> -> vector<8x12xf32>
    %cst_34 = arith.constant 0.353553385 : f32
    %29 = vector.broadcast %cst_34 : f32 to vector<8x12xf32>
    %30 = arith.mulf %28, %29 : vector<8x12xf32>
    %cst_35 = arith.constant dense<0xFF800000> : vector<8xf32>
    %31 = vector.multi_reduction <maximumf>, %30, %cst_35 [1] : vector<8x12xf32> to vector<8xf32>
    %32 = vector.shape_cast %31 : vector<8xf32> to vector<8x1xf32>
    %33 = vector.broadcast %32 : vector<8x1xf32> to vector<8x12xf32>
    %34 = arith.subf %30, %33 : vector<8x12xf32>
    %35 = math.exp %34 : vector<8x12xf32>
    %cst_36 = arith.constant dense<0.000000e+00> : vector<8xf32>
    %36 = vector.multi_reduction <add>, %35, %cst_36 [1] : vector<8x12xf32> to vector<8xf32>
    %37 = vector.shape_cast %36 : vector<8xf32> to vector<8x1xf32>
    %38 = tpu.reciprocal %37 {approx = true} : vector<8x1xf32> -> vector<8x1xf32>
    %39 = arith.truncf %35 : vector<8x12xf32> to vector<8x12xbf16>
    %cst_37 = arith.constant dense<0.000000e+00> : vector<8x8xf32>
    %40 = tpu.matmul %39, %27, %cst_37 {dimension_numbers = #tpu.dot_dimension_numbers<[1], [0], [0], [1], [0, 0, 1, 1], [], []>} : vector<8x12xbf16>, vector<12x8xbf16>, vector<8x8xf32> -> vector<8x8xf32>
    %41 = vector.broadcast %38 : vector<8x1xf32> to vector<8x8xf32>
    %42 = arith.mulf %40, %41 : vector<8x8xf32>
    %43 = arith.truncf %42 : vector<8x8xf32> to vector<8x8xbf16>
    %44 = vector.extract_strided_slice %2 {offsets = [0, 0], sizes = [8, 32], strides = [1, 1]} : vector<32x32xbf16> to vector<8x32xbf16>
    %cst_38 = arith.constant dense<0.000000e+00> : vector<8x32xf32>
    %45 = tpu.matmul %43, %44, %cst_38 {dimension_numbers = #tpu.dot_dimension_numbers<[1], [0], [0], [1], [0, 0, 1, 1], [], []>} : vector<8x8xbf16>, vector<8x32xbf16>, vector<8x32xf32> -> vector<8x32xf32>
    %46 = arith.addf %21, %45 : vector<8x32xf32>
    %47 = vector.extract_strided_slice %17 {offsets = [0, 8], sizes = [8, 8], strides = [1, 1]} : vector<8x32xf32> to vector<8x8xf32>
    %48 = arith.truncf %47 : vector<8x8xf32> to vector<8x8xbf16>
    %49 = vector.extract_strided_slice %19 {offsets = [0, 8], sizes = [12, 8], strides = [1, 1]} : vector<12x32xf32> to vector<12x8xf32>
    %50 = arith.truncf %49 : vector<12x8xf32> to vector<12x8xbf16>
    %51 = vector.extract_strided_slice %20 {offsets = [0, 8], sizes = [12, 8], strides = [1, 1]} : vector<12x32xf32> to vector<12x8xf32>
    %52 = arith.truncf %51 : vector<12x8xf32> to vector<12x8xbf16>
    %cst_39 = arith.constant dense<0.000000e+00> : vector<8x12xf32>
    %53 = tpu.matmul %48, %50, %cst_39 {dimension_numbers = #tpu.dot_dimension_numbers<[1], [1], [0], [0], [0, 0, 1, 0], [], []>} : vector<8x8xbf16>, vector<12x8xbf16>, vector<8x12xf32> -> vector<8x12xf32>
    %cst_40 = arith.constant 0.353553385 : f32
    %54 = vector.broadcast %cst_40 : f32 to vector<8x12xf32>
    %55 = arith.mulf %53, %54 : vector<8x12xf32>
    %cst_41 = arith.constant dense<0xFF800000> : vector<8xf32>
    %56 = vector.multi_reduction <maximumf>, %55, %cst_41 [1] : vector<8x12xf32> to vector<8xf32>
    %57 = vector.shape_cast %56 : vector<8xf32> to vector<8x1xf32>
    %58 = vector.broadcast %57 : vector<8x1xf32> to vector<8x12xf32>
    %59 = arith.subf %55, %58 : vector<8x12xf32>
    %60 = math.exp %59 : vector<8x12xf32>
    %cst_42 = arith.constant dense<0.000000e+00> : vector<8xf32>
    %61 = vector.multi_reduction <add>, %60, %cst_42 [1] : vector<8x12xf32> to vector<8xf32>
    %62 = vector.shape_cast %61 : vector<8xf32> to vector<8x1xf32>
    %63 = tpu.reciprocal %62 {approx = true} : vector<8x1xf32> -> vector<8x1xf32>
    %64 = arith.truncf %60 : vector<8x12xf32> to vector<8x12xbf16>
    %cst_43 = arith.constant dense<0.000000e+00> : vector<8x8xf32>
    %65 = tpu.matmul %64, %52, %cst_43 {dimension_numbers = #tpu.dot_dimension_numbers<[1], [0], [0], [1], [0, 0, 1, 1], [], []>} : vector<8x12xbf16>, vector<12x8xbf16>, vector<8x8xf32> -> vector<8x8xf32>
    %66 = vector.broadcast %63 : vector<8x1xf32> to vector<8x8xf32>
    %67 = arith.mulf %65, %66 : vector<8x8xf32>
    %68 = arith.truncf %67 : vector<8x8xf32> to vector<8x8xbf16>
    %69 = vector.extract_strided_slice %2 {offsets = [8, 0], sizes = [8, 32], strides = [1, 1]} : vector<32x32xbf16> to vector<8x32xbf16>
    %cst_44 = arith.constant dense<0.000000e+00> : vector<8x32xf32>
    %70 = tpu.matmul %68, %69, %cst_44 {dimension_numbers = #tpu.dot_dimension_numbers<[1], [0], [0], [1], [0, 0, 1, 1], [], []>} : vector<8x8xbf16>, vector<8x32xbf16>, vector<8x32xf32> -> vector<8x32xf32>
    %71 = arith.addf %46, %70 : vector<8x32xf32>
    %72 = vector.extract_strided_slice %17 {offsets = [0, 16], sizes = [8, 8], strides = [1, 1]} : vector<8x32xf32> to vector<8x8xf32>
    %73 = arith.truncf %72 : vector<8x8xf32> to vector<8x8xbf16>
    %74 = vector.extract_strided_slice %19 {offsets = [0, 16], sizes = [12, 8], strides = [1, 1]} : vector<12x32xf32> to vector<12x8xf32>
    %75 = arith.truncf %74 : vector<12x8xf32> to vector<12x8xbf16>
    %76 = vector.extract_strided_slice %20 {offsets = [0, 16], sizes = [12, 8], strides = [1, 1]} : vector<12x32xf32> to vector<12x8xf32>
    %77 = arith.truncf %76 : vector<12x8xf32> to vector<12x8xbf16>
    %cst_45 = arith.constant dense<0.000000e+00> : vector<8x12xf32>
    %78 = tpu.matmul %73, %75, %cst_45 {dimension_numbers = #tpu.dot_dimension_numbers<[1], [1], [0], [0], [0, 0, 1, 0], [], []>} : vector<8x8xbf16>, vector<12x8xbf16>, vector<8x12xf32> -> vector<8x12xf32>
    %cst_46 = arith.constant 0.353553385 : f32
    %79 = vector.broadcast %cst_46 : f32 to vector<8x12xf32>
    %80 = arith.mulf %78, %79 : vector<8x12xf32>
    %cst_47 = arith.constant dense<0xFF800000> : vector<8xf32>
    %81 = vector.multi_reduction <maximumf>, %80, %cst_47 [1] : vector<8x12xf32> to vector<8xf32>
    %82 = vector.shape_cast %81 : vector<8xf32> to vector<8x1xf32>
    %83 = vector.broadcast %82 : vector<8x1xf32> to vector<8x12xf32>
    %84 = arith.subf %80, %83 : vector<8x12xf32>
    %85 = math.exp %84 : vector<8x12xf32>
    %cst_48 = arith.constant dense<0.000000e+00> : vector<8xf32>
    %86 = vector.multi_reduction <add>, %85, %cst_48 [1] : vector<8x12xf32> to vector<8xf32>
    %87 = vector.shape_cast %86 : vector<8xf32> to vector<8x1xf32>
    %88 = tpu.reciprocal %87 {approx = true} : vector<8x1xf32> -> vector<8x1xf32>
    %89 = arith.truncf %85 : vector<8x12xf32> to vector<8x12xbf16>
    %cst_49 = arith.constant dense<0.000000e+00> : vector<8x8xf32>
    %90 = tpu.matmul %89, %77, %cst_49 {dimension_numbers = #tpu.dot_dimension_numbers<[1], [0], [0], [1], [0, 0, 1, 1], [], []>} : vector<8x12xbf16>, vector<12x8xbf16>, vector<8x8xf32> -> vector<8x8xf32>
    %91 = vector.broadcast %88 : vector<8x1xf32> to vector<8x8xf32>
    %92 = arith.mulf %90, %91 : vector<8x8xf32>
    %93 = arith.truncf %92 : vector<8x8xf32> to vector<8x8xbf16>
    %94 = vector.extract_strided_slice %2 {offsets = [16, 0], sizes = [8, 32], strides = [1, 1]} : vector<32x32xbf16> to vector<8x32xbf16>
    %cst_50 = arith.constant dense<0.000000e+00> : vector<8x32xf32>
    %95 = tpu.matmul %93, %94, %cst_50 {dimension_numbers = #tpu.dot_dimension_numbers<[1], [0], [0], [1], [0, 0, 1, 1], [], []>} : vector<8x8xbf16>, vector<8x32xbf16>, vector<8x32xf32> -> vector<8x32xf32>
    %96 = arith.addf %71, %95 : vector<8x32xf32>
    %97 = vector.extract_strided_slice %17 {offsets = [0, 24], sizes = [8, 8], strides = [1, 1]} : vector<8x32xf32> to vector<8x8xf32>
    %98 = arith.truncf %97 : vector<8x8xf32> to vector<8x8xbf16>
    %99 = vector.extract_strided_slice %19 {offsets = [0, 24], sizes = [12, 8], strides = [1, 1]} : vector<12x32xf32> to vector<12x8xf32>
    %100 = arith.truncf %99 : vector<12x8xf32> to vector<12x8xbf16>
    %101 = vector.extract_strided_slice %20 {offsets = [0, 24], sizes = [12, 8], strides = [1, 1]} : vector<12x32xf32> to vector<12x8xf32>
    %102 = arith.truncf %101 : vector<12x8xf32> to vector<12x8xbf16>
    %cst_51 = arith.constant dense<0.000000e+00> : vector<8x12xf32>
    %103 = tpu.matmul %98, %100, %cst_51 {dimension_numbers = #tpu.dot_dimension_numbers<[1], [1], [0], [0], [0, 0, 1, 0], [], []>} : vector<8x8xbf16>, vector<12x8xbf16>, vector<8x12xf32> -> vector<8x12xf32>
    %cst_52 = arith.constant 0.353553385 : f32
    %104 = vector.broadcast %cst_52 : f32 to vector<8x12xf32>
    %105 = arith.mulf %103, %104 : vector<8x12xf32>
    %cst_53 = arith.constant dense<0xFF800000> : vector<8xf32>
    %106 = vector.multi_reduction <maximumf>, %105, %cst_53 [1] : vector<8x12xf32> to vector<8xf32>
    %107 = vector.shape_cast %106 : vector<8xf32> to vector<8x1xf32>
    %108 = vector.broadcast %107 : vector<8x1xf32> to vector<8x12xf32>
    %109 = arith.subf %105, %108 : vector<8x12xf32>
    %110 = math.exp %109 : vector<8x12xf32>
    %cst_54 = arith.constant dense<0.000000e+00> : vector<8xf32>
    %111 = vector.multi_reduction <add>, %110, %cst_54 [1] : vector<8x12xf32> to vector<8xf32>
    %112 = vector.shape_cast %111 : vector<8xf32> to vector<8x1xf32>
    %113 = tpu.reciprocal %112 {approx = true} : vector<8x1xf32> -> vector<8x1xf32>
    %114 = arith.truncf %110 : vector<8x12xf32> to vector<8x12xbf16>
    %cst_55 = arith.constant dense<0.000000e+00> : vector<8x8xf32>
    %115 = tpu.matmul %114, %102, %cst_55 {dimension_numbers = #tpu.dot_dimension_numbers<[1], [0], [0], [1], [0, 0, 1, 1], [], []>} : vector<8x12xbf16>, vector<12x8xbf16>, vector<8x8xf32> -> vector<8x8xf32>
    %116 = vector.broadcast %113 : vector<8x1xf32> to vector<8x8xf32>
    %117 = arith.mulf %115, %116 : vector<8x8xf32>
    %118 = arith.truncf %117 : vector<8x8xf32> to vector<8x8xbf16>
    %119 = vector.extract_strided_slice %2 {offsets = [24, 0], sizes = [8, 32], strides = [1, 1]} : vector<32x32xbf16> to vector<8x32xbf16>
    %cst_56 = arith.constant dense<0.000000e+00> : vector<8x32xf32>
    %120 = tpu.matmul %118, %119, %cst_56 {dimension_numbers = #tpu.dot_dimension_numbers<[1], [0], [0], [1], [0, 0, 1, 1], [], []>} : vector<8x8xbf16>, vector<8x32xbf16>, vector<8x32xf32> -> vector<8x32xf32>
    %121 = arith.addf %96, %120 : vector<8x32xf32>
    %cst_57 = arith.constant dense<0.000000e+00> : vector<8xf32>
    %122 = vector.multi_reduction <add>, %121, %cst_57 [1] : vector<8x32xf32> to vector<8xf32>
    %123 = vector.shape_cast %122 : vector<8xf32> to vector<8x1xf32>
    %cst_58 = arith.constant 3.200000e+01 : f32
    %124 = vector.broadcast %cst_58 : f32 to vector<8x1xf32>
    %125 = arith.divf %123, %124 : vector<8x1xf32>
    %126 = vector.broadcast %125 : vector<8x1xf32> to vector<8x32xf32>
    %127 = arith.subf %121, %126 : vector<8x32xf32>
    %128 = arith.mulf %127, %127 : vector<8x32xf32>
    %cst_59 = arith.constant dense<0.000000e+00> : vector<8xf32>
    %129 = vector.multi_reduction <add>, %128, %cst_59 [1] : vector<8x32xf32> to vector<8xf32>
    %130 = vector.shape_cast %129 : vector<8xf32> to vector<8x1xf32>
    %cst_60 = arith.constant 3.200000e+01 : f32
    %131 = vector.broadcast %cst_60 : f32 to vector<8x1xf32>
    %132 = arith.divf %130, %131 : vector<8x1xf32>
    %133 = vector.broadcast %125 : vector<8x1xf32> to vector<8x32xf32>
    %134 = arith.subf %121, %133 : vector<8x32xf32>
    %cst_61 = arith.constant 9.99999974E-6 : f32
    %135 = vector.broadcast %cst_61 : f32 to vector<8x1xf32>
    %136 = arith.addf %132, %135 : vector<8x1xf32>
    %137 = math.rsqrt %136 : vector<8x1xf32>
    %138 = vector.broadcast %137 : vector<8x1xf32> to vector<8x32xf32>
    %139 = arith.mulf %134, %138 : vector<8x32xf32>
    %140 = vector.broadcast %5 : vector<1x32xf32> to vector<8x32xf32>
    %141 = arith.mulf %139, %140 : vector<8x32xf32>
    %142 = vector.broadcast %6 : vector<1x32xf32> to vector<8x32xf32>
    %143 = arith.addf %141, %142 : vector<8x32xf32>
    %144 = arith.truncf %143 : vector<8x32xf32> to vector<8x32xbf16>
    %cst_62 = arith.constant dense<0.000000e+00> : vector<8x96xf32>
    %145 = tpu.matmul %144, %3, %cst_62 {dimension_numbers = #tpu.dot_dimension_numbers<[1], [0], [0], [1], [0, 0, 1, 1], [], []>} : vector<8x32xbf16>, vector<32x96xbf16>, vector<8x96xf32> -> vector<8x96xf32>
    %146 = vector.extract_strided_slice %145 {offsets = [0, 0], sizes = [8, 32], strides = [1, 1]} : vector<8x96xf32> to vector<8x32xf32>
    %147 = vector.extract_strided_slice %145 {offsets = [0, 32], sizes = [8, 32], strides = [1, 1]} : vector<8x96xf32> to vector<8x32xf32>
    %148 = vector.extract_strided_slice %145 {offsets = [0, 64], sizes = [8, 32], strides = [1, 1]} : vector<8x96xf32> to vector<8x32xf32>
    %cst_63 = arith.constant 0.000000e+00 : f32
    %149 = vector.broadcast %cst_63 : f32 to vector<8x32xf32>
    %150 = vector.extract_strided_slice %146 {offsets = [0, 0], sizes = [8, 8], strides = [1, 1]} : vector<8x32xf32> to vector<8x8xf32>
    %151 = arith.truncf %150 : vector<8x8xf32> to vector<8x8xbf16>
    %152 = vector.extract_strided_slice %147 {offsets = [0, 0], sizes = [8, 8], strides = [1, 1]} : vector<8x32xf32> to vector<8x8xf32>
    %153 = arith.truncf %152 : vector<8x8xf32> to vector<8x8xbf16>
    %154 = vector.extract_strided_slice %148 {offsets = [0, 0], sizes = [8, 8], strides = [1, 1]} : vector<8x32xf32> to vector<8x8xf32>
    %155 = arith.truncf %154 : vector<8x8xf32> to vector<8x8xbf16>
    %cst_64 = arith.constant dense<0.000000e+00> : vector<8x8xf32>
    %156 = tpu.matmul %151, %153, %cst_64 {dimension_numbers = #tpu.dot_dimension_numbers<[1], [1], [0], [0], [0, 0, 1, 0], [], []>} : vector<8x8xbf16>, vector<8x8xbf16>, vector<8x8xf32> -> vector<8x8xf32>
    %cst_65 = arith.constant 0.353553385 : f32
    %157 = vector.broadcast %cst_65 : f32 to vector<8x8xf32>
    %158 = arith.mulf %156, %157 : vector<8x8xf32>
    %cst_66 = arith.constant dense<0xFF800000> : vector<8xf32>
    %159 = vector.multi_reduction <maximumf>, %158, %cst_66 [1] : vector<8x8xf32> to vector<8xf32>
    %160 = vector.shape_cast %159 : vector<8xf32> to vector<8x1xf32>
    %161 = vector.broadcast %160 : vector<8x1xf32> to vector<8x8xf32>
    %162 = arith.subf %158, %161 : vector<8x8xf32>
    %163 = math.exp %162 : vector<8x8xf32>
    %cst_67 = arith.constant dense<0.000000e+00> : vector<8xf32>
    %164 = vector.multi_reduction <add>, %163, %cst_67 [1] : vector<8x8xf32> to vector<8xf32>
    %165 = vector.shape_cast %164 : vector<8xf32> to vector<8x1xf32>
    %166 = tpu.reciprocal %165 {approx = true} : vector<8x1xf32> -> vector<8x1xf32>
    %167 = arith.truncf %163 : vector<8x8xf32> to vector<8x8xbf16>
    %cst_68 = arith.constant dense<0.000000e+00> : vector<8x8xf32>
    %168 = tpu.matmul %167, %155, %cst_68 {dimension_numbers = #tpu.dot_dimension_numbers<[1], [0], [0], [1], [0, 0, 1, 1], [], []>} : vector<8x8xbf16>, vector<8x8xbf16>, vector<8x8xf32> -> vector<8x8xf32>
    %169 = vector.broadcast %166 : vector<8x1xf32> to vector<8x8xf32>
    %170 = arith.mulf %168, %169 : vector<8x8xf32>
    %171 = arith.truncf %170 : vector<8x8xf32> to vector<8x8xbf16>
    %172 = vector.extract_strided_slice %4 {offsets = [0, 0], sizes = [8, 32], strides = [1, 1]} : vector<32x32xbf16> to vector<8x32xbf16>
    %cst_69 = arith.constant dense<0.000000e+00> : vector<8x32xf32>
    %173 = tpu.matmul %171, %172, %cst_69 {dimension_numbers = #tpu.dot_dimension_numbers<[1], [0], [0], [1], [0, 0, 1, 1], [], []>} : vector<8x8xbf16>, vector<8x32xbf16>, vector<8x32xf32> -> vector<8x32xf32>
    %174 = arith.addf %149, %173 : vector<8x32xf32>
    %175 = vector.extract_strided_slice %146 {offsets = [0, 8], sizes = [8, 8], strides = [1, 1]} : vector<8x32xf32> to vector<8x8xf32>
    %176 = arith.truncf %175 : vector<8x8xf32> to vector<8x8xbf16>
    %177 = vector.extract_strided_slice %147 {offsets = [0, 8], sizes = [8, 8], strides = [1, 1]} : vector<8x32xf32> to vector<8x8xf32>
    %178 = arith.truncf %177 : vector<8x8xf32> to vector<8x8xbf16>
    %179 = vector.extract_strided_slice %148 {offsets = [0, 8], sizes = [8, 8], strides = [1, 1]} : vector<8x32xf32> to vector<8x8xf32>
    %180 = arith.truncf %179 : vector<8x8xf32> to vector<8x8xbf16>
    %cst_70 = arith.constant dense<0.000000e+00> : vector<8x8xf32>
    %181 = tpu.matmul %176, %178, %cst_70 {dimension_numbers = #tpu.dot_dimension_numbers<[1], [1], [0], [0], [0, 0, 1, 0], [], []>} : vector<8x8xbf16>, vector<8x8xbf16>, vector<8x8xf32> -> vector<8x8xf32>
    %cst_71 = arith.constant 0.353553385 : f32
    %182 = vector.broadcast %cst_71 : f32 to vector<8x8xf32>
    %183 = arith.mulf %181, %182 : vector<8x8xf32>
    %cst_72 = arith.constant dense<0xFF800000> : vector<8xf32>
    %184 = vector.multi_reduction <maximumf>, %183, %cst_72 [1] : vector<8x8xf32> to vector<8xf32>
    %185 = vector.shape_cast %184 : vector<8xf32> to vector<8x1xf32>
    %186 = vector.broadcast %185 : vector<8x1xf32> to vector<8x8xf32>
    %187 = arith.subf %183, %186 : vector<8x8xf32>
    %188 = math.exp %187 : vector<8x8xf32>
    %cst_73 = arith.constant dense<0.000000e+00> : vector<8xf32>
    %189 = vector.multi_reduction <add>, %188, %cst_73 [1] : vector<8x8xf32> to vector<8xf32>
    %190 = vector.shape_cast %189 : vector<8xf32> to vector<8x1xf32>
    %191 = tpu.reciprocal %190 {approx = true} : vector<8x1xf32> -> vector<8x1xf32>
    %192 = arith.truncf %188 : vector<8x8xf32> to vector<8x8xbf16>
    %cst_74 = arith.constant dense<0.000000e+00> : vector<8x8xf32>
    %193 = tpu.matmul %192, %180, %cst_74 {dimension_numbers = #tpu.dot_dimension_numbers<[1], [0], [0], [1], [0, 0, 1, 1], [], []>} : vector<8x8xbf16>, vector<8x8xbf16>, vector<8x8xf32> -> vector<8x8xf32>
    %194 = vector.broadcast %191 : vector<8x1xf32> to vector<8x8xf32>
    %195 = arith.mulf %193, %194 : vector<8x8xf32>
    %196 = arith.truncf %195 : vector<8x8xf32> to vector<8x8xbf16>
    %197 = vector.extract_strided_slice %4 {offsets = [8, 0], sizes = [8, 32], strides = [1, 1]} : vector<32x32xbf16> to vector<8x32xbf16>
    %cst_75 = arith.constant dense<0.000000e+00> : vector<8x32xf32>
    %198 = tpu.matmul %196, %197, %cst_75 {dimension_numbers = #tpu.dot_dimension_numbers<[1], [0], [0], [1], [0, 0, 1, 1], [], []>} : vector<8x8xbf16>, vector<8x32xbf16>, vector<8x32xf32> -> vector<8x32xf32>
    %199 = arith.addf %174, %198 : vector<8x32xf32>
    %200 = vector.extract_strided_slice %146 {offsets = [0, 16], sizes = [8, 8], strides = [1, 1]} : vector<8x32xf32> to vector<8x8xf32>
    %201 = arith.truncf %200 : vector<8x8xf32> to vector<8x8xbf16>
    %202 = vector.extract_strided_slice %147 {offsets = [0, 16], sizes = [8, 8], strides = [1, 1]} : vector<8x32xf32> to vector<8x8xf32>
    %203 = arith.truncf %202 : vector<8x8xf32> to vector<8x8xbf16>
    %204 = vector.extract_strided_slice %148 {offsets = [0, 16], sizes = [8, 8], strides = [1, 1]} : vector<8x32xf32> to vector<8x8xf32>
    %205 = arith.truncf %204 : vector<8x8xf32> to vector<8x8xbf16>
    %cst_76 = arith.constant dense<0.000000e+00> : vector<8x8xf32>
    %206 = tpu.matmul %201, %203, %cst_76 {dimension_numbers = #tpu.dot_dimension_numbers<[1], [1], [0], [0], [0, 0, 1, 0], [], []>} : vector<8x8xbf16>, vector<8x8xbf16>, vector<8x8xf32> -> vector<8x8xf32>
    %cst_77 = arith.constant 0.353553385 : f32
    %207 = vector.broadcast %cst_77 : f32 to vector<8x8xf32>
    %208 = arith.mulf %206, %207 : vector<8x8xf32>
    %cst_78 = arith.constant dense<0xFF800000> : vector<8xf32>
    %209 = vector.multi_reduction <maximumf>, %208, %cst_78 [1] : vector<8x8xf32> to vector<8xf32>
    %210 = vector.shape_cast %209 : vector<8xf32> to vector<8x1xf32>
    %211 = vector.broadcast %210 : vector<8x1xf32> to vector<8x8xf32>
    %212 = arith.subf %208, %211 : vector<8x8xf32>
    %213 = math.exp %212 : vector<8x8xf32>
    %cst_79 = arith.constant dense<0.000000e+00> : vector<8xf32>
    %214 = vector.multi_reduction <add>, %213, %cst_79 [1] : vector<8x8xf32> to vector<8xf32>
    %215 = vector.shape_cast %214 : vector<8xf32> to vector<8x1xf32>
    %216 = tpu.reciprocal %215 {approx = true} : vector<8x1xf32> -> vector<8x1xf32>
    %217 = arith.truncf %213 : vector<8x8xf32> to vector<8x8xbf16>
    %cst_80 = arith.constant dense<0.000000e+00> : vector<8x8xf32>
    %218 = tpu.matmul %217, %205, %cst_80 {dimension_numbers = #tpu.dot_dimension_numbers<[1], [0], [0], [1], [0, 0, 1, 1], [], []>} : vector<8x8xbf16>, vector<8x8xbf16>, vector<8x8xf32> -> vector<8x8xf32>
    %219 = vector.broadcast %216 : vector<8x1xf32> to vector<8x8xf32>
    %220 = arith.mulf %218, %219 : vector<8x8xf32>
    %221 = arith.truncf %220 : vector<8x8xf32> to vector<8x8xbf16>
    %222 = vector.extract_strided_slice %4 {offsets = [16, 0], sizes = [8, 32], strides = [1, 1]} : vector<32x32xbf16> to vector<8x32xbf16>
    %cst_81 = arith.constant dense<0.000000e+00> : vector<8x32xf32>
    %223 = tpu.matmul %221, %222, %cst_81 {dimension_numbers = #tpu.dot_dimension_numbers<[1], [0], [0], [1], [0, 0, 1, 1], [], []>} : vector<8x8xbf16>, vector<8x32xbf16>, vector<8x32xf32> -> vector<8x32xf32>
    %224 = arith.addf %199, %223 : vector<8x32xf32>
    %225 = vector.extract_strided_slice %146 {offsets = [0, 24], sizes = [8, 8], strides = [1, 1]} : vector<8x32xf32> to vector<8x8xf32>
    %226 = arith.truncf %225 : vector<8x8xf32> to vector<8x8xbf16>
    %227 = vector.extract_strided_slice %147 {offsets = [0, 24], sizes = [8, 8], strides = [1, 1]} : vector<8x32xf32> to vector<8x8xf32>
    %228 = arith.truncf %227 : vector<8x8xf32> to vector<8x8xbf16>
    %229 = vector.extract_strided_slice %148 {offsets = [0, 24], sizes = [8, 8], strides = [1, 1]} : vector<8x32xf32> to vector<8x8xf32>
    %230 = arith.truncf %229 : vector<8x8xf32> to vector<8x8xbf16>
    %cst_82 = arith.constant dense<0.000000e+00> : vector<8x8xf32>
    %231 = tpu.matmul %226, %228, %cst_82 {dimension_numbers = #tpu.dot_dimension_numbers<[1], [1], [0], [0], [0, 0, 1, 0], [], []>} : vector<8x8xbf16>, vector<8x8xbf16>, vector<8x8xf32> -> vector<8x8xf32>
    %cst_83 = arith.constant 0.353553385 : f32
    %232 = vector.broadcast %cst_83 : f32 to vector<8x8xf32>
    %233 = arith.mulf %231, %232 : vector<8x8xf32>
    %cst_84 = arith.constant dense<0xFF800000> : vector<8xf32>
    %234 = vector.multi_reduction <maximumf>, %233, %cst_84 [1] : vector<8x8xf32> to vector<8xf32>
    %235 = vector.shape_cast %234 : vector<8xf32> to vector<8x1xf32>
    %236 = vector.broadcast %235 : vector<8x1xf32> to vector<8x8xf32>
    %237 = arith.subf %233, %236 : vector<8x8xf32>
    %238 = math.exp %237 : vector<8x8xf32>
    %cst_85 = arith.constant dense<0.000000e+00> : vector<8xf32>
    %239 = vector.multi_reduction <add>, %238, %cst_85 [1] : vector<8x8xf32> to vector<8xf32>
    %240 = vector.shape_cast %239 : vector<8xf32> to vector<8x1xf32>
    %241 = tpu.reciprocal %240 {approx = true} : vector<8x1xf32> -> vector<8x1xf32>
    %242 = arith.truncf %238 : vector<8x8xf32> to vector<8x8xbf16>
    %cst_86 = arith.constant dense<0.000000e+00> : vector<8x8xf32>
    %243 = tpu.matmul %242, %230, %cst_86 {dimension_numbers = #tpu.dot_dimension_numbers<[1], [0], [0], [1], [0, 0, 1, 1], [], []>} : vector<8x8xbf16>, vector<8x8xbf16>, vector<8x8xf32> -> vector<8x8xf32>
    %244 = vector.broadcast %241 : vector<8x1xf32> to vector<8x8xf32>
    %245 = arith.mulf %243, %244 : vector<8x8xf32>
    %246 = arith.truncf %245 : vector<8x8xf32> to vector<8x8xbf16>
    %247 = vector.extract_strided_slice %4 {offsets = [24, 0], sizes = [8, 32], strides = [1, 1]} : vector<32x32xbf16> to vector<8x32xbf16>
    %cst_87 = arith.constant dense<0.000000e+00> : vector<8x32xf32>
    %248 = tpu.matmul %246, %247, %cst_87 {dimension_numbers = #tpu.dot_dimension_numbers<[1], [0], [0], [1], [0, 0, 1, 1], [], []>} : vector<8x8xbf16>, vector<8x32xbf16>, vector<8x32xf32> -> vector<8x32xf32>
    %249 = arith.addf %224, %248 : vector<8x32xf32>
    %250 = arith.addf %121, %249 : vector<8x32xf32>
    %cst_88 = arith.constant dense<0.000000e+00> : vector<8xf32>
    %251 = vector.multi_reduction <add>, %250, %cst_88 [1] : vector<8x32xf32> to vector<8xf32>
    %252 = vector.shape_cast %251 : vector<8xf32> to vector<8x1xf32>
    %cst_89 = arith.constant 3.200000e+01 : f32
    %253 = vector.broadcast %cst_89 : f32 to vector<8x1xf32>
    %254 = arith.divf %252, %253 : vector<8x1xf32>
    %255 = vector.broadcast %254 : vector<8x1xf32> to vector<8x32xf32>
    %256 = arith.subf %250, %255 : vector<8x32xf32>
    %257 = arith.mulf %256, %256 : vector<8x32xf32>
    %cst_90 = arith.constant dense<0.000000e+00> : vector<8xf32>
    %258 = vector.multi_reduction <add>, %257, %cst_90 [1] : vector<8x32xf32> to vector<8xf32>
    %259 = vector.shape_cast %258 : vector<8xf32> to vector<8x1xf32>
    %cst_91 = arith.constant 3.200000e+01 : f32
    %260 = vector.broadcast %cst_91 : f32 to vector<8x1xf32>
    %261 = arith.divf %259, %260 : vector<8x1xf32>
    %262 = vector.broadcast %254 : vector<8x1xf32> to vector<8x32xf32>
    %263 = arith.subf %250, %262 : vector<8x32xf32>
    %cst_92 = arith.constant 9.99999974E-6 : f32
    %264 = vector.broadcast %cst_92 : f32 to vector<8x1xf32>
    %265 = arith.addf %261, %264 : vector<8x1xf32>
    %266 = math.rsqrt %265 : vector<8x1xf32>
    %267 = vector.broadcast %266 : vector<8x1xf32> to vector<8x32xf32>
    %268 = arith.mulf %263, %267 : vector<8x32xf32>
    %269 = vector.broadcast %7 : vector<1x32xf32> to vector<8x32xf32>
    %270 = arith.mulf %268, %269 : vector<8x32xf32>
    %271 = vector.broadcast %8 : vector<1x32xf32> to vector<8x32xf32>
    %272 = arith.addf %270, %271 : vector<8x32xf32>
    %273 = arith.truncf %272 : vector<8x32xf32> to vector<8x32xbf16>
    %cst_93 = arith.constant dense<0.000000e+00> : vector<8x128xf32>
    %274 = tpu.matmul %273, %9, %cst_93 {dimension_numbers = #tpu.dot_dimension_numbers<[1], [0], [0], [1], [0, 0, 1, 1], [], []>} : vector<8x32xbf16>, vector<32x128xbf16>, vector<8x128xf32> -> vector<8x128xf32>
    %275 = vector.broadcast %10 : vector<1x128xf32> to vector<8x128xf32>
    %276 = arith.addf %274, %275 : vector<8x128xf32>
    %cst_94 = arith.constant 5.000000e-01 : f32
    %277 = vector.broadcast %cst_94 : f32 to vector<8x128xf32>
    %278 = arith.mulf %277, %276 : vector<8x128xf32>
    %cst_95 = arith.constant 0.707106769 : f32
    %279 = vector.broadcast %cst_95 : f32 to vector<8x128xf32>
    %280 = arith.mulf %276, %279 : vector<8x128xf32>
    %281 = math.absf %280 : vector<8x128xf32>
    %cst_96 = arith.constant 0.327591091 : f32
    %282 = vector.broadcast %cst_96 : f32 to vector<8x128xf32>
    %283 = arith.mulf %282, %281 : vector<8x128xf32>
    %cst_97 = arith.constant 1.000000e+00 : f32
    %284 = vector.broadcast %cst_97 : f32 to vector<8x128xf32>
    %285 = arith.addf %284, %283 : vector<8x128xf32>
    %cst_98 = arith.constant 1.000000e+00 : f32
    %286 = vector.broadcast %cst_98 : f32 to vector<8x128xf32>
    %287 = arith.divf %286, %285 : vector<8x128xf32>
    %cst_99 = arith.constant 1.06140542 : f32
    %288 = vector.broadcast %cst_99 : f32 to vector<8x128xf32>
    %289 = arith.mulf %288, %287 : vector<8x128xf32>
    %cst_100 = arith.constant -1.45315206 : f32
    %290 = vector.broadcast %cst_100 : f32 to vector<8x128xf32>
    %291 = arith.addf %289, %290 : vector<8x128xf32>
    %292 = arith.mulf %291, %287 : vector<8x128xf32>
    %cst_101 = arith.constant 1.42141378 : f32
    %293 = vector.broadcast %cst_101 : f32 to vector<8x128xf32>
    %294 = arith.addf %292, %293 : vector<8x128xf32>
    %295 = arith.mulf %294, %287 : vector<8x128xf32>
    %cst_102 = arith.constant -0.284496725 : f32
    %296 = vector.broadcast %cst_102 : f32 to vector<8x128xf32>
    %297 = arith.addf %295, %296 : vector<8x128xf32>
    %298 = arith.mulf %297, %287 : vector<8x128xf32>
    %cst_103 = arith.constant 0.254829586 : f32
    %299 = vector.broadcast %cst_103 : f32 to vector<8x128xf32>
    %300 = arith.addf %298, %299 : vector<8x128xf32>
    %301 = arith.mulf %300, %287 : vector<8x128xf32>
    %cst_104 = arith.constant 0.000000e+00 : f32
    %302 = vector.broadcast %cst_104 : f32 to vector<8x128xf32>
    %303 = arith.subf %302, %281 : vector<8x128xf32>
    %304 = arith.mulf %303, %281 : vector<8x128xf32>
    %305 = math.exp %304 : vector<8x128xf32>
    %306 = arith.mulf %301, %305 : vector<8x128xf32>
    %cst_105 = arith.constant 1.000000e+00 : f32
    %307 = vector.broadcast %cst_105 : f32 to vector<8x128xf32>
    %308 = arith.subf %307, %306 : vector<8x128xf32>
    %cst_106 = arith.constant 0.000000e+00 : f32
    %309 = vector.broadcast %cst_106 : f32 to vector<8x128xf32>
    %310 = arith.cmpf oge, %280, %309 : vector<8x128xf32>
    %cst_107 = arith.constant 0.000000e+00 : f32
    %311 = vector.broadcast %cst_107 : f32 to vector<8x128xf32>
    %312 = arith.subf %311, %308 : vector<8x128xf32>
    %313 = arith.select %310, %308, %312 : vector<8x128xi1>, vector<8x128xf32>
    %cst_108 = arith.constant 1.000000e+00 : f32
    %314 = vector.broadcast %cst_108 : f32 to vector<8x128xf32>
    %315 = arith.addf %314, %313 : vector<8x128xf32>
    %316 = arith.mulf %278, %315 : vector<8x128xf32>
    %317 = arith.truncf %316 : vector<8x128xf32> to vector<8x128xbf16>
    %cst_109 = arith.constant dense<0.000000e+00> : vector<8x32xf32>
    %318 = tpu.matmul %317, %11, %cst_109 {dimension_numbers = #tpu.dot_dimension_numbers<[1], [0], [0], [1], [0, 0, 1, 1], [], []>} : vector<8x128xbf16>, vector<128x32xbf16>, vector<8x32xf32> -> vector<8x32xf32>
    %319 = arith.addf %250, %318 : vector<8x32xf32>
    %320 = vector.broadcast %12 : vector<1x32xf32> to vector<8x32xf32>
    %321 = arith.addf %319, %320 : vector<8x32xf32>
    %322 = arith.truncf %321 : vector<8x32xf32> to vector<8x32xbf16>
    %c0_110 = arith.constant 0 : index
    %c0_111 = arith.constant 0 : index
    %c0_112 = arith.constant 0 : index
    %323 = vector.load %arg16[%c0_110, %c0_111, %c0_112] : memref<2x8x32xbf16, #tpu.memory_space<vmem>>, vector<1x8x32xbf16>
    %324 = vector.shape_cast %323 : vector<1x8x32xbf16> to vector<8x32xbf16>
    %325 = vector.shape_cast %322 : vector<8x32xbf16> to vector<1x8x32xbf16>
    tpu.vector_store %arg16[%c0_110, %c0_111, %c0_112], %325 {strides = array<i32>} : memref<2x8x32xbf16, #tpu.memory_space<vmem>>, vector<1x8x32xbf16>,
    %c1 = arith.constant 1 : index
    %c0_113 = arith.constant 0 : index
    %c0_114 = arith.constant 0 : index
    %326 = vector.load %arg1[%c1, %c0_113, %c0_114] : memref<2x8x32xbf16, #tpu.memory_space<vmem>>, vector<1x8x32xbf16>
    %327 = vector.shape_cast %326 : vector<1x8x32xbf16> to vector<8x32xbf16>
    %c1_115 = arith.constant 1 : index
    %c0_116 = arith.constant 0 : index
    %c0_117 = arith.constant 0 : index
    %328 = vector.load %arg2[%c1_115, %c0_116, %c0_117] : memref<2x12x16xbf16, #tpu.memory_space<vmem>>, vector<1x12x16xbf16>
    %329 = vector.shape_cast %328 : vector<1x12x16xbf16> to vector<12x16xbf16>
    %cst_118 = arith.constant dense<0.000000e+00> : vector<8x32xf32>
    %330 = tpu.matmul %327, %0, %cst_118 {dimension_numbers = #tpu.dot_dimension_numbers<[1], [0], [0], [1], [0, 0, 1, 1], [], []>} : vector<8x32xbf16>, vector<32x32xbf16>, vector<8x32xf32> -> vector<8x32xf32>
    %cst_119 = arith.constant dense<0.000000e+00> : vector<12x64xf32>
    %331 = tpu.matmul %329, %1, %cst_119 {dimension_numbers = #tpu.dot_dimension_numbers<[1], [0], [0], [1], [0, 0, 1, 1], [], []>} : vector<12x16xbf16>, vector<16x64xbf16>, vector<12x64xf32> -> vector<12x64xf32>
    %332 = vector.extract_strided_slice %331 {offsets = [0, 0], sizes = [12, 32], strides = [1, 1]} : vector<12x64xf32> to vector<12x32xf32>
    %333 = vector.extract_strided_slice %331 {offsets = [0, 32], sizes = [12, 32], strides = [1, 1]} : vector<12x64xf32> to vector<12x32xf32>
    %cst_120 = arith.constant 0.000000e+00 : f32
    %334 = vector.broadcast %cst_120 : f32 to vector<8x32xf32>
    %335 = vector.extract_strided_slice %330 {offsets = [0, 0], sizes = [8, 8], strides = [1, 1]} : vector<8x32xf32> to vector<8x8xf32>
    %336 = arith.truncf %335 : vector<8x8xf32> to vector<8x8xbf16>
    %337 = vector.extract_strided_slice %332 {offsets = [0, 0], sizes = [12, 8], strides = [1, 1]} : vector<12x32xf32> to vector<12x8xf32>
    %338 = arith.truncf %337 : vector<12x8xf32> to vector<12x8xbf16>
    %339 = vector.extract_strided_slice %333 {offsets = [0, 0], sizes = [12, 8], strides = [1, 1]} : vector<12x32xf32> to vector<12x8xf32>
    %340 = arith.truncf %339 : vector<12x8xf32> to vector<12x8xbf16>
    %cst_121 = arith.constant dense<0.000000e+00> : vector<8x12xf32>
    %341 = tpu.matmul %336, %338, %cst_121 {dimension_numbers = #tpu.dot_dimension_numbers<[1], [1], [0], [0], [0, 0, 1, 0], [], []>} : vector<8x8xbf16>, vector<12x8xbf16>, vector<8x12xf32> -> vector<8x12xf32>
    %cst_122 = arith.constant 0.353553385 : f32
    %342 = vector.broadcast %cst_122 : f32 to vector<8x12xf32>
    %343 = arith.mulf %341, %342 : vector<8x12xf32>
    %cst_123 = arith.constant dense<0xFF800000> : vector<8xf32>
    %344 = vector.multi_reduction <maximumf>, %343, %cst_123 [1] : vector<8x12xf32> to vector<8xf32>
    %345 = vector.shape_cast %344 : vector<8xf32> to vector<8x1xf32>
    %346 = vector.broadcast %345 : vector<8x1xf32> to vector<8x12xf32>
    %347 = arith.subf %343, %346 : vector<8x12xf32>
    %348 = math.exp %347 : vector<8x12xf32>
    %cst_124 = arith.constant dense<0.000000e+00> : vector<8xf32>
    %349 = vector.multi_reduction <add>, %348, %cst_124 [1] : vector<8x12xf32> to vector<8xf32>
    %350 = vector.shape_cast %349 : vector<8xf32> to vector<8x1xf32>
    %351 = tpu.reciprocal %350 {approx = true} : vector<8x1xf32> -> vector<8x1xf32>
    %352 = arith.truncf %348 : vector<8x12xf32> to vector<8x12xbf16>
    %cst_125 = arith.constant dense<0.000000e+00> : vector<8x8xf32>
    %353 = tpu.matmul %352, %340, %cst_125 {dimension_numbers = #tpu.dot_dimension_numbers<[1], [0], [0], [1], [0, 0, 1, 1], [], []>} : vector<8x12xbf16>, vector<12x8xbf16>, vector<8x8xf32> -> vector<8x8xf32>
    %354 = vector.broadcast %351 : vector<8x1xf32> to vector<8x8xf32>
    %355 = arith.mulf %353, %354 : vector<8x8xf32>
    %356 = arith.truncf %355 : vector<8x8xf32> to vector<8x8xbf16>
    %357 = vector.extract_strided_slice %2 {offsets = [0, 0], sizes = [8, 32], strides = [1, 1]} : vector<32x32xbf16> to vector<8x32xbf16>
    %cst_126 = arith.constant dense<0.000000e+00> : vector<8x32xf32>
    %358 = tpu.matmul %356, %357, %cst_126 {dimension_numbers = #tpu.dot_dimension_numbers<[1], [0], [0], [1], [0, 0, 1, 1], [], []>} : vector<8x8xbf16>, vector<8x32xbf16>, vector<8x32xf32> -> vector<8x32xf32>
    %359 = arith.addf %334, %358 : vector<8x32xf32>
    %360 = vector.extract_strided_slice %330 {offsets = [0, 8], sizes = [8, 8], strides = [1, 1]} : vector<8x32xf32> to vector<8x8xf32>
    %361 = arith.truncf %360 : vector<8x8xf32> to vector<8x8xbf16>
    %362 = vector.extract_strided_slice %332 {offsets = [0, 8], sizes = [12, 8], strides = [1, 1]} : vector<12x32xf32> to vector<12x8xf32>
    %363 = arith.truncf %362 : vector<12x8xf32> to vector<12x8xbf16>
    %364 = vector.extract_strided_slice %333 {offsets = [0, 8], sizes = [12, 8], strides = [1, 1]} : vector<12x32xf32> to vector<12x8xf32>
    %365 = arith.truncf %364 : vector<12x8xf32> to vector<12x8xbf16>
    %cst_127 = arith.constant dense<0.000000e+00> : vector<8x12xf32>
    %366 = tpu.matmul %361, %363, %cst_127 {dimension_numbers = #tpu.dot_dimension_numbers<[1], [1], [0], [0], [0, 0, 1, 0], [], []>} : vector<8x8xbf16>, vector<12x8xbf16>, vector<8x12xf32> -> vector<8x12xf32>
    %cst_128 = arith.constant 0.353553385 : f32
    %367 = vector.broadcast %cst_128 : f32 to vector<8x12xf32>
    %368 = arith.mulf %366, %367 : vector<8x12xf32>
    %cst_129 = arith.constant dense<0xFF800000> : vector<8xf32>
    %369 = vector.multi_reduction <maximumf>, %368, %cst_129 [1] : vector<8x12xf32> to vector<8xf32>
    %370 = vector.shape_cast %369 : vector<8xf32> to vector<8x1xf32>
    %371 = vector.broadcast %370 : vector<8x1xf32> to vector<8x12xf32>
    %372 = arith.subf %368, %371 : vector<8x12xf32>
    %373 = math.exp %372 : vector<8x12xf32>
    %cst_130 = arith.constant dense<0.000000e+00> : vector<8xf32>
    %374 = vector.multi_reduction <add>, %373, %cst_130 [1] : vector<8x12xf32> to vector<8xf32>
    %375 = vector.shape_cast %374 : vector<8xf32> to vector<8x1xf32>
    %376 = tpu.reciprocal %375 {approx = true} : vector<8x1xf32> -> vector<8x1xf32>
    %377 = arith.truncf %373 : vector<8x12xf32> to vector<8x12xbf16>
    %cst_131 = arith.constant dense<0.000000e+00> : vector<8x8xf32>
    %378 = tpu.matmul %377, %365, %cst_131 {dimension_numbers = #tpu.dot_dimension_numbers<[1], [0], [0], [1], [0, 0, 1, 1], [], []>} : vector<8x12xbf16>, vector<12x8xbf16>, vector<8x8xf32> -> vector<8x8xf32>
    %379 = vector.broadcast %376 : vector<8x1xf32> to vector<8x8xf32>
    %380 = arith.mulf %378, %379 : vector<8x8xf32>
    %381 = arith.truncf %380 : vector<8x8xf32> to vector<8x8xbf16>
    %382 = vector.extract_strided_slice %2 {offsets = [8, 0], sizes = [8, 32], strides = [1, 1]} : vector<32x32xbf16> to vector<8x32xbf16>
    %cst_132 = arith.constant dense<0.000000e+00> : vector<8x32xf32>
    %383 = tpu.matmul %381, %382, %cst_132 {dimension_numbers = #tpu.dot_dimension_numbers<[1], [0], [0], [1], [0, 0, 1, 1], [], []>} : vector<8x8xbf16>, vector<8x32xbf16>, vector<8x32xf32> -> vector<8x32xf32>
    %384 = arith.addf %359, %383 : vector<8x32xf32>
    %385 = vector.extract_strided_slice %330 {offsets = [0, 16], sizes = [8, 8], strides = [1, 1]} : vector<8x32xf32> to vector<8x8xf32>
    %386 = arith.truncf %385 : vector<8x8xf32> to vector<8x8xbf16>
    %387 = vector.extract_strided_slice %332 {offsets = [0, 16], sizes = [12, 8], strides = [1, 1]} : vector<12x32xf32> to vector<12x8xf32>
    %388 = arith.truncf %387 : vector<12x8xf32> to vector<12x8xbf16>
    %389 = vector.extract_strided_slice %333 {offsets = [0, 16], sizes = [12, 8], strides = [1, 1]} : vector<12x32xf32> to vector<12x8xf32>
    %390 = arith.truncf %389 : vector<12x8xf32> to vector<12x8xbf16>
    %cst_133 = arith.constant dense<0.000000e+00> : vector<8x12xf32>
    %391 = tpu.matmul %386, %388, %cst_133 {dimension_numbers = #tpu.dot_dimension_numbers<[1], [1], [0], [0], [0, 0, 1, 0], [], []>} : vector<8x8xbf16>, vector<12x8xbf16>, vector<8x12xf32> -> vector<8x12xf32>
    %cst_134 = arith.constant 0.353553385 : f32
    %392 = vector.broadcast %cst_134 : f32 to vector<8x12xf32>
    %393 = arith.mulf %391, %392 : vector<8x12xf32>
    %cst_135 = arith.constant dense<0xFF800000> : vector<8xf32>
    %394 = vector.multi_reduction <maximumf>, %393, %cst_135 [1] : vector<8x12xf32> to vector<8xf32>
    %395 = vector.shape_cast %394 : vector<8xf32> to vector<8x1xf32>
    %396 = vector.broadcast %395 : vector<8x1xf32> to vector<8x12xf32>
    %397 = arith.subf %393, %396 : vector<8x12xf32>
    %398 = math.exp %397 : vector<8x12xf32>
    %cst_136 = arith.constant dense<0.000000e+00> : vector<8xf32>
    %399 = vector.multi_reduction <add>, %398, %cst_136 [1] : vector<8x12xf32> to vector<8xf32>
    %400 = vector.shape_cast %399 : vector<8xf32> to vector<8x1xf32>
    %401 = tpu.reciprocal %400 {approx = true} : vector<8x1xf32> -> vector<8x1xf32>
    %402 = arith.truncf %398 : vector<8x12xf32> to vector<8x12xbf16>
    %cst_137 = arith.constant dense<0.000000e+00> : vector<8x8xf32>
    %403 = tpu.matmul %402, %390, %cst_137 {dimension_numbers = #tpu.dot_dimension_numbers<[1], [0], [0], [1], [0, 0, 1, 1], [], []>} : vector<8x12xbf16>, vector<12x8xbf16>, vector<8x8xf32> -> vector<8x8xf32>
    %404 = vector.broadcast %401 : vector<8x1xf32> to vector<8x8xf32>
    %405 = arith.mulf %403, %404 : vector<8x8xf32>
    %406 = arith.truncf %405 : vector<8x8xf32> to vector<8x8xbf16>
    %407 = vector.extract_strided_slice %2 {offsets = [16, 0], sizes = [8, 32], strides = [1, 1]} : vector<32x32xbf16> to vector<8x32xbf16>
    %cst_138 = arith.constant dense<0.000000e+00> : vector<8x32xf32>
    %408 = tpu.matmul %406, %407, %cst_138 {dimension_numbers = #tpu.dot_dimension_numbers<[1], [0], [0], [1], [0, 0, 1, 1], [], []>} : vector<8x8xbf16>, vector<8x32xbf16>, vector<8x32xf32> -> vector<8x32xf32>
    %409 = arith.addf %384, %408 : vector<8x32xf32>
    %410 = vector.extract_strided_slice %330 {offsets = [0, 24], sizes = [8, 8], strides = [1, 1]} : vector<8x32xf32> to vector<8x8xf32>
    %411 = arith.truncf %410 : vector<8x8xf32> to vector<8x8xbf16>
    %412 = vector.extract_strided_slice %332 {offsets = [0, 24], sizes = [12, 8], strides = [1, 1]} : vector<12x32xf32> to vector<12x8xf32>
    %413 = arith.truncf %412 : vector<12x8xf32> to vector<12x8xbf16>
    %414 = vector.extract_strided_slice %333 {offsets = [0, 24], sizes = [12, 8], strides = [1, 1]} : vector<12x32xf32> to vector<12x8xf32>
    %415 = arith.truncf %414 : vector<12x8xf32> to vector<12x8xbf16>
    %cst_139 = arith.constant dense<0.000000e+00> : vector<8x12xf32>
    %416 = tpu.matmul %411, %413, %cst_139 {dimension_numbers = #tpu.dot_dimension_numbers<[1], [1], [0], [0], [0, 0, 1, 0], [], []>} : vector<8x8xbf16>, vector<12x8xbf16>, vector<8x12xf32> -> vector<8x12xf32>
    %cst_140 = arith.constant 0.353553385 : f32
    %417 = vector.broadcast %cst_140 : f32 to vector<8x12xf32>
    %418 = arith.mulf %416, %417 : vector<8x12xf32>
    %cst_141 = arith.constant dense<0xFF800000> : vector<8xf32>
    %419 = vector.multi_reduction <maximumf>, %418, %cst_141 [1] : vector<8x12xf32> to vector<8xf32>
    %420 = vector.shape_cast %419 : vector<8xf32> to vector<8x1xf32>
    %421 = vector.broadcast %420 : vector<8x1xf32> to vector<8x12xf32>
    %422 = arith.subf %418, %421 : vector<8x12xf32>
    %423 = math.exp %422 : vector<8x12xf32>
    %cst_142 = arith.constant dense<0.000000e+00> : vector<8xf32>
    %424 = vector.multi_reduction <add>, %423, %cst_142 [1] : vector<8x12xf32> to vector<8xf32>
    %425 = vector.shape_cast %424 : vector<8xf32> to vector<8x1xf32>
    %426 = tpu.reciprocal %425 {approx = true} : vector<8x1xf32> -> vector<8x1xf32>
    %427 = arith.truncf %423 : vector<8x12xf32> to vector<8x12xbf16>
    %cst_143 = arith.constant dense<0.000000e+00> : vector<8x8xf32>
    %428 = tpu.matmul %427, %415, %cst_143 {dimension_numbers = #tpu.dot_dimension_numbers<[1], [0], [0], [1], [0, 0, 1, 1], [], []>} : vector<8x12xbf16>, vector<12x8xbf16>, vector<8x8xf32> -> vector<8x8xf32>
    %429 = vector.broadcast %426 : vector<8x1xf32> to vector<8x8xf32>
    %430 = arith.mulf %428, %429 : vector<8x8xf32>
    %431 = arith.truncf %430 : vector<8x8xf32> to vector<8x8xbf16>
    %432 = vector.extract_strided_slice %2 {offsets = [24, 0], sizes = [8, 32], strides = [1, 1]} : vector<32x32xbf16> to vector<8x32xbf16>
    %cst_144 = arith.constant dense<0.000000e+00> : vector<8x32xf32>
    %433 = tpu.matmul %431, %432, %cst_144 {dimension_numbers = #tpu.dot_dimension_numbers<[1], [0], [0], [1], [0, 0, 1, 1], [], []>} : vector<8x8xbf16>, vector<8x32xbf16>, vector<8x32xf32> -> vector<8x32xf32>
    %434 = arith.addf %409, %433 : vector<8x32xf32>
    %cst_145 = arith.constant dense<0.000000e+00> : vector<8xf32>
    %435 = vector.multi_reduction <add>, %434, %cst_145 [1] : vector<8x32xf32> to vector<8xf32>
    %436 = vector.shape_cast %435 : vector<8xf32> to vector<8x1xf32>
    %cst_146 = arith.constant 3.200000e+01 : f32
    %437 = vector.broadcast %cst_146 : f32 to vector<8x1xf32>
    %438 = arith.divf %436, %437 : vector<8x1xf32>
    %439 = vector.broadcast %438 : vector<8x1xf32> to vector<8x32xf32>
    %440 = arith.subf %434, %439 : vector<8x32xf32>
    %441 = arith.mulf %440, %440 : vector<8x32xf32>
    %cst_147 = arith.constant dense<0.000000e+00> : vector<8xf32>
    %442 = vector.multi_reduction <add>, %441, %cst_147 [1] : vector<8x32xf32> to vector<8xf32>
    %443 = vector.shape_cast %442 : vector<8xf32> to vector<8x1xf32>
    %cst_148 = arith.constant 3.200000e+01 : f32
    %444 = vector.broadcast %cst_148 : f32 to vector<8x1xf32>
    %445 = arith.divf %443, %444 : vector<8x1xf32>
    %446 = vector.broadcast %438 : vector<8x1xf32> to vector<8x32xf32>
    %447 = arith.subf %434, %446 : vector<8x32xf32>
    %cst_149 = arith.constant 9.99999974E-6 : f32
    %448 = vector.broadcast %cst_149 : f32 to vector<8x1xf32>
    %449 = arith.addf %445, %448 : vector<8x1xf32>
    %450 = math.rsqrt %449 : vector<8x1xf32>
    %451 = vector.broadcast %450 : vector<8x1xf32> to vector<8x32xf32>
    %452 = arith.mulf %447, %451 : vector<8x32xf32>
    %453 = vector.broadcast %5 : vector<1x32xf32> to vector<8x32xf32>
    %454 = arith.mulf %452, %453 : vector<8x32xf32>
    %455 = vector.broadcast %6 : vector<1x32xf32> to vector<8x32xf32>
    %456 = arith.addf %454, %455 : vector<8x32xf32>
    %457 = arith.truncf %456 : vector<8x32xf32> to vector<8x32xbf16>
    %cst_150 = arith.constant dense<0.000000e+00> : vector<8x96xf32>
    %458 = tpu.matmul %457, %3, %cst_150 {dimension_numbers = #tpu.dot_dimension_numbers<[1], [0], [0], [1], [0, 0, 1, 1], [], []>} : vector<8x32xbf16>, vector<32x96xbf16>, vector<8x96xf32> -> vector<8x96xf32>
    %459 = vector.extract_strided_slice %458 {offsets = [0, 0], sizes = [8, 32], strides = [1, 1]} : vector<8x96xf32> to vector<8x32xf32>
    %460 = vector.extract_strided_slice %458 {offsets = [0, 32], sizes = [8, 32], strides = [1, 1]} : vector<8x96xf32> to vector<8x32xf32>
    %461 = vector.extract_strided_slice %458 {offsets = [0, 64], sizes = [8, 32], strides = [1, 1]} : vector<8x96xf32> to vector<8x32xf32>
    %cst_151 = arith.constant 0.000000e+00 : f32
    %462 = vector.broadcast %cst_151 : f32 to vector<8x32xf32>
    %463 = vector.extract_strided_slice %459 {offsets = [0, 0], sizes = [8, 8], strides = [1, 1]} : vector<8x32xf32> to vector<8x8xf32>
    %464 = arith.truncf %463 : vector<8x8xf32> to vector<8x8xbf16>
    %465 = vector.extract_strided_slice %460 {offsets = [0, 0], sizes = [8, 8], strides = [1, 1]} : vector<8x32xf32> to vector<8x8xf32>
    %466 = arith.truncf %465 : vector<8x8xf32> to vector<8x8xbf16>
    %467 = vector.extract_strided_slice %461 {offsets = [0, 0], sizes = [8, 8], strides = [1, 1]} : vector<8x32xf32> to vector<8x8xf32>
    %468 = arith.truncf %467 : vector<8x8xf32> to vector<8x8xbf16>
    %cst_152 = arith.constant dense<0.000000e+00> : vector<8x8xf32>
    %469 = tpu.matmul %464, %466, %cst_152 {dimension_numbers = #tpu.dot_dimension_numbers<[1], [1], [0], [0], [0, 0, 1, 0], [], []>} : vector<8x8xbf16>, vector<8x8xbf16>, vector<8x8xf32> -> vector<8x8xf32>
    %cst_153 = arith.constant 0.353553385 : f32
    %470 = vector.broadcast %cst_153 : f32 to vector<8x8xf32>
    %471 = arith.mulf %469, %470 : vector<8x8xf32>
    %cst_154 = arith.constant dense<0xFF800000> : vector<8xf32>
    %472 = vector.multi_reduction <maximumf>, %471, %cst_154 [1] : vector<8x8xf32> to vector<8xf32>
    %473 = vector.shape_cast %472 : vector<8xf32> to vector<8x1xf32>
    %474 = vector.broadcast %473 : vector<8x1xf32> to vector<8x8xf32>
    %475 = arith.subf %471, %474 : vector<8x8xf32>
    %476 = math.exp %475 : vector<8x8xf32>
    %cst_155 = arith.constant dense<0.000000e+00> : vector<8xf32>
    %477 = vector.multi_reduction <add>, %476, %cst_155 [1] : vector<8x8xf32> to vector<8xf32>
    %478 = vector.shape_cast %477 : vector<8xf32> to vector<8x1xf32>
    %479 = tpu.reciprocal %478 {approx = true} : vector<8x1xf32> -> vector<8x1xf32>
    %480 = arith.truncf %476 : vector<8x8xf32> to vector<8x8xbf16>
    %cst_156 = arith.constant dense<0.000000e+00> : vector<8x8xf32>
    %481 = tpu.matmul %480, %468, %cst_156 {dimension_numbers = #tpu.dot_dimension_numbers<[1], [0], [0], [1], [0, 0, 1, 1], [], []>} : vector<8x8xbf16>, vector<8x8xbf16>, vector<8x8xf32> -> vector<8x8xf32>
    %482 = vector.broadcast %479 : vector<8x1xf32> to vector<8x8xf32>
    %483 = arith.mulf %481, %482 : vector<8x8xf32>
    %484 = arith.truncf %483 : vector<8x8xf32> to vector<8x8xbf16>
    %485 = vector.extract_strided_slice %4 {offsets = [0, 0], sizes = [8, 32], strides = [1, 1]} : vector<32x32xbf16> to vector<8x32xbf16>
    %cst_157 = arith.constant dense<0.000000e+00> : vector<8x32xf32>
    %486 = tpu.matmul %484, %485, %cst_157 {dimension_numbers = #tpu.dot_dimension_numbers<[1], [0], [0], [1], [0, 0, 1, 1], [], []>} : vector<8x8xbf16>, vector<8x32xbf16>, vector<8x32xf32> -> vector<8x32xf32>
    %487 = arith.addf %462, %486 : vector<8x32xf32>
    %488 = vector.extract_strided_slice %459 {offsets = [0, 8], sizes = [8, 8], strides = [1, 1]} : vector<8x32xf32> to vector<8x8xf32>
    %489 = arith.truncf %488 : vector<8x8xf32> to vector<8x8xbf16>
    %490 = vector.extract_strided_slice %460 {offsets = [0, 8], sizes = [8, 8], strides = [1, 1]} : vector<8x32xf32> to vector<8x8xf32>
    %491 = arith.truncf %490 : vector<8x8xf32> to vector<8x8xbf16>
    %492 = vector.extract_strided_slice %461 {offsets = [0, 8], sizes = [8, 8], strides = [1, 1]} : vector<8x32xf32> to vector<8x8xf32>
    %493 = arith.truncf %492 : vector<8x8xf32> to vector<8x8xbf16>
    %cst_158 = arith.constant dense<0.000000e+00> : vector<8x8xf32>
    %494 = tpu.matmul %489, %491, %cst_158 {dimension_numbers = #tpu.dot_dimension_numbers<[1], [1], [0], [0], [0, 0, 1, 0], [], []>} : vector<8x8xbf16>, vector<8x8xbf16>, vector<8x8xf32> -> vector<8x8xf32>
    %cst_159 = arith.constant 0.353553385 : f32
    %495 = vector.broadcast %cst_159 : f32 to vector<8x8xf32>
    %496 = arith.mulf %494, %495 : vector<8x8xf32>
    %cst_160 = arith.constant dense<0xFF800000> : vector<8xf32>
    %497 = vector.multi_reduction <maximumf>, %496, %cst_160 [1] : vector<8x8xf32> to vector<8xf32>
    %498 = vector.shape_cast %497 : vector<8xf32> to vector<8x1xf32>
    %499 = vector.broadcast %498 : vector<8x1xf32> to vector<8x8xf32>
    %500 = arith.subf %496, %499 : vector<8x8xf32>
    %501 = math.exp %500 : vector<8x8xf32>
    %cst_161 = arith.constant dense<0.000000e+00> : vector<8xf32>
    %502 = vector.multi_reduction <add>, %501, %cst_161 [1] : vector<8x8xf32> to vector<8xf32>
    %503 = vector.shape_cast %502 : vector<8xf32> to vector<8x1xf32>
    %504 = tpu.reciprocal %503 {approx = true} : vector<8x1xf32> -> vector<8x1xf32>
    %505 = arith.truncf %501 : vector<8x8xf32> to vector<8x8xbf16>
    %cst_162 = arith.constant dense<0.000000e+00> : vector<8x8xf32>
    %506 = tpu.matmul %505, %493, %cst_162 {dimension_numbers = #tpu.dot_dimension_numbers<[1], [0], [0], [1], [0, 0, 1, 1], [], []>} : vector<8x8xbf16>, vector<8x8xbf16>, vector<8x8xf32> -> vector<8x8xf32>
    %507 = vector.broadcast %504 : vector<8x1xf32> to vector<8x8xf32>
    %508 = arith.mulf %506, %507 : vector<8x8xf32>
    %509 = arith.truncf %508 : vector<8x8xf32> to vector<8x8xbf16>
    %510 = vector.extract_strided_slice %4 {offsets = [8, 0], sizes = [8, 32], strides = [1, 1]} : vector<32x32xbf16> to vector<8x32xbf16>
    %cst_163 = arith.constant dense<0.000000e+00> : vector<8x32xf32>
    %511 = tpu.matmul %509, %510, %cst_163 {dimension_numbers = #tpu.dot_dimension_numbers<[1], [0], [0], [1], [0, 0, 1, 1], [], []>} : vector<8x8xbf16>, vector<8x32xbf16>, vector<8x32xf32> -> vector<8x32xf32>
    %512 = arith.addf %487, %511 : vector<8x32xf32>
    %513 = vector.extract_strided_slice %459 {offsets = [0, 16], sizes = [8, 8], strides = [1, 1]} : vector<8x32xf32> to vector<8x8xf32>
    %514 = arith.truncf %513 : vector<8x8xf32> to vector<8x8xbf16>
    %515 = vector.extract_strided_slice %460 {offsets = [0, 16], sizes = [8, 8], strides = [1, 1]} : vector<8x32xf32> to vector<8x8xf32>
    %516 = arith.truncf %515 : vector<8x8xf32> to vector<8x8xbf16>
    %517 = vector.extract_strided_slice %461 {offsets = [0, 16], sizes = [8, 8], strides = [1, 1]} : vector<8x32xf32> to vector<8x8xf32>
    %518 = arith.truncf %517 : vector<8x8xf32> to vector<8x8xbf16>
    %cst_164 = arith.constant dense<0.000000e+00> : vector<8x8xf32>
    %519 = tpu.matmul %514, %516, %cst_164 {dimension_numbers = #tpu.dot_dimension_numbers<[1], [1], [0], [0], [0, 0, 1, 0], [], []>} : vector<8x8xbf16>, vector<8x8xbf16>, vector<8x8xf32> -> vector<8x8xf32>
    %cst_165 = arith.constant 0.353553385 : f32
    %520 = vector.broadcast %cst_165 : f32 to vector<8x8xf32>
    %521 = arith.mulf %519, %520 : vector<8x8xf32>
    %cst_166 = arith.constant dense<0xFF800000> : vector<8xf32>
    %522 = vector.multi_reduction <maximumf>, %521, %cst_166 [1] : vector<8x8xf32> to vector<8xf32>
    %523 = vector.shape_cast %522 : vector<8xf32> to vector<8x1xf32>
    %524 = vector.broadcast %523 : vector<8x1xf32> to vector<8x8xf32>
    %525 = arith.subf %521, %524 : vector<8x8xf32>
    %526 = math.exp %525 : vector<8x8xf32>
    %cst_167 = arith.constant dense<0.000000e+00> : vector<8xf32>
    %527 = vector.multi_reduction <add>, %526, %cst_167 [1] : vector<8x8xf32> to vector<8xf32>
    %528 = vector.shape_cast %527 : vector<8xf32> to vector<8x1xf32>
    %529 = tpu.reciprocal %528 {approx = true} : vector<8x1xf32> -> vector<8x1xf32>
    %530 = arith.truncf %526 : vector<8x8xf32> to vector<8x8xbf16>
    %cst_168 = arith.constant dense<0.000000e+00> : vector<8x8xf32>
    %531 = tpu.matmul %530, %518, %cst_168 {dimension_numbers = #tpu.dot_dimension_numbers<[1], [0], [0], [1], [0, 0, 1, 1], [], []>} : vector<8x8xbf16>, vector<8x8xbf16>, vector<8x8xf32> -> vector<8x8xf32>
    %532 = vector.broadcast %529 : vector<8x1xf32> to vector<8x8xf32>
    %533 = arith.mulf %531, %532 : vector<8x8xf32>
    %534 = arith.truncf %533 : vector<8x8xf32> to vector<8x8xbf16>
    %535 = vector.extract_strided_slice %4 {offsets = [16, 0], sizes = [8, 32], strides = [1, 1]} : vector<32x32xbf16> to vector<8x32xbf16>
    %cst_169 = arith.constant dense<0.000000e+00> : vector<8x32xf32>
    %536 = tpu.matmul %534, %535, %cst_169 {dimension_numbers = #tpu.dot_dimension_numbers<[1], [0], [0], [1], [0, 0, 1, 1], [], []>} : vector<8x8xbf16>, vector<8x32xbf16>, vector<8x32xf32> -> vector<8x32xf32>
    %537 = arith.addf %512, %536 : vector<8x32xf32>
    %538 = vector.extract_strided_slice %459 {offsets = [0, 24], sizes = [8, 8], strides = [1, 1]} : vector<8x32xf32> to vector<8x8xf32>
    %539 = arith.truncf %538 : vector<8x8xf32> to vector<8x8xbf16>
    %540 = vector.extract_strided_slice %460 {offsets = [0, 24], sizes = [8, 8], strides = [1, 1]} : vector<8x32xf32> to vector<8x8xf32>
    %541 = arith.truncf %540 : vector<8x8xf32> to vector<8x8xbf16>
    %542 = vector.extract_strided_slice %461 {offsets = [0, 24], sizes = [8, 8], strides = [1, 1]} : vector<8x32xf32> to vector<8x8xf32>
    %543 = arith.truncf %542 : vector<8x8xf32> to vector<8x8xbf16>
    %cst_170 = arith.constant dense<0.000000e+00> : vector<8x8xf32>
    %544 = tpu.matmul %539, %541, %cst_170 {dimension_numbers = #tpu.dot_dimension_numbers<[1], [1], [0], [0], [0, 0, 1, 0], [], []>} : vector<8x8xbf16>, vector<8x8xbf16>, vector<8x8xf32> -> vector<8x8xf32>
    %cst_171 = arith.constant 0.353553385 : f32
    %545 = vector.broadcast %cst_171 : f32 to vector<8x8xf32>
    %546 = arith.mulf %544, %545 : vector<8x8xf32>
    %cst_172 = arith.constant dense<0xFF800000> : vector<8xf32>
    %547 = vector.multi_reduction <maximumf>, %546, %cst_172 [1] : vector<8x8xf32> to vector<8xf32>
    %548 = vector.shape_cast %547 : vector<8xf32> to vector<8x1xf32>
    %549 = vector.broadcast %548 : vector<8x1xf32> to vector<8x8xf32>
    %550 = arith.subf %546, %549 : vector<8x8xf32>
    %551 = math.exp %550 : vector<8x8xf32>
    %cst_173 = arith.constant dense<0.000000e+00> : vector<8xf32>
    %552 = vector.multi_reduction <add>, %551, %cst_173 [1] : vector<8x8xf32> to vector<8xf32>
    %553 = vector.shape_cast %552 : vector<8xf32> to vector<8x1xf32>
    %554 = tpu.reciprocal %553 {approx = true} : vector<8x1xf32> -> vector<8x1xf32>
    %555 = arith.truncf %551 : vector<8x8xf32> to vector<8x8xbf16>
    %cst_174 = arith.constant dense<0.000000e+00> : vector<8x8xf32>
    %556 = tpu.matmul %555, %543, %cst_174 {dimension_numbers = #tpu.dot_dimension_numbers<[1], [0], [0], [1], [0, 0, 1, 1], [], []>} : vector<8x8xbf16>, vector<8x8xbf16>, vector<8x8xf32> -> vector<8x8xf32>
    %557 = vector.broadcast %554 : vector<8x1xf32> to vector<8x8xf32>
    %558 = arith.mulf %556, %557 : vector<8x8xf32>
    %559 = arith.truncf %558 : vector<8x8xf32> to vector<8x8xbf16>
    %560 = vector.extract_strided_slice %4 {offsets = [24, 0], sizes = [8, 32], strides = [1, 1]} : vector<32x32xbf16> to vector<8x32xbf16>
    %cst_175 = arith.constant dense<0.000000e+00> : vector<8x32xf32>
    %561 = tpu.matmul %559, %560, %cst_175 {dimension_numbers = #tpu.dot_dimension_numbers<[1], [0], [0], [1], [0, 0, 1, 1], [], []>} : vector<8x8xbf16>, vector<8x32xbf16>, vector<8x32xf32> -> vector<8x32xf32>
    %562 = arith.addf %537, %561 : vector<8x32xf32>
    %563 = arith.addf %434, %562 : vector<8x32xf32>
    %cst_176 = arith.constant dense<0.000000e+00> : vector<8xf32>
    %564 = vector.multi_reduction <add>, %563, %cst_176 [1] : vector<8x32xf32> to vector<8xf32>
    %565 = vector.shape_cast %564 : vector<8xf32> to vector<8x1xf32>
    %cst_177 = arith.constant 3.200000e+01 : f32
    %566 = vector.broadcast %cst_177 : f32 to vector<8x1xf32>
    %567 = arith.divf %565, %566 : vector<8x1xf32>
    %568 = vector.broadcast %567 : vector<8x1xf32> to vector<8x32xf32>
    %569 = arith.subf %563, %568 : vector<8x32xf32>
    %570 = arith.mulf %569, %569 : vector<8x32xf32>
    %cst_178 = arith.constant dense<0.000000e+00> : vector<8xf32>
    %571 = vector.multi_reduction <add>, %570, %cst_178 [1] : vector<8x32xf32> to vector<8xf32>
    %572 = vector.shape_cast %571 : vector<8xf32> to vector<8x1xf32>
    %cst_179 = arith.constant 3.200000e+01 : f32
    %573 = vector.broadcast %cst_179 : f32 to vector<8x1xf32>
    %574 = arith.divf %572, %573 : vector<8x1xf32>
    %575 = vector.broadcast %567 : vector<8x1xf32> to vector<8x32xf32>
    %576 = arith.subf %563, %575 : vector<8x32xf32>
    %cst_180 = arith.constant 9.99999974E-6 : f32
    %577 = vector.broadcast %cst_180 : f32 to vector<8x1xf32>
    %578 = arith.addf %574, %577 : vector<8x1xf32>
    %579 = math.rsqrt %578 : vector<8x1xf32>
    %580 = vector.broadcast %579 : vector<8x1xf32> to vector<8x32xf32>
    %581 = arith.mulf %576, %580 : vector<8x32xf32>
    %582 = vector.broadcast %7 : vector<1x32xf32> to vector<8x32xf32>
    %583 = arith.mulf %581, %582 : vector<8x32xf32>
    %584 = vector.broadcast %8 : vector<1x32xf32> to vector<8x32xf32>
    %585 = arith.addf %583, %584 : vector<8x32xf32>
    %586 = arith.truncf %585 : vector<8x32xf32> to vector<8x32xbf16>
    %cst_181 = arith.constant dense<0.000000e+00> : vector<8x128xf32>
    %587 = tpu.matmul %586, %9, %cst_181 {dimension_numbers = #tpu.dot_dimension_numbers<[1], [0], [0], [1], [0, 0, 1, 1], [], []>} : vector<8x32xbf16>, vector<32x128xbf16>, vector<8x128xf32> -> vector<8x128xf32>
    %588 = vector.broadcast %10 : vector<1x128xf32> to vector<8x128xf32>
    %589 = arith.addf %587, %588 : vector<8x128xf32>
    %cst_182 = arith.constant 5.000000e-01 : f32
    %590 = vector.broadcast %cst_182 : f32 to vector<8x128xf32>
    %591 = arith.mulf %590, %589 : vector<8x128xf32>
    %cst_183 = arith.constant 0.707106769 : f32
    %592 = vector.broadcast %cst_183 : f32 to vector<8x128xf32>
    %593 = arith.mulf %589, %592 : vector<8x128xf32>
    %594 = math.absf %593 : vector<8x128xf32>
    %cst_184 = arith.constant 0.327591091 : f32
    %595 = vector.broadcast %cst_184 : f32 to vector<8x128xf32>
    %596 = arith.mulf %595, %594 : vector<8x128xf32>
    %cst_185 = arith.constant 1.000000e+00 : f32
    %597 = vector.broadcast %cst_185 : f32 to vector<8x128xf32>
    %598 = arith.addf %597, %596 : vector<8x128xf32>
    %cst_186 = arith.constant 1.000000e+00 : f32
    %599 = vector.broadcast %cst_186 : f32 to vector<8x128xf32>
    %600 = arith.divf %599, %598 : vector<8x128xf32>
    %cst_187 = arith.constant 1.06140542 : f32
    %601 = vector.broadcast %cst_187 : f32 to vector<8x128xf32>
    %602 = arith.mulf %601, %600 : vector<8x128xf32>
    %cst_188 = arith.constant -1.45315206 : f32
    %603 = vector.broadcast %cst_188 : f32 to vector<8x128xf32>
    %604 = arith.addf %602, %603 : vector<8x128xf32>
    %605 = arith.mulf %604, %600 : vector<8x128xf32>
    %cst_189 = arith.constant 1.42141378 : f32
    %606 = vector.broadcast %cst_189 : f32 to vector<8x128xf32>
    %607 = arith.addf %605, %606 : vector<8x128xf32>
    %608 = arith.mulf %607, %600 : vector<8x128xf32>
    %cst_190 = arith.constant -0.284496725 : f32
    %609 = vector.broadcast %cst_190 : f32 to vector<8x128xf32>
    %610 = arith.addf %608, %609 : vector<8x128xf32>
    %611 = arith.mulf %610, %600 : vector<8x128xf32>
    %cst_191 = arith.constant 0.254829586 : f32
    %612 = vector.broadcast %cst_191 : f32 to vector<8x128xf32>
    %613 = arith.addf %611, %612 : vector<8x128xf32>
    %614 = arith.mulf %613, %600 : vector<8x128xf32>
    %cst_192 = arith.constant 0.000000e+00 : f32
    %615 = vector.broadcast %cst_192 : f32 to vector<8x128xf32>
    %616 = arith.subf %615, %594 : vector<8x128xf32>
    %617 = arith.mulf %616, %594 : vector<8x128xf32>
    %618 = math.exp %617 : vector<8x128xf32>
    %619 = arith.mulf %614, %618 : vector<8x128xf32>
    %cst_193 = arith.constant 1.000000e+00 : f32
    %620 = vector.broadcast %cst_193 : f32 to vector<8x128xf32>
    %621 = arith.subf %620, %619 : vector<8x128xf32>
    %cst_194 = arith.constant 0.000000e+00 : f32
    %622 = vector.broadcast %cst_194 : f32 to vector<8x128xf32>
    %623 = arith.cmpf oge, %593, %622 : vector<8x128xf32>
    %cst_195 = arith.constant 0.000000e+00 : f32
    %624 = vector.broadcast %cst_195 : f32 to vector<8x128xf32>
    %625 = arith.subf %624, %621 : vector<8x128xf32>
    %626 = arith.select %623, %621, %625 : vector<8x128xi1>, vector<8x128xf32>
    %cst_196 = arith.constant 1.000000e+00 : f32
    %627 = vector.broadcast %cst_196 : f32 to vector<8x128xf32>
    %628 = arith.addf %627, %626 : vector<8x128xf32>
    %629 = arith.mulf %591, %628 : vector<8x128xf32>
    %630 = arith.truncf %629 : vector<8x128xf32> to vector<8x128xbf16>
    %cst_197 = arith.constant dense<0.000000e+00> : vector<8x32xf32>
    %631 = tpu.matmul %630, %11, %cst_197 {dimension_numbers = #tpu.dot_dimension_numbers<[1], [0], [0], [1], [0, 0, 1, 1], [], []>} : vector<8x128xbf16>, vector<128x32xbf16>, vector<8x32xf32> -> vector<8x32xf32>
    %632 = arith.addf %563, %631 : vector<8x32xf32>
    %633 = vector.broadcast %12 : vector<1x32xf32> to vector<8x32xf32>
    %634 = arith.addf %632, %633 : vector<8x32xf32>
    %635 = arith.truncf %634 : vector<8x32xf32> to vector<8x32xbf16>
    %c1_198 = arith.constant 1 : index
    %c0_199 = arith.constant 0 : index
    %c0_200 = arith.constant 0 : index
    %636 = vector.load %arg16[%c1_198, %c0_199, %c0_200] : memref<2x8x32xbf16, #tpu.memory_space<vmem>>, vector<1x8x32xbf16>
    %637 = vector.shape_cast %636 : vector<1x8x32xbf16> to vector<8x32xbf16>
    %638 = vector.shape_cast %635 : vector<8x32xbf16> to vector<1x8x32xbf16>
    tpu.vector_store %arg16[%c1_198, %c0_199, %c0_200], %638 {strides = array<i32>} : memref<2x8x32xbf16, #tpu.memory_space<vmem>>, vector<1x8x32xbf16>,
    return
  }
  func.func @transform_0(%arg0: i32) -> (i32, i32, i32) {
    %c0_i32 = arith.constant 0 : i32
    %c0_i32_0 = arith.constant 0 : i32
    %c0_i32_1 = arith.constant 0 : i32
    return %arg0, %c0_i32, %c0_i32_0 : i32, i32, i32
  }
  func.func @transform_1(%arg0: i32) -> (i32, i32, i32) {
    %c0_i32 = arith.constant 0 : i32
    %c0_i32_0 = arith.constant 0 : i32
    %c0_i32_1 = arith.constant 0 : i32
    return %arg0, %c0_i32, %c0_i32_0 : i32, i32, i32
  }
  func.func @transform_2(%arg0: i32) -> (i32, i32) {
    %c0_i32 = arith.constant 0 : i32
    %c0_i32_0 = arith.constant 0 : i32
    %c0_i32_1 = arith.constant 0 : i32
    return %c0_i32, %c0_i32_0 : i32, i32
  }
  func.func @transform_3(%arg0: i32) -> (i32, i32) {
    %c0_i32 = arith.constant 0 : i32
    %c0_i32_0 = arith.constant 0 : i32
    %c0_i32_1 = arith.constant 0 : i32
    return %c0_i32, %c0_i32_0 : i32, i32
  }
  func.func @transform_4(%arg0: i32) -> (i32, i32) {
    %c0_i32 = arith.constant 0 : i32
    %c0_i32_0 = arith.constant 0 : i32
    %c0_i32_1 = arith.constant 0 : i32
    return %c0_i32, %c0_i32_0 : i32, i32
  }
  func.func @transform_5(%arg0: i32) -> (i32, i32) {
    %c0_i32 = arith.constant 0 : i32
    %c0_i32_0 = arith.constant 0 : i32
    %c0_i32_1 = arith.constant 0 : i32
    return %c0_i32, %c0_i32_0 : i32, i32
  }
  func.func @transform_6(%arg0: i32) -> (i32, i32) {
    %c0_i32 = arith.constant 0 : i32
    %c0_i32_0 = arith.constant 0 : i32
    %c0_i32_1 = arith.constant 0 : i32
    return %c0_i32, %c0_i32_0 : i32, i32
  }
  func.func @transform_7(%arg0: i32) -> (i32, i32) {
    %c0_i32 = arith.constant 0 : i32
    %c0_i32_0 = arith.constant 0 : i32
    %c0_i32_1 = arith.constant 0 : i32
    return %c0_i32, %c0_i32_0 : i32, i32
  }
  func.func @transform_8(%arg0: i32) -> (i32, i32) {
    %c0_i32 = arith.constant 0 : i32
    %c0_i32_0 = arith.constant 0 : i32
    %c0_i32_1 = arith.constant 0 : i32
    return %c0_i32, %c0_i32_0 : i32, i32
  }
  func.func @transform_9(%arg0: i32) -> (i32, i32) {
    %c0_i32 = arith.constant 0 : i32
    %c0_i32_0 = arith.constant 0 : i32
    %c0_i32_1 = arith.constant 0 : i32
    return %c0_i32, %c0_i32_0 : i32, i32
  }
  func.func @transform_10(%arg0: i32) -> (i32, i32) {
    %c0_i32 = arith.constant 0 : i32
    %c0_i32_0 = arith.constant 0 : i32
    %c0_i32_1 = arith.constant 0 : i32
    return %c0_i32, %c0_i32_0 : i32, i32
  }
  func.func @transform_11(%arg0: i32) -> (i32, i32) {
    %c0_i32 = arith.constant 0 : i32
    %c0_i32_0 = arith.constant 0 : i32
    %c0_i32_1 = arith.constant 0 : i32
    return %c0_i32, %c0_i32_0 : i32, i32
  }
  func.func @transform_12(%arg0: i32) -> (i32, i32) {
    %c0_i32 = arith.constant 0 : i32
    %c0_i32_0 = arith.constant 0 : i32
    %c0_i32_1 = arith.constant 0 : i32
    return %c0_i32, %c0_i32_0 : i32, i32
  }
  func.func @transform_13(%arg0: i32) -> (i32, i32) {
    %c0_i32 = arith.constant 0 : i32
    %c0_i32_0 = arith.constant 0 : i32
    %c0_i32_1 = arith.constant 0 : i32
    return %c0_i32, %c0_i32_0 : i32, i32
  }
  func.func @transform_14(%arg0: i32) -> (i32, i32) {
    %c0_i32 = arith.constant 0 : i32
    %c0_i32_0 = arith.constant 0 : i32
    %c0_i32_1 = arith.constant 0 : i32
    return %c0_i32, %c0_i32_0 : i32, i32
  }
  func.func @transform_15(%arg0: i32) -> (i32, i32, i32) {
    %c0_i32 = arith.constant 0 : i32
    %c0_i32_0 = arith.constant 0 : i32
    %c0_i32_1 = arith.constant 0 : i32
    return %arg0, %c0_i32, %c0_i32_0 : i32, i32, i32
  }
}

module attributes {stable_mosaic.version = 11 : i64} {
  func.func @_fused_block_kernel(%arg0: i32, %arg1: memref<2x8x32xbf16, #tpu.memory_space<vmem>>, %arg2: memref<2x12x16xbf16, #tpu.memory_space<vmem>>, %arg3: memref<32x32xbf16, #tpu.memory_space<vmem>>, %arg4: memref<16x64xbf16, #tpu.memory_space<vmem>>, %arg5: memref<32x32xbf16, #tpu.memory_space<vmem>>, %arg6: memref<32x96xbf16, #tpu.memory_space<vmem>>, %arg7: memref<32x32xbf16, #tpu.memory_space<vmem>>, %arg8: memref<1x32xf32, #tpu.memory_space<vmem>>, %arg9: memref<1x32xf32, #tpu.memory_space<vmem>>, %arg10: memref<1x32xf32, #tpu.memory_space<vmem>>, %arg11: memref<1x32xf32, #tpu.memory_space<vmem>>, %arg12: memref<32x128xbf16, #tpu.memory_space<vmem>>, %arg13: memref<1x128xf32, #tpu.memory_space<vmem>>, %arg14: memref<128x32xbf16, #tpu.memory_space<vmem>>, %arg15: memref<1x32xf32, #tpu.memory_space<vmem>>, %arg16: memref<2x8x32xbf16, #tpu.memory_space<vmem>>) attributes {dimension_semantics = [#tpu.dimension_semantics<parallel>], iteration_bounds = array<i64: 2>, scalar_prefetch = 0 : i64, scratch_operands = 0 : i64, tpu.core_type = #tpu.core_type<tc>, window_params = [{transform_indices = @transform_0, window_bounds = array<i64: 2, 8, 32>}, {transform_indices = @transform_1, window_bounds = array<i64: 2, 12, 16>}, {pipeline_mode = #tpu.pipeline_mode<synchronous>, transform_indices = @transform_2, window_bounds = array<i64: 32, 32>}, {pipeline_mode = #tpu.pipeline_mode<synchronous>, transform_indices = @transform_3, window_bounds = array<i64: 16, 64>}, {pipeline_mode = #tpu.pipeline_mode<synchronous>, transform_indices = @transform_4, window_bounds = array<i64: 32, 32>}, {pipeline_mode = #tpu.pipeline_mode<synchronous>, transform_indices = @transform_5, window_bounds = array<i64: 32, 96>}, {pipeline_mode = #tpu.pipeline_mode<synchronous>, transform_indices = @transform_6, window_bounds = array<i64: 32, 32>}, {pipeline_mode = #tpu.pipeline_mode<synchronous>, transform_indices = @transform_7, window_bounds = array<i64: 1, 32>}, {pipeline_mode = #tpu.pipeline_mode<synchronous>, transform_indices = @transform_8, window_bounds = array<i64: 1, 32>}, {pipeline_mode = #tpu.pipeline_mode<synchronous>, transform_indices = @transform_9, window_bounds = array<i64: 1, 32>}, {pipeline_mode = #tpu.pipeline_mode<synchronous>, transform_indices = @transform_10, window_bounds = array<i64: 1, 32>}, {pipeline_mode = #tpu.pipeline_mode<synchronous>, transform_indices = @transform_11, window_bounds = array<i64: 32, 128>}, {pipeline_mode = #tpu.pipeline_mode<synchronous>, transform_indices = @transform_12, window_bounds = array<i64: 1, 128>}, {pipeline_mode = #tpu.pipeline_mode<synchronous>, transform_indices = @transform_13, window_bounds = array<i64: 128, 32>}, {pipeline_mode = #tpu.pipeline_mode<synchronous>, transform_indices = @transform_14, window_bounds = array<i64: 1, 32>}, {transform_indices = @transform_15, window_bounds = array<i64: 2, 8, 32>}]} {
    %c0 = arith.constant 0 : index
    %c0_0 = arith.constant 0 : index
    %0 = vector.load %arg3[%c0, %c0_0] : memref<32x32xbf16, #tpu.memory_space<vmem>>, vector<32x32xbf16>
    %c0_1 = arith.constant 0 : index
    %c0_2 = arith.constant 0 : index
    %1 = vector.load %arg4[%c0_1, %c0_2] : memref<16x64xbf16, #tpu.memory_space<vmem>>, vector<16x64xbf16>
    %c0_3 = arith.constant 0 : index
    %c0_4 = arith.constant 0 : index
    %2 = vector.load %arg5[%c0_3, %c0_4] : memref<32x32xbf16, #tpu.memory_space<vmem>>, vector<32x32xbf16>
    %c0_5 = arith.constant 0 : index
    %c0_6 = arith.constant 0 : index
    %3 = vector.load %arg6[%c0_5, %c0_6] : memref<32x96xbf16, #tpu.memory_space<vmem>>, vector<32x96xbf16>
    %c0_7 = arith.constant 0 : index
    %c0_8 = arith.constant 0 : index
    %4 = vector.load %arg7[%c0_7, %c0_8] : memref<32x32xbf16, #tpu.memory_space<vmem>>, vector<32x32xbf16>
    %c0_9 = arith.constant 0 : index
    %c0_10 = arith.constant 0 : index
    %5 = vector.load %arg8[%c0_9, %c0_10] : memref<1x32xf32, #tpu.memory_space<vmem>>, vector<1x32xf32>
    %c0_11 = arith.constant 0 : index
    %c0_12 = arith.constant 0 : index
    %6 = vector.load %arg9[%c0_11, %c0_12] : memref<1x32xf32, #tpu.memory_space<vmem>>, vector<1x32xf32>
    %c0_13 = arith.constant 0 : index
    %c0_14 = arith.constant 0 : index
    %7 = vector.load %arg10[%c0_13, %c0_14] : memref<1x32xf32, #tpu.memory_space<vmem>>, vector<1x32xf32>
    %c0_15 = arith.constant 0 : index
    %c0_16 = arith.constant 0 : index
    %8 = vector.load %arg11[%c0_15, %c0_16] : memref<1x32xf32, #tpu.memory_space<vmem>>, vector<1x32xf32>
    %c0_17 = arith.constant 0 : index
    %c0_18 = arith.constant 0 : index
    %9 = vector.load %arg12[%c0_17, %c0_18] : memref<32x128xbf16, #tpu.memory_space<vmem>>, vector<32x128xbf16>
    %c0_19 = arith.constant 0 : index
    %c0_20 = arith.constant 0 : index
    %10 = vector.load %arg13[%c0_19, %c0_20] : memref<1x128xf32, #tpu.memory_space<vmem>>, vector<1x128xf32>
    %c0_21 = arith.constant 0 : index
    %c0_22 = arith.constant 0 : index
    %11 = vector.load %arg14[%c0_21, %c0_22] : memref<128x32xbf16, #tpu.memory_space<vmem>>, vector<128x32xbf16>
    %c0_23 = arith.constant 0 : index
    %c0_24 = arith.constant 0 : index
    %12 = vector.load %arg15[%c0_23, %c0_24] : memref<1x32xf32, #tpu.memory_space<vmem>>, vector<1x32xf32>
    %c0_25 = arith.constant 0 : index
    %c0_26 = arith.constant 0 : index
    %c0_27 = arith.constant 0 : index
    %13 = vector.load %arg1[%c0_25, %c0_26, %c0_27] : memref<2x8x32xbf16, #tpu.memory_space<vmem>>, vector<1x8x32xbf16>
    %14 = vector.shape_cast %13 : vector<1x8x32xbf16> to vector<8x32xbf16>
    %c0_28 = arith.constant 0 : index
    %c0_29 = arith.constant 0 : index
    %c0_30 = arith.constant 0 : index
    %15 = vector.load %arg2[%c0_28, %c0_29, %c0_30] : memref<2x12x16xbf16, #tpu.memory_space<vmem>>, vector<1x12x16xbf16>
    %16 = vector.shape_cast %15 : vector<1x12x16xbf16> to vector<12x16xbf16>
    %cst = arith.constant dense<0.000000e+00> : vector<8x32xf32>
    %17 = tpu.matmul %14, %0, %cst {dimension_numbers = #tpu.dot_dimension_numbers<[1], [0], [0], [1], [0, 0, 1, 1], [], []>} : vector<8x32xbf16>, vector<32x32xbf16>, vector<8x32xf32> -> vector<8x32xf32>
    %cst_31 = arith.constant dense<0.000000e+00> : vector<12x64xf32>
    %18 = tpu.matmul %16, %1, %cst_31 {dimension_numbers = #tpu.dot_dimension_numbers<[1], [0], [0], [1], [0, 0, 1, 1], [], []>} : vector<12x16xbf16>, vector<16x64xbf16>, vector<12x64xf32> -> vector<12x64xf32>
    %19 = vector.extract_strided_slice %18 {offsets = [0, 0], sizes = [12, 32], strides = [1, 1]} : vector<12x64xf32> to vector<12x32xf32>
    %20 = vector.extract_strided_slice %18 {offsets = [0, 32], sizes = [12, 32], strides = [1, 1]} : vector<12x64xf32> to vector<12x32xf32>
    %cst_32 = arith.constant 0.000000e+00 : f32
    %21 = vector.broadcast %cst_32 : f32 to vector<8x32xf32>
    %22 = vector.extract_strided_slice %17 {offsets = [0, 0], sizes = [8, 8], strides = [1, 1]} : vector<8x32xf32> to vector<8x8xf32>
    %23 = arith.truncf %22 : vector<8x8xf32> to vector<8x8xbf16>
    %24 = vector.extract_strided_slice %19 {offsets = [0, 0], sizes = [12, 8], strides = [1, 1]} : vector<12x32xf32> to vector<12x8xf32>
    %25 = arith.truncf %24 : vector<12x8xf32> to vector<12x8xbf16>
    %26 = vector.extract_strided_slice %20 {offsets = [0, 0], sizes = [12, 8], strides = [1, 1]} : vector<12x32xf32> to vector<12x8xf32>
    %27 = arith.truncf %26 : vector<12x8xf32> to vector<12x8xbf16>
    %cst_33 = arith.constant dense<0.000000e+00> : vector<8x12xf32>
    %28 = tpu.matmul %23, %25, %cst_33 {dimension_numbers = #tpu.dot_dimension_numbers<[1], [1], [0], [0], [0, 0, 1, 0], [], []>} : vector<8x8xbf16>, vector<12x8xbf16>, vector<8x12xf32> -> vector<8x12xf32>
    %cst_34 = arith.constant 0.353553385 : f32
    %29 = vector.broadcast %cst_34 : f32 to vector<8x12xf32>
    %30 = arith.mulf %28, %29 : vector<8x12xf32>
    %cst_35 = arith.constant dense<0xFF800000> : vector<8xf32>
    %31 = vector.multi_reduction <maximumf>, %30, %cst_35 [1] : vector<8x12xf32> to vector<8xf32>
    %32 = vector.shape_cast %31 : vector<8xf32> to vector<8x1xf32>
    %33 = vector.broadcast %32 : vector<8x1xf32> to vector<8x12xf32>
    %34 = arith.subf %30, %33 : vector<8x12xf32>
    %35 = math.exp %34 : vector<8x12xf32>
    %cst_36 = arith.constant dense<0.000000e+00> : vector<8xf32>
    %36 = vector.multi_reduction <add>, %35, %cst_36 [1] : vector<8x12xf32> to vector<8xf32>
    %37 = vector.shape_cast %36 : vector<8xf32> to vector<8x1xf32>
    %38 = tpu.reciprocal %37 {approx = true} : vector<8x1xf32> -> vector<8x1xf32>
    %39 = arith.truncf %35 : vector<8x12xf32> to vector<8x12xbf16>
    %cst_37 = arith.constant dense<0.000000e+00> : vector<8x8xf32>
    %40 = tpu.matmul %39, %27, %cst_37 {dimension_numbers = #tpu.dot_dimension_numbers<[1], [0], [0], [1], [0, 0, 1, 1], [], []>} : vector<8x12xbf16>, vector<12x8xbf16>, vector<8x8xf32> -> vector<8x8xf32>
    %41 = vector.broadcast %38 : vector<8x1xf32> to vector<8x8xf32>
    %42 = arith.mulf %40, %41 : vector<8x8xf32>
    %43 = arith.truncf %42 : vector<8x8xf32> to vector<8x8xbf16>
    %44 = vector.extract_strided_slice %2 {offsets = [0, 0], sizes = [8, 32], strides = [1, 1]} : vector<32x32xbf16> to vector<8x32xbf16>
    %cst_38 = arith.constant dense<0.000000e+00> : vector<8x32xf32>
    %45 = tpu.matmul %43, %44, %cst_38 {dimension_numbers = #tpu.dot_dimension_numbers<[1], [0], [0], [1], [0, 0, 1, 1], [], []>} : vector<8x8xbf16>, vector<8x32xbf16>, vector<8x32xf32> -> vector<8x32xf32>
    %46 = arith.addf %21, %45 : vector<8x32xf32>
    %47 = vector.extract_strided_slice %17 {offsets = [0, 8], sizes = [8, 8], strides = [1, 1]} : vector<8x32xf32> to vector<8x8xf32>
    %48 = arith.truncf %47 : vector<8x8xf32> to vector<8x8xbf16>
    %49 = vector.extract_strided_slice %19 {offsets = [0, 8], sizes = [12, 8], strides = [1, 1]} : vector<12x32xf32> to vector<12x8xf32>
    %50 = arith.truncf %49 : vector<12x8xf32> to vector<12x8xbf16>
    %51 = vector.extract_strided_slice %20 {offsets = [0, 8], sizes = [12, 8], strides = [1, 1]} : vector<12x32xf32> to vector<12x8xf32>
    %52 = arith.truncf %51 : vector<12x8xf32> to vector<12x8xbf16>
    %cst_39 = arith.constant dense<0.000000e+00> : vector<8x12xf32>
    %53 = tpu.matmul %48, %50, %cst_39 {dimension_numbers = #tpu.dot_dimension_numbers<[1], [1], [0], [0], [0, 0, 1, 0], [], []>} : vector<8x8xbf16>, vector<12x8xbf16>, vector<8x12xf32> -> vector<8x12xf32>
    %cst_40 = arith.constant 0.353553385 : f32
    %54 = vector.broadcast %cst_40 : f32 to vector<8x12xf32>
    %55 = arith.mulf %53, %54 : vector<8x12xf32>
    %cst_41 = arith.constant dense<0xFF800000> : vector<8xf32>
    %56 = vector.multi_reduction <maximumf>, %55, %cst_41 [1] : vector<8x12xf32> to vector<8xf32>
    %57 = vector.shape_cast %56 : vector<8xf32> to vector<8x1xf32>
    %58 = vector.broadcast %57 : vector<8x1xf32> to vector<8x12xf32>
    %59 = arith.subf %55, %58 : vector<8x12xf32>
    %60 = math.exp %59 : vector<8x12xf32>
    %cst_42 = arith.constant dense<0.000000e+00> : vector<8xf32>
    %61 = vector.multi_reduction <add>, %60, %cst_42 [1] : vector<8x12xf32> to vector<8xf32>
    %62 = vector.shape_cast %61 : vector<8xf32> to vector<8x1xf32>
    %63 = tpu.reciprocal %62 {approx = true} : vector<8x1xf32> -> vector<8x1xf32>
    %64 = arith.truncf %60 : vector<8x12xf32> to vector<8x12xbf16>
    %cst_43 = arith.constant dense<0.000000e+00> : vector<8x8xf32>
    %65 = tpu.matmul %64, %52, %cst_43 {dimension_numbers = #tpu.dot_dimension_numbers<[1], [0], [0], [1], [0, 0, 1, 1], [], []>} : vector<8x12xbf16>, vector<12x8xbf16>, vector<8x8xf32> -> vector<8x8xf32>
    %66 = vector.broadcast %63 : vector<8x1xf32> to vector<8x8xf32>
    %67 = arith.mulf %65, %66 : vector<8x8xf32>
    %68 = arith.truncf %67 : vector<8x8xf32> to vector<8x8xbf16>
    %69 = vector.extract_strided_slice %2 {offsets = [8, 0], sizes = [8, 32], strides = [1, 1]} : vector<32x32xbf16> to vector<8x32xbf16>
    %cst_44 = arith.constant dense<0.000000e+00> : vector<8x32xf32>
    %70 = tpu.matmul %68, %69, %cst_44 {dimension_numbers = #tpu.dot_dimension_numbers<[1], [0], [0], [1], [0, 0, 1, 1], [], []>} : vector<8x8xbf16>, vector<8x32xbf16>, vector<8x32xf32> -> vector<8x32xf32>
    %71 = arith.addf %46, %70 : vector<8x32xf32>
    %72 = vector.extract_strided_slice %17 {offsets = [0, 16], sizes = [8, 8], strides = [1, 1]} : vector<8x32xf32> to vector<8x8xf32>
    %73 = arith.truncf %72 : vector<8x8xf32> to vector<8x8xbf16>
    %74 = vector.extract_strided_slice %19 {offsets = [0, 16], sizes = [12, 8], strides = [1, 1]} : vector<12x32xf32> to vector<12x8xf32>
    %75 = arith.truncf %74 : vector<12x8xf32> to vector<12x8xbf16>
    %76 = vector.extract_strided_slice %20 {offsets = [0, 16], sizes = [12, 8], strides = [1, 1]} : vector<12x32xf32> to vector<12x8xf32>
    %77 = arith.truncf %76 : vector<12x8xf32> to vector<12x8xbf16>
    %cst_45 = arith.constant dense<0.000000e+00> : vector<8x12xf32>
    %78 = tpu.matmul %73, %75, %cst_45 {dimension_numbers = #tpu.dot_dimension_numbers<[1], [1], [0], [0], [0, 0, 1, 0], [], []>} : vector<8x8xbf16>, vector<12x8xbf16>, vector<8x12xf32> -> vector<8x12xf32>
    %cst_46 = arith.constant 0.353553385 : f32
    %79 = vector.broadcast %cst_46 : f32 to vector<8x12xf32>
    %80 = arith.mulf %78, %79 : vector<8x12xf32>
    %cst_47 = arith.constant dense<0xFF800000> : vector<8xf32>
    %81 = vector.multi_reduction <maximumf>, %80, %cst_47 [1] : vector<8x12xf32> to vector<8xf32>
    %82 = vector.shape_cast %81 : vector<8xf32> to vector<8x1xf32>
    %83 = vector.broadcast %82 : vector<8x1xf32> to vector<8x12xf32>
    %84 = arith.subf %80, %83 : vector<8x12xf32>
    %85 = math.exp %84 : vector<8x12xf32>
    %cst_48 = arith.constant dense<0.000000e+00> : vector<8xf32>
    %86 = vector.multi_reduction <add>, %85, %cst_48 [1] : vector<8x12xf32> to vector<8xf32>
    %87 = vector.shape_cast %86 : vector<8xf32> to vector<8x1xf32>
    %88 = tpu.reciprocal %87 {approx = true} : vector<8x1xf32> -> vector<8x1xf32>
    %89 = arith.truncf %85 : vector<8x12xf32> to vector<8x12xbf16>
    %cst_49 = arith.constant dense<0.000000e+00> : vector<8x8xf32>
    %90 = tpu.matmul %89, %77, %cst_49 {dimension_numbers = #tpu.dot_dimension_numbers<[1], [0], [0], [1], [0, 0, 1, 1], [], []>} : vector<8x12xbf16>, vector<12x8xbf16>, vector<8x8xf32> -> vector<8x8xf32>
    %91 = vector.broadcast %88 : vector<8x1xf32> to vector<8x8xf32>
    %92 = arith.mulf %90, %91 : vector<8x8xf32>
    %93 = arith.truncf %92 : vector<8x8xf32> to vector<8x8xbf16>
    %94 = vector.extract_strided_slice %2 {offsets = [16, 0], sizes = [8, 32], strides = [1, 1]} : vector<32x32xbf16> to vector<8x32xbf16>
    %cst_50 = arith.constant dense<0.000000e+00> : vector<8x32xf32>
    %95 = tpu.matmul %93, %94, %cst_50 {dimension_numbers = #tpu.dot_dimension_numbers<[1], [0], [0], [1], [0, 0, 1, 1], [], []>} : vector<8x8xbf16>, vector<8x32xbf16>, vector<8x32xf32> -> vector<8x32xf32>
    %96 = arith.addf %71, %95 : vector<8x32xf32>
    %97 = vector.extract_strided_slice %17 {offsets = [0, 24], sizes = [8, 8], strides = [1, 1]} : vector<8x32xf32> to vector<8x8xf32>
    %98 = arith.truncf %97 : vector<8x8xf32> to vector<8x8xbf16>
    %99 = vector.extract_strided_slice %19 {offsets = [0, 24], sizes = [12, 8], strides = [1, 1]} : vector<12x32xf32> to vector<12x8xf32>
    %100 = arith.truncf %99 : vector<12x8xf32> to vector<12x8xbf16>
    %101 = vector.extract_strided_slice %20 {offsets = [0, 24], sizes = [12, 8], strides = [1, 1]} : vector<12x32xf32> to vector<12x8xf32>
    %102 = arith.truncf %101 : vector<12x8xf32> to vector<12x8xbf16>
    %cst_51 = arith.constant dense<0.000000e+00> : vector<8x12xf32>
    %103 = tpu.matmul %98, %100, %cst_51 {dimension_numbers = #tpu.dot_dimension_numbers<[1], [1], [0], [0], [0, 0, 1, 0], [], []>} : vector<8x8xbf16>, vector<12x8xbf16>, vector<8x12xf32> -> vector<8x12xf32>
    %cst_52 = arith.constant 0.353553385 : f32
    %104 = vector.broadcast %cst_52 : f32 to vector<8x12xf32>
    %105 = arith.mulf %103, %104 : vector<8x12xf32>
    %cst_53 = arith.constant dense<0xFF800000> : vector<8xf32>
    %106 = vector.multi_reduction <maximumf>, %105, %cst_53 [1] : vector<8x12xf32> to vector<8xf32>
    %107 = vector.shape_cast %106 : vector<8xf32> to vector<8x1xf32>
    %108 = vector.broadcast %107 : vector<8x1xf32> to vector<8x12xf32>
    %109 = arith.subf %105, %108 : vector<8x12xf32>
    %110 = math.exp %109 : vector<8x12xf32>
    %cst_54 = arith.constant dense<0.000000e+00> : vector<8xf32>
    %111 = vector.multi_reduction <add>, %110, %cst_54 [1] : vector<8x12xf32> to vector<8xf32>
    %112 = vector.shape_cast %111 : vector<8xf32> to vector<8x1xf32>
    %113 = tpu.reciprocal %112 {approx = true} : vector<8x1xf32> -> vector<8x1xf32>
    %114 = arith.truncf %110 : vector<8x12xf32> to vector<8x12xbf16>
    %cst_55 = arith.constant dense<0.000000e+00> : vector<8x8xf32>
    %115 = tpu.matmul %114, %102, %cst_55 {dimension_numbers = #tpu.dot_dimension_numbers<[1], [0], [0], [1], [0, 0, 1, 1], [], []>} : vector<8x12xbf16>, vector<12x8xbf16>, vector<8x8xf32> -> vector<8x8xf32>
    %116 = vector.broadcast %113 : vector<8x1xf32> to vector<8x8xf32>
    %117 = arith.mulf %115, %116 : vector<8x8xf32>
    %118 = arith.truncf %117 : vector<8x8xf32> to vector<8x8xbf16>
    %119 = vector.extract_strided_slice %2 {offsets = [24, 0], sizes = [8, 32], strides = [1, 1]} : vector<32x32xbf16> to vector<8x32xbf16>
    %cst_56 = arith.constant dense<0.000000e+00> : vector<8x32xf32>
    %120 = tpu.matmul %118, %119, %cst_56 {dimension_numbers = #tpu.dot_dimension_numbers<[1], [0], [0], [1], [0, 0, 1, 1], [], []>} : vector<8x8xbf16>, vector<8x32xbf16>, vector<8x32xf32> -> vector<8x32xf32>
    %121 = arith.addf %96, %120 : vector<8x32xf32>
    %cst_57 = arith.constant dense<0.000000e+00> : vector<8xf32>
    %122 = vector.multi_reduction <add>, %121, %cst_57 [1] : vector<8x32xf32> to vector<8xf32>
    %123 = vector.shape_cast %122 : vector<8xf32> to vector<8x1xf32>
    %cst_58 = arith.constant 3.200000e+01 : f32
    %124 = vector.broadcast %cst_58 : f32 to vector<8x1xf32>
    %125 = arith.divf %123, %124 : vector<8x1xf32>
    %126 = vector.broadcast %125 : vector<8x1xf32> to vector<8x32xf32>
    %127 = arith.subf %121, %126 : vector<8x32xf32>
    %128 = arith.mulf %127, %127 : vector<8x32xf32>
    %cst_59 = arith.constant dense<0.000000e+00> : vector<8xf32>
    %129 = vector.multi_reduction <add>, %128, %cst_59 [1] : vector<8x32xf32> to vector<8xf32>
    %130 = vector.shape_cast %129 : vector<8xf32> to vector<8x1xf32>
    %cst_60 = arith.constant 3.200000e+01 : f32
    %131 = vector.broadcast %cst_60 : f32 to vector<8x1xf32>
    %132 = arith.divf %130, %131 : vector<8x1xf32>
    %133 = vector.broadcast %125 : vector<8x1xf32> to vector<8x32xf32>
    %134 = arith.subf %121, %133 : vector<8x32xf32>
    %cst_61 = arith.constant 9.99999974E-6 : f32
    %135 = vector.broadcast %cst_61 : f32 to vector<8x1xf32>
    %136 = arith.addf %132, %135 : vector<8x1xf32>
    %137 = math.rsqrt %136 : vector<8x1xf32>
    %138 = vector.broadcast %137 : vector<8x1xf32> to vector<8x32xf32>
    %139 = arith.mulf %134, %138 : vector<8x32xf32>
    %140 = vector.broadcast %5 : vector<1x32xf32> to vector<8x32xf32>
    %141 = arith.mulf %139, %140 : vector<8x32xf32>
    %142 = vector.broadcast %6 : vector<1x32xf32> to vector<8x32xf32>
    %143 = arith.addf %141, %142 : vector<8x32xf32>
    %144 = arith.truncf %143 : vector<8x32xf32> to vector<8x32xbf16>
    %cst_62 = arith.constant dense<0.000000e+00> : vector<8x96xf32>
    %145 = tpu.matmul %144, %3, %cst_62 {dimension_numbers = #tpu.dot_dimension_numbers<[1], [0], [0], [1], [0, 0, 1, 1], [], []>} : vector<8x32xbf16>, vector<32x96xbf16>, vector<8x96xf32> -> vector<8x96xf32>
    %146 = vector.extract_strided_slice %145 {offsets = [0, 0], sizes = [8, 32], strides = [1, 1]} : vector<8x96xf32> to vector<8x32xf32>
    %147 = vector.extract_strided_slice %145 {offsets = [0, 32], sizes = [8, 32], strides = [1, 1]} : vector<8x96xf32> to vector<8x32xf32>
    %148 = vector.extract_strided_slice %145 {offsets = [0, 64], sizes = [8, 32], strides = [1, 1]} : vector<8x96xf32> to vector<8x32xf32>
    %cst_63 = arith.constant 0.000000e+00 : f32
    %149 = vector.broadcast %cst_63 : f32 to vector<8x32xf32>
    %150 = vector.extract_strided_slice %146 {offsets = [0, 0], sizes = [8, 8], strides = [1, 1]} : vector<8x32xf32> to vector<8x8xf32>
    %151 = arith.truncf %150 : vector<8x8xf32> to vector<8x8xbf16>
    %152 = vector.extract_strided_slice %147 {offsets = [0, 0], sizes = [8, 8], strides = [1, 1]} : vector<8x32xf32> to vector<8x8xf32>
    %153 = arith.truncf %152 : vector<8x8xf32> to vector<8x8xbf16>
    %154 = vector.extract_strided_slice %148 {offsets = [0, 0], sizes = [8, 8], strides = [1, 1]} : vector<8x32xf32> to vector<8x8xf32>
    %155 = arith.truncf %154 : vector<8x8xf32> to vector<8x8xbf16>
    %cst_64 = arith.constant dense<0.000000e+00> : vector<8x8xf32>
    %156 = tpu.matmul %151, %153, %cst_64 {dimension_numbers = #tpu.dot_dimension_numbers<[1], [1], [0], [0], [0, 0, 1, 0], [], []>} : vector<8x8xbf16>, vector<8x8xbf16>, vector<8x8xf32> -> vector<8x8xf32>
    %cst_65 = arith.constant 0.353553385 : f32
    %157 = vector.broadcast %cst_65 : f32 to vector<8x8xf32>
    %158 = arith.mulf %156, %157 : vector<8x8xf32>
    %cst_66 = arith.constant dense<0xFF800000> : vector<8xf32>
    %159 = vector.multi_reduction <maximumf>, %158, %cst_66 [1] : vector<8x8xf32> to vector<8xf32>
    %160 = vector.shape_cast %159 : vector<8xf32> to vector<8x1xf32>
    %161 = vector.broadcast %160 : vector<8x1xf32> to vector<8x8xf32>
    %162 = arith.subf %158, %161 : vector<8x8xf32>
    %163 = math.exp %162 : vector<8x8xf32>
    %cst_67 = arith.constant dense<0.000000e+00> : vector<8xf32>
    %164 = vector.multi_reduction <add>, %163, %cst_67 [1] : vector<8x8xf32> to vector<8xf32>
    %165 = vector.shape_cast %164 : vector<8xf32> to vector<8x1xf32>
    %166 = tpu.reciprocal %165 {approx = true} : vector<8x1xf32> -> vector<8x1xf32>
    %167 = arith.truncf %163 : vector<8x8xf32> to vector<8x8xbf16>
    %cst_68 = arith.constant dense<0.000000e+00> : vector<8x8xf32>
    %168 = tpu.matmul %167, %155, %cst_68 {dimension_numbers = #tpu.dot_dimension_numbers<[1], [0], [0], [1], [0, 0, 1, 1], [], []>} : vector<8x8xbf16>, vector<8x8xbf16>, vector<8x8xf32> -> vector<8x8xf32>
    %169 = vector.broadcast %166 : vector<8x1xf32> to vector<8x8xf32>
    %170 = arith.mulf %168, %169 : vector<8x8xf32>
    %171 = arith.truncf %170 : vector<8x8xf32> to vector<8x8xbf16>
    %172 = vector.extract_strided_slice %4 {offsets = [0, 0], sizes = [8, 32], strides = [1, 1]} : vector<32x32xbf16> to vector<8x32xbf16>
    %cst_69 = arith.constant dense<0.000000e+00> : vector<8x32xf32>
    %173 = tpu.matmul %171, %172, %cst_69 {dimension_numbers = #tpu.dot_dimension_numbers<[1], [0], [0], [1], [0, 0, 1, 1], [], []>} : vector<8x8xbf16>, vector<8x32xbf16>, vector<8x32xf32> -> vector<8x32xf32>
    %174 = arith.addf %149, %173 : vector<8x32xf32>
    %175 = vector.extract_strided_slice %146 {offsets = [0, 8], sizes = [8, 8], strides = [1, 1]} : vector<8x32xf32> to vector<8x8xf32>
    %176 = arith.truncf %175 : vector<8x8xf32> to vector<8x8xbf16>
    %177 = vector.extract_strided_slice %147 {offsets = [0, 8], sizes = [8, 8], strides = [1, 1]} : vector<8x32xf32> to vector<8x8xf32>
    %178 = arith.truncf %177 : vector<8x8xf32> to vector<8x8xbf16>
    %179 = vector.extract_strided_slice %148 {offsets = [0, 8], sizes = [8, 8], strides = [1, 1]} : vector<8x32xf32> to vector<8x8xf32>
    %180 = arith.truncf %179 : vector<8x8xf32> to vector<8x8xbf16>
    %cst_70 = arith.constant dense<0.000000e+00> : vector<8x8xf32>
    %181 = tpu.matmul %176, %178, %cst_70 {dimension_numbers = #tpu.dot_dimension_numbers<[1], [1], [0], [0], [0, 0, 1, 0], [], []>} : vector<8x8xbf16>, vector<8x8xbf16>, vector<8x8xf32> -> vector<8x8xf32>
    %cst_71 = arith.constant 0.353553385 : f32
    %182 = vector.broadcast %cst_71 : f32 to vector<8x8xf32>
    %183 = arith.mulf %181, %182 : vector<8x8xf32>
    %cst_72 = arith.constant dense<0xFF800000> : vector<8xf32>
    %184 = vector.multi_reduction <maximumf>, %183, %cst_72 [1] : vector<8x8xf32> to vector<8xf32>
    %185 = vector.shape_cast %184 : vector<8xf32> to vector<8x1xf32>
    %186 = vector.broadcast %185 : vector<8x1xf32> to vector<8x8xf32>
    %187 = arith.subf %183, %186 : vector<8x8xf32>
    %188 = math.exp %187 : vector<8x8xf32>
    %cst_73 = arith.constant dense<0.000000e+00> : vector<8xf32>
    %189 = vector.multi_reduction <add>, %188, %cst_73 [1] : vector<8x8xf32> to vector<8xf32>
    %190 = vector.shape_cast %189 : vector<8xf32> to vector<8x1xf32>
    %191 = tpu.reciprocal %190 {approx = true} : vector<8x1xf32> -> vector<8x1xf32>
    %192 = arith.truncf %188 : vector<8x8xf32> to vector<8x8xbf16>
    %cst_74 = arith.constant dense<0.000000e+00> : vector<8x8xf32>
    %193 = tpu.matmul %192, %180, %cst_74 {dimension_numbers = #tpu.dot_dimension_numbers<[1], [0], [0], [1], [0, 0, 1, 1], [], []>} : vector<8x8xbf16>, vector<8x8xbf16>, vector<8x8xf32> -> vector<8x8xf32>
    %194 = vector.broadcast %191 : vector<8x1xf32> to vector<8x8xf32>
    %195 = arith.mulf %193, %194 : vector<8x8xf32>
    %196 = arith.truncf %195 : vector<8x8xf32> to vector<8x8xbf16>
    %197 = vector.extract_strided_slice %4 {offsets = [8, 0], sizes = [8, 32], strides = [1, 1]} : vector<32x32xbf16> to vector<8x32xbf16>
    %cst_75 = arith.constant dense<0.000000e+00> : vector<8x32xf32>
    %198 = tpu.matmul %196, %197, %cst_75 {dimension_numbers = #tpu.dot_dimension_numbers<[1], [0], [0], [1], [0, 0, 1, 1], [], []>} : vector<8x8xbf16>, vector<8x32xbf16>, vector<8x32xf32> -> vector<8x32xf32>
    %199 = arith.addf %174, %198 : vector<8x32xf32>
    %200 = vector.extract_strided_slice %146 {offsets = [0, 16], sizes = [8, 8], strides = [1, 1]} : vector<8x32xf32> to vector<8x8xf32>
    %201 = arith.truncf %200 : vector<8x8xf32> to vector<8x8xbf16>
    %202 = vector.extract_strided_slice %147 {offsets = [0, 16], sizes = [8, 8], strides = [1, 1]} : vector<8x32xf32> to vector<8x8xf32>
    %203 = arith.truncf %202 : vector<8x8xf32> to vector<8x8xbf16>
    %204 = vector.extract_strided_slice %148 {offsets = [0, 16], sizes = [8, 8], strides = [1, 1]} : vector<8x32xf32> to vector<8x8xf32>
    %205 = arith.truncf %204 : vector<8x8xf32> to vector<8x8xbf16>
    %cst_76 = arith.constant dense<0.000000e+00> : vector<8x8xf32>
    %206 = tpu.matmul %201, %203, %cst_76 {dimension_numbers = #tpu.dot_dimension_numbers<[1], [1], [0], [0], [0, 0, 1, 0], [], []>} : vector<8x8xbf16>, vector<8x8xbf16>, vector<8x8xf32> -> vector<8x8xf32>
    %cst_77 = arith.constant 0.353553385 : f32
    %207 = vector.broadcast %cst_77 : f32 to vector<8x8xf32>
    %208 = arith.mulf %206, %207 : vector<8x8xf32>
    %cst_78 = arith.constant dense<0xFF800000> : vector<8xf32>
    %209 = vector.multi_reduction <maximumf>, %208, %cst_78 [1] : vector<8x8xf32> to vector<8xf32>
    %210 = vector.shape_cast %209 : vector<8xf32> to vector<8x1xf32>
    %211 = vector.broadcast %210 : vector<8x1xf32> to vector<8x8xf32>
    %212 = arith.subf %208, %211 : vector<8x8xf32>
    %213 = math.exp %212 : vector<8x8xf32>
    %cst_79 = arith.constant dense<0.000000e+00> : vector<8xf32>
    %214 = vector.multi_reduction <add>, %213, %cst_79 [1] : vector<8x8xf32> to vector<8xf32>
    %215 = vector.shape_cast %214 : vector<8xf32> to vector<8x1xf32>
    %216 = tpu.reciprocal %215 {approx = true} : vector<8x1xf32> -> vector<8x1xf32>
    %217 = arith.truncf %213 : vector<8x8xf32> to vector<8x8xbf16>
    %cst_80 = arith.constant dense<0.000000e+00> : vector<8x8xf32>
    %218 = tpu.matmul %217, %205, %cst_80 {dimension_numbers = #tpu.dot_dimension_numbers<[1], [0], [0], [1], [0, 0, 1, 1], [], []>} : vector<8x8xbf16>, vector<8x8xbf16>, vector<8x8xf32> -> vector<8x8xf32>
    %219 = vector.broadcast %216 : vector<8x1xf32> to vector<8x8xf32>
    %220 = arith.mulf %218, %219 : vector<8x8xf32>
    %221 = arith.truncf %220 : vector<8x8xf32> to vector<8x8xbf16>
    %222 = vector.extract_strided_slice %4 {offsets = [16, 0], sizes = [8, 32], strides = [1, 1]} : vector<32x32xbf16> to vector<8x32xbf16>
    %cst_81 = arith.constant dense<0.000000e+00> : vector<8x32xf32>
    %223 = tpu.matmul %221, %222, %cst_81 {dimension_numbers = #tpu.dot_dimension_numbers<[1], [0], [0], [1], [0, 0, 1, 1], [], []>} : vector<8x8xbf16>, vector<8x32xbf16>, vector<8x32xf32> -> vector<8x32xf32>
    %224 = arith.addf %199, %223 : vector<8x32xf32>
    %225 = vector.extract_strided_slice %146 {offsets = [0, 24], sizes = [8, 8], strides = [1, 1]} : vector<8x32xf32> to vector<8x8xf32>
    %226 = arith.truncf %225 : vector<8x8xf32> to vector<8x8xbf16>
    %227 = vector.extract_strided_slice %147 {offsets = [0, 24], sizes = [8, 8], strides = [1, 1]} : vector<8x32xf32> to vector<8x8xf32>
    %228 = arith.truncf %227 : vector<8x8xf32> to vector<8x8xbf16>
    %229 = vector.extract_strided_slice %148 {offsets = [0, 24], sizes = [8, 8], strides = [1, 1]} : vector<8x32xf32> to vector<8x8xf32>
    %230 = arith.truncf %229 : vector<8x8xf32> to vector<8x8xbf16>
    %cst_82 = arith.constant dense<0.000000e+00> : vector<8x8xf32>
    %231 = tpu.matmul %226, %228, %cst_82 {dimension_numbers = #tpu.dot_dimension_numbers<[1], [1], [0], [0], [0, 0, 1, 0], [], []>} : vector<8x8xbf16>, vector<8x8xbf16>, vector<8x8xf32> -> vector<8x8xf32>
    %cst_83 = arith.constant 0.353553385 : f32
    %232 = vector.broadcast %cst_83 : f32 to vector<8x8xf32>
    %233 = arith.mulf %231, %232 : vector<8x8xf32>
    %cst_84 = arith.constant dense<0xFF800000> : vector<8xf32>
    %234 = vector.multi_reduction <maximumf>, %233, %cst_84 [1] : vector<8x8xf32> to vector<8xf32>
    %235 = vector.shape_cast %234 : vector<8xf32> to vector<8x1xf32>
    %236 = vector.broadcast %235 : vector<8x1xf32> to vector<8x8xf32>
    %237 = arith.subf %233, %236 : vector<8x8xf32>
    %238 = math.exp %237 : vector<8x8xf32>
    %cst_85 = arith.constant dense<0.000000e+00> : vector<8xf32>
    %239 = vector.multi_reduction <add>, %238, %cst_85 [1] : vector<8x8xf32> to vector<8xf32>
    %240 = vector.shape_cast %239 : vector<8xf32> to vector<8x1xf32>
    %241 = tpu.reciprocal %240 {approx = true} : vector<8x1xf32> -> vector<8x1xf32>
    %242 = arith.truncf %238 : vector<8x8xf32> to vector<8x8xbf16>
    %cst_86 = arith.constant dense<0.000000e+00> : vector<8x8xf32>
    %243 = tpu.matmul %242, %230, %cst_86 {dimension_numbers = #tpu.dot_dimension_numbers<[1], [0], [0], [1], [0, 0, 1, 1], [], []>} : vector<8x8xbf16>, vector<8x8xbf16>, vector<8x8xf32> -> vector<8x8xf32>
    %244 = vector.broadcast %241 : vector<8x1xf32> to vector<8x8xf32>
    %245 = arith.mulf %243, %244 : vector<8x8xf32>
    %246 = arith.truncf %245 : vector<8x8xf32> to vector<8x8xbf16>
    %247 = vector.extract_strided_slice %4 {offsets = [24, 0], sizes = [8, 32], strides = [1, 1]} : vector<32x32xbf16> to vector<8x32xbf16>
    %cst_87 = arith.constant dense<0.000000e+00> : vector<8x32xf32>
    %248 = tpu.matmul %246, %247, %cst_87 {dimension_numbers = #tpu.dot_dimension_numbers<[1], [0], [0], [1], [0, 0, 1, 1], [], []>} : vector<8x8xbf16>, vector<8x32xbf16>, vector<8x32xf32> -> vector<8x32xf32>
    %249 = arith.addf %224, %248 : vector<8x32xf32>
    %250 = arith.addf %121, %249 : vector<8x32xf32>
    %cst_88 = arith.constant dense<0.000000e+00> : vector<8xf32>
    %251 = vector.multi_reduction <add>, %250, %cst_88 [1] : vector<8x32xf32> to vector<8xf32>
    %252 = vector.shape_cast %251 : vector<8xf32> to vector<8x1xf32>
    %cst_89 = arith.constant 3.200000e+01 : f32
    %253 = vector.broadcast %cst_89 : f32 to vector<8x1xf32>
    %254 = arith.divf %252, %253 : vector<8x1xf32>
    %255 = vector.broadcast %254 : vector<8x1xf32> to vector<8x32xf32>
    %256 = arith.subf %250, %255 : vector<8x32xf32>
    %257 = arith.mulf %256, %256 : vector<8x32xf32>
    %cst_90 = arith.constant dense<0.000000e+00> : vector<8xf32>
    %258 = vector.multi_reduction <add>, %257, %cst_90 [1] : vector<8x32xf32> to vector<8xf32>
    %259 = vector.shape_cast %258 : vector<8xf32> to vector<8x1xf32>
    %cst_91 = arith.constant 3.200000e+01 : f32
    %260 = vector.broadcast %cst_91 : f32 to vector<8x1xf32>
    %261 = arith.divf %259, %260 : vector<8x1xf32>
    %262 = vector.broadcast %254 : vector<8x1xf32> to vector<8x32xf32>
    %263 = arith.subf %250, %262 : vector<8x32xf32>
    %cst_92 = arith.constant 9.99999974E-6 : f32
    %264 = vector.broadcast %cst_92 : f32 to vector<8x1xf32>
    %265 = arith.addf %261, %264 : vector<8x1xf32>
    %266 = math.rsqrt %265 : vector<8x1xf32>
    %267 = vector.broadcast %266 : vector<8x1xf32> to vector<8x32xf32>
    %268 = arith.mulf %263, %267 : vector<8x32xf32>
    %269 = vector.broadcast %7 : vector<1x32xf32> to vector<8x32xf32>
    %270 = arith.mulf %268, %269 : vector<8x32xf32>
    %271 = vector.broadcast %8 : vector<1x32xf32> to vector<8x32xf32>
    %272 = arith.addf %270, %271 : vector<8x32xf32>
    %273 = arith.truncf %272 : vector<8x32xf32> to vector<8x32xbf16>
    %cst_93 = arith.constant dense<0.000000e+00> : vector<8x128xf32>
    %274 = tpu.matmul %273, %9, %cst_93 {dimension_numbers = #tpu.dot_dimension_numbers<[1], [0], [0], [1], [0, 0, 1, 1], [], []>} : vector<8x32xbf16>, vector<32x128xbf16>, vector<8x128xf32> -> vector<8x128xf32>
    %275 = vector.broadcast %10 : vector<1x128xf32> to vector<8x128xf32>
    %276 = arith.addf %274, %275 : vector<8x128xf32>
    %cst_94 = arith.constant 5.000000e-01 : f32
    %277 = vector.broadcast %cst_94 : f32 to vector<8x128xf32>
    %278 = arith.mulf %277, %276 : vector<8x128xf32>
    %cst_95 = arith.constant 0.707106769 : f32
    %279 = vector.broadcast %cst_95 : f32 to vector<8x128xf32>
    %280 = arith.mulf %276, %279 : vector<8x128xf32>
    %281 = math.absf %280 : vector<8x128xf32>
    %cst_96 = arith.constant 0.327591091 : f32
    %282 = vector.broadcast %cst_96 : f32 to vector<8x128xf32>
    %283 = arith.mulf %282, %281 : vector<8x128xf32>
    %cst_97 = arith.constant 1.000000e+00 : f32
    %284 = vector.broadcast %cst_97 : f32 to vector<8x128xf32>
    %285 = arith.addf %284, %283 : vector<8x128xf32>
    %cst_98 = arith.constant 1.000000e+00 : f32
    %286 = vector.broadcast %cst_98 : f32 to vector<8x128xf32>
    %287 = arith.divf %286, %285 : vector<8x128xf32>
    %cst_99 = arith.constant 1.06140542 : f32
    %288 = vector.broadcast %cst_99 : f32 to vector<8x128xf32>
    %289 = arith.mulf %288, %287 : vector<8x128xf32>
    %cst_100 = arith.constant -1.45315206 : f32
    %290 = vector.broadcast %cst_100 : f32 to vector<8x128xf32>
    %291 = arith.addf %289, %290 : vector<8x128xf32>
    %292 = arith.mulf %291, %287 : vector<8x128xf32>
    %cst_101 = arith.constant 1.42141378 : f32
    %293 = vector.broadcast %cst_101 : f32 to vector<8x128xf32>
    %294 = arith.addf %292, %293 : vector<8x128xf32>
    %295 = arith.mulf %294, %287 : vector<8x128xf32>
    %cst_102 = arith.constant -0.284496725 : f32
    %296 = vector.broadcast %cst_102 : f32 to vector<8x128xf32>
    %297 = arith.addf %295, %296 : vector<8x128xf32>
    %298 = arith.mulf %297, %287 : vector<8x128xf32>
    %cst_103 = arith.constant 0.254829586 : f32
    %299 = vector.broadcast %cst_103 : f32 to vector<8x128xf32>
    %300 = arith.addf %298, %299 : vector<8x128xf32>
    %301 = arith.mulf %300, %287 : vector<8x128xf32>
    %cst_104 = arith.constant 0.000000e+00 : f32
    %302 = vector.broadcast %cst_104 : f32 to vector<8x128xf32>
    %303 = arith.subf %302, %281 : vector<8x128xf32>
    %304 = arith.mulf %303, %281 : vector<8x128xf32>
    %305 = math.exp %304 : vector<8x128xf32>
    %306 = arith.mulf %301, %305 : vector<8x128xf32>
    %cst_105 = arith.constant 1.000000e+00 : f32
    %307 = vector.broadcast %cst_105 : f32 to vector<8x128xf32>
    %308 = arith.subf %307, %306 : vector<8x128xf32>
    %cst_106 = arith.constant 0.000000e+00 : f32
    %309 = vector.broadcast %cst_106 : f32 to vector<8x128xf32>
    %310 = arith.cmpf oge, %280, %309 : vector<8x128xf32>
    %cst_107 = arith.constant 0.000000e+00 : f32
    %311 = vector.broadcast %cst_107 : f32 to vector<8x128xf32>
    %312 = arith.subf %311, %308 : vector<8x128xf32>
    %313 = arith.select %310, %308, %312 : vector<8x128xi1>, vector<8x128xf32>
    %cst_108 = arith.constant 1.000000e+00 : f32
    %314 = vector.broadcast %cst_108 : f32 to vector<8x128xf32>
    %315 = arith.addf %314, %313 : vector<8x128xf32>
    %316 = arith.mulf %278, %315 : vector<8x128xf32>
    %317 = arith.truncf %316 : vector<8x128xf32> to vector<8x128xbf16>
    %cst_109 = arith.constant dense<0.000000e+00> : vector<8x32xf32>
    %318 = tpu.matmul %317, %11, %cst_109 {dimension_numbers = #tpu.dot_dimension_numbers<[1], [0], [0], [1], [0, 0, 1, 1], [], []>} : vector<8x128xbf16>, vector<128x32xbf16>, vector<8x32xf32> -> vector<8x32xf32>
    %319 = arith.addf %250, %318 : vector<8x32xf32>
    %320 = vector.broadcast %12 : vector<1x32xf32> to vector<8x32xf32>
    %321 = arith.addf %319, %320 : vector<8x32xf32>
    %322 = arith.truncf %321 : vector<8x32xf32> to vector<8x32xbf16>
    %c0_110 = arith.constant 0 : index
    %c0_111 = arith.constant 0 : index
    %c0_112 = arith.constant 0 : index
    %323 = vector.load %arg16[%c0_110, %c0_111, %c0_112] : memref<2x8x32xbf16, #tpu.memory_space<vmem>>, vector<1x8x32xbf16>
    %324 = vector.shape_cast %323 : vector<1x8x32xbf16> to vector<8x32xbf16>
    %325 = vector.shape_cast %322 : vector<8x32xbf16> to vector<1x8x32xbf16>
    tpu.vector_store %arg16[%c0_110, %c0_111, %c0_112], %325 {strides = array<i32>} : memref<2x8x32xbf16, #tpu.memory_space<vmem>>, vector<1x8x32xbf16>,
    %c1 = arith.constant 1 : index
    %c0_113 = arith.constant 0 : index
    %c0_114 = arith.constant 0 : index
    %326 = vector.load %arg1[%c1, %c0_113, %c0_114] : memref<2x8x32xbf16, #tpu.memory_space<vmem>>, vector<1x8x32xbf16>
    %327 = vector.shape_cast %326 : vector<1x8x32xbf16> to vector<8x32xbf16>
    %c1_115 = arith.constant 1 : index
    %c0_116 = arith.constant 0 : index
    %c0_117 = arith.constant 0 : index
    %328 = vector.load %arg2[%c1_115, %c0_116, %c0_117] : memref<2x12x16xbf16, #tpu.memory_space<vmem>>, vector<1x12x16xbf16>
    %329 = vector.shape_cast %328 : vector<1x12x16xbf16> to vector<12x16xbf16>
    %cst_118 = arith.constant dense<0.000000e+00> : vector<8x32xf32>
    %330 = tpu.matmul %327, %0, %cst_118 {dimension_numbers = #tpu.dot_dimension_numbers<[1], [0], [0], [1], [0, 0, 1, 1], [], []>} : vector<8x32xbf16>, vector<32x32xbf16>, vector<8x32xf32> -> vector<8x32xf32>
    %cst_119 = arith.constant dense<0.000000e+00> : vector<12x64xf32>
    %331 = tpu.matmul %329, %1, %cst_119 {dimension_numbers = #tpu.dot_dimension_numbers<[1], [0], [0], [1], [0, 0, 1, 1], [], []>} : vector<12x16xbf16>, vector<16x64xbf16>, vector<12x64xf32> -> vector<12x64xf32>
    %332 = vector.extract_strided_slice %331 {offsets = [0, 0], sizes = [12, 32], strides = [1, 1]} : vector<12x64xf32> to vector<12x32xf32>
    %333 = vector.extract_strided_slice %331 {offsets = [0, 32], sizes = [12, 32], strides = [1, 1]} : vector<12x64xf32> to vector<12x32xf32>
    %cst_120 = arith.constant 0.000000e+00 : f32
    %334 = vector.broadcast %cst_120 : f32 to vector<8x32xf32>
    %335 = vector.extract_strided_slice %330 {offsets = [0, 0], sizes = [8, 8], strides = [1, 1]} : vector<8x32xf32> to vector<8x8xf32>
    %336 = arith.truncf %335 : vector<8x8xf32> to vector<8x8xbf16>
    %337 = vector.extract_strided_slice %332 {offsets = [0, 0], sizes = [12, 8], strides = [1, 1]} : vector<12x32xf32> to vector<12x8xf32>
    %338 = arith.truncf %337 : vector<12x8xf32> to vector<12x8xbf16>
    %339 = vector.extract_strided_slice %333 {offsets = [0, 0], sizes = [12, 8], strides = [1, 1]} : vector<12x32xf32> to vector<12x8xf32>
    %340 = arith.truncf %339 : vector<12x8xf32> to vector<12x8xbf16>
    %cst_121 = arith.constant dense<0.000000e+00> : vector<8x12xf32>
    %341 = tpu.matmul %336, %338, %cst_121 {dimension_numbers = #tpu.dot_dimension_numbers<[1], [1], [0], [0], [0, 0, 1, 0], [], []>} : vector<8x8xbf16>, vector<12x8xbf16>, vector<8x12xf32> -> vector<8x12xf32>
    %cst_122 = arith.constant 0.353553385 : f32
    %342 = vector.broadcast %cst_122 : f32 to vector<8x12xf32>
    %343 = arith.mulf %341, %342 : vector<8x12xf32>
    %cst_123 = arith.constant dense<0xFF800000> : vector<8xf32>
    %344 = vector.multi_reduction <maximumf>, %343, %cst_123 [1] : vector<8x12xf32> to vector<8xf32>
    %345 = vector.shape_cast %344 : vector<8xf32> to vector<8x1xf32>
    %346 = vector.broadcast %345 : vector<8x1xf32> to vector<8x12xf32>
    %347 = arith.subf %343, %346 : vector<8x12xf32>
    %348 = math.exp %347 : vector<8x12xf32>
    %cst_124 = arith.constant dense<0.000000e+00> : vector<8xf32>
    %349 = vector.multi_reduction <add>, %348, %cst_124 [1] : vector<8x12xf32> to vector<8xf32>
    %350 = vector.shape_cast %349 : vector<8xf32> to vector<8x1xf32>
    %351 = tpu.reciprocal %350 {approx = true} : vector<8x1xf32> -> vector<8x1xf32>
    %352 = arith.truncf %348 : vector<8x12xf32> to vector<8x12xbf16>
    %cst_125 = arith.constant dense<0.000000e+00> : vector<8x8xf32>
    %353 = tpu.matmul %352, %340, %cst_125 {dimension_numbers = #tpu.dot_dimension_numbers<[1], [0], [0], [1], [0, 0, 1, 1], [], []>} : vector<8x12xbf16>, vector<12x8xbf16>, vector<8x8xf32> -> vector<8x8xf32>
    %354 = vector.broadcast %351 : vector<8x1xf32> to vector<8x8xf32>
    %355 = arith.mulf %353, %354 : vector<8x8xf32>
    %356 = arith.truncf %355 : vector<8x8xf32> to vector<8x8xbf16>
    %357 = vector.extract_strided_slice %2 {offsets = [0, 0], sizes = [8, 32], strides = [1, 1]} : vector<32x32xbf16> to vector<8x32xbf16>
    %cst_126 = arith.constant dense<0.000000e+00> : vector<8x32xf32>
    %358 = tpu.matmul %356, %357, %cst_126 {dimension_numbers = #tpu.dot_dimension_numbers<[1], [0], [0], [1], [0, 0, 1, 1], [], []>} : vector<8x8xbf16>, vector<8x32xbf16>, vector<8x32xf32> -> vector<8x32xf32>
    %359 = arith.addf %334, %358 : vector<8x32xf32>
    %360 = vector.extract_strided_slice %330 {offsets = [0, 8], sizes = [8, 8], strides = [1, 1]} : vector<8x32xf32> to vector<8x8xf32>
    %361 = arith.truncf %360 : vector<8x8xf32> to vector<8x8xbf16>
    %362 = vector.extract_strided_slice %332 {offsets = [0, 8], sizes = [12, 8], strides = [1, 1]} : vector<12x32xf32> to vector<12x8xf32>
    %363 = arith.truncf %362 : vector<12x8xf32> to vector<12x8xbf16>
    %364 = vector.extract_strided_slice %333 {offsets = [0, 8], sizes = [12, 8], strides = [1, 1]} : vector<12x32xf32> to vector<12x8xf32>
    %365 = arith.truncf %364 : vector<12x8xf32> to vector<12x8xbf16>
    %cst_127 = arith.constant dense<0.000000e+00> : vector<8x12xf32>
    %366 = tpu.matmul %361, %363, %cst_127 {dimension_numbers = #tpu.dot_dimension_numbers<[1], [1], [0], [0], [0, 0, 1, 0], [], []>} : vector<8x8xbf16>, vector<12x8xbf16>, vector<8x12xf32> -> vector<8x12xf32>
    %cst_128 = arith.constant 0.353553385 : f32
    %367 = vector.broadcast %cst_128 : f32 to vector<8x12xf32>
    %368 = arith.mulf %366, %367 : vector<8x12xf32>
    %cst_129 = arith.constant dense<0xFF800000> : vector<8xf32>
    %369 = vector.multi_reduction <maximumf>, %368, %cst_129 [1] : vector<8x12xf32> to vector<8xf32>
    %370 = vector.shape_cast %369 : vector<8xf32> to vector<8x1xf32>
    %371 = vector.broadcast %370 : vector<8x1xf32> to vector<8x12xf32>
    %372 = arith.subf %368, %371 : vector<8x12xf32>
    %373 = math.exp %372 : vector<8x12xf32>
    %cst_130 = arith.constant dense<0.000000e+00> : vector<8xf32>
    %374 = vector.multi_reduction <add>, %373, %cst_130 [1] : vector<8x12xf32> to vector<8xf32>
    %375 = vector.shape_cast %374 : vector<8xf32> to vector<8x1xf32>
    %376 = tpu.reciprocal %375 {approx = true} : vector<8x1xf32> -> vector<8x1xf32>
    %377 = arith.truncf %373 : vector<8x12xf32> to vector<8x12xbf16>
    %cst_131 = arith.constant dense<0.000000e+00> : vector<8x8xf32>
    %378 = tpu.matmul %377, %365, %cst_131 {dimension_numbers = #tpu.dot_dimension_numbers<[1], [0], [0], [1], [0, 0, 1, 1], [], []>} : vector<8x12xbf16>, vector<12x8xbf16>, vector<8x8xf32> -> vector<8x8xf32>
    %379 = vector.broadcast %376 : vector<8x1xf32> to vector<8x8xf32>
    %380 = arith.mulf %378, %379 : vector<8x8xf32>
    %381 = arith.truncf %380 : vector<8x8xf32> to vector<8x8xbf16>
    %382 = vector.extract_strided_slice %2 {offsets = [8, 0], sizes = [8, 32], strides = [1, 1]} : vector<32x32xbf16> to vector<8x32xbf16>
    %cst_132 = arith.constant dense<0.000000e+00> : vector<8x32xf32>
    %383 = tpu.matmul %381, %382, %cst_132 {dimension_numbers = #tpu.dot_dimension_numbers<[1], [0], [0], [1], [0, 0, 1, 1], [], []>} : vector<8x8xbf16>, vector<8x32xbf16>, vector<8x32xf32> -> vector<8x32xf32>
    %384 = arith.addf %359, %383 : vector<8x32xf32>
    %385 = vector.extract_strided_slice %330 {offsets = [0, 16], sizes = [8, 8], strides = [1, 1]} : vector<8x32xf32> to vector<8x8xf32>
    %386 = arith.truncf %385 : vector<8x8xf32> to vector<8x8xbf16>
    %387 = vector.extract_strided_slice %332 {offsets = [0, 16], sizes = [12, 8], strides = [1, 1]} : vector<12x32xf32> to vector<12x8xf32>
    %388 = arith.truncf %387 : vector<12x8xf32> to vector<12x8xbf16>
    %389 = vector.extract_strided_slice %333 {offsets = [0, 16], sizes = [12, 8], strides = [1, 1]} : vector<12x32xf32> to vector<12x8xf32>
    %390 = arith.truncf %389 : vector<12x8xf32> to vector<12x8xbf16>
    %cst_133 = arith.constant dense<0.000000e+00> : vector<8x12xf32>
    %391 = tpu.matmul %386, %388, %cst_133 {dimension_numbers = #tpu.dot_dimension_numbers<[1], [1], [0], [0], [0, 0, 1, 0], [], []>} : vector<8x8xbf16>, vector<12x8xbf16>, vector<8x12xf32> -> vector<8x12xf32>
    %cst_134 = arith.constant 0.353553385 : f32
    %392 = vector.broadcast %cst_134 : f32 to vector<8x12xf32>
    %393 = arith.mulf %391, %392 : vector<8x12xf32>
    %cst_135 = arith.constant dense<0xFF800000> : vector<8xf32>
    %394 = vector.multi_reduction <maximumf>, %393, %cst_135 [1] : vector<8x12xf32> to vector<8xf32>
    %395 = vector.shape_cast %394 : vector<8xf32> to vector<8x1xf32>
    %396 = vector.broadcast %395 : vector<8x1xf32> to vector<8x12xf32>
    %397 = arith.subf %393, %396 : vector<8x12xf32>
    %398 = math.exp %397 : vector<8x12xf32>
    %cst_136 = arith.constant dense<0.000000e+00> : vector<8xf32>
    %399 = vector.multi_reduction <add>, %398, %cst_136 [1] : vector<8x12xf32> to vector<8xf32>
    %400 = vector.shape_cast %399 : vector<8xf32> to vector<8x1xf32>
    %401 = tpu.reciprocal %400 {approx = true} : vector<8x1xf32> -> vector<8x1xf32>
    %402 = arith.truncf %398 : vector<8x12xf32> to vector<8x12xbf16>
    %cst_137 = arith.constant dense<0.000000e+00> : vector<8x8xf32>
    %403 = tpu.matmul %402, %390, %cst_137 {dimension_numbers = #tpu.dot_dimension_numbers<[1], [0], [0], [1], [0, 0, 1, 1], [], []>} : vector<8x12xbf16>, vector<12x8xbf16>, vector<8x8xf32> -> vector<8x8xf32>
    %404 = vector.broadcast %401 : vector<8x1xf32> to vector<8x8xf32>
    %405 = arith.mulf %403, %404 : vector<8x8xf32>
    %406 = arith.truncf %405 : vector<8x8xf32> to vector<8x8xbf16>
    %407 = vector.extract_strided_slice %2 {offsets = [16, 0], sizes = [8, 32], strides = [1, 1]} : vector<32x32xbf16> to vector<8x32xbf16>
    %cst_138 = arith.constant dense<0.000000e+00> : vector<8x32xf32>
    %408 = tpu.matmul %406, %407, %cst_138 {dimension_numbers = #tpu.dot_dimension_numbers<[1], [0], [0], [1], [0, 0, 1, 1], [], []>} : vector<8x8xbf16>, vector<8x32xbf16>, vector<8x32xf32> -> vector<8x32xf32>
    %409 = arith.addf %384, %408 : vector<8x32xf32>
    %410 = vector.extract_strided_slice %330 {offsets = [0, 24], sizes = [8, 8], strides = [1, 1]} : vector<8x32xf32> to vector<8x8xf32>
    %411 = arith.truncf %410 : vector<8x8xf32> to vector<8x8xbf16>
    %412 = vector.extract_strided_slice %332 {offsets = [0, 24], sizes = [12, 8], strides = [1, 1]} : vector<12x32xf32> to vector<12x8xf32>
    %413 = arith.truncf %412 : vector<12x8xf32> to vector<12x8xbf16>
    %414 = vector.extract_strided_slice %333 {offsets = [0, 24], sizes = [12, 8], strides = [1, 1]} : vector<12x32xf32> to vector<12x8xf32>
    %415 = arith.truncf %414 : vector<12x8xf32> to vector<12x8xbf16>
    %cst_139 = arith.constant dense<0.000000e+00> : vector<8x12xf32>
    %416 = tpu.matmul %411, %413, %cst_139 {dimension_numbers = #tpu.dot_dimension_numbers<[1], [1], [0], [0], [0, 0, 1, 0], [], []>} : vector<8x8xbf16>, vector<12x8xbf16>, vector<8x12xf32> -> vector<8x12xf32>
    %cst_140 = arith.constant 0.353553385 : f32
    %417 = vector.broadcast %cst_140 : f32 to vector<8x12xf32>
    %418 = arith.mulf %416, %417 : vector<8x12xf32>
    %cst_141 = arith.constant dense<0xFF800000> : vector<8xf32>
    %419 = vector.multi_reduction <maximumf>, %418, %cst_141 [1] : vector<8x12xf32> to vector<8xf32>
    %420 = vector.shape_cast %419 : vector<8xf32> to vector<8x1xf32>
    %421 = vector.broadcast %420 : vector<8x1xf32> to vector<8x12xf32>
    %422 = arith.subf %418, %421 : vector<8x12xf32>
    %423 = math.exp %422 : vector<8x12xf32>
    %cst_142 = arith.constant dense<0.000000e+00> : vector<8xf32>
    %424 = vector.multi_reduction <add>, %423, %cst_142 [1] : vector<8x12xf32> to vector<8xf32>
    %425 = vector.shape_cast %424 : vector<8xf32> to vector<8x1xf32>
    %426 = tpu.reciprocal %425 {approx = true} : vector<8x1xf32> -> vector<8x1xf32>
    %427 = arith.truncf %423 : vector<8x12xf32> to vector<8x12xbf16>
    %cst_143 = arith.constant dense<0.000000e+00> : vector<8x8xf32>
    %428 = tpu.matmul %427, %415, %cst_143 {dimension_numbers = #tpu.dot_dimension_numbers<[1], [0], [0], [1], [0, 0, 1, 1], [], []>} : vector<8x12xbf16>, vector<12x8xbf16>, vector<8x8xf32> -> vector<8x8xf32>
    %429 = vector.broadcast %426 : vector<8x1xf32> to vector<8x8xf32>
    %430 = arith.mulf %428, %429 : vector<8x8xf32>
    %431 = arith.truncf %430 : vector<8x8xf32> to vector<8x8xbf16>
    %432 = vector.extract_strided_slice %2 {offsets = [24, 0], sizes = [8, 32], strides = [1, 1]} : vector<32x32xbf16> to vector<8x32xbf16>
    %cst_144 = arith.constant dense<0.000000e+00> : vector<8x32xf32>
    %433 = tpu.matmul %431, %432, %cst_144 {dimension_numbers = #tpu.dot_dimension_numbers<[1], [0], [0], [1], [0, 0, 1, 1], [], []>} : vector<8x8xbf16>, vector<8x32xbf16>, vector<8x32xf32> -> vector<8x32xf32>
    %434 = arith.addf %409, %433 : vector<8x32xf32>
    %cst_145 = arith.constant dense<0.000000e+00> : vector<8xf32>
    %435 = vector.multi_reduction <add>, %434, %cst_145 [1] : vector<8x32xf32> to vector<8xf32>
    %436 = vector.shape_cast %435 : vector<8xf32> to vector<8x1xf32>
    %cst_146 = arith.constant 3.200000e+01 : f32
    %437 = vector.broadcast %cst_146 : f32 to vector<8x1xf32>
    %438 = arith.divf %436, %437 : vector<8x1xf32>
    %439 = vector.broadcast %438 : vector<8x1xf32> to vector<8x32xf32>
    %440 = arith.subf %434, %439 : vector<8x32xf32>
    %441 = arith.mulf %440, %440 : vector<8x32xf32>
    %cst_147 = arith.constant dense<0.000000e+00> : vector<8xf32>
    %442 = vector.multi_reduction <add>, %441, %cst_147 [1] : vector<8x32xf32> to vector<8xf32>
    %443 = vector.shape_cast %442 : vector<8xf32> to vector<8x1xf32>
    %cst_148 = arith.constant 3.200000e+01 : f32
    %444 = vector.broadcast %cst_148 : f32 to vector<8x1xf32>
    %445 = arith.divf %443, %444 : vector<8x1xf32>
    %446 = vector.broadcast %438 : vector<8x1xf32> to vector<8x32xf32>
    %447 = arith.subf %434, %446 : vector<8x32xf32>
    %cst_149 = arith.constant 9.99999974E-6 : f32
    %448 = vector.broadcast %cst_149 : f32 to vector<8x1xf32>
    %449 = arith.addf %445, %448 : vector<8x1xf32>
    %450 = math.rsqrt %449 : vector<8x1xf32>
    %451 = vector.broadcast %450 : vector<8x1xf32> to vector<8x32xf32>
    %452 = arith.mulf %447, %451 : vector<8x32xf32>
    %453 = vector.broadcast %5 : vector<1x32xf32> to vector<8x32xf32>
    %454 = arith.mulf %452, %453 : vector<8x32xf32>
    %455 = vector.broadcast %6 : vector<1x32xf32> to vector<8x32xf32>
    %456 = arith.addf %454, %455 : vector<8x32xf32>
    %457 = arith.truncf %456 : vector<8x32xf32> to vector<8x32xbf16>
    %cst_150 = arith.constant dense<0.000000e+00> : vector<8x96xf32>
    %458 = tpu.matmul %457, %3, %cst_150 {dimension_numbers = #tpu.dot_dimension_numbers<[1], [0], [0], [1], [0, 0, 1, 1], [], []>} : vector<8x32xbf16>, vector<32x96xbf16>, vector<8x96xf32> -> vector<8x96xf32>
    %459 = vector.extract_strided_slice %458 {offsets = [0, 0], sizes = [8, 32], strides = [1, 1]} : vector<8x96xf32> to vector<8x32xf32>
    %460 = vector.extract_strided_slice %458 {offsets = [0, 32], sizes = [8, 32], strides = [1, 1]} : vector<8x96xf32> to vector<8x32xf32>
    %461 = vector.extract_strided_slice %458 {offsets = [0, 64], sizes = [8, 32], strides = [1, 1]} : vector<8x96xf32> to vector<8x32xf32>
    %cst_151 = arith.constant 0.000000e+00 : f32
    %462 = vector.broadcast %cst_151 : f32 to vector<8x32xf32>
    %463 = vector.extract_strided_slice %459 {offsets = [0, 0], sizes = [8, 8], strides = [1, 1]} : vector<8x32xf32> to vector<8x8xf32>
    %464 = arith.truncf %463 : vector<8x8xf32> to vector<8x8xbf16>
    %465 = vector.extract_strided_slice %460 {offsets = [0, 0], sizes = [8, 8], strides = [1, 1]} : vector<8x32xf32> to vector<8x8xf32>
    %466 = arith.truncf %465 : vector<8x8xf32> to vector<8x8xbf16>
    %467 = vector.extract_strided_slice %461 {offsets = [0, 0], sizes = [8, 8], strides = [1, 1]} : vector<8x32xf32> to vector<8x8xf32>
    %468 = arith.truncf %467 : vector<8x8xf32> to vector<8x8xbf16>
    %cst_152 = arith.constant dense<0.000000e+00> : vector<8x8xf32>
    %469 = tpu.matmul %464, %466, %cst_152 {dimension_numbers = #tpu.dot_dimension_numbers<[1], [1], [0], [0], [0, 0, 1, 0], [], []>} : vector<8x8xbf16>, vector<8x8xbf16>, vector<8x8xf32> -> vector<8x8xf32>
    %cst_153 = arith.constant 0.353553385 : f32
    %470 = vector.broadcast %cst_153 : f32 to vector<8x8xf32>
    %471 = arith.mulf %469, %470 : vector<8x8xf32>
    %cst_154 = arith.constant dense<0xFF800000> : vector<8xf32>
    %472 = vector.multi_reduction <maximumf>, %471, %cst_154 [1] : vector<8x8xf32> to vector<8xf32>
    %473 = vector.shape_cast %472 : vector<8xf32> to vector<8x1xf32>
    %474 = vector.broadcast %473 : vector<8x1xf32> to vector<8x8xf32>
    %475 = arith.subf %471, %474 : vector<8x8xf32>
    %476 = math.exp %475 : vector<8x8xf32>
    %cst_155 = arith.constant dense<0.000000e+00> : vector<8xf32>
    %477 = vector.multi_reduction <add>, %476, %cst_155 [1] : vector<8x8xf32> to vector<8xf32>
    %478 = vector.shape_cast %477 : vector<8xf32> to vector<8x1xf32>
    %479 = tpu.reciprocal %478 {approx = true} : vector<8x1xf32> -> vector<8x1xf32>
    %480 = arith.truncf %476 : vector<8x8xf32> to vector<8x8xbf16>
    %cst_156 = arith.constant dense<0.000000e+00> : vector<8x8xf32>
    %481 = tpu.matmul %480, %468, %cst_156 {dimension_numbers = #tpu.dot_dimension_numbers<[1], [0], [0], [1], [0, 0, 1, 1], [], []>} : vector<8x8xbf16>, vector<8x8xbf16>, vector<8x8xf32> -> vector<8x8xf32>
    %482 = vector.broadcast %479 : vector<8x1xf32> to vector<8x8xf32>
    %483 = arith.mulf %481, %482 : vector<8x8xf32>
    %484 = arith.truncf %483 : vector<8x8xf32> to vector<8x8xbf16>
    %485 = vector.extract_strided_slice %4 {offsets = [0, 0], sizes = [8, 32], strides = [1, 1]} : vector<32x32xbf16> to vector<8x32xbf16>
    %cst_157 = arith.constant dense<0.000000e+00> : vector<8x32xf32>
    %486 = tpu.matmul %484, %485, %cst_157 {dimension_numbers = #tpu.dot_dimension_numbers<[1], [0], [0], [1], [0, 0, 1, 1], [], []>} : vector<8x8xbf16>, vector<8x32xbf16>, vector<8x32xf32> -> vector<8x32xf32>
    %487 = arith.addf %462, %486 : vector<8x32xf32>
    %488 = vector.extract_strided_slice %459 {offsets = [0, 8], sizes = [8, 8], strides = [1, 1]} : vector<8x32xf32> to vector<8x8xf32>
    %489 = arith.truncf %488 : vector<8x8xf32> to vector<8x8xbf16>
    %490 = vector.extract_strided_slice %460 {offsets = [0, 8], sizes = [8, 8], strides = [1, 1]} : vector<8x32xf32> to vector<8x8xf32>
    %491 = arith.truncf %490 : vector<8x8xf32> to vector<8x8xbf16>
    %492 = vector.extract_strided_slice %461 {offsets = [0, 8], sizes = [8, 8], strides = [1, 1]} : vector<8x32xf32> to vector<8x8xf32>
    %493 = arith.truncf %492 : vector<8x8xf32> to vector<8x8xbf16>
    %cst_158 = arith.constant dense<0.000000e+00> : vector<8x8xf32>
    %494 = tpu.matmul %489, %491, %cst_158 {dimension_numbers = #tpu.dot_dimension_numbers<[1], [1], [0], [0], [0, 0, 1, 0], [], []>} : vector<8x8xbf16>, vector<8x8xbf16>, vector<8x8xf32> -> vector<8x8xf32>
    %cst_159 = arith.constant 0.353553385 : f32
    %495 = vector.broadcast %cst_159 : f32 to vector<8x8xf32>
    %496 = arith.mulf %494, %495 : vector<8x8xf32>
    %cst_160 = arith.constant dense<0xFF800000> : vector<8xf32>
    %497 = vector.multi_reduction <maximumf>, %496, %cst_160 [1] : vector<8x8xf32> to vector<8xf32>
    %498 = vector.shape_cast %497 : vector<8xf32> to vector<8x1xf32>
    %499 = vector.broadcast %498 : vector<8x1xf32> to vector<8x8xf32>
    %500 = arith.subf %496, %499 : vector<8x8xf32>
    %501 = math.exp %500 : vector<8x8xf32>
    %cst_161 = arith.constant dense<0.000000e+00> : vector<8xf32>
    %502 = vector.multi_reduction <add>, %501, %cst_161 [1] : vector<8x8xf32> to vector<8xf32>
    %503 = vector.shape_cast %502 : vector<8xf32> to vector<8x1xf32>
    %504 = tpu.reciprocal %503 {approx = true} : vector<8x1xf32> -> vector<8x1xf32>
    %505 = arith.truncf %501 : vector<8x8xf32> to vector<8x8xbf16>
    %cst_162 = arith.constant dense<0.000000e+00> : vector<8x8xf32>
    %506 = tpu.matmul %505, %493, %cst_162 {dimension_numbers = #tpu.dot_dimension_numbers<[1], [0], [0], [1], [0, 0, 1, 1], [], []>} : vector<8x8xbf16>, vector<8x8xbf16>, vector<8x8xf32> -> vector<8x8xf32>
    %507 = vector.broadcast %504 : vector<8x1xf32> to vector<8x8xf32>
    %508 = arith.mulf %506, %507 : vector<8x8xf32>
    %509 = arith.truncf %508 : vector<8x8xf32> to vector<8x8xbf16>
    %510 = vector.extract_strided_slice %4 {offsets = [8, 0], sizes = [8, 32], strides = [1, 1]} : vector<32x32xbf16> to vector<8x32xbf16>
    %cst_163 = arith.constant dense<0.000000e+00> : vector<8x32xf32>
    %511 = tpu.matmul %509, %510, %cst_163 {dimension_numbers = #tpu.dot_dimension_numbers<[1], [0], [0], [1], [0, 0, 1, 1], [], []>} : vector<8x8xbf16>, vector<8x32xbf16>, vector<8x32xf32> -> vector<8x32xf32>
    %512 = arith.addf %487, %511 : vector<8x32xf32>
    %513 = vector.extract_strided_slice %459 {offsets = [0, 16], sizes = [8, 8], strides = [1, 1]} : vector<8x32xf32> to vector<8x8xf32>
    %514 = arith.truncf %513 : vector<8x8xf32> to vector<8x8xbf16>
    %515 = vector.extract_strided_slice %460 {offsets = [0, 16], sizes = [8, 8], strides = [1, 1]} : vector<8x32xf32> to vector<8x8xf32>
    %516 = arith.truncf %515 : vector<8x8xf32> to vector<8x8xbf16>
    %517 = vector.extract_strided_slice %461 {offsets = [0, 16], sizes = [8, 8], strides = [1, 1]} : vector<8x32xf32> to vector<8x8xf32>
    %518 = arith.truncf %517 : vector<8x8xf32> to vector<8x8xbf16>
    %cst_164 = arith.constant dense<0.000000e+00> : vector<8x8xf32>
    %519 = tpu.matmul %514, %516, %cst_164 {dimension_numbers = #tpu.dot_dimension_numbers<[1], [1], [0], [0], [0, 0, 1, 0], [], []>} : vector<8x8xbf16>, vector<8x8xbf16>, vector<8x8xf32> -> vector<8x8xf32>
    %cst_165 = arith.constant 0.353553385 : f32
    %520 = vector.broadcast %cst_165 : f32 to vector<8x8xf32>
    %521 = arith.mulf %519, %520 : vector<8x8xf32>
    %cst_166 = arith.constant dense<0xFF800000> : vector<8xf32>
    %522 = vector.multi_reduction <maximumf>, %521, %cst_166 [1] : vector<8x8xf32> to vector<8xf32>
    %523 = vector.shape_cast %522 : vector<8xf32> to vector<8x1xf32>
    %524 = vector.broadcast %523 : vector<8x1xf32> to vector<8x8xf32>
    %525 = arith.subf %521, %524 : vector<8x8xf32>
    %526 = math.exp %525 : vector<8x8xf32>
    %cst_167 = arith.constant dense<0.000000e+00> : vector<8xf32>
    %527 = vector.multi_reduction <add>, %526, %cst_167 [1] : vector<8x8xf32> to vector<8xf32>
    %528 = vector.shape_cast %527 : vector<8xf32> to vector<8x1xf32>
    %529 = tpu.reciprocal %528 {approx = true} : vector<8x1xf32> -> vector<8x1xf32>
    %530 = arith.truncf %526 : vector<8x8xf32> to vector<8x8xbf16>
    %cst_168 = arith.constant dense<0.000000e+00> : vector<8x8xf32>
    %531 = tpu.matmul %530, %518, %cst_168 {dimension_numbers = #tpu.dot_dimension_numbers<[1], [0], [0], [1], [0, 0, 1, 1], [], []>} : vector<8x8xbf16>, vector<8x8xbf16>, vector<8x8xf32> -> vector<8x8xf32>
    %532 = vector.broadcast %529 : vector<8x1xf32> to vector<8x8xf32>
    %533 = arith.mulf %531, %532 : vector<8x8xf32>
    %534 = arith.truncf %533 : vector<8x8xf32> to vector<8x8xbf16>
    %535 = vector.extract_strided_slice %4 {offsets = [16, 0], sizes = [8, 32], strides = [1, 1]} : vector<32x32xbf16> to vector<8x32xbf16>
    %cst_169 = arith.constant dense<0.000000e+00> : vector<8x32xf32>
    %536 = tpu.matmul %534, %535, %cst_169 {dimension_numbers = #tpu.dot_dimension_numbers<[1], [0], [0], [1], [0, 0, 1, 1], [], []>} : vector<8x8xbf16>, vector<8x32xbf16>, vector<8x32xf32> -> vector<8x32xf32>
    %537 = arith.addf %512, %536 : vector<8x32xf32>
    %538 = vector.extract_strided_slice %459 {offsets = [0, 24], sizes = [8, 8], strides = [1, 1]} : vector<8x32xf32> to vector<8x8xf32>
    %539 = arith.truncf %538 : vector<8x8xf32> to vector<8x8xbf16>
    %540 = vector.extract_strided_slice %460 {offsets = [0, 24], sizes = [8, 8], strides = [1, 1]} : vector<8x32xf32> to vector<8x8xf32>
    %541 = arith.truncf %540 : vector<8x8xf32> to vector<8x8xbf16>
    %542 = vector.extract_strided_slice %461 {offsets = [0, 24], sizes = [8, 8], strides = [1, 1]} : vector<8x32xf32> to vector<8x8xf32>
    %543 = arith.truncf %542 : vector<8x8xf32> to vector<8x8xbf16>
    %cst_170 = arith.constant dense<0.000000e+00> : vector<8x8xf32>
    %544 = tpu.matmul %539, %541, %cst_170 {dimension_numbers = #tpu.dot_dimension_numbers<[1], [1], [0], [0], [0, 0, 1, 0], [], []>} : vector<8x8xbf16>, vector<8x8xbf16>, vector<8x8xf32> -> vector<8x8xf32>
    %cst_171 = arith.constant 0.353553385 : f32
    %545 = vector.broadcast %cst_171 : f32 to vector<8x8xf32>
    %546 = arith.mulf %544, %545 : vector<8x8xf32>
    %cst_172 = arith.constant dense<0xFF800000> : vector<8xf32>
    %547 = vector.multi_reduction <maximumf>, %546, %cst_172 [1] : vector<8x8xf32> to vector<8xf32>
    %548 = vector.shape_cast %547 : vector<8xf32> to vector<8x1xf32>
    %549 = vector.broadcast %548 : vector<8x1xf32> to vector<8x8xf32>
    %550 = arith.subf %546, %549 : vector<8x8xf32>
    %551 = math.exp %550 : vector<8x8xf32>
    %cst_173 = arith.constant dense<0.000000e+00> : vector<8xf32>
    %552 = vector.multi_reduction <add>, %551, %cst_173 [1] : vector<8x8xf32> to vector<8xf32>
    %553 = vector.shape_cast %552 : vector<8xf32> to vector<8x1xf32>
    %554 = tpu.reciprocal %553 {approx = true} : vector<8x1xf32> -> vector<8x1xf32>
    %555 = arith.truncf %551 : vector<8x8xf32> to vector<8x8xbf16>
    %cst_174 = arith.constant dense<0.000000e+00> : vector<8x8xf32>
    %556 = tpu.matmul %555, %543, %cst_174 {dimension_numbers = #tpu.dot_dimension_numbers<[1], [0], [0], [1], [0, 0, 1, 1], [], []>} : vector<8x8xbf16>, vector<8x8xbf16>, vector<8x8xf32> -> vector<8x8xf32>
    %557 = vector.broadcast %554 : vector<8x1xf32> to vector<8x8xf32>
    %558 = arith.mulf %556, %557 : vector<8x8xf32>
    %559 = arith.truncf %558 : vector<8x8xf32> to vector<8x8xbf16>
    %560 = vector.extract_strided_slice %4 {offsets = [24, 0], sizes = [8, 32], strides = [1, 1]} : vector<32x32xbf16> to vector<8x32xbf16>
    %cst_175 = arith.constant dense<0.000000e+00> : vector<8x32xf32>
    %561 = tpu.matmul %559, %560, %cst_175 {dimension_numbers = #tpu.dot_dimension_numbers<[1], [0], [0], [1], [0, 0, 1, 1], [], []>} : vector<8x8xbf16>, vector<8x32xbf16>, vector<8x32xf32> -> vector<8x32xf32>
    %562 = arith.addf %537, %561 : vector<8x32xf32>
    %563 = arith.addf %434, %562 : vector<8x32xf32>
    %cst_176 = arith.constant dense<0.000000e+00> : vector<8xf32>
    %564 = vector.multi_reduction <add>, %563, %cst_176 [1] : vector<8x32xf32> to vector<8xf32>
    %565 = vector.shape_cast %564 : vector<8xf32> to vector<8x1xf32>
    %cst_177 = arith.constant 3.200000e+01 : f32
    %566 = vector.broadcast %cst_177 : f32 to vector<8x1xf32>
    %567 = arith.divf %565, %566 : vector<8x1xf32>
    %568 = vector.broadcast %567 : vector<8x1xf32> to vector<8x32xf32>
    %569 = arith.subf %563, %568 : vector<8x32xf32>
    %570 = arith.mulf %569, %569 : vector<8x32xf32>
    %cst_178 = arith.constant dense<0.000000e+00> : vector<8xf32>
    %571 = vector.multi_reduction <add>, %570, %cst_178 [1] : vector<8x32xf32> to vector<8xf32>
    %572 = vector.shape_cast %571 : vector<8xf32> to vector<8x1xf32>
    %cst_179 = arith.constant 3.200000e+01 : f32
    %573 = vector.broadcast %cst_179 : f32 to vector<8x1xf32>
    %574 = arith.divf %572, %573 : vector<8x1xf32>
    %575 = vector.broadcast %567 : vector<8x1xf32> to vector<8x32xf32>
    %576 = arith.subf %563, %575 : vector<8x32xf32>
    %cst_180 = arith.constant 9.99999974E-6 : f32
    %577 = vector.broadcast %cst_180 : f32 to vector<8x1xf32>
    %578 = arith.addf %574, %577 : vector<8x1xf32>
    %579 = math.rsqrt %578 : vector<8x1xf32>
    %580 = vector.broadcast %579 : vector<8x1xf32> to vector<8x32xf32>
    %581 = arith.mulf %576, %580 : vector<8x32xf32>
    %582 = vector.broadcast %7 : vector<1x32xf32> to vector<8x32xf32>
    %583 = arith.mulf %581, %582 : vector<8x32xf32>
    %584 = vector.broadcast %8 : vector<1x32xf32> to vector<8x32xf32>
    %585 = arith.addf %583, %584 : vector<8x32xf32>
    %586 = arith.truncf %585 : vector<8x32xf32> to vector<8x32xbf16>
    %cst_181 = arith.constant dense<0.000000e+00> : vector<8x128xf32>
    %587 = tpu.matmul %586, %9, %cst_181 {dimension_numbers = #tpu.dot_dimension_numbers<[1], [0], [0], [1], [0, 0, 1, 1], [], []>} : vector<8x32xbf16>, vector<32x128xbf16>, vector<8x128xf32> -> vector<8x128xf32>
    %588 = vector.broadcast %10 : vector<1x128xf32> to vector<8x128xf32>
    %589 = arith.addf %587, %588 : vector<8x128xf32>
    %cst_182 = arith.constant 5.000000e-01 : f32
    %590 = vector.broadcast %cst_182 : f32 to vector<8x128xf32>
    %591 = arith.mulf %590, %589 : vector<8x128xf32>
    %cst_183 = arith.constant 0.707106769 : f32
    %592 = vector.broadcast %cst_183 : f32 to vector<8x128xf32>
    %593 = arith.mulf %589, %592 : vector<8x128xf32>
    %594 = math.absf %593 : vector<8x128xf32>
    %cst_184 = arith.constant 0.327591091 : f32
    %595 = vector.broadcast %cst_184 : f32 to vector<8x128xf32>
    %596 = arith.mulf %595, %594 : vector<8x128xf32>
    %cst_185 = arith.constant 1.000000e+00 : f32
    %597 = vector.broadcast %cst_185 : f32 to vector<8x128xf32>
    %598 = arith.addf %597, %596 : vector<8x128xf32>
    %cst_186 = arith.constant 1.000000e+00 : f32
    %599 = vector.broadcast %cst_186 : f32 to vector<8x128xf32>
    %600 = arith.divf %599, %598 : vector<8x128xf32>
    %cst_187 = arith.constant 1.06140542 : f32
    %601 = vector.broadcast %cst_187 : f32 to vector<8x128xf32>
    %602 = arith.mulf %601, %600 : vector<8x128xf32>
    %cst_188 = arith.constant -1.45315206 : f32
    %603 = vector.broadcast %cst_188 : f32 to vector<8x128xf32>
    %604 = arith.addf %602, %603 : vector<8x128xf32>
    %605 = arith.mulf %604, %600 : vector<8x128xf32>
    %cst_189 = arith.constant 1.42141378 : f32
    %606 = vector.broadcast %cst_189 : f32 to vector<8x128xf32>
    %607 = arith.addf %605, %606 : vector<8x128xf32>
    %608 = arith.mulf %607, %600 : vector<8x128xf32>
    %cst_190 = arith.constant -0.284496725 : f32
    %609 = vector.broadcast %cst_190 : f32 to vector<8x128xf32>
    %610 = arith.addf %608, %609 : vector<8x128xf32>
    %611 = arith.mulf %610, %600 : vector<8x128xf32>
    %cst_191 = arith.constant 0.254829586 : f32
    %612 = vector.broadcast %cst_191 : f32 to vector<8x128xf32>
    %613 = arith.addf %611, %612 : vector<8x128xf32>
    %614 = arith.mulf %613, %600 : vector<8x128xf32>
    %cst_192 = arith.constant 0.000000e+00 : f32
    %615 = vector.broadcast %cst_192 : f32 to vector<8x128xf32>
    %616 = arith.subf %615, %594 : vector<8x128xf32>
    %617 = arith.mulf %616, %594 : vector<8x128xf32>
    %618 = math.exp %617 : vector<8x128xf32>
    %619 = arith.mulf %614, %618 : vector<8x128xf32>
    %cst_193 = arith.constant 1.000000e+00 : f32
    %620 = vector.broadcast %cst_193 : f32 to vector<8x128xf32>
    %621 = arith.subf %620, %619 : vector<8x128xf32>
    %cst_194 = arith.constant 0.000000e+00 : f32
    %622 = vector.broadcast %cst_194 : f32 to vector<8x128xf32>
    %623 = arith.cmpf oge, %593, %622 : vector<8x128xf32>
    %cst_195 = arith.constant 0.000000e+00 : f32
    %624 = vector.broadcast %cst_195 : f32 to vector<8x128xf32>
    %625 = arith.subf %624, %621 : vector<8x128xf32>
    %626 = arith.select %623, %621, %625 : vector<8x128xi1>, vector<8x128xf32>
    %cst_196 = arith.constant 1.000000e+00 : f32
    %627 = vector.broadcast %cst_196 : f32 to vector<8x128xf32>
    %628 = arith.addf %627, %626 : vector<8x128xf32>
    %629 = arith.mulf %591, %628 : vector<8x128xf32>
    %630 = arith.truncf %629 : vector<8x128xf32> to vector<8x128xbf16>
    %cst_197 = arith.constant dense<0.000000e+00> : vector<8x32xf32>
    %631 = tpu.matmul %630, %11, %cst_197 {dimension_numbers = #tpu.dot_dimension_numbers<[1], [0], [0], [1], [0, 0, 1, 1], [], []>} : vector<8x128xbf16>, vector<128x32xbf16>, vector<8x32xf32> -> vector<8x32xf32>
    %632 = arith.addf %563, %631 : vector<8x32xf32>
    %633 = vector.broadcast %12 : vector<1x32xf32> to vector<8x32xf32>
    %634 = arith.addf %632, %633 : vector<8x32xf32>
    %635 = arith.truncf %634 : vector<8x32xf32> to vector<8x32xbf16>
    %c1_198 = arith.constant 1 : index
    %c0_199 = arith.constant 0 : index
    %c0_200 = arith.constant 0 : index
    %636 = vector.load %arg16[%c1_198, %c0_199, %c0_200] : memref<2x8x32xbf16, #tpu.memory_space<vmem>>, vector<1x8x32xbf16>
    %637 = vector.shape_cast %636 : vector<1x8x32xbf16> to vector<8x32xbf16>
    %638 = vector.shape_cast %635 : vector<8x32xbf16> to vector<1x8x32xbf16>
    tpu.vector_store %arg16[%c1_198, %c0_199, %c0_200], %638 {strides = array<i32>} : memref<2x8x32xbf16, #tpu.memory_space<vmem>>, vector<1x8x32xbf16>,
    return
  }
  func.func @transform_0(%arg0: i32) -> (i32, i32, i32) {
    %c0_i32 = arith.constant 0 : i32
    %c0_i32_0 = arith.constant 0 : i32
    %c0_i32_1 = arith.constant 0 : i32
    return %arg0, %c0_i32, %c0_i32_0 : i32, i32, i32
  }
  func.func @transform_1(%arg0: i32) -> (i32, i32, i32) {
    %c0_i32 = arith.constant 0 : i32
    %c0_i32_0 = arith.constant 0 : i32
    %c0_i32_1 = arith.constant 0 : i32
    return %arg0, %c0_i32, %c0_i32_0 : i32, i32, i32
  }
  func.func @transform_2(%arg0: i32) -> (i32, i32) {
    %c0_i32 = arith.constant 0 : i32
    %c0_i32_0 = arith.constant 0 : i32
    %c0_i32_1 = arith.constant 0 : i32
    return %c0_i32, %c0_i32_0 : i32, i32
  }
  func.func @transform_3(%arg0: i32) -> (i32, i32) {
    %c0_i32 = arith.constant 0 : i32
    %c0_i32_0 = arith.constant 0 : i32
    %c0_i32_1 = arith.constant 0 : i32
    return %c0_i32, %c0_i32_0 : i32, i32
  }
  func.func @transform_4(%arg0: i32) -> (i32, i32) {
    %c0_i32 = arith.constant 0 : i32
    %c0_i32_0 = arith.constant 0 : i32
    %c0_i32_1 = arith.constant 0 : i32
    return %c0_i32, %c0_i32_0 : i32, i32
  }
  func.func @transform_5(%arg0: i32) -> (i32, i32) {
    %c0_i32 = arith.constant 0 : i32
    %c0_i32_0 = arith.constant 0 : i32
    %c0_i32_1 = arith.constant 0 : i32
    return %c0_i32, %c0_i32_0 : i32, i32
  }
  func.func @transform_6(%arg0: i32) -> (i32, i32) {
    %c0_i32 = arith.constant 0 : i32
    %c0_i32_0 = arith.constant 0 : i32
    %c0_i32_1 = arith.constant 0 : i32
    return %c0_i32, %c0_i32_0 : i32, i32
  }
  func.func @transform_7(%arg0: i32) -> (i32, i32) {
    %c0_i32 = arith.constant 0 : i32
    %c0_i32_0 = arith.constant 0 : i32
    %c0_i32_1 = arith.constant 0 : i32
    return %c0_i32, %c0_i32_0 : i32, i32
  }
  func.func @transform_8(%arg0: i32) -> (i32, i32) {
    %c0_i32 = arith.constant 0 : i32
    %c0_i32_0 = arith.constant 0 : i32
    %c0_i32_1 = arith.constant 0 : i32
    return %c0_i32, %c0_i32_0 : i32, i32
  }
  func.func @transform_9(%arg0: i32) -> (i32, i32) {
    %c0_i32 = arith.constant 0 : i32
    %c0_i32_0 = arith.constant 0 : i32
    %c0_i32_1 = arith.constant 0 : i32
    return %c0_i32, %c0_i32_0 : i32, i32
  }
  func.func @transform_10(%arg0: i32) -> (i32, i32) {
    %c0_i32 = arith.constant 0 : i32
    %c0_i32_0 = arith.constant 0 : i32
    %c0_i32_1 = arith.constant 0 : i32
    return %c0_i32, %c0_i32_0 : i32, i32
  }
  func.func @transform_11(%arg0: i32) -> (i32, i32) {
    %c0_i32 = arith.constant 0 : i32
    %c0_i32_0 = arith.constant 0 : i32
    %c0_i32_1 = arith.constant 0 : i32
    return %c0_i32, %c0_i32_0 : i32, i32
  }
  func.func @transform_12(%arg0: i32) -> (i32, i32) {
    %c0_i32 = arith.constant 0 : i32
    %c0_i32_0 = arith.constant 0 : i32
    %c0_i32_1 = arith.constant 0 : i32
    return %c0_i32, %c0_i32_0 : i32, i32
  }
  func.func @transform_13(%arg0: i32) -> (i32, i32) {
    %c0_i32 = arith.constant 0 : i32
    %c0_i32_0 = arith.constant 0 : i32
    %c0_i32_1 = arith.constant 0 : i32
    return %c0_i32, %c0_i32_0 : i32, i32
  }
  func.func @transform_14(%arg0: i32) -> (i32, i32) {
    %c0_i32 = arith.constant 0 : i32
    %c0_i32_0 = arith.constant 0 : i32
    %c0_i32_1 = arith.constant 0 : i32
    return %c0_i32, %c0_i32_0 : i32, i32
  }
  func.func @transform_15(%arg0: i32) -> (i32, i32, i32) {
    %c0_i32 = arith.constant 0 : i32
    %c0_i32_0 = arith.constant 0 : i32
    %c0_i32_1 = arith.constant 0 : i32
    return %arg0, %c0_i32, %c0_i32_0 : i32, i32, i32
  }
}

</mosaic_0001>

<bundles_post_ra>
// kernel: tpu_custom_call.1
= control target key start
LH: loop header
LB: loop body
LE: loop exit
PB: predicated region body
PF: predicated region fallthrough
CT: control target
= control target key end

     0   :  { %s5608_s0 = inlined_call_operand.vmem [shape: bf16[4,8,32], index: 0, kind: input, shape index: {}]   ;;  %s5609_s1 = inlined_call_operand.vmem [shape: bf16[4,12,16], index: 1, kind: input, shape index: {}]   ;;  %s5610_s2 = inlined_call_operand.vmem [shape: bf16[32,32], index: 2, kind: input, shape index: {}]   ;;  %s5611_s3 = inlined_call_operand.vmem [shape: bf16[16,64], index: 3, kind: input, shape index: {}]   ;;  %s5612_s4 = inlined_call_operand.vmem [shape: bf16[32,32], index: 4, kind: input, shape index: {}]   ;;  %s5613_s5 = inlined_call_operand.vmem [shape: bf16[32,96], index: 5, kind: input, shape index: {}]   ;;  %s5614_s6 = inlined_call_operand.vmem [shape: bf16[32,32], index: 6, kind: input, shape index: {}]   ;;  %s5615_s7 = inlined_call_operand.vmem [shape: f32[1,32], index: 7, kind: input, shape index: {}]   ;;  %s5616_s8 = inlined_call_operand.vmem [shape: f32[1,32], index: 8, kind: input, shape index: {}]   ;;  %s5617_s9 = inlined_call_operand.vmem [shape: f32[1,32], index: 9, kind: input, shape index: {}]   ;;  %s5618_s10 = inlined_call_operand.vmem [shape: f32[1,32], index: 10, kind: input, shape index: {}]   ;;  %s5619_s11 = inlined_call_operand.vmem [shape: bf16[32,128], index: 11, kind: input, shape index: {}]   ;;  %s5620_s12 = inlined_call_operand.vmem [shape: f32[1,128], index: 12, kind: input, shape index: {}]   ;;  %s5621_s13 = inlined_call_operand.vmem [shape: bf16[128,32], index: 13, kind: input, shape index: {}]   ;;  %s5622_s14 = inlined_call_operand.vmem [shape: f32[1,32], index: 14, kind: input, shape index: {}]   ;;  %s5623_s15 = inlined_call_operand.hbm [shape: bf16[4,8,32], index: 15, kind: output, shape index: {}]  }
   0x1   :  { %5649 = sst [smem:[#allocation10_spill]] %s5608_s0 }
   0x2   :  { %5650 = sst [smem:[#allocation11_spill]] %s5609_s1 }
   0x3   :  { %20 = vsyncpa [#allocation3], 0 }
   0x4   :  { %22 = vsyncpa [#allocation3 + $0x1], 0  ;;  %s4839_s18 = smov 0   ;;  %s4841_s19 = smov 0  }
   0x5   :  { %s4843_s20 = smov 0   ;;  %s4845_s21 = smov 0  }
   0x6 LB: > { %5651 = sst [smem:[#allocation5_spill]] %s4730_s18  ;;  %s4860_s22 = sadd.s32 4294967295, %s4742_s21   ;;  %s4742_s21 = sphi %s4845_s21, %s5674_s21   ;;  %s4738_s20 = sphi %s4843_s20, %s5676_s20   ;;  %s4734_s19 = sphi %s4841_s19, %s5678_s19   ;;  %s4730_s18 = sphi %s4839_s18, %s5677_s18  }
   0x7   : > { %5652 = sst [smem:[#allocation6_spill]] %s4738_s20  ;;  %s3875_s23 = sadd.s32 4294967294, %s4742_s21  }
   0x8   : > { %s4864_s24 = sadd.s32 1, %s4742_s21   ;;  %s360_s25 = sadd.s32 1, %s4738_s20 }
   0x9   : > { %5653 = sst [smem:[#allocation7_spill]] %s4864_s24  ;;  %s357_s26 = ssub.s32 %s4742_s21, %s4864_s24 }
   0xa   : > { %p370_p0 = scmp.ne.s32.totalorder %s4738_s20, %s4734_s19  ;;  %p358_p1 = scmp.eq.s32.totalorder %s357_s26, 0 }
   0xb   : > { %p371_p2 = scmp.eq.s32.totalorder %s4860_s22, 1  ;;  %p376_p3 = scmp.ne.s32.totalorder %s4734_s19, %s4730_s18 }
   0xc   : > { %p377_p4 = scmp.eq.s32.totalorder %s3875_s23, 1  ;;  %p3878_p7 = scmp.ge.s32.totalorder %s4742_s21, 1 }
   0xd   : > { %s4875_s27 = scalar_select %p358_p1, %s4738_s20, %s360_s25  }
   0xe   : > { %p4877_p5 = por %p371_p2, %p370_p0  ;;  %p4881_p6 = por %p377_p4, %p376_p3 }
   0xf   : > { %5654 = sst [smem:[#allocation8_spill]] %s4875_s27  ;;  %p453_p8 = scmp.lt.s32.totalorder %s4742_s21, 3 }
  0x10   : > { %s5656_s29 = scalar_select %p4881_p6, 1, 0 }
  0x11   : > { %p454_p9 = pnand %p3878_p7, %p453_p8 }
  0x12   : > { %5657 = sst [smem:[#allocation9_spill]] %s5656_s29  ;;  %v4576_v0 = vld [vmem:[%s5610_s2] sm:$0xff] (!%p454_p9)   ;;  %v4744_v1 = vmov (!%p454_p9), 0.0   ;;  %v4577_v2 = vld [vmem:[%s5610_s2 + $0x8] sm:$0xff] (!%p454_p9)   ;;  %vm4745_vm0 = vmmov (!%p454_p9), 0   ;;  %s3880_s25 = sshll.u32 (!%p454_p9), %s4860_s22, 1 }
  0x13   : > { %457 = sbr.rel (%p454_p9) target bundleno = 9883 (0x269b), region = 80  ;;  %4111 = vmatprep.subr.bf16.mxu0 (!%p454_p9), %v4744_v1  ;;  %4137 = vmatprep.subr.bf16.mxu1 (!%p454_p9), %v4744_v1  ;;  %p508_p10 = scmp.lt.s32.totalorder (!%p454_p9), %s3880_s25, 3  ;;  %vm581_vm1 = vcmask (!%p454_p9), 261120   ;;  %v4578_v3 = vld [vmem:[%s5611_s3] sm:$0xff] (!%p454_p9)   ;;  %vm636_vm2 = vcmask (!%p454_p9), 130048   ;;  %vm683_vm3 = vcmask (!%p454_p9), 64512  }
  0x14   : > { %4112 = vmatpush3.bf16.msra.mxu0 (!%p454_p9), %v4576_v0  ;;  %4115 = vmatprep.mubr.msk.bf16.mxu0 (!%p454_p9), %vm4745_vm0, %v4744_v1  ;;  %s5658_s0 = sld [smem:[#allocation10_spill]] (!%p454_p9)  ;;  %s5659_s1 = sld [smem:[#allocation11_spill]] (!%p454_p9)  ;;  %vm749_vm4 = vcmask (!%p454_p9), 1045504   ;;  %vm731_vm5 = vcmask (!%p454_p9), 97280   ;;  %v529_v52 = vld [vmem:[%s5612_s4 + $0x4] sm:$0xf] (!%p454_p9) }
  0x15   : > { %4113 = vmatprep.subr.bf16.mxu0 (!%p454_p9), %v4744_v1  ;;  %4139 = vmatprep.mubr.msk.bf16.mxu1 (!%p454_p9), %vm4745_vm0, %v4744_v1  ;;  %s5644_s24 = smov (!%p454_p9), 120   ;;  %s5646_s27 = smov (!%p454_p9), 96   ;;  %vm911_vm6 = vcmask (!%p454_p9), 1043456   ;;  %vm2252_vm8 = vcmask (!%p454_p9), 257024  }
  0x16   : > { %s5633_s29 = smov (!%p454_p9), 112   ;;  %s5642_s26 = smov (!%p454_p9), 80   ;;  %v4976_v53 = vsel (!%p454_p9), %vm911_vm6, %v529_v52, 0 }
  0x17   : > { %s5629_s30 = smov (!%p454_p9), 104   ;;  %s5661_s23 = smov (!%p454_p9), 72  }
  0x18   : > { %4114 = vmatpush3.bf16.msra.mxu0 (!%p454_p9), %v4577_v2 }
  0x19   : > { %4119 = vmatprep.subr.bf16.mxu0 (!%p454_p9), %v4744_v1 }
  0x1a   : > { %s5680_s25 = smov (!%p508_p10, %s3880_s25), 3 }
  0x1b   : > { %s3881_s16 = sshll.u32 %s5680_s25, 2  ;;  %s3973_s17 = sshll.u32 %s5680_s25, 3 }
  0x1c   : > { %s4908_s20 = scalar_lea.vmem %s5658_s0, %s3881_s16  ;;  %s4913_s18 = scalar_lea.vmem %s5659_s1, %s3973_s17 }
  0x1d   : > { %v566_v4 = vld [vmem:[%s4908_s20] sm:$0xf]  ;;  %s5638_s25 = smov 88   ;;  %s5631_s16 = smov 72  }
  0x1e   : > { %4116 = vmatmul.mubr.msk.bf16.vlgmr.msra.gmra.mrb[0].mxu0 %vm581_vm1, %v566_v4  ;;  %v4579_v5 = vld [vmem:[%s4913_s18] sm:$0x3f]   ;;  %s5660_s17 = smov 112   ;;  %s5667_s1 = smov 64  }
  0x1f   : > { %4120 = vmatpush3.bf16.msra.mxu0 %v4578_v3  ;;  %4121 = vmatprep.mubr.msk.bf16.mxu0 %vm4745_vm0, %v4744_v1  ;;  %s5668_s0 = smov 56  }
  0x20   : > { %4125 = vmatprep.subr.bf16.mxu0 %v4744_v1 }
  0x26   : > { %4122 = vmatmul.mubr.msk.bf16.vlgmr.msra.gmra.mrb[4].mxu0 %vm636_vm2, %v4579_v5 }
  0x27   : > { %4127 = vmatprep.mubr.msk.bf16.mxu0 %vm4745_vm0, %v4744_v1 }
  0xf1   : > { %v619_v6 = vpop.f32.mrb[0].mxu0 }
  0xf2   : > { %v4117_v7 = vpop.f32.mrb[1].mxu0  ;;  %v681_v16 = vpack.c.bf16 %v619_v6, %v619_v6 }
  0xf3   : > { %v622_v8 = vpop.f32.mrb[2].mxu0 }
  0xf4   : > { %v4118_v9 = vpop.f32.mrb[3].mxu0 }
  0xf9   : > { %v674_v10 = vpop.f32.mrb[4].mxu0 }
  0xfa   : > { %v4123_v11 = vpop.f32.mrb[5].mxu0 }
  0xfb   : > { %v677_v12 = vpop.f32.mrb[6].mxu0 }
  0xfc   : > { %v4924_v13 = vpack.c.bf16 %v677_v12, %v674_v10  ;;  %v4124_v14 = vpop.f32.mrb[7].mxu0  ;;  %v528_v12 = vld [vmem:[%s5612_s4] sm:$0xf] }
  0xfd   : > { %v4989_v14 = vsel %vm911_vm6, %v528_v12, 0 }
  0xfe   : > { %798 = vrot.lane.b32.xlu0 %v4924_v13, %s5644_s24  ;;  %v688_v15 = vsel %vm683_vm3, %v4924_v13, 0 }
  0xff   : > { %4126 = vmatpush3.bf16.xpose.msra.mxu0 %v688_v15 }
 0x100   : > { %4131 = vmatprep.subr.bf16.mxu0 %v4744_v1 }
 0x102   : > { %796 = vrot.lane.b32.xlu0 %v681_v16, %s5644_s24 }
 0x106   : > { %744 = vrot.lane.b32.xlu0 %v4924_v13, %s5646_s27  ;;  %4128 = vmatmul.mubr.msk.bf16.vlgmr.msra.gmra.mrb[8].mxu0 %vm683_vm3, %v681_v16 }
 0x107   : > { %4133 = vmatprep.mubr.msk.bf16.mxu0 %vm4745_vm0, %v4744_v1 }
 0x10a   : > { %1003 = vrot.lane.b32.xlu0 %v4924_v13, %s5633_s29 }
 0x10e   : > { %1001 = vrot.lane.b32.xlu0 %v681_v16, %s5633_s29  ;;  %s5636_s29 = smov 64  }
 0x170   : > { %v799_v17 = vpop.permute.xlu0 %798 }
 0x171   : > { %v804_v18 = vsel %vm683_vm3, %v799_v17, 0 }
 0x172   : > { %4138 = vmatpush3.bf16.xpose.msra.mxu1 %v804_v18 }
 0x173   : > { %4149 = vmatprep.subr.bf16.mxu1 %v4744_v1 }
 0x174   : > { %v797_v19 = vpop.permute.xlu0 %796 }
 0x178   : > { %v745_v20 = vpop.permute.xlu0 %744 }
 0x179   : > { %v751_v21 = vsel %vm749_vm4, %v745_v20, 0  ;;  %4140 = vmatmul.mubr.msk.bf16.vlgmr.msra.gmra.mrb[0].mxu1 %vm683_vm3, %v797_v19 }
 0x17a   : > { %4132 = vmatpush3.bf16.msra.mxu0 %v751_v21  ;;  %4151 = vmatprep.mubr.msk.bf16.mxu1 %vm4745_vm0, %v4744_v1 }
 0x17b   : > { %4143 = vmatprep.subr.bf16.mxu0 %v4744_v1  ;;  %4150 = vmatpush3.bf16.msra.mxu1 %v4976_v53 }
 0x17c   : > { %v1004_v45 = vpop.permute.xlu0 %1003  ;;  %4155 = vmatprep.subr.bf16.mxu1 %v4744_v1 }
 0x17d   : > { %v1009_v48 = vsel %vm683_vm3, %v1004_v45, 0 }
 0x180   : > { %v1002_v50 = vpop.permute.xlu0 %1001 }
 0x1d9   : > { %v724_v22 = vpop.f32.mrb[8].mxu0 }
 0x1da   : > { %v730_v23 = vmul.f32 0.35355338, %v724_v22  ;;  %v4129_v24 = vpop.f32.mrb[9].mxu0 }
 0x1db   : > { %v727_v25 = vpop.f32.mrb[10].mxu0 }
 0x1dc   : > { %v4130_v26 = vpop.f32.mrb[11].mxu0  ;;  %v732_v27 = vsel %vm731_vm5, %v730_v23, -inf }
 0x1dd   : > { %733 = vmax.xlane.f32.xlu1 %v732_v27  ;;  %v530_v26 = vld [vmem:[%s5612_s4 + $0x8] sm:$0xf] }
 0x1de   : > { %v5009_v27 = vsel %vm911_vm6, %v530_v26, 0 }
 0x24c   : > { %v840_v28 = vpop.f32.mrb[0].mxu1 }
 0x24d   : > { %v846_v29 = vmul.f32 0.35355338, %v840_v28  ;;  %v4141_v30 = vpop.f32.mrb[1].mxu1 }
 0x24e   : > { %v843_v31 = vpop.f32.mrb[2].mxu1 }
 0x24f   : > { %v4142_v32 = vpop.f32.mrb[3].mxu1  ;;  %v847_v33 = vsel %vm731_vm5, %v846_v29, -inf }
 0x250   : > { %848 = vmax.xlane.f32.xlu1 %v847_v33 }
 0x261   : > { %858 = vrot.lane.b32.xlu1 %v4924_v13, %s5638_s25 }
 0x265   : > { %1063 = vrot.lane.b32.xlu1 %v4924_v13, %s5642_s26 }
 0x269   : > { %1162 = vrot.lane.b32.xlu1 %v4924_v13, %s5629_s30 }
 0x26a   : > { %v734_v34 = vpop.xlane.xlu1 %733 }
 0x26b   : > { %v735_v35 = vsub.f32 %v730_v23, %v734_v34 }
 0x26d   : > { %v736_v36 = vmul.f32 1.442695, %v735_v35  ;;  %1160 = vrot.lane.b32.xlu1 %v681_v16, %s5629_s30  ;;  %s5666_s30 = smov 88  }
 0x26f   : > { %4593 = vpow2.f32 %v736_v36 }
 0x279   : > { %v4594_v37 = vpop.eup %4593 }
 0x27a   : > { %v742_v38 = vpack.c.bf16 %v4594_v37, %v4594_v37  ;;  %v738_v11 = vsel %vm731_vm5, %v4594_v37, 0.0 }
 0x27c   : > { %4134 = vmatmul.mubr.msk.bf16.vlgmr.msra.gmra.mrb[12].mxu0 %vm731_vm5, %v742_v38 }
 0x27d   : > { %4145 = vmatprep.mubr.msk.bf16.mxu0 %vm4745_vm0, %v4744_v1 }
 0x2dd   : > { %v849_v39 = vpop.xlane.xlu1 %848 }
 0x2de   : > { %v850_v40 = vsub.f32 %v846_v29, %v849_v39 }
 0x2e0   : > { %v851_v41 = vmul.f32 1.442695, %v850_v40 }
 0x2e1   : > { %v859_v42 = vpop.permute.xlu1 %858 }
 0x2e2   : > { %4595 = vpow2.f32 %v851_v41  ;;  %v864_v43 = vsel %vm749_vm4, %v859_v42, 0 }
 0x2e3   : > { %4144 = vmatpush3.bf16.msra.mxu0 %v864_v43 }
 0x2e4   : > { %4161 = vmatprep.subr.bf16.mxu0 %v4744_v1 }
 0x2e5   : > { %v1064_v49 = vpop.permute.xlu1 %1063 }
 0x2e6   : > { %v1069_v51 = vsel %vm749_vm4, %v1064_v49, 0 }
 0x2e9   : > { %v1163_v58 = vpop.permute.xlu1 %1162 }
 0x2ea   : > { %v1168_v24 = vsel %vm683_vm3, %v1163_v58, 0 }
 0x2ec   : > { %v4596_v44 = vpop.eup %4595 }
 0x2ed   : > { %v853_v46 = vsel %vm731_vm5, %v4596_v44, 0.0  ;;  %v857_v47 = vpack.c.bf16 %v4596_v44, %v4596_v44  ;;  %v1161_v59 = vpop.permute.xlu1 %1160 }
 0x2ee   : > { %854 = vadd.xlane.f32.xlu1 %v853_v46 }
 0x2ef   : > { %4146 = vmatmul.mubr.msk.bf16.vlgmr.msra.gmra.mrb[16].mxu0 %vm731_vm5, %v857_v47 }
 0x2f0   : > { %4162 = vmatpush3.bf16.xpose.msra.mxu0 %v1009_v48  ;;  %4163 = vmatprep.mubr.msk.bf16.mxu0 %vm4745_vm0, %v4744_v1 }
 0x2f1   : > { %4167 = vmatprep.subr.bf16.mxu0 %v4744_v1 }
 0x2f7   : > { %4164 = vmatmul.mubr.msk.bf16.vlgmr.msra.gmra.mrb[20].mxu0 %vm683_vm3, %v1002_v50 }
 0x2f8   : > { %4168 = vmatpush3.bf16.msra.mxu0 %v1069_v51  ;;  %4169 = vmatprep.mubr.msk.bf16.mxu0 %vm4745_vm0, %v4744_v1 }
 0x2f9   : > { %4179 = vmatprep.subr.bf16.mxu0 %v4744_v1 }
 0x34f   : > { %v787_v54 = vpop.f32.mrb[12].mxu0 }
 0x350   : > { %v4135_v55 = vpop.f32.mrb[13].mxu0 }
 0x351   : > { %v790_v56 = vpop.f32.mrb[14].mxu0 }
 0x352   : > { %v4136_v57 = vpop.f32.mrb[15].mxu0 }
 0x37b   : > { %v855_v60 = vpop.xlane.xlu1 %854 }
 0x37c   : > { %4597 = vrcp.f32 %v855_v60 }
 0x386   : > { %v4598_v61 = vpop.eup %4597 }
 0x3c2   : > { %v900_v62 = vpop.f32.mrb[16].mxu0 }
 0x3c3   : > { %v906_v63 = vmul.f32 %v4598_v61, %v900_v62  ;;  %v4147_v0 = vpop.f32.mrb[17].mxu0 }
 0x3c4   : > { %v903_v2 = vpop.f32.mrb[18].mxu0 }
 0x3c5   : > { %v907_v3 = vpack.c.bf16 %v906_v63, %v906_v63  ;;  %v4148_v4 = vpop.f32.mrb[19].mxu0 }
 0x3c7   : > { %4152 = vmatmul.mubr.msk.bf16.vlgmr.msra.gmra.mrb[4].mxu1 %vm683_vm3, %v907_v3 }
 0x3c8   : > { %4157 = vmatprep.mubr.msk.bf16.mxu1 %vm4745_vm0, %v4744_v1  ;;  %4156 = vmatpush3.bf16.msra.mxu1 %v4989_v14 }
 0x3c9   : > { %4173 = vmatprep.subr.bf16.mxu1 %v4744_v1 }
 0x3ca   : > { %v1045_v5 = vpop.f32.mrb[20].mxu0 }
 0x3cb   : > { %v1051_v6 = vmul.f32 0.35355338, %v1045_v5  ;;  %v4165_v7 = vpop.f32.mrb[21].mxu0 }
 0x3cc   : > { %v1048_v8 = vpop.f32.mrb[22].mxu0  ;;  %v5045_v7 = vld [vmem:[%s5613_s5] sm:$0xff]  }
 0x3cd   : > { %v4166_v9 = vpop.f32.mrb[23].mxu0  ;;  %v1052_v10 = vsel %vm731_vm5, %v1051_v6, -inf  ;;  %v5051_v8 = vld [vmem:[%s5613_s5 + $0x8] sm:$0xff]  }
 0x3ce   : > { %1053 = vmax.xlane.f32.xlu0 %v1052_v10 }
 0x3d2   : > { %739 = vadd.xlane.f32.xlu0 %v738_v11 }
 0x45b   : > { %v1054_v15 = vpop.xlane.xlu0 %1053 }
 0x45c   : > { %v1055_v16 = vsub.f32 %v1051_v6, %v1054_v15  ;;  %v3903_v15 = vld [vmem:[%s5615_s7] ss:$0 sm:$0xff] }
 0x45e   : > { %v1056_v17 = vmul.f32 1.442695, %v1055_v16 }
 0x45f   : > { %v740_v18 = vpop.xlane.xlu0 %739 }
 0x460   : > { %4599 = vpow2.f32 %v1056_v17  ;;  %v3904_v17 = vld [vmem:[%s5616_s8] ss:$0 sm:$0xff] }
 0x461   : > { %4601 = vrcp.f32 %v740_v18 }
 0x46a   : > { %v4600_v19 = vpop.eup %4599 }
 0x46b   : > { %v4602_v20 = vpop.eup %4601  ;;  %v1058_v21 = vsel %vm731_vm5, %v4600_v19, 0.0  ;;  %v1062_v22 = vpack.c.bf16 %v4600_v19, %v4600_v19 }
 0x46c   : > { %v793_v23 = vmul.f32 %v4602_v20, %v787_v54  ;;  %1059 = vadd.xlane.f32.xlu0 %v1058_v21 }
 0x46d   : > { %4170 = vmatmul.mubr.msk.bf16.vlgmr.msra.gmra.mrb[24].mxu0 %vm731_vm5, %v1062_v22 }
 0x46e   : > { %4180 = vmatpush3.bf16.xpose.msra.mxu0 %v1168_v24  ;;  %v794_v25 = vpack.c.bf16 %v793_v23, %v793_v23  ;;  %4181 = vmatprep.mubr.msk.bf16.mxu0 %vm4745_vm0, %v4744_v1 }
 0x46f   : > { %4197 = vmatprep.subr.bf16.mxu0 %v4744_v1 }
 0x470   : > { %4158 = vmatmul.mubr.msk.bf16.vlgmr.msra.gmra.mrb[4].mxu1 %vm683_vm3, %v794_v25 }
 0x471   : > { %4175 = vmatprep.mubr.msk.bf16.mxu1 %vm4745_vm0, %v4744_v1  ;;  %4174 = vmatpush3.bf16.msra.mxu1 %v5009_v27 }
 0x472   : > { %4185 = vmatprep.subr.bf16.mxu1 %v4744_v1 }
 0x475   : > { %4182 = vmatmul.mubr.msk.bf16.vlgmr.msra.gmra.mrb[28].mxu0 %vm683_vm3, %v1161_v59 }
 0x476   : > { %4201 = vmatprep.mubr.msk.bf16.mxu0 %vm4745_vm0, %v4744_v1  ;;  %4198 = vmatpush3.bf16.msra.mxu0 %v5045_v7 }
 0x477   : > { %4199 = vmatprep.subr.bf16.mxu0 %v4744_v1 }
 0x47a   : > { %4200 = vmatpush3.bf16.msra.mxu0 %v5051_v8 }
 0x47b   : > { %4205 = vmatprep.subr.bf16.mxu0 %v4744_v1 }
 0x4f9   : > { %v1060_v28 = vpop.xlane.xlu0 %1059 }
 0x4fa   : > { %4603 = vrcp.f32 %v1060_v28 }
 0x504   : > { %v4604_v29 = vpop.eup %4603 }
 0x540   : > { %v1105_v30 = vpop.f32.mrb[24].mxu0 }
 0x541   : > { %v1111_v31 = vmul.f32 %v4604_v29, %v1105_v30  ;;  %v4171_v32 = vpop.f32.mrb[25].mxu0 }
 0x542   : > { %v1108_v33 = vpop.f32.mrb[26].mxu0 }
 0x543   : > { %v1112_v34 = vpack.c.bf16 %v1111_v31, %v1111_v31  ;;  %v4172_v35 = vpop.f32.mrb[27].mxu0 }
 0x545   : > { %4176 = vmatmul.mubr.msk.bf16.vlgmr.msra.gmra.mrb[4].mxu1 %vm683_vm3, %v1112_v34 }
 0x546   : > { %4187 = vmatprep.mubr.msk.bf16.mxu1 %vm4745_vm0, %v4744_v1 }
 0x548   : > { %v1204_v36 = vpop.f32.mrb[28].mxu0 }
 0x549   : > { %v1210_v37 = vmul.f32 0.35355338, %v1204_v36  ;;  %v4183_v38 = vpop.f32.mrb[29].mxu0 }
 0x54a   : > { %v1207_v39 = vpop.f32.mrb[30].mxu0 }
 0x54b   : > { %v4184_v40 = vpop.f32.mrb[31].mxu0  ;;  %v1211_v41 = vsel %vm731_vm5, %v1210_v37, -inf }
 0x54c   : > { %1212 = vmax.xlane.f32.xlu0 %v1211_v41 }
 0x562   : > { %1222 = vrot.lane.b32.xlu0 %v4924_v13, %s5631_s16  ;;  %v531_v13 = vld [vmem:[%s5612_s4 + $0xc] sm:$0xf]  ;;  %s5635_s16 = smov 56  }
 0x563   : > { %v5029_v50 = vsel %vm911_vm6, %v531_v13, 0 }
 0x5d9   : > { %v1213_v42 = vpop.xlane.xlu0 %1212 }
 0x5da   : > { %v1214_v43 = vsub.f32 %v1210_v37, %v1213_v42 }
 0x5dc   : > { %v1215_v44 = vmul.f32 1.442695, %v1214_v43 }
 0x5dd   : > { %v1223_v45 = vpop.permute.xlu0 %1222 }
 0x5de   : > { %4605 = vpow2.f32 %v1215_v44  ;;  %v1228_v46 = vsel %vm749_vm4, %v1223_v45, 0 }
 0x5df   : > { %4186 = vmatpush3.bf16.msra.mxu1 %v1228_v46 }
 0x5e0   : > { %4191 = vmatprep.subr.bf16.mxu1 %v4744_v1 }
 0x5e8   : > { %v4606_v47 = vpop.eup %4605 }
 0x5e9   : > { %v1217_v48 = vsel %vm731_vm5, %v4606_v47, 0.0  ;;  %v1221_v49 = vpack.c.bf16 %v4606_v47, %v4606_v47 }
 0x5ea   : > { %1218 = vadd.xlane.f32.xlu1 %v1217_v48 }
 0x5eb   : > { %4188 = vmatmul.mubr.msk.bf16.vlgmr.msra.gmra.mrb[8].mxu1 %vm731_vm5, %v1221_v49 }
 0x5ec   : > { %4193 = vmatprep.mubr.msk.bf16.mxu1 %vm4745_vm0, %v4744_v1  ;;  %4192 = vmatpush3.bf16.msra.mxu1 %v5029_v50 }
 0x5ed   : > { %4211 = vmatprep.subr.bf16.mxu1 %v4744_v1 }
 0x677   : > { %v1219_v51 = vpop.xlane.xlu1 %1218 }
 0x678   : > { %4607 = vrcp.f32 %v1219_v51 }
 0x682   : > { %v4608_v52 = vpop.eup %4607 }
 0x6be   : > { %v1264_v54 = vpop.f32.mrb[8].mxu1 }
 0x6bf   : > { %v1270_v55 = vmul.f32 %v4608_v52, %v1264_v54  ;;  %v4189_v56 = vpop.f32.mrb[9].mxu1 }
 0x6c0   : > { %v1267_v57 = vpop.f32.mrb[10].mxu1 }
 0x6c1   : > { %v1271_v58 = vpack.c.bf16 %v1270_v55, %v1270_v55  ;;  %v4190_v59 = vpop.f32.mrb[11].mxu1 }
 0x6c3   : > { %4194 = vmatmul.mubr.msk.bf16.vlgmr.msra.gmra.mrb[4].mxu1 %vm683_vm3, %v1271_v58 }
 0x6c4   : > { %4213 = vmatprep.mubr.msk.bf16.mxu1 %vm4745_vm0, %v4744_v1 }
 0x796   : > { %v5036_v60 = vpop.f32.mrb[4].mxu1 }
 0x797   : > { %v4195_v61 = vpop.f32.mrb[5].mxu1  ;;  %v1319_v62 = vsel %vm581_vm1, %v5036_v60, 0.0 }
 0x798   : > { %1320 = vadd.xlane.f32.xlu1 %v1319_v62  ;;  %v1315_v63 = vpop.f32.mrb[6].mxu1  ;;  %v536_v62 = vld [vmem:[%s5614_s6] sm:$0xf] }
 0x799   : > { %v4196_v0 = vpop.f32.mrb[7].mxu1  ;;  %v5112_v63 = vsel %vm911_vm6, %v536_v62, 0 }
 0x79a   : > { %v537_v0 = vld [vmem:[%s5614_s6 + $0x4] sm:$0xf] }
 0x825   : > { %v1321_v2 = vpop.xlane.xlu1 %1320 }
 0x826   : > { %v1323_v3 = vmul.f32 0.03125, %v1321_v2  ;;  %v5119_v2 = vsel %vm911_vm6, %v537_v0, 0 }
 0x828   : > { %v1324_v4 = vsub.f32 %v5036_v60, %v1323_v3 }
 0x82a   : > { %v1325_v5 = vmul.f32 %v1324_v4, %v1324_v4 }
 0x82c   : > { %v1326_v6 = vsel %vm581_vm1, %v1325_v5, 0.0 }
 0x82d   : > { %1327 = vadd.xlane.f32.xlu1 %v1326_v6 }
 0x8ba   : > { %v1328_v9 = vpop.xlane.xlu1 %1327 }
 0x8bb   : > { %v1329_v10 = vmul.f32 0.03125, %v1328_v9 }
 0x8bd   : > { %v1330_v11 = vadd.f32 1e-05, %v1329_v10 }
 0x8bf   : > { %4609 = vrsqrt.f32 %v1330_v11 }
 0x8c9   : > { %v4610_v12 = vpop.eup %4609 }
 0x8ca   : > { %v1332_v16 = vmul.f32 %v4610_v12, %v1324_v4 }
 0x8cc   : > { %v1339_v18 = vmul.f32 %v3903_v15, %v1332_v16 }
 0x8ce   : > { %v1346_v19 = vadd.f32 %v3904_v17, %v1339_v18 }
 0x8d0   : > { %v1347_v20 = vpack.c.bf16 %v1346_v19, %v1346_v19 }
 0x8d2   : > { %4202 = vmatmul.mubr.msk.bf16.vlgmr.msra.gmra.mrb[32].mxu0 %vm581_vm1, %v1347_v20 }
 0x8d3   : > { %4207 = vmatprep.mubr.msk.bf16.mxu0 %vm4745_vm0, %v4744_v1 }
 0x9a5   : > { %v1397_v21 = vpop.f32.mrb[32].mxu0 }
 0x9a6   : > { %v5065_v22 = vpack.c.bf16 %v1397_v21, %v1397_v21  ;;  %v4203_v23 = vpop.f32.mrb[33].mxu0 }
 0x9a7   : > { %v1400_v24 = vpop.f32.mrb[34].mxu0 }
 0x9a8   : > { %1517 = vrot.lane.b32.xlu1 %v5065_v22, %s5638_s25  ;;  %1405 = vrot.lane.b32.xlu0 %v5065_v22, %s5646_s27  ;;  %v4204_v25 = vpop.f32.mrb[35].mxu0  ;;  %s5640_s25 = smov 48   ;;  %s5663_s27 = smov 96  }
 0x9ac   : > { %1515 = vrot.lane.b32.xlu0 %v5065_v22, %s5644_s24 }
 0xa1a   : > { %v1406_v26 = vpop.permute.xlu0 %1405  ;;  %v1518_v29 = vpop.permute.xlu1 %1517 }
 0xa1b   : > { %v1411_v28 = vsel %vm683_vm3, %v1406_v26, 0  ;;  %v1523_v30 = vsel %vm683_vm3, %v1518_v29, 0 }
 0xa1c   : > { %4206 = vmatpush3.bf16.xpose.msra.mxu0 %v1411_v28 }
 0xa1d   : > { %4217 = vmatprep.subr.bf16.mxu0 %v4744_v1 }
 0xa1e   : > { %v1516_v31 = vpop.permute.xlu0 %1515 }
 0xa23   : > { %4208 = vmatmul.mubr.msk.bf16.vlgmr.msra.gmra.mrb[36].mxu0 %vm683_vm3, %v5065_v22 }
 0xa24   : > { %4218 = vmatpush3.bf16.xpose.msra.mxu0 %v1523_v30  ;;  %4219 = vmatprep.mubr.msk.bf16.mxu0 %vm4745_vm0, %v4744_v1 }
 0xa25   : > { %4229 = vmatprep.subr.bf16.mxu0 %v4744_v1 }
 0xa2b   : > { %4220 = vmatmul.mubr.msk.bf16.vlgmr.msra.gmra.mrb[40].mxu0 %vm683_vm3, %v1516_v31 }
 0xa2c   : > { %4231 = vmatprep.mubr.msk.bf16.mxu0 %vm4745_vm0, %v4744_v1  ;;  %4230 = vmatpush3.bf16.msra.mxu0 %v5119_v2 }
 0xa2d   : > { %4241 = vmatprep.subr.bf16.mxu0 %v4744_v1 }
 0xaf6   : > { %v1447_v32 = vpop.f32.mrb[36].mxu0 }
 0xaf7   : > { %v1453_v33 = vmul.f32 0.35355338, %v1447_v32  ;;  %v4209_v34 = vpop.f32.mrb[37].mxu0 }
 0xaf8   : > { %v1450_v35 = vpop.f32.mrb[38].mxu0 }
 0xaf9   : > { %v4210_v36 = vpop.f32.mrb[39].mxu0  ;;  %v1454_v37 = vsel %vm683_vm3, %v1453_v33, -inf }
 0xafa   : > { %1455 = vmax.xlane.f32.xlu0 %v1454_v37 }
 0xafe   : > { %v1559_v38 = vpop.f32.mrb[40].mxu0 }
 0xaff   : > { %v1565_v39 = vmul.f32 0.35355338, %v1559_v38  ;;  %v4221_v40 = vpop.f32.mrb[41].mxu0 }
 0xb00   : > { %v1562_v41 = vpop.f32.mrb[42].mxu0 }
 0xb01   : > { %v4222_v42 = vpop.f32.mrb[43].mxu0  ;;  %v1566_v43 = vsel %vm683_vm3, %v1565_v39, -inf }
 0xb02   : > { %1567 = vmax.xlane.f32.xlu1 %v1566_v43 }
 0xb10   : > { %1465 = vrot.lane.b32.xlu0 %v5065_v22, %s5636_s29  ;;  %s5662_s29 = smov 104  }
 0xb13   : > { %1577 = vrot.lane.b32.xlu1 %v5065_v22, %s5635_s16  ;;  %s5641_s16 = smov 40  }
 0xb17   : > { %1721 = vrot.lane.b32.xlu1 %v5065_v22, %s5642_s26 }
 0xb1b   : > { %1719 = vrot.lane.b32.xlu1 %v5065_v22, %s5660_s17 }
 0xb87   : > { %v1456_v44 = vpop.xlane.xlu0 %1455 }
 0xb88   : > { %v1457_v45 = vsub.f32 %v1453_v33, %v1456_v44 }
 0xb8a   : > { %v1458_v46 = vmul.f32 1.442695, %v1457_v45 }
 0xb8b   : > { %v1466_v47 = vpop.permute.xlu0 %1465 }
 0xb8c   : > { %4611 = vpow2.f32 %v1458_v46  ;;  %v1471_v48 = vsel %vm911_vm6, %v1466_v47, 0 }
 0xb8d   : > { %4212 = vmatpush3.bf16.msra.mxu1 %v1471_v48 }
 0xb8e   : > { %4223 = vmatprep.subr.bf16.mxu1 %v4744_v1 }
 0xb8f   : > { %v1568_v49 = vpop.xlane.xlu1 %1567 }
 0xb90   : > { %v1569_v13 = vsub.f32 %v1565_v39, %v1568_v49 }
 0xb92   : > { %v1570_v51 = vmul.f32 1.442695, %v1569_v13 }
 0xb93   : > { %v1578_v54 = vpop.permute.xlu1 %1577 }
 0xb94   : > { %4613 = vpow2.f32 %v1570_v51  ;;  %v1583_v57 = vsel %vm911_vm6, %v1578_v54, 0 }
 0xb96   : > { %v4612_v52 = vpop.eup %4611 }
 0xb97   : > { %v1460_v55 = vsel %vm683_vm3, %v4612_v52, 0.0  ;;  %v1464_v56 = vpack.c.bf16 %v4612_v52, %v4612_v52  ;;  %v1722_v3 = vpop.permute.xlu1 %1721 }
 0xb98   : > { %1461 = vadd.xlane.f32.xlu1 %v1460_v55  ;;  %v1727_v26 = vsel %vm683_vm3, %v1722_v3, 0  ;;  %v538_v55 = vld [vmem:[%s5614_s6 + $0x8] sm:$0xf] }
 0xb99   : > { %4214 = vmatmul.mubr.msk.bf16.vlgmr.msra.gmra.mrb[12].mxu1 %vm683_vm3, %v1464_v56  ;;  %v5159_v56 = vsel %vm911_vm6, %v538_v55, 0 }
 0xb9a   : > { %4224 = vmatpush3.bf16.msra.mxu1 %v1583_v57  ;;  %4225 = vmatprep.mubr.msk.bf16.mxu1 %vm4745_vm0, %v4744_v1 }
 0xb9b   : > { %4235 = vmatprep.subr.bf16.mxu1 %v4744_v1  ;;  %v1720_v4 = vpop.permute.xlu1 %1719 }
 0xb9e   : > { %v4614_v58 = vpop.eup %4613 }
 0xb9f   : > { %v1572_v59 = vsel %vm683_vm3, %v4614_v58, 0.0  ;;  %v1576_v61 = vpack.c.bf16 %v4614_v58, %v4614_v58 }
 0xba0   : > { %1573 = vadd.xlane.f32.xlu0 %v1572_v59 }
 0xba1   : > { %4226 = vmatmul.mubr.msk.bf16.vlgmr.msra.gmra.mrb[16].mxu1 %vm683_vm3, %v1576_v61 }
 0xba2   : > { %4237 = vmatprep.mubr.msk.bf16.mxu1 %vm4745_vm0, %v4744_v1  ;;  %4236 = vmatpush3.bf16.msra.mxu1 %v5112_v63 }
 0xba3   : > { %4247 = vmatprep.subr.bf16.mxu1 %v4744_v1 }
 0xba9   : > { %1880 = vrot.lane.b32.xlu1 %v5065_v22, %s5661_s23 }
 0xc25   : > { %v1462_v5 = vpop.xlane.xlu1 %1461 }
 0xc26   : > { %4615 = vrcp.f32 %v1462_v5 }
 0xc29   : > { %v1881_v49 = vpop.permute.xlu1 %1880 }
 0xc2a   : > { %v1886_v52 = vsel %vm683_vm3, %v1881_v49, 0 }
 0xc2d   : > { %v1574_v6 = vpop.xlane.xlu0 %1573 }
 0xc2e   : > { %4617 = vrcp.f32 %v1574_v6 }
 0xc30   : > { %v4616_v9 = vpop.eup %4615 }
 0xc38   : > { %v4618_v18 = vpop.eup %4617 }
 0xc6c   : > { %v1507_v10 = vpop.f32.mrb[12].mxu1 }
 0xc6d   : > { %v1513_v11 = vmul.f32 %v4616_v9, %v1507_v10  ;;  %v4215_v12 = vpop.f32.mrb[13].mxu1 }
 0xc6e   : > { %v1510_v15 = vpop.f32.mrb[14].mxu1 }
 0xc6f   : > { %v1514_v16 = vpack.c.bf16 %v1513_v11, %v1513_v11  ;;  %v4216_v17 = vpop.f32.mrb[15].mxu1 }
 0xc71   : > { %4238 = vmatmul.mubr.msk.bf16.vlgmr.msra.gmra.mrb[20].mxu1 %vm683_vm3, %v1514_v16 }
 0xc72   : > { %4249 = vmatprep.mubr.msk.bf16.mxu1 %vm4745_vm0, %v4744_v1 }
 0xc74   : > { %v1619_v19 = vpop.f32.mrb[16].mxu1 }
 0xc75   : > { %v1625_v20 = vmul.f32 %v4618_v18, %v1619_v19  ;;  %v4227_v21 = vpop.f32.mrb[17].mxu1 }
 0xc76   : > { %v1622_v23 = vpop.f32.mrb[18].mxu1 }
 0xc77   : > { %v1626_v24 = vpack.c.bf16 %v1625_v20, %v1625_v20  ;;  %v4228_v25 = vpop.f32.mrb[19].mxu1  ;;  %v539_v23 = vld [vmem:[%s5614_s6 + $0xc] sm:$0xf] }
 0xc79   : > { %4232 = vmatmul.mubr.msk.bf16.vlgmr.msra.gmra.mrb[44].mxu0 %vm683_vm3, %v1626_v24  ;;  %v5177_v24 = vsel %vm911_vm6, %v539_v23, 0 }
 0xc7a   : > { %4242 = vmatpush3.bf16.xpose.msra.mxu0 %v1727_v26  ;;  %4243 = vmatprep.mubr.msk.bf16.mxu0 %vm4745_vm0, %v4744_v1 }
 0xc7b   : > { %4253 = vmatprep.subr.bf16.mxu0 %v4744_v1 }
 0xc81   : > { %4244 = vmatmul.mubr.msk.bf16.vlgmr.msra.gmra.mrb[48].mxu0 %vm683_vm3, %v1720_v4 }
 0xc82   : > { %4255 = vmatprep.mubr.msk.bf16.mxu0 %vm4745_vm0, %v4744_v1  ;;  %4254 = vmatpush3.bf16.msra.mxu0 %v5159_v56 }
 0xc83   : > { %4265 = vmatprep.subr.bf16.mxu0 %v4744_v1 }
 0xd44   : > { %v1713_v28 = vpop.f32.mrb[20].mxu1 }
 0xd45   : > { %v4239_v29 = vpop.f32.mrb[21].mxu1 }
 0xd46   : > { %v1716_v30 = vpop.f32.mrb[22].mxu1 }
 0xd47   : > { %v4240_v31 = vpop.f32.mrb[23].mxu1 }
 0xd4c   : > { %v1667_v32 = vpop.f32.mrb[44].mxu0 }
 0xd4d   : > { %v5135_v33 = vadd.f32 %v1713_v28, %v1667_v32  ;;  %v4233_v34 = vpop.f32.mrb[45].mxu0 }
 0xd4e   : > { %v1670_v35 = vpop.f32.mrb[46].mxu0 }
 0xd4f   : > { %v4234_v36 = vpop.f32.mrb[47].mxu0 }
 0xd54   : > { %v1763_v37 = vpop.f32.mrb[48].mxu0 }
 0xd55   : > { %v1769_v38 = vmul.f32 0.35355338, %v1763_v37  ;;  %v4245_v39 = vpop.f32.mrb[49].mxu0 }
 0xd56   : > { %v1766_v40 = vpop.f32.mrb[50].mxu0 }
 0xd57   : > { %v4246_v41 = vpop.f32.mrb[51].mxu0  ;;  %v1770_v42 = vsel %vm683_vm3, %v1769_v38, -inf }
 0xd58   : > { %1771 = vmax.xlane.f32.xlu0 %v1770_v42 }
 0xd6e   : > { %1781 = vrot.lane.b32.xlu0 %v5065_v22, %s5640_s25  ;;  %s5664_s25 = smov 120  }
 0xd72   : > { %1878 = vrot.lane.b32.xlu0 %v5065_v22, %s5662_s29 }
 0xde5   : > { %v1772_v43 = vpop.xlane.xlu0 %1771 }
 0xde6   : > { %v1773_v44 = vsub.f32 %v1769_v38, %v1772_v43 }
 0xde8   : > { %v1774_v45 = vmul.f32 1.442695, %v1773_v44 }
 0xde9   : > { %v1782_v46 = vpop.permute.xlu0 %1781 }
 0xdea   : > { %4619 = vpow2.f32 %v1774_v45  ;;  %v1787_v47 = vsel %vm911_vm6, %v1782_v46, 0 }
 0xdeb   : > { %4248 = vmatpush3.bf16.msra.mxu1 %v1787_v47 }
 0xdec   : > { %4259 = vmatprep.subr.bf16.mxu1 %v4744_v1 }
 0xded   : > { %v1879_v54 = vpop.permute.xlu0 %1878 }
 0xdf4   : > { %v4620_v48 = vpop.eup %4619 }
 0xdf5   : > { %v1776_v13 = vsel %vm683_vm3, %v4620_v48, 0.0  ;;  %v1780_v51 = vpack.c.bf16 %v4620_v48, %v4620_v48 }
 0xdf6   : > { %1777 = vadd.xlane.f32.xlu0 %v1776_v13 }
 0xdf7   : > { %4250 = vmatmul.mubr.msk.bf16.vlgmr.msra.gmra.mrb[24].mxu1 %vm683_vm3, %v1780_v51  ;;  %v5195_v51 = vld [vmem:[%s5619_s11] sm:$0xff]  }
 0xdf8   : > { %4260 = vmatpush3.bf16.xpose.msra.mxu1 %v1886_v52  ;;  %4261 = vmatprep.mubr.msk.bf16.mxu1 %vm4745_vm0, %v4744_v1 }
 0xdf9   : > { %4271 = vmatprep.subr.bf16.mxu1 %v4744_v1 }
 0xdff   : > { %4262 = vmatmul.mubr.msk.bf16.vlgmr.msra.gmra.mrb[28].mxu1 %vm683_vm3, %v1879_v54 }
 0xe00   : > { %4273 = vmatprep.mubr.msk.bf16.mxu1 %vm4745_vm0, %v4744_v1  ;;  %4272 = vmatpush3.bf16.msra.mxu1 %v5177_v24 }
 0xe01   : > { %4285 = vmatprep.subr.bf16.mxu1 %v4744_v1 }
 0xe0c   : > { %1940 = vrot.lane.b32.xlu0 %v5065_v22, %s5641_s16 }
 0xe83   : > { %v1778_v57 = vpop.xlane.xlu0 %1777 }
 0xe84   : > { %4621 = vrcp.f32 %v1778_v57 }
 0xe87   : > { %v1941_v0 = vpop.permute.xlu0 %1940 }
 0xe88   : > { %v1946_v5 = vsel %vm911_vm6, %v1941_v0, 0 }
 0xe8e   : > { %v4622_v58 = vpop.eup %4621 }
 0xeca   : > { %v1823_v59 = vpop.f32.mrb[24].mxu1 }
 0xecb   : > { %v1829_v61 = vmul.f32 %v4622_v58, %v1823_v59  ;;  %v4251_v62 = vpop.f32.mrb[25].mxu1  ;;  %v3920_v58 = vld [vmem:[%s5617_s9] ss:$0 sm:$0xff] }
 0xecc   : > { %v1826_v3 = vpop.f32.mrb[26].mxu1 }
 0xecd   : > { %v1830_v22 = vpack.c.bf16 %v1829_v61, %v1829_v61  ;;  %v4252_v4 = vpop.f32.mrb[27].mxu1  ;;  %v3921_v61 = vld [vmem:[%s5618_s10] ss:$0 sm:$0xff] }
 0xece   : > { %v3935_v4 = vld [vmem:[%s4908_s20 + $0x4] sm:$0xf]  ;;  %s5665_s20 = smov 80  }
 0xecf   : > { %4256 = vmatmul.mubr.msk.bf16.vlgmr.msra.gmra.mrb[52].mxu0 %vm683_vm3, %v1830_v22  ;;  %v4673_v22 = vld [vmem:[%s5610_s2] sm:$0xff]  }
 0xed0   : > { %4266 = vmatpush3.bf16.msra.mxu0 %v1946_v5  ;;  %4267 = vmatprep.mubr.msk.bf16.mxu0 %vm4745_vm0, %v4744_v1  ;;  %v4674_v5 = vld [vmem:[%s5610_s2 + $0x8] sm:$0xff]  }
 0xed1   : > { %4277 = vmatprep.subr.bf16.mxu0 %v4744_v1 }
 0xed2   : > { %v1922_v6 = vpop.f32.mrb[28].mxu1 }
 0xed3   : > { %v1928_v9 = vmul.f32 0.35355338, %v1922_v6  ;;  %v4263_v10 = vpop.f32.mrb[29].mxu1  ;;  %v4675_v6 = vld [vmem:[%s5611_s3] sm:$0xff]  }
 0xed4   : > { %v1925_v11 = vpop.f32.mrb[30].mxu1  ;;  %v5238_v10 = vld [vmem:[%s5621_s13] sm:$0xff]  }
 0xed5   : > { %v4264_v12 = vpop.f32.mrb[31].mxu1  ;;  %v1929_v15 = vsel %vm683_vm3, %v1928_v9, -inf  ;;  %v5245_v11 = vld [vmem:[%s5621_s13 + $0x8] sm:$0xff]  }
 0xed6   : > { %1930 = vmax.xlane.f32.xlu1 %v1929_v15  ;;  %v5252_v12 = vld [vmem:[%s5621_s13 + $0x10] sm:$0xff]   ;;  %v5259_v15 = vld [vmem:[%s5621_s13 + $0x18] sm:$0xff]  }
 0xf63   : > { %v1931_v16 = vpop.xlane.xlu1 %1930 }
 0xf64   : > { %v1932_v17 = vsub.f32 %v1928_v9, %v1931_v16  ;;  %v4584_v9 = vld [vmem:[%s4913_s18 + $0x8] sm:$0x3f]   ;;  %v5266_v16 = vld [vmem:[%s5621_s13 + $0x20] sm:$0xff]   ;;  %s5648_s18 = sand.u32 1, %s4734_s19  }
 0xf65   : > { %s3879_s16 = sshll.u32 %s5648_s18, 3 }
 0xf66   : > { %v1933_v18 = vmul.f32 1.442695, %v1932_v17  ;;  %v5273_v17 = vld [vmem:[%s5621_s13 + $0x28] sm:$0xff]   ;;  %s5342_s24 = scalar_lea.vmem [#allocation2], %s3879_s16 }
 0xf68   : > { %4623 = vpow2.f32 %v1933_v18  ;;  %v5280_v18 = vld [vmem:[%s5621_s13 + $0x30] sm:$0xff]  }
 0xf72   : > { %v4624_v19 = vpop.eup %4623 }
 0xf73   : > { %v1935_v20 = vsel %vm683_vm3, %v4624_v19, 0.0  ;;  %v1939_v21 = vpack.c.bf16 %v4624_v19, %v4624_v19  ;;  %v5287_v19 = vld [vmem:[%s5621_s13 + $0x38] sm:$0xff]  }
 0xf74   : > { %1936 = vadd.xlane.f32.xlu1 %v1935_v20  ;;  %v5294_v20 = vld [vmem:[%s5620_s12] ss:$0 sm:$0xff] }
 0xf75   : > { %4268 = vmatmul.mubr.msk.bf16.vlgmr.msra.gmra.mrb[56].mxu0 %vm683_vm3, %v1939_v21 }
 0xf76   : > { %4281 = vmatprep.mubr.msk.bf16.mxu0 %vm4745_vm0, %v4744_v1  ;;  %4278 = vmatpush3.bf16.msra.mxu0 %v5195_v51 }
 0xf77   : > { %4279 = vmatprep.subr.bf16.mxu0 %v4744_v1 }
 0xfa2   : > { %v1871_v25 = vpop.f32.mrb[52].mxu0 }
 0xfa3   : > { %v1877_v26 = vadd.f32 %v1871_v25, %v5135_v33  ;;  %v4257_v28 = vpop.f32.mrb[53].mxu0 }
 0xfa4   : > { %v1874_v29 = vpop.f32.mrb[54].mxu0 }
 0xfa5   : > { %v4258_v30 = vpop.f32.mrb[55].mxu0 }
0x1001   : > { %v1937_v31 = vpop.xlane.xlu1 %1936 }
0x1002   : > { %4625 = vrcp.f32 %v1937_v31 }
0x100c   : > { %v4626_v32 = vpop.eup %4625 }
0x1048   : > { %v1982_v34 = vpop.f32.mrb[56].mxu0 }
0x1049   : > { %v1988_v35 = vmul.f32 %v4626_v32, %v1982_v34  ;;  %v4269_v36 = vpop.f32.mrb[57].mxu0 }
0x104a   : > { %v1985_v37 = vpop.f32.mrb[58].mxu0 }
0x104b   : > { %v1989_v38 = vpack.c.bf16 %v1988_v35, %v1988_v35  ;;  %v4270_v39 = vpop.f32.mrb[59].mxu0 }
0x104d   : > { %4274 = vmatmul.mubr.msk.bf16.vlgmr.msra.gmra.mrb[32].mxu1 %vm683_vm3, %v1989_v38 }
0x104e   : > { %4301 = vmatprep.mubr.msk.bf16.mxu1 %vm4745_vm0, %v4744_v1  ;;  %4286 = vmatpush3.bf16.msra.mxu1 %v5238_v10 }
0x104f   : > { %4287 = vmatprep.subr.bf16.mxu1 %v4744_v1 }
0x1052   : > { %4288 = vmatpush3.bf16.msra.mxu1 %v5245_v11 }
0x1053   : > { %4289 = vmatprep.subr.bf16.mxu1 %v4744_v1 }
0x1056   : > { %4290 = vmatpush3.bf16.msra.mxu1 %v5252_v12 }
0x1057   : > { %4291 = vmatprep.subr.bf16.mxu1 %v4744_v1 }
0x105a   : > { %4292 = vmatpush3.bf16.msra.mxu1 %v5259_v15 }
0x105b   : > { %4293 = vmatprep.subr.bf16.mxu1 %v4744_v1 }
0x105e   : > { %4294 = vmatpush3.bf16.msra.mxu1 %v5266_v16 }
0x105f   : > { %4295 = vmatprep.subr.bf16.mxu1 %v4744_v1 }
0x1062   : > { %4296 = vmatpush3.bf16.msra.mxu1 %v5273_v17 }
0x1063   : > { %4297 = vmatprep.subr.bf16.mxu1 %v4744_v1 }
0x1066   : > { %4298 = vmatpush3.bf16.msra.mxu1 %v5280_v18 }
0x1067   : > { %4299 = vmatprep.subr.bf16.mxu1 %v4744_v1 }
0x106a   : > { %4300 = vmatpush3.bf16.msra.mxu1 %v5287_v19 }
0x106b   : > { %4331 = vmatprep.subr.bf16.mxu1 %v4744_v1 }
0x1120   : > { %v2030_v40 = vpop.f32.mrb[32].mxu1 }
0x1121   : > { %v2036_v41 = vadd.f32 %v2030_v40, %v1877_v26  ;;  %v4275_v33 = vpop.f32.mrb[33].mxu1 }
0x1122   : > { %v2033_v42 = vpop.f32.mrb[34].mxu1 }
0x1123   : > { %v5186_v43 = vadd.f32 %v2036_v41, %v5036_v60  ;;  %v4276_v44 = vpop.f32.mrb[35].mxu1  ;;  %v5201_v60 = vld [vmem:[%s5619_s11 + $0x8] sm:$0xff]  }
0x1124   : > { %4280 = vmatpush3.bf16.msra.mxu0 %v5201_v60 }
0x1125   : > { %v2038_v45 = vsel %vm581_vm1, %v5186_v43, 0.0  ;;  %4305 = vmatprep.subr.bf16.mxu0 %v4744_v1 }
0x1126   : > { %2039 = vadd.xlane.f32.xlu1 %v2038_v45 }
0x11b3   : > { %v2040_v46 = vpop.xlane.xlu1 %2039 }
0x11b4   : > { %v2041_v47 = vmul.f32 0.03125, %v2040_v46 }
0x11b6   : > { %v2042_v48 = vsub.f32 %v5186_v43, %v2041_v47 }
0x11b8   : > { %v2043_v49 = vmul.f32 %v2042_v48, %v2042_v48 }
0x11ba   : > { %v2044_v13 = vsel %vm581_vm1, %v2043_v49, 0.0 }
0x11bb   : > { %2045 = vadd.xlane.f32.xlu0 %v2044_v13 }
0x1248   : > { %v2046_v52 = vpop.xlane.xlu0 %2045 }
0x1249   : > { %v2047_v54 = vmul.f32 0.03125, %v2046_v52 }
0x124b   : > { %v2048_v55 = vadd.f32 1e-05, %v2047_v54 }
0x124d   : > { %4627 = vrsqrt.f32 %v2048_v55 }
0x1257   : > { %v4628_v57 = vpop.eup %4627 }
0x1258   : > { %v2050_v59 = vmul.f32 %v4628_v57, %v2042_v48 }
0x125a   : > { %v2057_v62 = vmul.f32 %v3920_v58, %v2050_v59 }
0x125c   : > { %v2064_v0 = vadd.f32 %v3921_v61, %v2057_v62 }
0x125e   : > { %v2065_v3 = vpack.c.bf16 %v2064_v0, %v2064_v0 }
0x1260   : > { %4282 = vmatmul.mubr.msk.bf16.vlgmr.msra.gmra.mrb[60].mxu0 %vm581_vm1, %v2065_v3 }
0x1261   : > { %4306 = vmatpush3.bf16.msra.mxu0 %v4673_v22  ;;  %4309 = vmatprep.mubr.msk.bf16.mxu0 %vm4745_vm0, %v4744_v1 }
0x1262   : > { %4307 = vmatprep.subr.bf16.mxu0 %v4744_v1 }
0x1265   : > { %4308 = vmatpush3.bf16.msra.mxu0 %v4674_v5 }
0x1266   : > { %4313 = vmatprep.subr.bf16.mxu0 %v4744_v1 }
0x1268   : > { %4310 = vmatmul.mubr.msk.bf16.vlgmr.msra.gmra.mrb[64].mxu0 %vm581_vm1, %v3935_v4 }
0x1269   : > { %4314 = vmatpush3.bf16.msra.mxu0 %v4675_v6  ;;  %4315 = vmatprep.mubr.msk.bf16.mxu0 %vm4745_vm0, %v4744_v1 }
0x126a   : > { %4319 = vmatprep.subr.bf16.mxu0 %v4744_v1 }
0x1270   : > { %4316 = vmatmul.mubr.msk.bf16.vlgmr.msra.gmra.mrb[68].mxu0 %vm636_vm2, %v4584_v9 }
0x1271   : > { %4321 = vmatprep.mubr.msk.bf16.mxu0 %vm4745_vm0, %v4744_v1 }
0x1333   : > { %v2121_v21 = vpop.f32.mrb[60].mxu0 }
0x1334   : > { %v2122_v23 = vadd.f32 %v5294_v20, %v2121_v21  ;;  %v4283_v25 = vpop.f32.mrb[61].mxu0 }
0x1335   : > { %v2124_v26 = vpop.f32.mrb[62].mxu0 }
0x1336   : > { %v2128_v28 = vmul.f32 0.70710677, %v2122_v23  ;;  %v4284_v29 = vpop.f32.mrb[63].mxu0  ;;  %v2127_v5 = vmul.f32 0.5, %v2122_v23 }
0x1338   : > { %v2129_v30 = vand.u32 2147483647, %v2128_v28  ;;  %vm2149_vm7 = vcmp.ge.f32.partialorder %v2128_v28, 0.0 }
0x133a   : > { %v2130_v31 = vmul.f32 0.3275911, %v2129_v30  ;;  %v2143_v39 = vsub.f32 0.0, %v2129_v30 }
0x133b   : > { %v2296_v32 = vpop.f32.mrb[64].mxu0 }
0x133c   : > { %v2131_v34 = vadd.f32 1.0, %v2130_v31  ;;  %v4311_v35 = vpop.f32.mrb[65].mxu0  ;;  %v2144_v45 = vmul.f32 %v2143_v39, %v2129_v30  ;;  %v5305_v48 = vpack.c.bf16 %v2296_v32, %v2296_v32 }
0x133d   : > { %v2299_v36 = vpop.f32.mrb[66].mxu0 }
0x133e   : > { %4629 = vrcp.f32 %v2131_v34  ;;  %v4312_v37 = vpop.f32.mrb[67].mxu0  ;;  %v2145_v13 = vmul.f32 1.442695, %v2144_v45 }
0x1340   : > { %4631 = vpow2.f32 %v2145_v13 }
0x1343   : > { %v2344_v38 = vpop.f32.mrb[68].mxu0 }
0x1344   : > { %v4317_v40 = vpop.f32.mrb[69].mxu0 }
0x1345   : > { %v2347_v41 = vpop.f32.mrb[70].mxu0 }
0x1346   : > { %v5297_v33 = vpack.c.bf16 %v2347_v41, %v2344_v38  ;;  %v4318_v42 = vpop.f32.mrb[71].mxu0 }
0x1348   : > { %v4630_v44 = vpop.eup %4629  ;;  %2412 = vrot.lane.b32.xlu0 %v5297_v33, %s5663_s27  ;;  %2465 = vrot.lane.b32.xlu1 %v5297_v33, %s5664_s25  ;;  %v2357_v46 = vsel %vm683_vm3, %v5297_v33, 0 }
0x1349   : > { %v2134_v47 = vmul.f32 1.0614054, %v4630_v44  ;;  %4320 = vmatpush3.bf16.xpose.msra.mxu0 %v2357_v46 }
0x134a   : > { %4325 = vmatprep.subr.bf16.mxu0 %v4744_v1  ;;  %v4632_v62 = vpop.eup %4631 }
0x134b   : > { %v2135_v49 = vadd.f32 -1.4531521, %v2134_v47 }
0x134c   : > { %2463 = vrot.lane.b32.xlu1 %v5305_v48, %s5664_s25 }
0x134d   : > { %v2136_v52 = vmul.f32 %v4630_v44, %v2135_v49 }
0x134f   : > { %v2137_v54 = vadd.f32 1.4214138, %v2136_v52 }
0x1350   : > { %4322 = vmatmul.mubr.msk.bf16.vlgmr.msra.gmra.mrb[72].mxu0 %vm683_vm3, %v5305_v48 }
0x1351   : > { %v2138_v55 = vmul.f32 %v4630_v44, %v2137_v54  ;;  %4327 = vmatprep.mubr.msk.bf16.mxu0 %vm4745_vm0, %v4744_v1 }
0x1353   : > { %v2139_v57 = vadd.f32 -0.28449672, %v2138_v55 }
0x1355   : > { %v2140_v58 = vmul.f32 %v4630_v44, %v2139_v57 }
0x1357   : > { %v2141_v59 = vadd.f32 0.2548296, %v2140_v58 }
0x1359   : > { %v2142_v61 = vmul.f32 %v4630_v44, %v2141_v59 }
0x135b   : > { %v2147_v0 = vmul.f32 %v4632_v62, %v2142_v61 }
0x135d   : > { %v2148_v3 = vsub.f32 1.0, %v2147_v0 }
0x135f   : > { %v2150_v22 = vsub.f32 0.0, %v2148_v3 }
0x1361   : > { %v2151_v4 = vsel %vm2149_vm7, %v2148_v3, %v2150_v22 }
0x1362   : > { %v2152_v6 = vadd.f32 1.0, %v2151_v4 }
0x1364   : > { %v2153_v9 = vmul.f32 %v2152_v6, %v2127_v5 }
0x1366   : > { %v2154_v21 = vpack.c.bf16 %v2153_v9, %v2153_v9 }
0x1368   : > { %4302 = vmatmul.mubr.bf16.vlgmr.msra.gmra.mrb[36].mxu1 %v2154_v21 }
0x1369   : > { %4333 = vmatprep.mubr.msk.bf16.mxu1 %vm4745_vm0, %v4744_v1 }
0x13ba   : > { %v2413_v25 = vpop.permute.xlu0 %2412  ;;  %v2466_v26 = vpop.permute.xlu1 %2465 }
0x13bb   : > { %v2418_v29 = vsel %vm749_vm4, %v2413_v25, 0  ;;  %v2471_v30 = vsel %vm683_vm3, %v2466_v26, 0 }
0x13bc   : > { %4326 = vmatpush3.bf16.msra.mxu0 %v2418_v29  ;;  %4332 = vmatpush3.bf16.xpose.msra.mxu1 %v2471_v30 }
0x13bd   : > { %4337 = vmatprep.subr.bf16.mxu0 %v4744_v1  ;;  %4343 = vmatprep.subr.bf16.mxu1 %v4744_v1 }
0x13be   : > { %v2464_v23 = vpop.permute.xlu1 %2463 }
0x13c3   : > { %4334 = vmatmul.mubr.msk.bf16.vlgmr.msra.gmra.mrb[40].mxu1 %vm683_vm3, %v2464_v23 }
0x13c4   : > { %4344 = vmatpush3.bf16.msra.mxu1 %v4976_v53  ;;  %4345 = vmatprep.mubr.msk.bf16.mxu1 %vm4745_vm0, %v4744_v1  ;;  %v5332_v53 = vld [vmem:[%s5622_s14] ss:$0 sm:$0xff] }
0x13c5   : > { %4349 = vmatprep.subr.bf16.mxu1 %v4744_v1 }
0x1423   : > { %v2393_v28 = vpop.f32.mrb[72].mxu0 }
0x1424   : > { %v2399_v31 = vmul.f32 0.35355338, %v2393_v28  ;;  %v4323_v32 = vpop.f32.mrb[73].mxu0 }
0x1425   : > { %v2396_v34 = vpop.f32.mrb[74].mxu0 }
0x1426   : > { %v4324_v35 = vpop.f32.mrb[75].mxu0  ;;  %v2400_v36 = vsel %vm731_vm5, %v2399_v31, -inf }
0x1427   : > { %2401 = vmax.xlane.f32.xlu1 %v2400_v36 }
0x1438   : > { %2663 = vrot.lane.b32.xlu1 %v5297_v33, %s5660_s17 }
0x143b   : > { %v2237_v37 = vpop.f32.mrb[36].mxu1 }
0x143c   : > { %v2243_v38 = vadd.f32 %v2237_v37, %v5186_v43  ;;  %v4303_v39 = vpop.f32.mrb[37].mxu1  ;;  %2723 = vrot.lane.b32.xlu1 %v5297_v33, %s5665_s20 }
0x143d   : > { %v2240_v40 = vpop.f32.mrb[38].mxu1 }
0x143e   : > { %v2250_v41 = vadd.f32 %v5332_v53, %v2243_v38  ;;  %v4304_v42 = vpop.f32.mrb[39].mxu1 }
0x1440   : > { %v2251_v44 = vpack.c.bf16 %v2250_v41, %v2250_v41  ;;  %2819 = vrot.lane.b32.xlu1 %v5297_v33, %s5662_s29 }
0x1442   : > { %2253 = vst.msk [vmem:[%s5342_s24] sm:$0xf] %vm2252_vm8, %v2251_v44 }
0x1444   : > { %2817 = vrot.lane.b32.xlu1 %v5305_v48, %s5662_s29 }
0x1496   : > { %v2507_v43 = vpop.f32.mrb[40].mxu1 }
0x1497   : > { %v2513_v45 = vmul.f32 0.35355338, %v2507_v43  ;;  %v4335_v46 = vpop.f32.mrb[41].mxu1 }
0x1498   : > { %v2510_v47 = vpop.f32.mrb[42].mxu1 }
0x1499   : > { %v4336_v49 = vpop.f32.mrb[43].mxu1  ;;  %v2514_v13 = vsel %vm731_vm5, %v2513_v45, -inf }
0x149a   : > { %2515 = vmax.xlane.f32.xlu0 %v2514_v13 }
0x14b0   : > { %2525 = vrot.lane.b32.xlu0 %v5297_v33, %s5666_s30 }
0x14b4   : > { %2661 = vrot.lane.b32.xlu0 %v5305_v48, %s5660_s17  ;;  %v2402_v52 = vpop.xlane.xlu1 %2401 }
0x14b5   : > { %v2403_v54 = vsub.f32 %v2399_v31, %v2402_v52 }
0x14b7   : > { %v2404_v55 = vmul.f32 1.442695, %v2403_v54 }
0x14b8   : > { %v2664_v22 = vpop.permute.xlu1 %2663 }
0x14b9   : > { %4633 = vpow2.f32 %v2404_v55  ;;  %v2669_v6 = vsel %vm683_vm3, %v2664_v22, 0 }
0x14bc   : > { %v2724_v9 = vpop.permute.xlu1 %2723 }
0x14bd   : > { %v2729_v25 = vsel %vm749_vm4, %v2724_v9, 0 }
0x14c0   : > { %v2820_v28 = vpop.permute.xlu1 %2819 }
0x14c3   : > { %v4634_v57 = vpop.eup %4633 }
0x14c4   : > { %v2410_v58 = vpack.c.bf16 %v4634_v57, %v4634_v57  ;;  %v2818_v31 = vpop.permute.xlu1 %2817  ;;  %v2406_v47 = vsel %vm731_vm5, %v4634_v57, 0.0 }
0x14c6   : > { %4328 = vmatmul.mubr.msk.bf16.vlgmr.msra.gmra.mrb[76].mxu0 %vm731_vm5, %v2410_v58 }
0x14c7   : > { %4339 = vmatprep.mubr.msk.bf16.mxu0 %vm4745_vm0, %v4744_v1 }
0x1527   : > { %v2516_v59 = vpop.xlane.xlu0 %2515 }
0x1528   : > { %v2517_v61 = vsub.f32 %v2513_v45, %v2516_v59 }
0x152a   : > { %v2518_v62 = vmul.f32 1.442695, %v2517_v61 }
0x152b   : > { %v2526_v0 = vpop.permute.xlu0 %2525 }
0x152c   : > { %4635 = vpow2.f32 %v2518_v62  ;;  %v2531_v3 = vsel %vm749_vm4, %v2526_v0, 0  ;;  %v2825_v62 = vsel %vm683_vm3, %v2820_v28, 0 }
0x152d   : > { %4338 = vmatpush3.bf16.msra.mxu0 %v2531_v3 }
0x152e   : > { %4355 = vmatprep.subr.bf16.mxu0 %v4744_v1 }
0x152f   : > { %v2662_v21 = vpop.permute.xlu0 %2661 }
0x1536   : > { %v4636_v48 = vpop.eup %4635 }
0x1537   : > { %v2520_v4 = vsel %vm731_vm5, %v4636_v48, 0.0  ;;  %v2524_v5 = vpack.c.bf16 %v4636_v48, %v4636_v48 }
0x1538   : > { %2521 = vadd.xlane.f32.xlu1 %v2520_v4 }
0x1539   : > { %4340 = vmatmul.mubr.msk.bf16.vlgmr.msra.gmra.mrb[80].mxu0 %vm731_vm5, %v2524_v5 }
0x153a   : > { %4356 = vmatpush3.bf16.xpose.msra.mxu0 %v2669_v6  ;;  %4357 = vmatprep.mubr.msk.bf16.mxu0 %vm4745_vm0, %v4744_v1 }
0x153b   : > { %4361 = vmatprep.subr.bf16.mxu0 %v4744_v1 }
0x1541   : > { %4358 = vmatmul.mubr.msk.bf16.vlgmr.msra.gmra.mrb[84].mxu0 %vm683_vm3, %v2662_v21 }
0x1542   : > { %4362 = vmatpush3.bf16.msra.mxu0 %v2729_v25  ;;  %4363 = vmatprep.mubr.msk.bf16.mxu0 %vm4745_vm0, %v4744_v1 }
0x1543   : > { %4373 = vmatprep.subr.bf16.mxu0 %v4744_v1 }
0x1599   : > { %v2454_v26 = vpop.f32.mrb[76].mxu0 }
0x159a   : > { %v4329_v29 = vpop.f32.mrb[77].mxu0 }
0x159b   : > { %v2457_v30 = vpop.f32.mrb[78].mxu0 }
0x159c   : > { %v4330_v23 = vpop.f32.mrb[79].mxu0 }
0x15c5   : > { %v2522_v32 = vpop.xlane.xlu1 %2521 }
0x15c6   : > { %4637 = vrcp.f32 %v2522_v32 }
0x15d0   : > { %v4638_v34 = vpop.eup %4637 }
0x160c   : > { %v2567_v35 = vpop.f32.mrb[80].mxu0 }
0x160d   : > { %v2573_v36 = vmul.f32 %v4638_v34, %v2567_v35  ;;  %v4341_v37 = vpop.f32.mrb[81].mxu0 }
0x160e   : > { %v2570_v38 = vpop.f32.mrb[82].mxu0 }
0x160f   : > { %v2574_v39 = vpack.c.bf16 %v2573_v36, %v2573_v36  ;;  %v4342_v40 = vpop.f32.mrb[83].mxu0 }
0x1611   : > { %4346 = vmatmul.mubr.msk.bf16.vlgmr.msra.gmra.mrb[44].mxu1 %vm683_vm3, %v2574_v39 }
0x1612   : > { %4350 = vmatpush3.bf16.msra.mxu1 %v4989_v14  ;;  %4351 = vmatprep.mubr.msk.bf16.mxu1 %vm4745_vm0, %v4744_v1 }
0x1613   : > { %4367 = vmatprep.subr.bf16.mxu1 %v4744_v1 }
0x1614   : > { %v2705_v41 = vpop.f32.mrb[84].mxu0 }
0x1615   : > { %v2711_v42 = vmul.f32 0.35355338, %v2705_v41  ;;  %v4359_v44 = vpop.f32.mrb[85].mxu0 }
0x1616   : > { %v2708_v43 = vpop.f32.mrb[86].mxu0 }
0x1617   : > { %v4360_v45 = vpop.f32.mrb[87].mxu0  ;;  %v2712_v46 = vsel %vm731_vm5, %v2711_v42, -inf }
0x1618   : > { %2713 = vmax.xlane.f32.xlu0 %v2712_v46 }
0x161c   : > { %2407 = vadd.xlane.f32.xlu0 %v2406_v47 }
0x16a5   : > { %v2714_v49 = vpop.xlane.xlu0 %2713 }
0x16a6   : > { %v2715_v13 = vsub.f32 %v2711_v42, %v2714_v49 }
0x16a8   : > { %v2716_v52 = vmul.f32 1.442695, %v2715_v13 }
0x16a9   : > { %v2408_v14 = vpop.xlane.xlu0 %2407 }
0x16aa   : > { %4639 = vpow2.f32 %v2716_v52 }
0x16ab   : > { %4641 = vrcp.f32 %v2408_v14 }
0x16b4   : > { %v4640_v54 = vpop.eup %4639 }
0x16b5   : > { %v4642_v55 = vpop.eup %4641  ;;  %v2718_v58 = vsel %vm731_vm5, %v4640_v54, 0.0  ;;  %v2722_v59 = vpack.c.bf16 %v4640_v54, %v4640_v54 }
0x16b6   : > { %v2460_v61 = vmul.f32 %v4642_v55, %v2454_v26  ;;  %2719 = vadd.xlane.f32.xlu0 %v2718_v58 }
0x16b7   : > { %4364 = vmatmul.mubr.msk.bf16.vlgmr.msra.gmra.mrb[88].mxu0 %vm731_vm5, %v2722_v59 }
0x16b8   : > { %4374 = vmatpush3.bf16.xpose.msra.mxu0 %v2825_v62  ;;  %v2461_v57 = vpack.c.bf16 %v2460_v61, %v2460_v61  ;;  %4375 = vmatprep.mubr.msk.bf16.mxu0 %vm4745_vm0, %v4744_v1  ;;  %v4676_v62 = vld [vmem:[%s5615_s7] ss:$0 sm:$0xff] }
0x16b9   : > { %4391 = vmatprep.subr.bf16.mxu0 %v4744_v1 }
0x16ba   : > { %4352 = vmatmul.mubr.msk.bf16.vlgmr.msra.gmra.mrb[44].mxu1 %vm683_vm3, %v2461_v57 }
0x16bb   : > { %4368 = vmatpush3.bf16.msra.mxu1 %v5009_v27  ;;  %4369 = vmatprep.mubr.msk.bf16.mxu1 %vm4745_vm0, %v4744_v1 }
0x16bc   : > { %4379 = vmatprep.subr.bf16.mxu1 %v4744_v1 }
0x16bf   : > { %4376 = vmatmul.mubr.msk.bf16.vlgmr.msra.gmra.mrb[92].mxu0 %vm683_vm3, %v2818_v31 }
0x16c0   : > { %4392 = vmatpush3.bf16.msra.mxu0 %v5045_v7  ;;  %4395 = vmatprep.mubr.msk.bf16.mxu0 %vm4745_vm0, %v4744_v1 }
0x16c1   : > { %4393 = vmatprep.subr.bf16.mxu0 %v4744_v1 }
0x16c4   : > { %4394 = vmatpush3.bf16.msra.mxu0 %v5051_v8 }
0x16c5   : > { %4399 = vmatprep.subr.bf16.mxu0 %v4744_v1 }
0x1743   : > { %v2720_v0 = vpop.xlane.xlu0 %2719 }
0x1744   : > { %4643 = vrcp.f32 %v2720_v0  ;;  %v4677_v0 = vld [vmem:[%s5616_s8] ss:$0 sm:$0xff] }
0x174e   : > { %v4644_v27 = vpop.eup %4643 }
0x178a   : > { %v2765_v3 = vpop.f32.mrb[88].mxu0 }
0x178b   : > { %v2771_v48 = vmul.f32 %v4644_v27, %v2765_v3  ;;  %v4365_v22 = vpop.f32.mrb[89].mxu0 }
0x178c   : > { %v2768_v4 = vpop.f32.mrb[90].mxu0 }
0x178d   : > { %v2772_v5 = vpack.c.bf16 %v2771_v48, %v2771_v48  ;;  %v4366_v6 = vpop.f32.mrb[91].mxu0 }
0x178f   : > { %4370 = vmatmul.mubr.msk.bf16.vlgmr.msra.gmra.mrb[44].mxu1 %vm683_vm3, %v2772_v5 }
0x1790   : > { %4381 = vmatprep.mubr.msk.bf16.mxu1 %vm4745_vm0, %v4744_v1 }
0x1792   : > { %v2861_v7 = vpop.f32.mrb[92].mxu0 }
0x1793   : > { %v2867_v9 = vmul.f32 0.35355338, %v2861_v7  ;;  %v4377_v21 = vpop.f32.mrb[93].mxu0 }
0x1794   : > { %v2864_v8 = vpop.f32.mrb[94].mxu0 }
0x1795   : > { %v4378_v25 = vpop.f32.mrb[95].mxu0  ;;  %v2868_v26 = vsel %vm731_vm5, %v2867_v9, -inf }
0x1796   : > { %2869 = vmax.xlane.f32.xlu0 %v2868_v26 }
0x17ac   : > { %2879 = vrot.lane.b32.xlu0 %v5297_v33, %s5661_s23 }
0x1823   : > { %v2870_v29 = vpop.xlane.xlu0 %2869 }
0x1824   : > { %v2871_v30 = vsub.f32 %v2867_v9, %v2870_v29 }
0x1826   : > { %v2872_v23 = vmul.f32 1.442695, %v2871_v30 }
0x1827   : > { %v2880_v28 = vpop.permute.xlu0 %2879 }
0x1828   : > { %4645 = vpow2.f32 %v2872_v23  ;;  %v2885_v31 = vsel %vm749_vm4, %v2880_v28, 0 }
0x1829   : > { %4380 = vmatpush3.bf16.msra.mxu1 %v2885_v31 }
0x182a   : > { %4385 = vmatprep.subr.bf16.mxu1 %v4744_v1 }
0x1832   : > { %v4646_v32 = vpop.eup %4645 }
0x1833   : > { %v2874_v34 = vsel %vm731_vm5, %v4646_v32, 0.0  ;;  %v2878_v35 = vpack.c.bf16 %v4646_v32, %v4646_v32 }
0x1834   : > { %2875 = vadd.xlane.f32.xlu1 %v2874_v34 }
0x1835   : > { %4382 = vmatmul.mubr.msk.bf16.vlgmr.msra.gmra.mrb[48].mxu1 %vm731_vm5, %v2878_v35 }
0x1836   : > { %4386 = vmatpush3.bf16.msra.mxu1 %v5029_v50  ;;  %4387 = vmatprep.mubr.msk.bf16.mxu1 %vm4745_vm0, %v4744_v1 }
0x1837   : > { %4405 = vmatprep.subr.bf16.mxu1 %v4744_v1 }
0x18c1   : > { %v2876_v33 = vpop.xlane.xlu1 %2875 }
0x18c2   : > { %4647 = vrcp.f32 %v2876_v33 }
0x18cc   : > { %v4648_v36 = vpop.eup %4647 }
0x1908   : > { %v2921_v37 = vpop.f32.mrb[48].mxu1 }
0x1909   : > { %v2927_v38 = vmul.f32 %v4648_v36, %v2921_v37  ;;  %v4383_v39 = vpop.f32.mrb[49].mxu1 }
0x190a   : > { %v2924_v40 = vpop.f32.mrb[50].mxu1 }
0x190b   : > { %v2928_v41 = vpack.c.bf16 %v2927_v38, %v2927_v38  ;;  %v4384_v42 = vpop.f32.mrb[51].mxu1 }
0x190d   : > { %4388 = vmatmul.mubr.msk.bf16.vlgmr.msra.gmra.mrb[44].mxu1 %vm683_vm3, %v2928_v41 }
0x190e   : > { %4407 = vmatprep.mubr.msk.bf16.mxu1 %vm4745_vm0, %v4744_v1 }
0x19e0   : > { %v5411_v50 = vpop.f32.mrb[44].mxu1 }
0x19e1   : > { %v4389_v44 = vpop.f32.mrb[45].mxu1  ;;  %v2973_v43 = vsel %vm581_vm1, %v5411_v50, 0.0 }
0x19e2   : > { %2974 = vadd.xlane.f32.xlu1 %v2973_v43  ;;  %v2969_v45 = vpop.f32.mrb[46].mxu1 }
0x19e3   : > { %v4390_v46 = vpop.f32.mrb[47].mxu1 }
0x1a6f   : > { %v2975_v47 = vpop.xlane.xlu1 %2974 }
0x1a70   : > { %v2976_v49 = vmul.f32 0.03125, %v2975_v47 }
0x1a72   : > { %v2977_v13 = vsub.f32 %v5411_v50, %v2976_v49 }
0x1a74   : > { %v2978_v52 = vmul.f32 %v2977_v13, %v2977_v13 }
0x1a76   : > { %v2979_v14 = vsel %vm581_vm1, %v2978_v52, 0.0 }
0x1a77   : > { %2980 = vadd.xlane.f32.xlu0 %v2979_v14 }
0x1b04   : > { %v2981_v54 = vpop.xlane.xlu0 %2980 }
0x1b05   : > { %v2982_v55 = vmul.f32 0.03125, %v2981_v54 }
0x1b07   : > { %v2983_v58 = vadd.f32 1e-05, %v2982_v55 }
0x1b09   : > { %4649 = vrsqrt.f32 %v2983_v58 }
0x1b13   : > { %v4650_v59 = vpop.eup %4649 }
0x1b14   : > { %v2985_v61 = vmul.f32 %v4650_v59, %v2977_v13 }
0x1b16   : > { %v2986_v57 = vmul.f32 %v4676_v62, %v2985_v61 }
0x1b18   : > { %v2987_v27 = vadd.f32 %v4677_v0, %v2986_v57 }
0x1b1a   : > { %v2988_v3 = vpack.c.bf16 %v2987_v27, %v2987_v27 }
0x1b1c   : > { %4396 = vmatmul.mubr.msk.bf16.vlgmr.msra.gmra.mrb[96].mxu0 %vm581_vm1, %v2988_v3 }
0x1b1d   : > { %4401 = vmatprep.mubr.msk.bf16.mxu0 %vm4745_vm0, %v4744_v1 }
0x1bef   : > { %v3026_v48 = vpop.f32.mrb[96].mxu0 }
0x1bf0   : > { %v5426_v22 = vpack.c.bf16 %v3026_v48, %v3026_v48  ;;  %v4397_v4 = vpop.f32.mrb[97].mxu0 }
0x1bf1   : > { %v3029_v5 = vpop.f32.mrb[98].mxu0 }
0x1bf2   : > { %3094 = vrot.lane.b32.xlu0 %v5426_v22, %s5667_s1  ;;  %3034 = vrot.lane.b32.xlu1 %v5426_v22, %s5663_s27  ;;  %v4398_v6 = vpop.f32.mrb[99].mxu0 }
0x1bf6   : > { %3146 = vrot.lane.b32.xlu1 %v5426_v22, %s5666_s30  ;;  %s3801_s30 = sshll.u32 %s5342_s24, 4  ;;  %s5559_s30 = int_to_ptr.vmem [resolvable:$true] %s3801_s30 }
0x1bfa   : > { %3144 = vrot.lane.b32.xlu1 %v5426_v22, %s5664_s25 }
0x1c64   : > { %v3095_v7 = vpop.permute.xlu0 %3094  ;;  %v3035_v9 = vpop.permute.xlu1 %3034 }
0x1c65   : > { %v3100_v21 = vsel %vm911_vm6, %v3095_v7, 0  ;;  %v3040_v8 = vsel %vm683_vm3, %v3035_v9, 0 }
0x1c66   : > { %4400 = vmatpush3.bf16.xpose.msra.mxu0 %v3040_v8  ;;  %4406 = vmatpush3.bf16.msra.mxu1 %v3100_v21 }
0x1c67   : > { %4411 = vmatprep.subr.bf16.mxu0 %v4744_v1  ;;  %4417 = vmatprep.subr.bf16.mxu1 %v4744_v1 }
0x1c68   : > { %v3147_v25 = vpop.permute.xlu1 %3146 }
0x1c69   : > { %v3152_v26 = vsel %vm683_vm3, %v3147_v25, 0 }
0x1c6c   : > { %v3145_v29 = vpop.permute.xlu1 %3144 }
0x1c6d   : > { %4402 = vmatmul.mubr.msk.bf16.vlgmr.msra.gmra.mrb[100].mxu0 %vm683_vm3, %v5426_v22 }
0x1c6e   : > { %4412 = vmatpush3.bf16.xpose.msra.mxu0 %v3152_v26  ;;  %4413 = vmatprep.mubr.msk.bf16.mxu0 %vm4745_vm0, %v4744_v1 }
0x1c6f   : > { %4423 = vmatprep.subr.bf16.mxu0 %v4744_v1 }
0x1c75   : > { %4414 = vmatmul.mubr.msk.bf16.vlgmr.msra.gmra.mrb[104].mxu0 %vm683_vm3, %v3145_v29 }
0x1c76   : > { %4424 = vmatpush3.bf16.msra.mxu0 %v5119_v2  ;;  %4425 = vmatprep.mubr.msk.bf16.mxu0 %vm4745_vm0, %v4744_v1 }
0x1c77   : > { %4435 = vmatprep.subr.bf16.mxu0 %v4744_v1 }
0x1d40   : > { %v3076_v30 = vpop.f32.mrb[100].mxu0 }
0x1d41   : > { %v3082_v23 = vmul.f32 0.35355338, %v3076_v30  ;;  %v4403_v28 = vpop.f32.mrb[101].mxu0 }
0x1d42   : > { %v3079_v31 = vpop.f32.mrb[102].mxu0 }
0x1d43   : > { %v4404_v32 = vpop.f32.mrb[103].mxu0  ;;  %v3083_v34 = vsel %vm683_vm3, %v3082_v23, -inf }
0x1d44   : > { %3084 = vmax.xlane.f32.xlu1 %v3083_v34 }
0x1d48   : > { %v3188_v35 = vpop.f32.mrb[104].mxu0 }
0x1d49   : > { %v3194_v33 = vmul.f32 0.35355338, %v3188_v35  ;;  %v4415_v36 = vpop.f32.mrb[105].mxu0 }
0x1d4a   : > { %v3191_v37 = vpop.f32.mrb[106].mxu0 }
0x1d4b   : > { %v4416_v38 = vpop.f32.mrb[107].mxu0  ;;  %v3195_v2 = vsel %vm683_vm3, %v3194_v33, -inf }
0x1d4c   : > { %3196 = vmax.xlane.f32.xlu0 %v3195_v2 }
0x1d55   : > { %3344 = vrot.lane.b32.xlu1 %v5426_v22, %s5665_s20  ;;  %s3974_s20 = sshll.u32 %s4860_s22, 7 }
0x1d59   : > { %3342 = vrot.lane.b32.xlu1 %v5426_v22, %s5660_s17  ;;  %s5669_s17 = smov 48  }
0x1d62   : > { %3206 = vrot.lane.b32.xlu0 %v5426_v22, %s5668_s0  ;;  %s5557_s0 = scalar_lea.hbm %s5623_s15, %s3974_s20 }
0x1dd1   : > { %v3085_v39 = vpop.xlane.xlu1 %3084 }
0x1dd2   : > { %v3086_v40 = vsub.f32 %v3082_v23, %v3085_v39 }
0x1dd4   : > { %v3087_v41 = vmul.f32 1.442695, %v3086_v40 }
0x1dd5   : > { %v3345_v55 = vpop.permute.xlu1 %3344 }
0x1dd6   : > { %4651 = vpow2.f32 %v3087_v41  ;;  %v3350_v29 = vsel %vm683_vm3, %v3345_v55, 0 }
0x1dd9   : > { %v3197_v42 = vpop.xlane.xlu0 %3196  ;;  %v3343_v58 = vpop.permute.xlu1 %3342 }
0x1dda   : > { %v3198_v44 = vsub.f32 %v3194_v33, %v3197_v42 }
0x1ddc   : > { %v3199_v43 = vmul.f32 1.442695, %v3198_v44 }
0x1ddd   : > { %v3207_v46 = vpop.permute.xlu0 %3206 }
0x1dde   : > { %4653 = vpow2.f32 %v3199_v43  ;;  %v3212_v13 = vsel %vm911_vm6, %v3207_v46, 0 }
0x1de0   : > { %v4652_v45 = vpop.eup %4651 }
0x1de1   : > { %v3089_v47 = vsel %vm683_vm3, %v4652_v45, 0.0  ;;  %v3093_v49 = vpack.c.bf16 %v4652_v45, %v4652_v45 }
0x1de2   : > { %3090 = vadd.xlane.f32.xlu1 %v3089_v47 }
0x1de3   : > { %4408 = vmatmul.mubr.msk.bf16.vlgmr.msra.gmra.mrb[52].mxu1 %vm683_vm3, %v3093_v49 }
0x1de4   : > { %4418 = vmatpush3.bf16.msra.mxu1 %v3212_v13  ;;  %4419 = vmatprep.mubr.msk.bf16.mxu1 %vm4745_vm0, %v4744_v1 }
0x1de5   : > { %4429 = vmatprep.subr.bf16.mxu1 %v4744_v1 }
0x1de8   : > { %v4654_v52 = vpop.eup %4653 }
0x1de9   : > { %v3201_v14 = vsel %vm683_vm3, %v4654_v52, 0.0  ;;  %v3205_v54 = vpack.c.bf16 %v4654_v52, %v4654_v52 }
0x1dea   : > { %3202 = vadd.xlane.f32.xlu0 %v3201_v14 }
0x1deb   : > { %4420 = vmatmul.mubr.msk.bf16.vlgmr.msra.gmra.mrb[56].mxu1 %vm683_vm3, %v3205_v54 }
0x1dec   : > { %4430 = vmatpush3.bf16.msra.mxu1 %v5112_v63  ;;  %4431 = vmatprep.mubr.msk.bf16.mxu1 %vm4745_vm0, %v4744_v1 }
0x1ded   : > { %4441 = vmatprep.subr.bf16.mxu1 %v4744_v1 }
0x1df3   : > { %3498 = vrot.lane.b32.xlu1 %v5426_v22, %s5662_s29  ;;  %s4757_s29 = smov [#allocation2]  }
0x1df4   : > { %s4684_s27 = sshll.u32 %s4757_s29, 4  ;;  %s4685_s27 = int_to_ptr.vmem [resolvable:$false] %s4684_s27 }
0x1df5   : > { %s4686_s25 = scalar_lea.vmem %s4685_s27, 256  ;;  %p4687_p0 = scmp.lt.s32.totalorder %s5559_s30, %s4685_s27 }
0x1e00   : > { %3404 = vrot.lane.b32.xlu0 %v5426_v22, %s5669_s17  ;;  %s5671_s17 = sand.u32 1, %s4734_s19  }
0x1e01   : > { %s5565_s22 = scalar_lea.sflag [#allocation3], %s5671_s17 }
0x1e6f   : > { %v3091_v59 = vpop.xlane.xlu1 %3090 }
0x1e70   : > { %4655 = vrcp.f32 %v3091_v59 }
0x1e73   : > { %v3499_v13 = vpop.permute.xlu1 %3498 }
0x1e77   : > { %v3203_v61 = vpop.xlane.xlu0 %3202 }
0x1e78   : > { %4657 = vrcp.f32 %v3203_v61 }
0x1e7a   : > { %v4656_v62 = vpop.eup %4655 }
0x1e7b   : > { %v3405_v27 = vpop.permute.xlu0 %3404 }
0x1e7c   : > { %v3410_v5 = vsel %vm911_vm6, %v3405_v27, 0 }
0x1e82   : > { %v4658_v6 = vpop.eup %4657 }
0x1eb6   : > { %v3136_v57 = vpop.f32.mrb[52].mxu1 }
0x1eb7   : > { %v3142_v63 = vmul.f32 %v4656_v62, %v3136_v57  ;;  %v4409_v0 = vpop.f32.mrb[53].mxu1 }
0x1eb8   : > { %v3139_v3 = vpop.f32.mrb[54].mxu1 }
0x1eb9   : > { %v3143_v48 = vpack.c.bf16 %v3142_v63, %v3142_v63  ;;  %v4410_v4 = vpop.f32.mrb[55].mxu1 }
0x1ebb   : > { %4432 = vmatmul.mubr.msk.bf16.vlgmr.msra.gmra.mrb[60].mxu1 %vm683_vm3, %v3143_v48 }
0x1ebc   : > { %4442 = vmatpush3.bf16.msra.mxu1 %v3410_v5  ;;  %4443 = vmatprep.mubr.msk.bf16.mxu1 %vm4745_vm0, %v4744_v1 }
0x1ebd   : > { %4453 = vmatprep.subr.bf16.mxu1 %v4744_v1 }
0x1ebe   : > { %v3248_v7 = vpop.f32.mrb[56].mxu1 }
0x1ebf   : > { %v3254_v9 = vmul.f32 %v4658_v6, %v3248_v7  ;;  %v4421_v21 = vpop.f32.mrb[57].mxu1 }
0x1ec0   : > { %v3251_v8 = vpop.f32.mrb[58].mxu1 }
0x1ec1   : > { %v3255_v25 = vpack.c.bf16 %v3254_v9, %v3254_v9  ;;  %v4422_v26 = vpop.f32.mrb[59].mxu1 }
0x1ec3   : > { %4426 = vmatmul.mubr.msk.bf16.vlgmr.msra.gmra.mrb[108].mxu0 %vm683_vm3, %v3255_v25 }
0x1ec4   : > { %4436 = vmatpush3.bf16.xpose.msra.mxu0 %v3350_v29  ;;  %4437 = vmatprep.mubr.msk.bf16.mxu0 %vm4745_vm0, %v4744_v1 }
0x1ec5   : > { %4447 = vmatprep.subr.bf16.mxu0 %v4744_v1 }
0x1ecb   : > { %4438 = vmatmul.mubr.msk.bf16.vlgmr.msra.gmra.mrb[112].mxu0 %vm683_vm3, %v3343_v58 }
0x1ecc   : > { %4448 = vmatpush3.bf16.msra.mxu0 %v5159_v56  ;;  %4449 = vmatprep.mubr.msk.bf16.mxu0 %vm4745_vm0, %v4744_v1 }
0x1ecd   : > { %4459 = vmatprep.subr.bf16.mxu0 %v4744_v1 }
0x1f8e   : > { %v3336_v30 = vpop.f32.mrb[60].mxu1 }
0x1f8f   : > { %v4433_v23 = vpop.f32.mrb[61].mxu1 }
0x1f90   : > { %v3339_v28 = vpop.f32.mrb[62].mxu1 }
0x1f91   : > { %v4434_v31 = vpop.f32.mrb[63].mxu1 }
0x1f96   : > { %v3293_v32 = vpop.f32.mrb[108].mxu0 }
0x1f97   : > { %v5490_v34 = vadd.f32 %v3336_v30, %v3293_v32  ;;  %v4427_v35 = vpop.f32.mrb[109].mxu0 }
0x1f98   : > { %v3296_v33 = vpop.f32.mrb[110].mxu0 }
0x1f99   : > { %v4428_v36 = vpop.f32.mrb[111].mxu0 }
0x1f9e   : > { %v3386_v37 = vpop.f32.mrb[112].mxu0 }
0x1f9f   : > { %v3392_v38 = vmul.f32 0.35355338, %v3386_v37  ;;  %v4439_v2 = vpop.f32.mrb[113].mxu0 }
0x1fa0   : > { %v3389_v39 = vpop.f32.mrb[114].mxu0 }
0x1fa1   : > { %v4440_v56 = vpop.f32.mrb[115].mxu0  ;;  %v3393_v40 = vsel %vm683_vm3, %v3392_v38, -inf }
0x1fa2   : > { %3394 = vmax.xlane.f32.xlu0 %v3393_v40 }
0x1fb8   : > { %3500 = vrot.lane.b32.xlu0 %v5426_v22, %s5661_s23  ;;  %s5670_s23 = smov 40  }
0x202f   : > { %v3395_v41 = vpop.xlane.xlu0 %3394 }
0x2030   : > { %v3396_v42 = vsub.f32 %v3392_v38, %v3395_v41 }
0x2032   : > { %v3397_v44 = vmul.f32 1.442695, %v3396_v42  ;;  %v4679_v42 = vld [vmem:[%s5618_s10] ss:$0 sm:$0xff] }
0x2033   : > { %v3501_v45 = vpop.permute.xlu0 %3500 }
0x2034   : > { %4659 = vpow2.f32 %v3397_v44  ;;  %v3506_v49 = vsel %vm683_vm3, %v3501_v45, 0 }
0x203e   : > { %v4660_v43 = vpop.eup %4659 }
0x203f   : > { %v3399_v46 = vsel %vm683_vm3, %v4660_v43, 0.0  ;;  %v3403_v47 = vpack.c.bf16 %v4660_v43, %v4660_v43 }
0x2040   : > { %3400 = vadd.xlane.f32.xlu0 %v3399_v46 }
0x2041   : > { %4444 = vmatmul.mubr.msk.bf16.vlgmr.msra.gmra.mrb[64].mxu1 %vm683_vm3, %v3403_v47 }
0x2042   : > { %4454 = vmatpush3.bf16.xpose.msra.mxu1 %v3506_v49  ;;  %4455 = vmatprep.mubr.msk.bf16.mxu1 %vm4745_vm0, %v4744_v1 }
0x2043   : > { %4465 = vmatprep.subr.bf16.mxu1 %v4744_v1 }
0x2049   : > { %4456 = vmatmul.mubr.msk.bf16.vlgmr.msra.gmra.mrb[68].mxu1 %vm683_vm3, %v3499_v13 }
0x204a   : > { %4466 = vmatpush3.bf16.msra.mxu1 %v5177_v24  ;;  %4467 = vmatprep.mubr.msk.bf16.mxu1 %vm4745_vm0, %v4744_v1 }
0x204b   : > { %4479 = vmatprep.subr.bf16.mxu1 %v4744_v1 }
0x2056   : > { %3560 = vrot.lane.b32.xlu0 %v5426_v22, %s5670_s23  ;;  %s4680_s23 = scalar_lea.vmem %s5559_s30, 128 }
0x2057   : > { %p4681_p11 = scmp.ne.s32.totalorder %s5559_s30, %s4680_s23  ;;  %p4688_p1 = scmp.lt.s32.totalorder %s4686_s25, %s4680_s23 }
0x2059   : > { %p4682_p12 = pnand %p4681_p11, %p4877_p5  ;;  %p4689_p2 = por %p4688_p1, %p4687_p0 }
0x205b   : > { %p4683_p13 = pneg %p4682_p12 }
0x205d   : > { %p4690_p3 = pnand %p4689_p2, %p4683_p13 }
0x20cd   : > { %v3401_v52 = vpop.xlane.xlu0 %3400 }
0x20ce   : > { %4661 = vrcp.f32 %v3401_v52 }
0x20d1   : > { %v3561_v59 = vpop.permute.xlu0 %3560 }
0x20d2   : > { %v3566_v24 = vsel %vm911_vm6, %v3561_v59, 0 }
0x20d8   : > { %v4662_v14 = vpop.eup %4661 }
0x2114   : > { %v3446_v54 = vpop.f32.mrb[64].mxu1 }
0x2115   : > { %v3452_v55 = vmul.f32 %v4662_v14, %v3446_v54  ;;  %v4445_v58 = vpop.f32.mrb[65].mxu1 }
0x2116   : > { %v3449_v61 = vpop.f32.mrb[66].mxu1 }
0x2117   : > { %v3453_v62 = vpack.c.bf16 %v3452_v55, %v3452_v55  ;;  %v4446_v57 = vpop.f32.mrb[67].mxu1 }
0x2119   : > { %4450 = vmatmul.mubr.msk.bf16.vlgmr.msra.gmra.mrb[116].mxu0 %vm683_vm3, %v3453_v62 }
0x211a   : > { %4460 = vmatpush3.bf16.msra.mxu0 %v3566_v24  ;;  %4461 = vmatprep.mubr.msk.bf16.mxu0 %vm4745_vm0, %v4744_v1 }
0x211b   : > { %4471 = vmatprep.subr.bf16.mxu0 %v4744_v1 }
0x211c   : > { %v3542_v22 = vpop.f32.mrb[68].mxu1 }
0x211d   : > { %v3548_v63 = vmul.f32 0.35355338, %v3542_v22  ;;  %v4457_v0 = vpop.f32.mrb[69].mxu1 }
0x211e   : > { %v3545_v27 = vpop.f32.mrb[70].mxu1 }
0x211f   : > { %v4458_v3 = vpop.f32.mrb[71].mxu1  ;;  %v3549_v48 = vsel %vm683_vm3, %v3548_v63, -inf }
0x2120   : > { %3550 = vmax.xlane.f32.xlu1 %v3549_v48 }
0x21ad   : > { %v3551_v4 = vpop.xlane.xlu1 %3550 }
0x21ae   : > { %v3552_v5 = vsub.f32 %v3548_v63, %v3551_v4 }
0x21b0   : > { %v3553_v6 = vmul.f32 1.442695, %v3552_v5 }
0x21b2   : > { %4663 = vpow2.f32 %v3553_v6 }
0x21bc   : > { %v4664_v7 = vpop.eup %4663 }
0x21bd   : > { %v3555_v9 = vsel %vm683_vm3, %v4664_v7, 0.0  ;;  %v3559_v21 = vpack.c.bf16 %v4664_v7, %v4664_v7 }
0x21be   : > { %3556 = vadd.xlane.f32.xlu1 %v3555_v9 }
0x21bf   : > { %4462 = vmatmul.mubr.msk.bf16.vlgmr.msra.gmra.mrb[120].mxu0 %vm683_vm3, %v3559_v21 }
0x21c0   : > { %4472 = vmatpush3.bf16.msra.mxu0 %v5195_v51  ;;  %4475 = vmatprep.mubr.msk.bf16.mxu0 %vm4745_vm0, %v4744_v1 }
0x21c1   : > { %4473 = vmatprep.subr.bf16.mxu0 %v4744_v1 }
0x21c4   : > { %4474 = vmatpush3.bf16.msra.mxu0 %v5201_v60 }
0x21ec   : > { %v3491_v8 = vpop.f32.mrb[116].mxu0 }
0x21ed   : > { %v3497_v25 = vadd.f32 %v3491_v8, %v5490_v34  ;;  %v4451_v26 = vpop.f32.mrb[117].mxu0 }
0x21ee   : > { %v3494_v29 = vpop.f32.mrb[118].mxu0 }
0x21ef   : > { %v4452_v30 = vpop.f32.mrb[119].mxu0 }
0x224b   : > { %v3557_v23 = vpop.xlane.xlu1 %3556 }
0x224c   : > { %4665 = vrcp.f32 %v3557_v23 }
0x2256   : > { %v4666_v28 = vpop.eup %4665 }
0x2292   : > { %v3602_v31 = vpop.f32.mrb[120].mxu0 }
0x2293   : > { %v3608_v32 = vmul.f32 %v4666_v28, %v3602_v31  ;;  %v4463_v35 = vpop.f32.mrb[121].mxu0 }
0x2294   : > { %v3605_v51 = vpop.f32.mrb[122].mxu0 }
0x2295   : > { %v3609_v33 = vpack.c.bf16 %v3608_v32, %v3608_v32  ;;  %v4464_v36 = vpop.f32.mrb[123].mxu0 }
0x2297   : > { %4468 = vmatmul.mubr.msk.bf16.vlgmr.msra.gmra.mrb[72].mxu1 %vm683_vm3, %v3609_v33 }
0x2298   : > { %4480 = vmatpush3.bf16.msra.mxu1 %v5238_v10  ;;  %4495 = vmatprep.mubr.msk.bf16.mxu1 %vm4745_vm0, %v4744_v1 }
0x2299   : > { %4481 = vmatprep.subr.bf16.mxu1 %v4744_v1 }
0x229c   : > { %4482 = vmatpush3.bf16.msra.mxu1 %v5245_v11 }
0x229d   : > { %4483 = vmatprep.subr.bf16.mxu1 %v4744_v1 }
0x22a0   : > { %4484 = vmatpush3.bf16.msra.mxu1 %v5252_v12 }
0x22a1   : > { %4485 = vmatprep.subr.bf16.mxu1 %v4744_v1 }
0x22a4   : > { %4486 = vmatpush3.bf16.msra.mxu1 %v5259_v15 }
0x22a5   : > { %4487 = vmatprep.subr.bf16.mxu1 %v4744_v1 }
0x22a8   : > { %4488 = vmatpush3.bf16.msra.mxu1 %v5266_v16 }
0x22a9   : > { %4489 = vmatprep.subr.bf16.mxu1 %v4744_v1 }
0x22ac   : > { %4490 = vmatpush3.bf16.msra.mxu1 %v5273_v17 }
0x22ad   : > { %4491 = vmatprep.subr.bf16.mxu1 %v4744_v1 }
0x22b0   : > { %4492 = vmatpush3.bf16.msra.mxu1 %v5280_v18 }
0x22b1   : > { %4493 = vmatprep.subr.bf16.mxu1 %v4744_v1 }
0x22b4   : > { %4494 = vmatpush3.bf16.msra.mxu1 %v5287_v19 }
0x236a   : > { %v3647_v60 = vpop.f32.mrb[72].mxu1 }
0x236b   : > { %v3653_v10 = vadd.f32 %v3647_v60, %v3497_v25  ;;  %v4469_v11 = vpop.f32.mrb[73].mxu1 }
0x236c   : > { %v3650_v12 = vpop.f32.mrb[74].mxu1 }
0x236d   : > { %v3654_v15 = vadd.f32 %v3653_v10, %v5411_v50  ;;  %v4470_v34 = vpop.f32.mrb[75].mxu1  ;;  %v4678_v50 = vld [vmem:[%s5617_s9] ss:$0 sm:$0xff] }
0x236f   : > { %v3655_v16 = vsel %vm581_vm1, %v3654_v15, 0.0 }
0x2370   : > { %3656 = vadd.xlane.f32.xlu0 %v3655_v16 }
0x23fd   : > { %v3657_v37 = vpop.xlane.xlu0 %3656 }
0x23fe   : > { %v3658_v17 = vmul.f32 0.03125, %v3657_v37 }
0x2400   : > { %v3659_v38 = vsub.f32 %v3654_v15, %v3658_v17 }
0x2402   : > { %v3660_v2 = vmul.f32 %v3659_v38, %v3659_v38 }
0x2404   : > { %v3661_v18 = vsel %vm581_vm1, %v3660_v2, 0.0 }
0x2405   : > { %3662 = vadd.xlane.f32.xlu1 %v3661_v18 }
0x2492   : > { %v3663_v1 = vpop.xlane.xlu1 %3662 }
0x2493   : > { %v3664_v39 = vmul.f32 0.03125, %v3663_v1 }
0x2495   : > { %v3665_v19 = vadd.f32 1e-05, %v3664_v39 }
0x2497   : > { %4667 = vrsqrt.f32 %v3665_v19 }
0x24a1   : > { %v4668_v56 = vpop.eup %4667 }
0x24a2   : > { %v3667_v40 = vmul.f32 %v4668_v56, %v3659_v38 }
0x24a4   : > { %v3668_v41 = vmul.f32 %v4678_v50, %v3667_v40 }
0x24a6   : > { %v3669_v44 = vadd.f32 %v4679_v42, %v3668_v41 }
0x24a8   : > { %v3670_v43 = vpack.c.bf16 %v3669_v44, %v3669_v44 }
0x24aa   : > { %4476 = vmatmul.mubr.msk.bf16.vlgmr.msra.gmra.mrb[124].mxu0 %vm581_vm1, %v3670_v43 }
0x257d   : > { %v3708_v45 = vpop.f32.mrb[124].mxu0 }
0x257e   : > { %v3709_v46 = vadd.f32 %v5294_v20, %v3708_v45  ;;  %v4477_v47 = vpop.f32.mrb[125].mxu0 }
0x257f   : > { %v3711_v49 = vpop.f32.mrb[126].mxu0 }
0x2580   : > { %v3715_v13 = vmul.f32 0.70710677, %v3709_v46  ;;  %v4478_v52 = vpop.f32.mrb[127].mxu0  ;;  %v3714_v21 = vmul.f32 0.5, %v3709_v46 }
0x2582   : > { %v3716_v14 = vand.u32 2147483647, %v3715_v13  ;;  %vm3736_vm9 = vcmp.ge.f32.partialorder %v3715_v13, 0.0 }
0x2584   : > { %v3717_v54 = vmul.f32 0.3275911, %v3716_v14  ;;  %v3730_v58 = vsub.f32 0.0, %v3716_v14 }
0x2586   : > { %v3718_v55 = vadd.f32 1.0, %v3717_v54  ;;  %v3731_v61 = vmul.f32 %v3730_v58, %v3716_v14 }
0x2588   : > { %4669 = vrcp.f32 %v3718_v55  ;;  %v3732_v24 = vmul.f32 1.442695, %v3731_v61 }
0x258a   : > { %4671 = vpow2.f32 %v3732_v24 }
0x2592   : > { %v4670_v59 = vpop.eup %4669 }
0x2593   : > { %v3721_v62 = vmul.f32 1.0614054, %v4670_v59 }
0x2594   : > { %v4672_v4 = vpop.eup %4671 }
0x2595   : > { %v3722_v57 = vadd.f32 -1.4531521, %v3721_v62 }
0x2597   : > { %v3723_v22 = vmul.f32 %v4670_v59, %v3722_v57 }
0x2599   : > { %v3724_v63 = vadd.f32 1.4214138, %v3723_v22 }
0x259b   : > { %v3725_v0 = vmul.f32 %v4670_v59, %v3724_v63 }
0x259d   : > { %v3726_v27 = vadd.f32 -0.28449672, %v3725_v0 }
0x259f   : > { %v3727_v20 = vmul.f32 %v4670_v59, %v3726_v27 }
0x25a1   : > { %v3728_v3 = vadd.f32 0.2548296, %v3727_v20 }
0x25a3   : > { %v3729_v48 = vmul.f32 %v4670_v59, %v3728_v3 }
0x25a5   : > { %v3734_v5 = vmul.f32 %v4672_v4, %v3729_v48 }
0x25a7   : > { %v3735_v6 = vsub.f32 1.0, %v3734_v5 }
0x25a9   : > { %v3737_v7 = vsub.f32 0.0, %v3735_v6 }
0x25ab   : > { %v3738_v9 = vsel %vm3736_vm9, %v3735_v6, %v3737_v7 }
0x25ac   : > { %v3739_v8 = vadd.f32 1.0, %v3738_v9 }
0x25ae   : > { %v3740_v25 = vmul.f32 %v3739_v8, %v3714_v21 }
0x25b0   : > { %v3741_v26 = vpack.c.bf16 %v3740_v25, %v3740_v25 }
0x25b2   : > { %4496 = vmatmul.mubr.bf16.vlgmr.msra.gmra.mrb[76].mxu1 %v3741_v26 }
0x2685   : > { %v3776_v29 = vpop.f32.mrb[76].mxu1 }
0x2686   : > { %v3782_v30 = vadd.f32 %v3776_v29, %v3654_v15  ;;  %v4497_v23 = vpop.f32.mrb[77].mxu1 }
0x2687   : > { %v3779_v28 = vpop.f32.mrb[78].mxu1 }
0x2688   : > { %v3783_v31 = vadd.f32 %v5332_v53, %v3782_v30  ;;  %v4498_v32 = vpop.f32.mrb[79].mxu1 }
0x268a   : > { %v3784_v35 = vpack.c.bf16 %v3783_v31, %v3783_v31 }
0x268c   : > { %3967 = vst.msk [vmem:[%s5342_s24 + $0x4] sm:$0xf] %vm2252_vm8, %v3784_v35 }
0x268d   : > { %4693 = shalt.err (!%p4690_p3)
}
0x268e   : > { %s4694_s24 = scalar_lea.hbm %s5557_s0, 128  ;;  %s4698_s26 = scalar_lea.hbm %s5623_s15, 256 }
0x268f   : > { %p4695_p4 = scmp.ne.s32.totalorder %s5557_s0, %s4694_s24  ;;  %p4699_p9 = scmp.lt.u32.totalorder %s5557_s0, %s5623_s15 }
0x2690   : > { %p4700_p10 = scmp.lt.u32.totalorder %s4698_s26, %s4694_s24  ;;  %p4702_p12 = scmp.lt.u32.totalorder %s4694_s24, %s5557_s0 }
0x2691   : > { %p4696_p7 = pnand %p4695_p4, %p4877_p5 }
0x2692   : > { %p4701_p11 = por %p4700_p10, %p4699_p9 }
0x2693   : > { %p4697_p8 = pneg %p4696_p7 }
0x2694   : > { %p4703_p13 = por %p4702_p12, %p4701_p11 }
0x2696   : > { %p4704_p0 = pnand %p4703_p13, %p4697_p8 }
0x2698   : > { %4707 = shalt.err (!%p4704_p0)
}
0x2699   : > { %s4758_s23 = smov 4  }
0x269a   : > { %4523 = dma.vmem_to_hbm [thread:$0]  (%p4877_p5), %s5559_s30, 128, %s5557_s0, %s5565_s22, %s5667_s1, %s5667_s1, %s4758_s23  }
0x269b PF: > { %s5672_s29 = sld [smem:[#allocation5_spill]]  ;;  %p4529_p1 = scmp.ge.s32.totalorder %s4742_s21, 2 }
0x269d   : > { %p4526_p2 = pnand %p4529_p1, %p4881_p6 }
0x26a1   : > { %s3816_s25 = sand.u32 1, %s5672_s29  }
0x26a2   : > { %s3817_s24 = scalar_lea.sflag [#allocation3], %s3816_s25 }
0x26a3   : > { %4725 = dma.done.wait (!%p4526_p2), %s3817_s24, 128  }
0x26a4   : > { %4727 = vsyncadd (!%p4526_p2), %s3817_s24, 4294967168  ;;  %s5674_s21 = sld [smem:[#allocation7_spill]]  ;;  %s5675_s28 = sld [smem:[#allocation6_spill]] }
0x26a5   : > { %s5676_s20 = sld [smem:[#allocation8_spill]]  ;;  %s5677_s18 = smov %s4734_s19 }
0x26aa   : > { %p25_p3 = scmp.ge.s32.totalorder %s5674_s21, 4   ;;  %s5678_s19 = smov %s5675_s28 }
0x26ac   :  { %27 = sbr.rel (!%p25_p3) target bundleno = 6 (0x6), region = 121 }
0x26b3   :  { %3822 = vsyncpa [#allocation3], 1 }
0x26b4   :  { %3824 = vsyncpa [#allocation3 + $0x1], 1 }

// kernel: tpu_custom_call.1
= control target key start
LH: loop header
LB: loop body
LE: loop exit
PB: predicated region body
PF: predicated region fallthrough
CT: control target
= control target key end

     0   :  { %s5608_s0 = inlined_call_operand.vmem [shape: bf16[4,8,32], index: 0, kind: input, shape index: {}]   ;;  %s5609_s1 = inlined_call_operand.vmem [shape: bf16[4,12,16], index: 1, kind: input, shape index: {}]   ;;  %s5610_s2 = inlined_call_operand.vmem [shape: bf16[32,32], index: 2, kind: input, shape index: {}]   ;;  %s5611_s3 = inlined_call_operand.vmem [shape: bf16[16,64], index: 3, kind: input, shape index: {}]   ;;  %s5612_s4 = inlined_call_operand.vmem [shape: bf16[32,32], index: 4, kind: input, shape index: {}]   ;;  %s5613_s5 = inlined_call_operand.vmem [shape: bf16[32,96], index: 5, kind: input, shape index: {}]   ;;  %s5614_s6 = inlined_call_operand.vmem [shape: bf16[32,32], index: 6, kind: input, shape index: {}]   ;;  %s5615_s7 = inlined_call_operand.vmem [shape: f32[1,32], index: 7, kind: input, shape index: {}]   ;;  %s5616_s8 = inlined_call_operand.vmem [shape: f32[1,32], index: 8, kind: input, shape index: {}]   ;;  %s5617_s9 = inlined_call_operand.vmem [shape: f32[1,32], index: 9, kind: input, shape index: {}]   ;;  %s5618_s10 = inlined_call_operand.vmem [shape: f32[1,32], index: 10, kind: input, shape index: {}]   ;;  %s5619_s11 = inlined_call_operand.vmem [shape: bf16[32,128], index: 11, kind: input, shape index: {}]   ;;  %s5620_s12 = inlined_call_operand.vmem [shape: f32[1,128], index: 12, kind: input, shape index: {}]   ;;  %s5621_s13 = inlined_call_operand.vmem [shape: bf16[128,32], index: 13, kind: input, shape index: {}]   ;;  %s5622_s14 = inlined_call_operand.vmem [shape: f32[1,32], index: 14, kind: input, shape index: {}]   ;;  %s5623_s15 = inlined_call_operand.hbm [shape: bf16[4,8,32], index: 15, kind: output, shape index: {}]  }
   0x1   :  { %5649 = sst [smem:[#allocation10_spill]] %s5608_s0 }
   0x2   :  { %5650 = sst [smem:[#allocation11_spill]] %s5609_s1 }
   0x3   :  { %20 = vsyncpa [#allocation3], 0 }
   0x4   :  { %22 = vsyncpa [#allocation3 + $0x1], 0  ;;  %s4839_s18 = smov 0   ;;  %s4841_s19 = smov 0  }
   0x5   :  { %s4843_s20 = smov 0   ;;  %s4845_s21 = smov 0  }
   0x6 LB: > { %5651 = sst [smem:[#allocation5_spill]] %s4730_s18  ;;  %s4860_s22 = sadd.s32 4294967295, %s4742_s21   ;;  %s4742_s21 = sphi %s4845_s21, %s5674_s21   ;;  %s4738_s20 = sphi %s4843_s20, %s5676_s20   ;;  %s4734_s19 = sphi %s4841_s19, %s5678_s19   ;;  %s4730_s18 = sphi %s4839_s18, %s5677_s18  }
   0x7   : > { %5652 = sst [smem:[#allocation6_spill]] %s4738_s20  ;;  %s3875_s23 = sadd.s32 4294967294, %s4742_s21  }
   0x8   : > { %s4864_s24 = sadd.s32 1, %s4742_s21   ;;  %s360_s25 = sadd.s32 1, %s4738_s20 }
   0x9   : > { %5653 = sst [smem:[#allocation7_spill]] %s4864_s24  ;;  %s357_s26 = ssub.s32 %s4742_s21, %s4864_s24 }
   0xa   : > { %p370_p0 = scmp.ne.s32.totalorder %s4738_s20, %s4734_s19  ;;  %p358_p1 = scmp.eq.s32.totalorder %s357_s26, 0 }
   0xb   : > { %p371_p2 = scmp.eq.s32.totalorder %s4860_s22, 1  ;;  %p376_p3 = scmp.ne.s32.totalorder %s4734_s19, %s4730_s18 }
   0xc   : > { %p377_p4 = scmp.eq.s32.totalorder %s3875_s23, 1  ;;  %p3878_p7 = scmp.ge.s32.totalorder %s4742_s21, 1 }
   0xd   : > { %s4875_s27 = scalar_select %p358_p1, %s4738_s20, %s360_s25  }
   0xe   : > { %p4877_p5 = por %p371_p2, %p370_p0  ;;  %p4881_p6 = por %p377_p4, %p376_p3 }
   0xf   : > { %5654 = sst [smem:[#allocation8_spill]] %s4875_s27  ;;  %p453_p8 = scmp.lt.s32.totalorder %s4742_s21, 3 }
  0x10   : > { %s5656_s29 = scalar_select %p4881_p6, 1, 0 }
  0x11   : > { %p454_p9 = pnand %p3878_p7, %p453_p8 }
  0x12   : > { %5657 = sst [smem:[#allocation9_spill]] %s5656_s29  ;;  %v4576_v0 = vld [vmem:[%s5610_s2] sm:$0xff] (!%p454_p9)   ;;  %v4744_v1 = vmov (!%p454_p9), 0.0   ;;  %v4577_v2 = vld [vmem:[%s5610_s2 + $0x8] sm:$0xff] (!%p454_p9)   ;;  %vm4745_vm0 = vmmov (!%p454_p9), 0   ;;  %s3880_s25 = sshll.u32 (!%p454_p9), %s4860_s22, 1 }
  0x13   : > { %457 = sbr.rel (%p454_p9) target bundleno = 9883 (0x269b), region = 80  ;;  %4111 = vmatprep.subr.bf16.mxu0 (!%p454_p9), %v4744_v1  ;;  %4137 = vmatprep.subr.bf16.mxu1 (!%p454_p9), %v4744_v1  ;;  %p508_p10 = scmp.lt.s32.totalorder (!%p454_p9), %s3880_s25, 3  ;;  %vm581_vm1 = vcmask (!%p454_p9), 261120   ;;  %v4578_v3 = vld [vmem:[%s5611_s3] sm:$0xff] (!%p454_p9)   ;;  %vm636_vm2 = vcmask (!%p454_p9), 130048   ;;  %vm683_vm3 = vcmask (!%p454_p9), 64512  }
  0x14   : > { %4112 = vmatpush3.bf16.msra.mxu0 (!%p454_p9), %v4576_v0  ;;  %4115 = vmatprep.mubr.msk.bf16.mxu0 (!%p454_p9), %vm4745_vm0, %v4744_v1  ;;  %s5658_s0 = sld [smem:[#allocation10_spill]] (!%p454_p9)  ;;  %s5659_s1 = sld [smem:[#allocation11_spill]] (!%p454_p9)  ;;  %vm749_vm4 = vcmask (!%p454_p9), 1045504   ;;  %vm731_vm5 = vcmask (!%p454_p9), 97280   ;;  %v529_v52 = vld [vmem:[%s5612_s4 + $0x4] sm:$0xf] (!%p454_p9) }
  0x15   : > { %4113 = vmatprep.subr.bf16.mxu0 (!%p454_p9), %v4744_v1  ;;  %4139 = vmatprep.mubr.msk.bf16.mxu1 (!%p454_p9), %vm4745_vm0, %v4744_v1  ;;  %s5644_s24 = smov (!%p454_p9), 120   ;;  %s5646_s27 = smov (!%p454_p9), 96   ;;  %vm911_vm6 = vcmask (!%p454_p9), 1043456   ;;  %vm2252_vm8 = vcmask (!%p454_p9), 257024  }
  0x16   : > { %s5633_s29 = smov (!%p454_p9), 112   ;;  %s5642_s26 = smov (!%p454_p9), 80   ;;  %v4976_v53 = vsel (!%p454_p9), %vm911_vm6, %v529_v52, 0 }
  0x17   : > { %s5629_s30 = smov (!%p454_p9), 104   ;;  %s5661_s23 = smov (!%p454_p9), 72  }
  0x18   : > { %4114 = vmatpush3.bf16.msra.mxu0 (!%p454_p9), %v4577_v2 }
  0x19   : > { %4119 = vmatprep.subr.bf16.mxu0 (!%p454_p9), %v4744_v1 }
  0x1a   : > { %s5680_s25 = smov (!%p508_p10, %s3880_s25), 3 }
  0x1b   : > { %s3881_s16 = sshll.u32 %s5680_s25, 2  ;;  %s3973_s17 = sshll.u32 %s5680_s25, 3 }
  0x1c   : > { %s4908_s20 = scalar_lea.vmem %s5658_s0, %s3881_s16  ;;  %s4913_s18 = scalar_lea.vmem %s5659_s1, %s3973_s17 }
  0x1d   : > { %v566_v4 = vld [vmem:[%s4908_s20] sm:$0xf]  ;;  %s5638_s25 = smov 88   ;;  %s5631_s16 = smov 72  }
  0x1e   : > { %4116 = vmatmul.mubr.msk.bf16.vlgmr.msra.gmra.mrb[0].mxu0 %vm581_vm1, %v566_v4  ;;  %v4579_v5 = vld [vmem:[%s4913_s18] sm:$0x3f]   ;;  %s5660_s17 = smov 112   ;;  %s5667_s1 = smov 64  }
  0x1f   : > { %4120 = vmatpush3.bf16.msra.mxu0 %v4578_v3  ;;  %4121 = vmatprep.mubr.msk.bf16.mxu0 %vm4745_vm0, %v4744_v1  ;;  %s5668_s0 = smov 56  }
  0x20   : > { %4125 = vmatprep.subr.bf16.mxu0 %v4744_v1 }
  0x26   : > { %4122 = vmatmul.mubr.msk.bf16.vlgmr.msra.gmra.mrb[4].mxu0 %vm636_vm2, %v4579_v5 }
  0x27   : > { %4127 = vmatprep.mubr.msk.bf16.mxu0 %vm4745_vm0, %v4744_v1 }
  0xf1   : > { %v619_v6 = vpop.f32.mrb[0].mxu0 }
  0xf2   : > { %v4117_v7 = vpop.f32.mrb[1].mxu0  ;;  %v681_v16 = vpack.c.bf16 %v619_v6, %v619_v6 }
  0xf3   : > { %v622_v8 = vpop.f32.mrb[2].mxu0 }
  0xf4   : > { %v4118_v9 = vpop.f32.mrb[3].mxu0 }
  0xf9   : > { %v674_v10 = vpop.f32.mrb[4].mxu0 }
  0xfa   : > { %v4123_v11 = vpop.f32.mrb[5].mxu0 }
  0xfb   : > { %v677_v12 = vpop.f32.mrb[6].mxu0 }
  0xfc   : > { %v4924_v13 = vpack.c.bf16 %v677_v12, %v674_v10  ;;  %v4124_v14 = vpop.f32.mrb[7].mxu0  ;;  %v528_v12 = vld [vmem:[%s5612_s4] sm:$0xf] }
  0xfd   : > { %v4989_v14 = vsel %vm911_vm6, %v528_v12, 0 }
  0xfe   : > { %798 = vrot.lane.b32.xlu0 %v4924_v13, %s5644_s24  ;;  %v688_v15 = vsel %vm683_vm3, %v4924_v13, 0 }
  0xff   : > { %4126 = vmatpush3.bf16.xpose.msra.mxu0 %v688_v15 }
 0x100   : > { %4131 = vmatprep.subr.bf16.mxu0 %v4744_v1 }
 0x102   : > { %796 = vrot.lane.b32.xlu0 %v681_v16, %s5644_s24 }
 0x106   : > { %744 = vrot.lane.b32.xlu0 %v4924_v13, %s5646_s27  ;;  %4128 = vmatmul.mubr.msk.bf16.vlgmr.msra.gmra.mrb[8].mxu0 %vm683_vm3, %v681_v16 }
 0x107   : > { %4133 = vmatprep.mubr.msk.bf16.mxu0 %vm4745_vm0, %v4744_v1 }
 0x10a   : > { %1003 = vrot.lane.b32.xlu0 %v4924_v13, %s5633_s29 }
 0x10e   : > { %1001 = vrot.lane.b32.xlu0 %v681_v16, %s5633_s29  ;;  %s5636_s29 = smov 64  }
 0x170   : > { %v799_v17 = vpop.permute.xlu0 %798 }
 0x171   : > { %v804_v18 = vsel %vm683_vm3, %v799_v17, 0 }
 0x172   : > { %4138 = vmatpush3.bf16.xpose.msra.mxu1 %v804_v18 }
 0x173   : > { %4149 = vmatprep.subr.bf16.mxu1 %v4744_v1 }
 0x174   : > { %v797_v19 = vpop.permute.xlu0 %796 }
 0x178   : > { %v745_v20 = vpop.permute.xlu0 %744 }
 0x179   : > { %v751_v21 = vsel %vm749_vm4, %v745_v20, 0  ;;  %4140 = vmatmul.mubr.msk.bf16.vlgmr.msra.gmra.mrb[0].mxu1 %vm683_vm3, %v797_v19 }
 0x17a   : > { %4132 = vmatpush3.bf16.msra.mxu0 %v751_v21  ;;  %4151 = vmatprep.mubr.msk.bf16.mxu1 %vm4745_vm0, %v4744_v1 }
 0x17b   : > { %4143 = vmatprep.subr.bf16.mxu0 %v4744_v1  ;;  %4150 = vmatpush3.bf16.msra.mxu1 %v4976_v53 }
 0x17c   : > { %v1004_v45 = vpop.permute.xlu0 %1003  ;;  %4155 = vmatprep.subr.bf16.mxu1 %v4744_v1 }
 0x17d   : > { %v1009_v48 = vsel %vm683_vm3, %v1004_v45, 0 }
 0x180   : > { %v1002_v50 = vpop.permute.xlu0 %1001 }
 0x1d9   : > { %v724_v22 = vpop.f32.mrb[8].mxu0 }
 0x1da   : > { %v730_v23 = vmul.f32 0.35355338, %v724_v22  ;;  %v4129_v24 = vpop.f32.mrb[9].mxu0 }
 0x1db   : > { %v727_v25 = vpop.f32.mrb[10].mxu0 }
 0x1dc   : > { %v4130_v26 = vpop.f32.mrb[11].mxu0  ;;  %v732_v27 = vsel %vm731_vm5, %v730_v23, -inf }
 0x1dd   : > { %733 = vmax.xlane.f32.xlu1 %v732_v27  ;;  %v530_v26 = vld [vmem:[%s5612_s4 + $0x8] sm:$0xf] }
 0x1de   : > { %v5009_v27 = vsel %vm911_vm6, %v530_v26, 0 }
 0x24c   : > { %v840_v28 = vpop.f32.mrb[0].mxu1 }
 0x24d   : > { %v846_v29 = vmul.f32 0.35355338, %v840_v28  ;;  %v4141_v30 = vpop.f32.mrb[1].mxu1 }
 0x24e   : > { %v843_v31 = vpop.f32.mrb[2].mxu1 }
 0x24f   : > { %v4142_v32 = vpop.f32.mrb[3].mxu1  ;;  %v847_v33 = vsel %vm731_vm5, %v846_v29, -inf }
 0x250   : > { %848 = vmax.xlane.f32.xlu1 %v847_v33 }
 0x261   : > { %858 = vrot.lane.b32.xlu1 %v4924_v13, %s5638_s25 }
 0x265   : > { %1063 = vrot.lane.b32.xlu1 %v4924_v13, %s5642_s26 }
 0x269   : > { %1162 = vrot.lane.b32.xlu1 %v4924_v13, %s5629_s30 }
 0x26a   : > { %v734_v34 = vpop.xlane.xlu1 %733 }
 0x26b   : > { %v735_v35 = vsub.f32 %v730_v23, %v734_v34 }
 0x26d   : > { %v736_v36 = vmul.f32 1.442695, %v735_v35  ;;  %1160 = vrot.lane.b32.xlu1 %v681_v16, %s5629_s30  ;;  %s5666_s30 = smov 88  }
 0x26f   : > { %4593 = vpow2.f32 %v736_v36 }
 0x279   : > { %v4594_v37 = vpop.eup %4593 }
 0x27a   : > { %v742_v38 = vpack.c.bf16 %v4594_v37, %v4594_v37  ;;  %v738_v11 = vsel %vm731_vm5, %v4594_v37, 0.0 }
 0x27c   : > { %4134 = vmatmul.mubr.msk.bf16.vlgmr.msra.gmra.mrb[12].mxu0 %vm731_vm5, %v742_v38 }
 0x27d   : > { %4145 = vmatprep.mubr.msk.bf16.mxu0 %vm4745_vm0, %v4744_v1 }
 0x2dd   : > { %v849_v39 = vpop.xlane.xlu1 %848 }
 0x2de   : > { %v850_v40 = vsub.f32 %v846_v29, %v849_v39 }
 0x2e0   : > { %v851_v41 = vmul.f32 1.442695, %v850_v40 }
 0x2e1   : > { %v859_v42 = vpop.permute.xlu1 %858 }
 0x2e2   : > { %4595 = vpow2.f32 %v851_v41  ;;  %v864_v43 = vsel %vm749_vm4, %v859_v42, 0 }
 0x2e3   : > { %4144 = vmatpush3.bf16.msra.mxu0 %v864_v43 }
 0x2e4   : > { %4161 = vmatprep.subr.bf16.mxu0 %v4744_v1 }
 0x2e5   : > { %v1064_v49 = vpop.permute.xlu1 %1063 }
 0x2e6   : > { %v1069_v51 = vsel %vm749_vm4, %v1064_v49, 0 }
 0x2e9   : > { %v1163_v58 = vpop.permute.xlu1 %1162 }
 0x2ea   : > { %v1168_v24 = vsel %vm683_vm3, %v1163_v58, 0 }
 0x2ec   : > { %v4596_v44 = vpop.eup %4595 }
 0x2ed   : > { %v853_v46 = vsel %vm731_vm5, %v4596_v44, 0.0  ;;  %v857_v47 = vpack.c.bf16 %v4596_v44, %v4596_v44  ;;  %v1161_v59 = vpop.permute.xlu1 %1160 }
 0x2ee   : > { %854 = vadd.xlane.f32.xlu1 %v853_v46 }
 0x2ef   : > { %4146 = vmatmul.mubr.msk.bf16.vlgmr.msra.gmra.mrb[16].mxu0 %vm731_vm5, %v857_v47 }
 0x2f0   : > { %4162 = vmatpush3.bf16.xpose.msra.mxu0 %v1009_v48  ;;  %4163 = vmatprep.mubr.msk.bf16.mxu0 %vm4745_vm0, %v4744_v1 }
 0x2f1   : > { %4167 = vmatprep.subr.bf16.mxu0 %v4744_v1 }
 0x2f7   : > { %4164 = vmatmul.mubr.msk.bf16.vlgmr.msra.gmra.mrb[20].mxu0 %vm683_vm3, %v1002_v50 }
 0x2f8   : > { %4168 = vmatpush3.bf16.msra.mxu0 %v1069_v51  ;;  %4169 = vmatprep.mubr.msk.bf16.mxu0 %vm4745_vm0, %v4744_v1 }
 0x2f9   : > { %4179 = vmatprep.subr.bf16.mxu0 %v4744_v1 }
 0x34f   : > { %v787_v54 = vpop.f32.mrb[12].mxu0 }
 0x350   : > { %v4135_v55 = vpop.f32.mrb[13].mxu0 }
 0x351   : > { %v790_v56 = vpop.f32.mrb[14].mxu0 }
 0x352   : > { %v4136_v57 = vpop.f32.mrb[15].mxu0 }
 0x37b   : > { %v855_v60 = vpop.xlane.xlu1 %854 }
 0x37c   : > { %4597 = vrcp.f32 %v855_v60 }
 0x386   : > { %v4598_v61 = vpop.eup %4597 }
 0x3c2   : > { %v900_v62 = vpop.f32.mrb[16].mxu0 }
 0x3c3   : > { %v906_v63 = vmul.f32 %v4598_v61, %v900_v62  ;;  %v4147_v0 = vpop.f32.mrb[17].mxu0 }
 0x3c4   : > { %v903_v2 = vpop.f32.mrb[18].mxu0 }
 0x3c5   : > { %v907_v3 = vpack.c.bf16 %v906_v63, %v906_v63  ;;  %v4148_v4 = vpop.f32.mrb[19].mxu0 }
 0x3c7   : > { %4152 = vmatmul.mubr.msk.bf16.vlgmr.msra.gmra.mrb[4].mxu1 %vm683_vm3, %v907_v3 }
 0x3c8   : > { %4157 = vmatprep.mubr.msk.bf16.mxu1 %vm4745_vm0, %v4744_v1  ;;  %4156 = vmatpush3.bf16.msra.mxu1 %v4989_v14 }
 0x3c9   : > { %4173 = vmatprep.subr.bf16.mxu1 %v4744_v1 }
 0x3ca   : > { %v1045_v5 = vpop.f32.mrb[20].mxu0 }
 0x3cb   : > { %v1051_v6 = vmul.f32 0.35355338, %v1045_v5  ;;  %v4165_v7 = vpop.f32.mrb[21].mxu0 }
 0x3cc   : > { %v1048_v8 = vpop.f32.mrb[22].mxu0  ;;  %v5045_v7 = vld [vmem:[%s5613_s5] sm:$0xff]  }
 0x3cd   : > { %v4166_v9 = vpop.f32.mrb[23].mxu0  ;;  %v1052_v10 = vsel %vm731_vm5, %v1051_v6, -inf  ;;  %v5051_v8 = vld [vmem:[%s5613_s5 + $0x8] sm:$0xff]  }
 0x3ce   : > { %1053 = vmax.xlane.f32.xlu0 %v1052_v10 }
 0x3d2   : > { %739 = vadd.xlane.f32.xlu0 %v738_v11 }
 0x45b   : > { %v1054_v15 = vpop.xlane.xlu0 %1053 }
 0x45c   : > { %v1055_v16 = vsub.f32 %v1051_v6, %v1054_v15  ;;  %v3903_v15 = vld [vmem:[%s5615_s7] ss:$0 sm:$0xff] }
 0x45e   : > { %v1056_v17 = vmul.f32 1.442695, %v1055_v16 }
 0x45f   : > { %v740_v18 = vpop.xlane.xlu0 %739 }
 0x460   : > { %4599 = vpow2.f32 %v1056_v17  ;;  %v3904_v17 = vld [vmem:[%s5616_s8] ss:$0 sm:$0xff] }
 0x461   : > { %4601 = vrcp.f32 %v740_v18 }
 0x46a   : > { %v4600_v19 = vpop.eup %4599 }
 0x46b   : > { %v4602_v20 = vpop.eup %4601  ;;  %v1058_v21 = vsel %vm731_vm5, %v4600_v19, 0.0  ;;  %v1062_v22 = vpack.c.bf16 %v4600_v19, %v4600_v19 }
 0x46c   : > { %v793_v23 = vmul.f32 %v4602_v20, %v787_v54  ;;  %1059 = vadd.xlane.f32.xlu0 %v1058_v21 }
 0x46d   : > { %4170 = vmatmul.mubr.msk.bf16.vlgmr.msra.gmra.mrb[24].mxu0 %vm731_vm5, %v1062_v22 }
 0x46e   : > { %4180 = vmatpush3.bf16.xpose.msra.mxu0 %v1168_v24  ;;  %v794_v25 = vpack.c.bf16 %v793_v23, %v793_v23  ;;  %4181 = vmatprep.mubr.msk.bf16.mxu0 %vm4745_vm0, %v4744_v1 }
 0x46f   : > { %4197 = vmatprep.subr.bf16.mxu0 %v4744_v1 }
 0x470   : > { %4158 = vmatmul.mubr.msk.bf16.vlgmr.msra.gmra.mrb[4].mxu1 %vm683_vm3, %v794_v25 }
 0x471   : > { %4175 = vmatprep.mubr.msk.bf16.mxu1 %vm4745_vm0, %v4744_v1  ;;  %4174 = vmatpush3.bf16.msra.mxu1 %v5009_v27 }
 0x472   : > { %4185 = vmatprep.subr.bf16.mxu1 %v4744_v1 }
 0x475   : > { %4182 = vmatmul.mubr.msk.bf16.vlgmr.msra.gmra.mrb[28].mxu0 %vm683_vm3, %v1161_v59 }
 0x476   : > { %4201 = vmatprep.mubr.msk.bf16.mxu0 %vm4745_vm0, %v4744_v1  ;;  %4198 = vmatpush3.bf16.msra.mxu0 %v5045_v7 }
 0x477   : > { %4199 = vmatprep.subr.bf16.mxu0 %v4744_v1 }
 0x47a   : > { %4200 = vmatpush3.bf16.msra.mxu0 %v5051_v8 }
 0x47b   : > { %4205 = vmatprep.subr.bf16.mxu0 %v4744_v1 }
 0x4f9   : > { %v1060_v28 = vpop.xlane.xlu0 %1059 }
 0x4fa   : > { %4603 = vrcp.f32 %v1060_v28 }
 0x504   : > { %v4604_v29 = vpop.eup %4603 }
 0x540   : > { %v1105_v30 = vpop.f32.mrb[24].mxu0 }
 0x541   : > { %v1111_v31 = vmul.f32 %v4604_v29, %v1105_v30  ;;  %v4171_v32 = vpop.f32.mrb[25].mxu0 }
 0x542   : > { %v1108_v33 = vpop.f32.mrb[26].mxu0 }
 0x543   : > { %v1112_v34 = vpack.c.bf16 %v1111_v31, %v1111_v31  ;;  %v4172_v35 = vpop.f32.mrb[27].mxu0 }
 0x545   : > { %4176 = vmatmul.mubr.msk.bf16.vlgmr.msra.gmra.mrb[4].mxu1 %vm683_vm3, %v1112_v34 }
 0x546   : > { %4187 = vmatprep.mubr.msk.bf16.mxu1 %vm4745_vm0, %v4744_v1 }
 0x548   : > { %v1204_v36 = vpop.f32.mrb[28].mxu0 }
 0x549   : > { %v1210_v37 = vmul.f32 0.35355338, %v1204_v36  ;;  %v4183_v38 = vpop.f32.mrb[29].mxu0 }
 0x54a   : > { %v1207_v39 = vpop.f32.mrb[30].mxu0 }
 0x54b   : > { %v4184_v40 = vpop.f32.mrb[31].mxu0  ;;  %v1211_v41 = vsel %vm731_vm5, %v1210_v37, -inf }
 0x54c   : > { %1212 = vmax.xlane.f32.xlu0 %v1211_v41 }
 0x562   : > { %1222 = vrot.lane.b32.xlu0 %v4924_v13, %s5631_s16  ;;  %v531_v13 = vld [vmem:[%s5612_s4 + $0xc] sm:$0xf]  ;;  %s5635_s16 = smov 56  }
 0x563   : > { %v5029_v50 = vsel %vm911_vm6, %v531_v13, 0 }
 0x5d9   : > { %v1213_v42 = vpop.xlane.xlu0 %1212 }
 0x5da   : > { %v1214_v43 = vsub.f32 %v1210_v37, %v1213_v42 }
 0x5dc   : > { %v1215_v44 = vmul.f32 1.442695, %v1214_v43 }
 0x5dd   : > { %v1223_v45 = vpop.permute.xlu0 %1222 }
 0x5de   : > { %4605 = vpow2.f32 %v1215_v44  ;;  %v1228_v46 = vsel %vm749_vm4, %v1223_v45, 0 }
 0x5df   : > { %4186 = vmatpush3.bf16.msra.mxu1 %v1228_v46 }
 0x5e0   : > { %4191 = vmatprep.subr.bf16.mxu1 %v4744_v1 }
 0x5e8   : > { %v4606_v47 = vpop.eup %4605 }
 0x5e9   : > { %v1217_v48 = vsel %vm731_vm5, %v4606_v47, 0.0  ;;  %v1221_v49 = vpack.c.bf16 %v4606_v47, %v4606_v47 }
 0x5ea   : > { %1218 = vadd.xlane.f32.xlu1 %v1217_v48 }
 0x5eb   : > { %4188 = vmatmul.mubr.msk.bf16.vlgmr.msra.gmra.mrb[8].mxu1 %vm731_vm5, %v1221_v49 }
 0x5ec   : > { %4193 = vmatprep.mubr.msk.bf16.mxu1 %vm4745_vm0, %v4744_v1  ;;  %4192 = vmatpush3.bf16.msra.mxu1 %v5029_v50 }
 0x5ed   : > { %4211 = vmatprep.subr.bf16.mxu1 %v4744_v1 }
 0x677   : > { %v1219_v51 = vpop.xlane.xlu1 %1218 }
 0x678   : > { %4607 = vrcp.f32 %v1219_v51 }
 0x682   : > { %v4608_v52 = vpop.eup %4607 }
 0x6be   : > { %v1264_v54 = vpop.f32.mrb[8].mxu1 }
 0x6bf   : > { %v1270_v55 = vmul.f32 %v4608_v52, %v1264_v54  ;;  %v4189_v56 = vpop.f32.mrb[9].mxu1 }
 0x6c0   : > { %v1267_v57 = vpop.f32.mrb[10].mxu1 }
 0x6c1   : > { %v1271_v58 = vpack.c.bf16 %v1270_v55, %v1270_v55  ;;  %v4190_v59 = vpop.f32.mrb[11].mxu1 }
 0x6c3   : > { %4194 = vmatmul.mubr.msk.bf16.vlgmr.msra.gmra.mrb[4].mxu1 %vm683_vm3, %v1271_v58 }
 0x6c4   : > { %4213 = vmatprep.mubr.msk.bf16.mxu1 %vm4745_vm0, %v4744_v1 }
 0x796   : > { %v5036_v60 = vpop.f32.mrb[4].mxu1 }
 0x797   : > { %v4195_v61 = vpop.f32.mrb[5].mxu1  ;;  %v1319_v62 = vsel %vm581_vm1, %v5036_v60, 0.0 }
 0x798   : > { %1320 = vadd.xlane.f32.xlu1 %v1319_v62  ;;  %v1315_v63 = vpop.f32.mrb[6].mxu1  ;;  %v536_v62 = vld [vmem:[%s5614_s6] sm:$0xf] }
 0x799   : > { %v4196_v0 = vpop.f32.mrb[7].mxu1  ;;  %v5112_v63 = vsel %vm911_vm6, %v536_v62, 0 }
 0x79a   : > { %v537_v0 = vld [vmem:[%s5614_s6 + $0x4] sm:$0xf] }
 0x825   : > { %v1321_v2 = vpop.xlane.xlu1 %1320 }
 0x826   : > { %v1323_v3 = vmul.f32 0.03125, %v1321_v2  ;;  %v5119_v2 = vsel %vm911_vm6, %v537_v0, 0 }
 0x828   : > { %v1324_v4 = vsub.f32 %v5036_v60, %v1323_v3 }
 0x82a   : > { %v1325_v5 = vmul.f32 %v1324_v4, %v1324_v4 }
 0x82c   : > { %v1326_v6 = vsel %vm581_vm1, %v1325_v5, 0.0 }
 0x82d   : > { %1327 = vadd.xlane.f32.xlu1 %v1326_v6 }
 0x8ba   : > { %v1328_v9 = vpop.xlane.xlu1 %1327 }
 0x8bb   : > { %v1329_v10 = vmul.f32 0.03125, %v1328_v9 }
 0x8bd   : > { %v1330_v11 = vadd.f32 1e-05, %v1329_v10 }
 0x8bf   : > { %4609 = vrsqrt.f32 %v1330_v11 }
 0x8c9   : > { %v4610_v12 = vpop.eup %4609 }
 0x8ca   : > { %v1332_v16 = vmul.f32 %v4610_v12, %v1324_v4 }
 0x8cc   : > { %v1339_v18 = vmul.f32 %v3903_v15, %v1332_v16 }
 0x8ce   : > { %v1346_v19 = vadd.f32 %v3904_v17, %v1339_v18 }
 0x8d0   : > { %v1347_v20 = vpack.c.bf16 %v1346_v19, %v1346_v19 }
 0x8d2   : > { %4202 = vmatmul.mubr.msk.bf16.vlgmr.msra.gmra.mrb[32].mxu0 %vm581_vm1, %v1347_v20 }
 0x8d3   : > { %4207 = vmatprep.mubr.msk.bf16.mxu0 %vm4745_vm0, %v4744_v1 }
 0x9a5   : > { %v1397_v21 = vpop.f32.mrb[32].mxu0 }
 0x9a6   : > { %v5065_v22 = vpack.c.bf16 %v1397_v21, %v1397_v21  ;;  %v4203_v23 = vpop.f32.mrb[33].mxu0 }
 0x9a7   : > { %v1400_v24 = vpop.f32.mrb[34].mxu0 }
 0x9a8   : > { %1517 = vrot.lane.b32.xlu1 %v5065_v22, %s5638_s25  ;;  %1405 = vrot.lane.b32.xlu0 %v5065_v22, %s5646_s27  ;;  %v4204_v25 = vpop.f32.mrb[35].mxu0  ;;  %s5640_s25 = smov 48   ;;  %s5663_s27 = smov 96  }
 0x9ac   : > { %1515 = vrot.lane.b32.xlu0 %v5065_v22, %s5644_s24 }
 0xa1a   : > { %v1406_v26 = vpop.permute.xlu0 %1405  ;;  %v1518_v29 = vpop.permute.xlu1 %1517 }
 0xa1b   : > { %v1411_v28 = vsel %vm683_vm3, %v1406_v26, 0  ;;  %v1523_v30 = vsel %vm683_vm3, %v1518_v29, 0 }
 0xa1c   : > { %4206 = vmatpush3.bf16.xpose.msra.mxu0 %v1411_v28 }
 0xa1d   : > { %4217 = vmatprep.subr.bf16.mxu0 %v4744_v1 }
 0xa1e   : > { %v1516_v31 = vpop.permute.xlu0 %1515 }
 0xa23   : > { %4208 = vmatmul.mubr.msk.bf16.vlgmr.msra.gmra.mrb[36].mxu0 %vm683_vm3, %v5065_v22 }
 0xa24   : > { %4218 = vmatpush3.bf16.xpose.msra.mxu0 %v1523_v30  ;;  %4219 = vmatprep.mubr.msk.bf16.mxu0 %vm4745_vm0, %v4744_v1 }
 0xa25   : > { %4229 = vmatprep.subr.bf16.mxu0 %v4744_v1 }
 0xa2b   : > { %4220 = vmatmul.mubr.msk.bf16.vlgmr.msra.gmra.mrb[40].mxu0 %vm683_vm3, %v1516_v31 }
 0xa2c   : > { %4231 = vmatprep.mubr.msk.bf16.mxu0 %vm4745_vm0, %v4744_v1  ;;  %4230 = vmatpush3.bf16.msra.mxu0 %v5119_v2 }
 0xa2d   : > { %4241 = vmatprep.subr.bf16.mxu0 %v4744_v1 }
 0xaf6   : > { %v1447_v32 = vpop.f32.mrb[36].mxu0 }
 0xaf7   : > { %v1453_v33 = vmul.f32 0.35355338, %v1447_v32  ;;  %v4209_v34 = vpop.f32.mrb[37].mxu0 }
 0xaf8   : > { %v1450_v35 = vpop.f32.mrb[38].mxu0 }
 0xaf9   : > { %v4210_v36 = vpop.f32.mrb[39].mxu0  ;;  %v1454_v37 = vsel %vm683_vm3, %v1453_v33, -inf }
 0xafa   : > { %1455 = vmax.xlane.f32.xlu0 %v1454_v37 }
 0xafe   : > { %v1559_v38 = vpop.f32.mrb[40].mxu0 }
 0xaff   : > { %v1565_v39 = vmul.f32 0.35355338, %v1559_v38  ;;  %v4221_v40 = vpop.f32.mrb[41].mxu0 }
 0xb00   : > { %v1562_v41 = vpop.f32.mrb[42].mxu0 }
 0xb01   : > { %v4222_v42 = vpop.f32.mrb[43].mxu0  ;;  %v1566_v43 = vsel %vm683_vm3, %v1565_v39, -inf }
 0xb02   : > { %1567 = vmax.xlane.f32.xlu1 %v1566_v43 }
 0xb10   : > { %1465 = vrot.lane.b32.xlu0 %v5065_v22, %s5636_s29  ;;  %s5662_s29 = smov 104  }
 0xb13   : > { %1577 = vrot.lane.b32.xlu1 %v5065_v22, %s5635_s16  ;;  %s5641_s16 = smov 40  }
 0xb17   : > { %1721 = vrot.lane.b32.xlu1 %v5065_v22, %s5642_s26 }
 0xb1b   : > { %1719 = vrot.lane.b32.xlu1 %v5065_v22, %s5660_s17 }
 0xb87   : > { %v1456_v44 = vpop.xlane.xlu0 %1455 }
 0xb88   : > { %v1457_v45 = vsub.f32 %v1453_v33, %v1456_v44 }
 0xb8a   : > { %v1458_v46 = vmul.f32 1.442695, %v1457_v45 }
 0xb8b   : > { %v1466_v47 = vpop.permute.xlu0 %1465 }
 0xb8c   : > { %4611 = vpow2.f32 %v1458_v46  ;;  %v1471_v48 = vsel %vm911_vm6, %v1466_v47, 0 }
 0xb8d   : > { %4212 = vmatpush3.bf16.msra.mxu1 %v1471_v48 }
 0xb8e   : > { %4223 = vmatprep.subr.bf16.mxu1 %v4744_v1 }
 0xb8f   : > { %v1568_v49 = vpop.xlane.xlu1 %1567 }
 0xb90   : > { %v1569_v13 = vsub.f32 %v1565_v39, %v1568_v49 }
 0xb92   : > { %v1570_v51 = vmul.f32 1.442695, %v1569_v13 }
 0xb93   : > { %v1578_v54 = vpop.permute.xlu1 %1577 }
 0xb94   : > { %4613 = vpow2.f32 %v1570_v51  ;;  %v1583_v57 = vsel %vm911_vm6, %v1578_v54, 0 }
 0xb96   : > { %v4612_v52 = vpop.eup %4611 }
 0xb97   : > { %v1460_v55 = vsel %vm683_vm3, %v4612_v52, 0.0  ;;  %v1464_v56 = vpack.c.bf16 %v4612_v52, %v4612_v52  ;;  %v1722_v3 = vpop.permute.xlu1 %1721 }
 0xb98   : > { %1461 = vadd.xlane.f32.xlu1 %v1460_v55  ;;  %v1727_v26 = vsel %vm683_vm3, %v1722_v3, 0  ;;  %v538_v55 = vld [vmem:[%s5614_s6 + $0x8] sm:$0xf] }
 0xb99   : > { %4214 = vmatmul.mubr.msk.bf16.vlgmr.msra.gmra.mrb[12].mxu1 %vm683_vm3, %v1464_v56  ;;  %v5159_v56 = vsel %vm911_vm6, %v538_v55, 0 }
 0xb9a   : > { %4224 = vmatpush3.bf16.msra.mxu1 %v1583_v57  ;;  %4225 = vmatprep.mubr.msk.bf16.mxu1 %vm4745_vm0, %v4744_v1 }
 0xb9b   : > { %4235 = vmatprep.subr.bf16.mxu1 %v4744_v1  ;;  %v1720_v4 = vpop.permute.xlu1 %1719 }
 0xb9e   : > { %v4614_v58 = vpop.eup %4613 }
 0xb9f   : > { %v1572_v59 = vsel %vm683_vm3, %v4614_v58, 0.0  ;;  %v1576_v61 = vpack.c.bf16 %v4614_v58, %v4614_v58 }
 0xba0   : > { %1573 = vadd.xlane.f32.xlu0 %v1572_v59 }
 0xba1   : > { %4226 = vmatmul.mubr.msk.bf16.vlgmr.msra.gmra.mrb[16].mxu1 %vm683_vm3, %v1576_v61 }
 0xba2   : > { %4237 = vmatprep.mubr.msk.bf16.mxu1 %vm4745_vm0, %v4744_v1  ;;  %4236 = vmatpush3.bf16.msra.mxu1 %v5112_v63 }
 0xba3   : > { %4247 = vmatprep.subr.bf16.mxu1 %v4744_v1 }
 0xba9   : > { %1880 = vrot.lane.b32.xlu1 %v5065_v22, %s5661_s23 }
 0xc25   : > { %v1462_v5 = vpop.xlane.xlu1 %1461 }
 0xc26   : > { %4615 = vrcp.f32 %v1462_v5 }
 0xc29   : > { %v1881_v49 = vpop.permute.xlu1 %1880 }
 0xc2a   : > { %v1886_v52 = vsel %vm683_vm3, %v1881_v49, 0 }
 0xc2d   : > { %v1574_v6 = vpop.xlane.xlu0 %1573 }
 0xc2e   : > { %4617 = vrcp.f32 %v1574_v6 }
 0xc30   : > { %v4616_v9 = vpop.eup %4615 }
 0xc38   : > { %v4618_v18 = vpop.eup %4617 }
 0xc6c   : > { %v1507_v10 = vpop.f32.mrb[12].mxu1 }
 0xc6d   : > { %v1513_v11 = vmul.f32 %v4616_v9, %v1507_v10  ;;  %v4215_v12 = vpop.f32.mrb[13].mxu1 }
 0xc6e   : > { %v1510_v15 = vpop.f32.mrb[14].mxu1 }
 0xc6f   : > { %v1514_v16 = vpack.c.bf16 %v1513_v11, %v1513_v11  ;;  %v4216_v17 = vpop.f32.mrb[15].mxu1 }
 0xc71   : > { %4238 = vmatmul.mubr.msk.bf16.vlgmr.msra.gmra.mrb[20].mxu1 %vm683_vm3, %v1514_v16 }
 0xc72   : > { %4249 = vmatprep.mubr.msk.bf16.mxu1 %vm4745_vm0, %v4744_v1 }
 0xc74   : > { %v1619_v19 = vpop.f32.mrb[16].mxu1 }
 0xc75   : > { %v1625_v20 = vmul.f32 %v4618_v18, %v1619_v19  ;;  %v4227_v21 = vpop.f32.mrb[17].mxu1 }
 0xc76   : > { %v1622_v23 = vpop.f32.mrb[18].mxu1 }
 0xc77   : > { %v1626_v24 = vpack.c.bf16 %v1625_v20, %v1625_v20  ;;  %v4228_v25 = vpop.f32.mrb[19].mxu1  ;;  %v539_v23 = vld [vmem:[%s5614_s6 + $0xc] sm:$0xf] }
 0xc79   : > { %4232 = vmatmul.mubr.msk.bf16.vlgmr.msra.gmra.mrb[44].mxu0 %vm683_vm3, %v1626_v24  ;;  %v5177_v24 = vsel %vm911_vm6, %v539_v23, 0 }
 0xc7a   : > { %4242 = vmatpush3.bf16.xpose.msra.mxu0 %v1727_v26  ;;  %4243 = vmatprep.mubr.msk.bf16.mxu0 %vm4745_vm0, %v4744_v1 }
 0xc7b   : > { %4253 = vmatprep.subr.bf16.mxu0 %v4744_v1 }
 0xc81   : > { %4244 = vmatmul.mubr.msk.bf16.vlgmr.msra.gmra.mrb[48].mxu0 %vm683_vm3, %v1720_v4 }
 0xc82   : > { %4255 = vmatprep.mubr.msk.bf16.mxu0 %vm4745_vm0, %v4744_v1  ;;  %4254 = vmatpush3.bf16.msra.mxu0 %v5159_v56 }
 0xc83   : > { %4265 = vmatprep.subr.bf16.mxu0 %v4744_v1 }
 0xd44   : > { %v1713_v28 = vpop.f32.mrb[20].mxu1 }
 0xd45   : > { %v4239_v29 = vpop.f32.mrb[21].mxu1 }
 0xd46   : > { %v1716_v30 = vpop.f32.mrb[22].mxu1 }
 0xd47   : > { %v4240_v31 = vpop.f32.mrb[23].mxu1 }
 0xd4c   : > { %v1667_v32 = vpop.f32.mrb[44].mxu0 }
 0xd4d   : > { %v5135_v33 = vadd.f32 %v1713_v28, %v1667_v32  ;;  %v4233_v34 = vpop.f32.mrb[45].mxu0 }
 0xd4e   : > { %v1670_v35 = vpop.f32.mrb[46].mxu0 }
 0xd4f   : > { %v4234_v36 = vpop.f32.mrb[47].mxu0 }
 0xd54   : > { %v1763_v37 = vpop.f32.mrb[48].mxu0 }
 0xd55   : > { %v1769_v38 = vmul.f32 0.35355338, %v1763_v37  ;;  %v4245_v39 = vpop.f32.mrb[49].mxu0 }
 0xd56   : > { %v1766_v40 = vpop.f32.mrb[50].mxu0 }
 0xd57   : > { %v4246_v41 = vpop.f32.mrb[51].mxu0  ;;  %v1770_v42 = vsel %vm683_vm3, %v1769_v38, -inf }
 0xd58   : > { %1771 = vmax.xlane.f32.xlu0 %v1770_v42 }
 0xd6e   : > { %1781 = vrot.lane.b32.xlu0 %v5065_v22, %s5640_s25  ;;  %s5664_s25 = smov 120  }
 0xd72   : > { %1878 = vrot.lane.b32.xlu0 %v5065_v22, %s5662_s29 }
 0xde5   : > { %v1772_v43 = vpop.xlane.xlu0 %1771 }
 0xde6   : > { %v1773_v44 = vsub.f32 %v1769_v38, %v1772_v43 }
 0xde8   : > { %v1774_v45 = vmul.f32 1.442695, %v1773_v44 }
 0xde9   : > { %v1782_v46 = vpop.permute.xlu0 %1781 }
 0xdea   : > { %4619 = vpow2.f32 %v1774_v45  ;;  %v1787_v47 = vsel %vm911_vm6, %v1782_v46, 0 }
 0xdeb   : > { %4248 = vmatpush3.bf16.msra.mxu1 %v1787_v47 }
 0xdec   : > { %4259 = vmatprep.subr.bf16.mxu1 %v4744_v1 }
 0xded   : > { %v1879_v54 = vpop.permute.xlu0 %1878 }
 0xdf4   : > { %v4620_v48 = vpop.eup %4619 }
 0xdf5   : > { %v1776_v13 = vsel %vm683_vm3, %v4620_v48, 0.0  ;;  %v1780_v51 = vpack.c.bf16 %v4620_v48, %v4620_v48 }
 0xdf6   : > { %1777 = vadd.xlane.f32.xlu0 %v1776_v13 }
 0xdf7   : > { %4250 = vmatmul.mubr.msk.bf16.vlgmr.msra.gmra.mrb[24].mxu1 %vm683_vm3, %v1780_v51  ;;  %v5195_v51 = vld [vmem:[%s5619_s11] sm:$0xff]  }
 0xdf8   : > { %4260 = vmatpush3.bf16.xpose.msra.mxu1 %v1886_v52  ;;  %4261 = vmatprep.mubr.msk.bf16.mxu1 %vm4745_vm0, %v4744_v1 }
 0xdf9   : > { %4271 = vmatprep.subr.bf16.mxu1 %v4744_v1 }
 0xdff   : > { %4262 = vmatmul.mubr.msk.bf16.vlgmr.msra.gmra.mrb[28].mxu1 %vm683_vm3, %v1879_v54 }
 0xe00   : > { %4273 = vmatprep.mubr.msk.bf16.mxu1 %vm4745_vm0, %v4744_v1  ;;  %4272 = vmatpush3.bf16.msra.mxu1 %v5177_v24 }
 0xe01   : > { %4285 = vmatprep.subr.bf16.mxu1 %v4744_v1 }
 0xe0c   : > { %1940 = vrot.lane.b32.xlu0 %v5065_v22, %s5641_s16 }
 0xe83   : > { %v1778_v57 = vpop.xlane.xlu0 %1777 }
 0xe84   : > { %4621 = vrcp.f32 %v1778_v57 }
 0xe87   : > { %v1941_v0 = vpop.permute.xlu0 %1940 }
 0xe88   : > { %v1946_v5 = vsel %vm911_vm6, %v1941_v0, 0 }
 0xe8e   : > { %v4622_v58 = vpop.eup %4621 }
 0xeca   : > { %v1823_v59 = vpop.f32.mrb[24].mxu1 }
 0xecb   : > { %v1829_v61 = vmul.f32 %v4622_v58, %v1823_v59  ;;  %v4251_v62 = vpop.f32.mrb[25].mxu1  ;;  %v3920_v58 = vld [vmem:[%s5617_s9] ss:$0 sm:$0xff] }
 0xecc   : > { %v1826_v3 = vpop.f32.mrb[26].mxu1 }
 0xecd   : > { %v1830_v22 = vpack.c.bf16 %v1829_v61, %v1829_v61  ;;  %v4252_v4 = vpop.f32.mrb[27].mxu1  ;;  %v3921_v61 = vld [vmem:[%s5618_s10] ss:$0 sm:$0xff] }
 0xece   : > { %v3935_v4 = vld [vmem:[%s4908_s20 + $0x4] sm:$0xf]  ;;  %s5665_s20 = smov 80  }
 0xecf   : > { %4256 = vmatmul.mubr.msk.bf16.vlgmr.msra.gmra.mrb[52].mxu0 %vm683_vm3, %v1830_v22  ;;  %v4673_v22 = vld [vmem:[%s5610_s2] sm:$0xff]  }
 0xed0   : > { %4266 = vmatpush3.bf16.msra.mxu0 %v1946_v5  ;;  %4267 = vmatprep.mubr.msk.bf16.mxu0 %vm4745_vm0, %v4744_v1  ;;  %v4674_v5 = vld [vmem:[%s5610_s2 + $0x8] sm:$0xff]  }
 0xed1   : > { %4277 = vmatprep.subr.bf16.mxu0 %v4744_v1 }
 0xed2   : > { %v1922_v6 = vpop.f32.mrb[28].mxu1 }
 0xed3   : > { %v1928_v9 = vmul.f32 0.35355338, %v1922_v6  ;;  %v4263_v10 = vpop.f32.mrb[29].mxu1  ;;  %v4675_v6 = vld [vmem:[%s5611_s3] sm:$0xff]  }
 0xed4   : > { %v1925_v11 = vpop.f32.mrb[30].mxu1  ;;  %v5238_v10 = vld [vmem:[%s5621_s13] sm:$0xff]  }
 0xed5   : > { %v4264_v12 = vpop.f32.mrb[31].mxu1  ;;  %v1929_v15 = vsel %vm683_vm3, %v1928_v9, -inf  ;;  %v5245_v11 = vld [vmem:[%s5621_s13 + $0x8] sm:$0xff]  }
 0xed6   : > { %1930 = vmax.xlane.f32.xlu1 %v1929_v15  ;;  %v5252_v12 = vld [vmem:[%s5621_s13 + $0x10] sm:$0xff]   ;;  %v5259_v15 = vld [vmem:[%s5621_s13 + $0x18] sm:$0xff]  }
 0xf63   : > { %v1931_v16 = vpop.xlane.xlu1 %1930 }
 0xf64   : > { %v1932_v17 = vsub.f32 %v1928_v9, %v1931_v16  ;;  %v4584_v9 = vld [vmem:[%s4913_s18 + $0x8] sm:$0x3f]   ;;  %v5266_v16 = vld [vmem:[%s5621_s13 + $0x20] sm:$0xff]   ;;  %s5648_s18 = sand.u32 1, %s4734_s19  }
 0xf65   : > { %s3879_s16 = sshll.u32 %s5648_s18, 3 }
 0xf66   : > { %v1933_v18 = vmul.f32 1.442695, %v1932_v17  ;;  %v5273_v17 = vld [vmem:[%s5621_s13 + $0x28] sm:$0xff]   ;;  %s5342_s24 = scalar_lea.vmem [#allocation2], %s3879_s16 }
 0xf68   : > { %4623 = vpow2.f32 %v1933_v18  ;;  %v5280_v18 = vld [vmem:[%s5621_s13 + $0x30] sm:$0xff]  }
 0xf72   : > { %v4624_v19 = vpop.eup %4623 }
 0xf73   : > { %v1935_v20 = vsel %vm683_vm3, %v4624_v19, 0.0  ;;  %v1939_v21 = vpack.c.bf16 %v4624_v19, %v4624_v19  ;;  %v5287_v19 = vld [vmem:[%s5621_s13 + $0x38] sm:$0xff]  }
 0xf74   : > { %1936 = vadd.xlane.f32.xlu1 %v1935_v20  ;;  %v5294_v20 = vld [vmem:[%s5620_s12] ss:$0 sm:$0xff] }
 0xf75   : > { %4268 = vmatmul.mubr.msk.bf16.vlgmr.msra.gmra.mrb[56].mxu0 %vm683_vm3, %v1939_v21 }
 0xf76   : > { %4281 = vmatprep.mubr.msk.bf16.mxu0 %vm4745_vm0, %v4744_v1  ;;  %4278 = vmatpush3.bf16.msra.mxu0 %v5195_v51 }
 0xf77   : > { %4279 = vmatprep.subr.bf16.mxu0 %v4744_v1 }
 0xfa2   : > { %v1871_v25 = vpop.f32.mrb[52].mxu0 }
 0xfa3   : > { %v1877_v26 = vadd.f32 %v1871_v25, %v5135_v33  ;;  %v4257_v28 = vpop.f32.mrb[53].mxu0 }
 0xfa4   : > { %v1874_v29 = vpop.f32.mrb[54].mxu0 }
 0xfa5   : > { %v4258_v30 = vpop.f32.mrb[55].mxu0 }
0x1001   : > { %v1937_v31 = vpop.xlane.xlu1 %1936 }
0x1002   : > { %4625 = vrcp.f32 %v1937_v31 }
0x100c   : > { %v4626_v32 = vpop.eup %4625 }
0x1048   : > { %v1982_v34 = vpop.f32.mrb[56].mxu0 }
0x1049   : > { %v1988_v35 = vmul.f32 %v4626_v32, %v1982_v34  ;;  %v4269_v36 = vpop.f32.mrb[57].mxu0 }
0x104a   : > { %v1985_v37 = vpop.f32.mrb[58].mxu0 }
0x104b   : > { %v1989_v38 = vpack.c.bf16 %v1988_v35, %v1988_v35  ;;  %v4270_v39 = vpop.f32.mrb[59].mxu0 }
0x104d   : > { %4274 = vmatmul.mubr.msk.bf16.vlgmr.msra.gmra.mrb[32].mxu1 %vm683_vm3, %v1989_v38 }
0x104e   : > { %4301 = vmatprep.mubr.msk.bf16.mxu1 %vm4745_vm0, %v4744_v1  ;;  %4286 = vmatpush3.bf16.msra.mxu1 %v5238_v10 }
0x104f   : > { %4287 = vmatprep.subr.bf16.mxu1 %v4744_v1 }
0x1052   : > { %4288 = vmatpush3.bf16.msra.mxu1 %v5245_v11 }
0x1053   : > { %4289 = vmatprep.subr.bf16.mxu1 %v4744_v1 }
0x1056   : > { %4290 = vmatpush3.bf16.msra.mxu1 %v5252_v12 }
0x1057   : > { %4291 = vmatprep.subr.bf16.mxu1 %v4744_v1 }
0x105a   : > { %4292 = vmatpush3.bf16.msra.mxu1 %v5259_v15 }
0x105b   : > { %4293 = vmatprep.subr.bf16.mxu1 %v4744_v1 }
0x105e   : > { %4294 = vmatpush3.bf16.msra.mxu1 %v5266_v16 }
0x105f   : > { %4295 = vmatprep.subr.bf16.mxu1 %v4744_v1 }
0x1062   : > { %4296 = vmatpush3.bf16.msra.mxu1 %v5273_v17 }
0x1063   : > { %4297 = vmatprep.subr.bf16.mxu1 %v4744_v1 }
0x1066   : > { %4298 = vmatpush3.bf16.msra.mxu1 %v5280_v18 }
0x1067   : > { %4299 = vmatprep.subr.bf16.mxu1 %v4744_v1 }
0x106a   : > { %4300 = vmatpush3.bf16.msra.mxu1 %v5287_v19 }
0x106b   : > { %4331 = vmatprep.subr.bf16.mxu1 %v4744_v1 }
0x1120   : > { %v2030_v40 = vpop.f32.mrb[32].mxu1 }
0x1121   : > { %v2036_v41 = vadd.f32 %v2030_v40, %v1877_v26  ;;  %v4275_v33 = vpop.f32.mrb[33].mxu1 }
0x1122   : > { %v2033_v42 = vpop.f32.mrb[34].mxu1 }
0x1123   : > { %v5186_v43 = vadd.f32 %v2036_v41, %v5036_v60  ;;  %v4276_v44 = vpop.f32.mrb[35].mxu1  ;;  %v5201_v60 = vld [vmem:[%s5619_s11 + $0x8] sm:$0xff]  }
0x1124   : > { %4280 = vmatpush3.bf16.msra.mxu0 %v5201_v60 }
0x1125   : > { %v2038_v45 = vsel %vm581_vm1, %v5186_v43, 0.0  ;;  %4305 = vmatprep.subr.bf16.mxu0 %v4744_v1 }
0x1126   : > { %2039 = vadd.xlane.f32.xlu1 %v2038_v45 }
0x11b3   : > { %v2040_v46 = vpop.xlane.xlu1 %2039 }
0x11b4   : > { %v2041_v47 = vmul.f32 0.03125, %v2040_v46 }
0x11b6   : > { %v2042_v48 = vsub.f32 %v5186_v43, %v2041_v47 }
0x11b8   : > { %v2043_v49 = vmul.f32 %v2042_v48, %v2042_v48 }
0x11ba   : > { %v2044_v13 = vsel %vm581_vm1, %v2043_v49, 0.0 }
0x11bb   : > { %2045 = vadd.xlane.f32.xlu0 %v2044_v13 }
0x1248   : > { %v2046_v52 = vpop.xlane.xlu0 %2045 }
0x1249   : > { %v2047_v54 = vmul.f32 0.03125, %v2046_v52 }
0x124b   : > { %v2048_v55 = vadd.f32 1e-05, %v2047_v54 }
0x124d   : > { %4627 = vrsqrt.f32 %v2048_v55 }
0x1257   : > { %v4628_v57 = vpop.eup %4627 }
0x1258   : > { %v2050_v59 = vmul.f32 %v4628_v57, %v2042_v48 }
0x125a   : > { %v2057_v62 = vmul.f32 %v3920_v58, %v2050_v59 }
0x125c   : > { %v2064_v0 = vadd.f32 %v3921_v61, %v2057_v62 }
0x125e   : > { %v2065_v3 = vpack.c.bf16 %v2064_v0, %v2064_v0 }
0x1260   : > { %4282 = vmatmul.mubr.msk.bf16.vlgmr.msra.gmra.mrb[60].mxu0 %vm581_vm1, %v2065_v3 }
0x1261   : > { %4306 = vmatpush3.bf16.msra.mxu0 %v4673_v22  ;;  %4309 = vmatprep.mubr.msk.bf16.mxu0 %vm4745_vm0, %v4744_v1 }
0x1262   : > { %4307 = vmatprep.subr.bf16.mxu0 %v4744_v1 }
0x1265   : > { %4308 = vmatpush3.bf16.msra.mxu0 %v4674_v5 }
0x1266   : > { %4313 = vmatprep.subr.bf16.mxu0 %v4744_v1 }
0x1268   : > { %4310 = vmatmul.mubr.msk.bf16.vlgmr.msra.gmra.mrb[64].mxu0 %vm581_vm1, %v3935_v4 }
0x1269   : > { %4314 = vmatpush3.bf16.msra.mxu0 %v4675_v6  ;;  %4315 = vmatprep.mubr.msk.bf16.mxu0 %vm4745_vm0, %v4744_v1 }
0x126a   : > { %4319 = vmatprep.subr.bf16.mxu0 %v4744_v1 }
0x1270   : > { %4316 = vmatmul.mubr.msk.bf16.vlgmr.msra.gmra.mrb[68].mxu0 %vm636_vm2, %v4584_v9 }
0x1271   : > { %4321 = vmatprep.mubr.msk.bf16.mxu0 %vm4745_vm0, %v4744_v1 }
0x1333   : > { %v2121_v21 = vpop.f32.mrb[60].mxu0 }
0x1334   : > { %v2122_v23 = vadd.f32 %v5294_v20, %v2121_v21  ;;  %v4283_v25 = vpop.f32.mrb[61].mxu0 }
0x1335   : > { %v2124_v26 = vpop.f32.mrb[62].mxu0 }
0x1336   : > { %v2128_v28 = vmul.f32 0.70710677, %v2122_v23  ;;  %v4284_v29 = vpop.f32.mrb[63].mxu0  ;;  %v2127_v5 = vmul.f32 0.5, %v2122_v23 }
0x1338   : > { %v2129_v30 = vand.u32 2147483647, %v2128_v28  ;;  %vm2149_vm7 = vcmp.ge.f32.partialorder %v2128_v28, 0.0 }
0x133a   : > { %v2130_v31 = vmul.f32 0.3275911, %v2129_v30  ;;  %v2143_v39 = vsub.f32 0.0, %v2129_v30 }
0x133b   : > { %v2296_v32 = vpop.f32.mrb[64].mxu0 }
0x133c   : > { %v2131_v34 = vadd.f32 1.0, %v2130_v31  ;;  %v4311_v35 = vpop.f32.mrb[65].mxu0  ;;  %v2144_v45 = vmul.f32 %v2143_v39, %v2129_v30  ;;  %v5305_v48 = vpack.c.bf16 %v2296_v32, %v2296_v32 }
0x133d   : > { %v2299_v36 = vpop.f32.mrb[66].mxu0 }
0x133e   : > { %4629 = vrcp.f32 %v2131_v34  ;;  %v4312_v37 = vpop.f32.mrb[67].mxu0  ;;  %v2145_v13 = vmul.f32 1.442695, %v2144_v45 }
0x1340   : > { %4631 = vpow2.f32 %v2145_v13 }
0x1343   : > { %v2344_v38 = vpop.f32.mrb[68].mxu0 }
0x1344   : > { %v4317_v40 = vpop.f32.mrb[69].mxu0 }
0x1345   : > { %v2347_v41 = vpop.f32.mrb[70].mxu0 }
0x1346   : > { %v5297_v33 = vpack.c.bf16 %v2347_v41, %v2344_v38  ;;  %v4318_v42 = vpop.f32.mrb[71].mxu0 }
0x1348   : > { %v4630_v44 = vpop.eup %4629  ;;  %2412 = vrot.lane.b32.xlu0 %v5297_v33, %s5663_s27  ;;  %2465 = vrot.lane.b32.xlu1 %v5297_v33, %s5664_s25  ;;  %v2357_v46 = vsel %vm683_vm3, %v5297_v33, 0 }
0x1349   : > { %v2134_v47 = vmul.f32 1.0614054, %v4630_v44  ;;  %4320 = vmatpush3.bf16.xpose.msra.mxu0 %v2357_v46 }
0x134a   : > { %4325 = vmatprep.subr.bf16.mxu0 %v4744_v1  ;;  %v4632_v62 = vpop.eup %4631 }
0x134b   : > { %v2135_v49 = vadd.f32 -1.4531521, %v2134_v47 }
0x134c   : > { %2463 = vrot.lane.b32.xlu1 %v5305_v48, %s5664_s25 }
0x134d   : > { %v2136_v52 = vmul.f32 %v4630_v44, %v2135_v49 }
0x134f   : > { %v2137_v54 = vadd.f32 1.4214138, %v2136_v52 }
0x1350   : > { %4322 = vmatmul.mubr.msk.bf16.vlgmr.msra.gmra.mrb[72].mxu0 %vm683_vm3, %v5305_v48 }
0x1351   : > { %v2138_v55 = vmul.f32 %v4630_v44, %v2137_v54  ;;  %4327 = vmatprep.mubr.msk.bf16.mxu0 %vm4745_vm0, %v4744_v1 }
0x1353   : > { %v2139_v57 = vadd.f32 -0.28449672, %v2138_v55 }
0x1355   : > { %v2140_v58 = vmul.f32 %v4630_v44, %v2139_v57 }
0x1357   : > { %v2141_v59 = vadd.f32 0.2548296, %v2140_v58 }
0x1359   : > { %v2142_v61 = vmul.f32 %v4630_v44, %v2141_v59 }
0x135b   : > { %v2147_v0 = vmul.f32 %v4632_v62, %v2142_v61 }
0x135d   : > { %v2148_v3 = vsub.f32 1.0, %v2147_v0 }
0x135f   : > { %v2150_v22 = vsub.f32 0.0, %v2148_v3 }
0x1361   : > { %v2151_v4 = vsel %vm2149_vm7, %v2148_v3, %v2150_v22 }
0x1362   : > { %v2152_v6 = vadd.f32 1.0, %v2151_v4 }
0x1364   : > { %v2153_v9 = vmul.f32 %v2152_v6, %v2127_v5 }
0x1366   : > { %v2154_v21 = vpack.c.bf16 %v2153_v9, %v2153_v9 }
0x1368   : > { %4302 = vmatmul.mubr.bf16.vlgmr.msra.gmra.mrb[36].mxu1 %v2154_v21 }
0x1369   : > { %4333 = vmatprep.mubr.msk.bf16.mxu1 %vm4745_vm0, %v4744_v1 }
0x13ba   : > { %v2413_v25 = vpop.permute.xlu0 %2412  ;;  %v2466_v26 = vpop.permute.xlu1 %2465 }
0x13bb   : > { %v2418_v29 = vsel %vm749_vm4, %v2413_v25, 0  ;;  %v2471_v30 = vsel %vm683_vm3, %v2466_v26, 0 }
0x13bc   : > { %4326 = vmatpush3.bf16.msra.mxu0 %v2418_v29  ;;  %4332 = vmatpush3.bf16.xpose.msra.mxu1 %v2471_v30 }
0x13bd   : > { %4337 = vmatprep.subr.bf16.mxu0 %v4744_v1  ;;  %4343 = vmatprep.subr.bf16.mxu1 %v4744_v1 }
0x13be   : > { %v2464_v23 = vpop.permute.xlu1 %2463 }
0x13c3   : > { %4334 = vmatmul.mubr.msk.bf16.vlgmr.msra.gmra.mrb[40].mxu1 %vm683_vm3, %v2464_v23 }
0x13c4   : > { %4344 = vmatpush3.bf16.msra.mxu1 %v4976_v53  ;;  %4345 = vmatprep.mubr.msk.bf16.mxu1 %vm4745_vm0, %v4744_v1  ;;  %v5332_v53 = vld [vmem:[%s5622_s14] ss:$0 sm:$0xff] }
0x13c5   : > { %4349 = vmatprep.subr.bf16.mxu1 %v4744_v1 }
0x1423   : > { %v2393_v28 = vpop.f32.mrb[72].mxu0 }
0x1424   : > { %v2399_v31 = vmul.f32 0.35355338, %v2393_v28  ;;  %v4323_v32 = vpop.f32.mrb[73].mxu0 }
0x1425   : > { %v2396_v34 = vpop.f32.mrb[74].mxu0 }
0x1426   : > { %v4324_v35 = vpop.f32.mrb[75].mxu0  ;;  %v2400_v36 = vsel %vm731_vm5, %v2399_v31, -inf }
0x1427   : > { %2401 = vmax.xlane.f32.xlu1 %v2400_v36 }
0x1438   : > { %2663 = vrot.lane.b32.xlu1 %v5297_v33, %s5660_s17 }
0x143b   : > { %v2237_v37 = vpop.f32.mrb[36].mxu1 }
0x143c   : > { %v2243_v38 = vadd.f32 %v2237_v37, %v5186_v43  ;;  %v4303_v39 = vpop.f32.mrb[37].mxu1  ;;  %2723 = vrot.lane.b32.xlu1 %v5297_v33, %s5665_s20 }
0x143d   : > { %v2240_v40 = vpop.f32.mrb[38].mxu1 }
0x143e   : > { %v2250_v41 = vadd.f32 %v5332_v53, %v2243_v38  ;;  %v4304_v42 = vpop.f32.mrb[39].mxu1 }
0x1440   : > { %v2251_v44 = vpack.c.bf16 %v2250_v41, %v2250_v41  ;;  %2819 = vrot.lane.b32.xlu1 %v5297_v33, %s5662_s29 }
0x1442   : > { %2253 = vst.msk [vmem:[%s5342_s24] sm:$0xf] %vm2252_vm8, %v2251_v44 }
0x1444   : > { %2817 = vrot.lane.b32.xlu1 %v5305_v48, %s5662_s29 }
0x1496   : > { %v2507_v43 = vpop.f32.mrb[40].mxu1 }
0x1497   : > { %v2513_v45 = vmul.f32 0.35355338, %v2507_v43  ;;  %v4335_v46 = vpop.f32.mrb[41].mxu1 }
0x1498   : > { %v2510_v47 = vpop.f32.mrb[42].mxu1 }
0x1499   : > { %v4336_v49 = vpop.f32.mrb[43].mxu1  ;;  %v2514_v13 = vsel %vm731_vm5, %v2513_v45, -inf }
0x149a   : > { %2515 = vmax.xlane.f32.xlu0 %v2514_v13 }
0x14b0   : > { %2525 = vrot.lane.b32.xlu0 %v5297_v33, %s5666_s30 }
0x14b4   : > { %2661 = vrot.lane.b32.xlu0 %v5305_v48, %s5660_s17  ;;  %v2402_v52 = vpop.xlane.xlu1 %2401 }
0x14b5   : > { %v2403_v54 = vsub.f32 %v2399_v31, %v2402_v52 }
0x14b7   : > { %v2404_v55 = vmul.f32 1.442695, %v2403_v54 }
0x14b8   : > { %v2664_v22 = vpop.permute.xlu1 %2663 }
0x14b9   : > { %4633 = vpow2.f32 %v2404_v55  ;;  %v2669_v6 = vsel %vm683_vm3, %v2664_v22, 0 }
0x14bc   : > { %v2724_v9 = vpop.permute.xlu1 %2723 }
0x14bd   : > { %v2729_v25 = vsel %vm749_vm4, %v2724_v9, 0 }
0x14c0   : > { %v2820_v28 = vpop.permute.xlu1 %2819 }
0x14c3   : > { %v4634_v57 = vpop.eup %4633 }
0x14c4   : > { %v2410_v58 = vpack.c.bf16 %v4634_v57, %v4634_v57  ;;  %v2818_v31 = vpop.permute.xlu1 %2817  ;;  %v2406_v47 = vsel %vm731_vm5, %v4634_v57, 0.0 }
0x14c6   : > { %4328 = vmatmul.mubr.msk.bf16.vlgmr.msra.gmra.mrb[76].mxu0 %vm731_vm5, %v2410_v58 }
0x14c7   : > { %4339 = vmatprep.mubr.msk.bf16.mxu0 %vm4745_vm0, %v4744_v1 }
0x1527   : > { %v2516_v59 = vpop.xlane.xlu0 %2515 }
0x1528   : > { %v2517_v61 = vsub.f32 %v2513_v45, %v2516_v59 }
0x152a   : > { %v2518_v62 = vmul.f32 1.442695, %v2517_v61 }
0x152b   : > { %v2526_v0 = vpop.permute.xlu0 %2525 }
0x152c   : > { %4635 = vpow2.f32 %v2518_v62  ;;  %v2531_v3 = vsel %vm749_vm4, %v2526_v0, 0  ;;  %v2825_v62 = vsel %vm683_vm3, %v2820_v28, 0 }
0x152d   : > { %4338 = vmatpush3.bf16.msra.mxu0 %v2531_v3 }
0x152e   : > { %4355 = vmatprep.subr.bf16.mxu0 %v4744_v1 }
0x152f   : > { %v2662_v21 = vpop.permute.xlu0 %2661 }
0x1536   : > { %v4636_v48 = vpop.eup %4635 }
0x1537   : > { %v2520_v4 = vsel %vm731_vm5, %v4636_v48, 0.0  ;;  %v2524_v5 = vpack.c.bf16 %v4636_v48, %v4636_v48 }
0x1538   : > { %2521 = vadd.xlane.f32.xlu1 %v2520_v4 }
0x1539   : > { %4340 = vmatmul.mubr.msk.bf16.vlgmr.msra.gmra.mrb[80].mxu0 %vm731_vm5, %v2524_v5 }
0x153a   : > { %4356 = vmatpush3.bf16.xpose.msra.mxu0 %v2669_v6  ;;  %4357 = vmatprep.mubr.msk.bf16.mxu0 %vm4745_vm0, %v4744_v1 }
0x153b   : > { %4361 = vmatprep.subr.bf16.mxu0 %v4744_v1 }
0x1541   : > { %4358 = vmatmul.mubr.msk.bf16.vlgmr.msra.gmra.mrb[84].mxu0 %vm683_vm3, %v2662_v21 }
0x1542   : > { %4362 = vmatpush3.bf16.msra.mxu0 %v2729_v25  ;;  %4363 = vmatprep.mubr.msk.bf16.mxu0 %vm4745_vm0, %v4744_v1 }
0x1543   : > { %4373 = vmatprep.subr.bf16.mxu0 %v4744_v1 }
0x1599   : > { %v2454_v26 = vpop.f32.mrb[76].mxu0 }
0x159a   : > { %v4329_v29 = vpop.f32.mrb[77].mxu0 }
0x159b   : > { %v2457_v30 = vpop.f32.mrb[78].mxu0 }
0x159c   : > { %v4330_v23 = vpop.f32.mrb[79].mxu0 }
0x15c5   : > { %v2522_v32 = vpop.xlane.xlu1 %2521 }
0x15c6   : > { %4637 = vrcp.f32 %v2522_v32 }
0x15d0   : > { %v4638_v34 = vpop.eup %4637 }
0x160c   : > { %v2567_v35 = vpop.f32.mrb[80].mxu0 }
0x160d   : > { %v2573_v36 = vmul.f32 %v4638_v34, %v2567_v35  ;;  %v4341_v37 = vpop.f32.mrb[81].mxu0 }
0x160e   : > { %v2570_v38 = vpop.f32.mrb[82].mxu0 }
0x160f   : > { %v2574_v39 = vpack.c.bf16 %v2573_v36, %v2573_v36  ;;  %v4342_v40 = vpop.f32.mrb[83].mxu0 }
0x1611   : > { %4346 = vmatmul.mubr.msk.bf16.vlgmr.msra.gmra.mrb[44].mxu1 %vm683_vm3, %v2574_v39 }
0x1612   : > { %4350 = vmatpush3.bf16.msra.mxu1 %v4989_v14  ;;  %4351 = vmatprep.mubr.msk.bf16.mxu1 %vm4745_vm0, %v4744_v1 }
0x1613   : > { %4367 = vmatprep.subr.bf16.mxu1 %v4744_v1 }
0x1614   : > { %v2705_v41 = vpop.f32.mrb[84].mxu0 }
0x1615   : > { %v2711_v42 = vmul.f32 0.35355338, %v2705_v41  ;;  %v4359_v44 = vpop.f32.mrb[85].mxu0 }
0x1616   : > { %v2708_v43 = vpop.f32.mrb[86].mxu0 }
0x1617   : > { %v4360_v45 = vpop.f32.mrb[87].mxu0  ;;  %v2712_v46 = vsel %vm731_vm5, %v2711_v42, -inf }
0x1618   : > { %2713 = vmax.xlane.f32.xlu0 %v2712_v46 }
0x161c   : > { %2407 = vadd.xlane.f32.xlu0 %v2406_v47 }
0x16a5   : > { %v2714_v49 = vpop.xlane.xlu0 %2713 }
0x16a6   : > { %v2715_v13 = vsub.f32 %v2711_v42, %v2714_v49 }
0x16a8   : > { %v2716_v52 = vmul.f32 1.442695, %v2715_v13 }
0x16a9   : > { %v2408_v14 = vpop.xlane.xlu0 %2407 }
0x16aa   : > { %4639 = vpow2.f32 %v2716_v52 }
0x16ab   : > { %4641 = vrcp.f32 %v2408_v14 }
0x16b4   : > { %v4640_v54 = vpop.eup %4639 }
0x16b5   : > { %v4642_v55 = vpop.eup %4641  ;;  %v2718_v58 = vsel %vm731_vm5, %v4640_v54, 0.0  ;;  %v2722_v59 = vpack.c.bf16 %v4640_v54, %v4640_v54 }
0x16b6   : > { %v2460_v61 = vmul.f32 %v4642_v55, %v2454_v26  ;;  %2719 = vadd.xlane.f32.xlu0 %v2718_v58 }
0x16b7   : > { %4364 = vmatmul.mubr.msk.bf16.vlgmr.msra.gmra.mrb[88].mxu0 %vm731_vm5, %v2722_v59 }
0x16b8   : > { %4374 = vmatpush3.bf16.xpose.msra.mxu0 %v2825_v62  ;;  %v2461_v57 = vpack.c.bf16 %v2460_v61, %v2460_v61  ;;  %4375 = vmatprep.mubr.msk.bf16.mxu0 %vm4745_vm0, %v4744_v1  ;;  %v4676_v62 = vld [vmem:[%s5615_s7] ss:$0 sm:$0xff] }
0x16b9   : > { %4391 = vmatprep.subr.bf16.mxu0 %v4744_v1 }
0x16ba   : > { %4352 = vmatmul.mubr.msk.bf16.vlgmr.msra.gmra.mrb[44].mxu1 %vm683_vm3, %v2461_v57 }
0x16bb   : > { %4368 = vmatpush3.bf16.msra.mxu1 %v5009_v27  ;;  %4369 = vmatprep.mubr.msk.bf16.mxu1 %vm4745_vm0, %v4744_v1 }
0x16bc   : > { %4379 = vmatprep.subr.bf16.mxu1 %v4744_v1 }
0x16bf   : > { %4376 = vmatmul.mubr.msk.bf16.vlgmr.msra.gmra.mrb[92].mxu0 %vm683_vm3, %v2818_v31 }
0x16c0   : > { %4392 = vmatpush3.bf16.msra.mxu0 %v5045_v7  ;;  %4395 = vmatprep.mubr.msk.bf16.mxu0 %vm4745_vm0, %v4744_v1 }
0x16c1   : > { %4393 = vmatprep.subr.bf16.mxu0 %v4744_v1 }
0x16c4   : > { %4394 = vmatpush3.bf16.msra.mxu0 %v5051_v8 }
0x16c5   : > { %4399 = vmatprep.subr.bf16.mxu0 %v4744_v1 }
0x1743   : > { %v2720_v0 = vpop.xlane.xlu0 %2719 }
0x1744   : > { %4643 = vrcp.f32 %v2720_v0  ;;  %v4677_v0 = vld [vmem:[%s5616_s8] ss:$0 sm:$0xff] }
0x174e   : > { %v4644_v27 = vpop.eup %4643 }
0x178a   : > { %v2765_v3 = vpop.f32.mrb[88].mxu0 }
0x178b   : > { %v2771_v48 = vmul.f32 %v4644_v27, %v2765_v3  ;;  %v4365_v22 = vpop.f32.mrb[89].mxu0 }
0x178c   : > { %v2768_v4 = vpop.f32.mrb[90].mxu0 }
0x178d   : > { %v2772_v5 = vpack.c.bf16 %v2771_v48, %v2771_v48  ;;  %v4366_v6 = vpop.f32.mrb[91].mxu0 }
0x178f   : > { %4370 = vmatmul.mubr.msk.bf16.vlgmr.msra.gmra.mrb[44].mxu1 %vm683_vm3, %v2772_v5 }
0x1790   : > { %4381 = vmatprep.mubr.msk.bf16.mxu1 %vm4745_vm0, %v4744_v1 }
0x1792   : > { %v2861_v7 = vpop.f32.mrb[92].mxu0 }
0x1793   : > { %v2867_v9 = vmul.f32 0.35355338, %v2861_v7  ;;  %v4377_v21 = vpop.f32.mrb[93].mxu0 }
0x1794   : > { %v2864_v8 = vpop.f32.mrb[94].mxu0 }
0x1795   : > { %v4378_v25 = vpop.f32.mrb[95].mxu0  ;;  %v2868_v26 = vsel %vm731_vm5, %v2867_v9, -inf }
0x1796   : > { %2869 = vmax.xlane.f32.xlu0 %v2868_v26 }
0x17ac   : > { %2879 = vrot.lane.b32.xlu0 %v5297_v33, %s5661_s23 }
0x1823   : > { %v2870_v29 = vpop.xlane.xlu0 %2869 }
0x1824   : > { %v2871_v30 = vsub.f32 %v2867_v9, %v2870_v29 }
0x1826   : > { %v2872_v23 = vmul.f32 1.442695, %v2871_v30 }
0x1827   : > { %v2880_v28 = vpop.permute.xlu0 %2879 }
0x1828   : > { %4645 = vpow2.f32 %v2872_v23  ;;  %v2885_v31 = vsel %vm749_vm4, %v2880_v28, 0 }
0x1829   : > { %4380 = vmatpush3.bf16.msra.mxu1 %v2885_v31 }
0x182a   : > { %4385 = vmatprep.subr.bf16.mxu1 %v4744_v1 }
0x1832   : > { %v4646_v32 = vpop.eup %4645 }
0x1833   : > { %v2874_v34 = vsel %vm731_vm5, %v4646_v32, 0.0  ;;  %v2878_v35 = vpack.c.bf16 %v4646_v32, %v4646_v32 }
0x1834   : > { %2875 = vadd.xlane.f32.xlu1 %v2874_v34 }
0x1835   : > { %4382 = vmatmul.mubr.msk.bf16.vlgmr.msra.gmra.mrb[48].mxu1 %vm731_vm5, %v2878_v35 }
0x1836   : > { %4386 = vmatpush3.bf16.msra.mxu1 %v5029_v50  ;;  %4387 = vmatprep.mubr.msk.bf16.mxu1 %vm4745_vm0, %v4744_v1 }
0x1837   : > { %4405 = vmatprep.subr.bf16.mxu1 %v4744_v1 }
0x18c1   : > { %v2876_v33 = vpop.xlane.xlu1 %2875 }
0x18c2   : > { %4647 = vrcp.f32 %v2876_v33 }
0x18cc   : > { %v4648_v36 = vpop.eup %4647 }
0x1908   : > { %v2921_v37 = vpop.f32.mrb[48].mxu1 }
0x1909   : > { %v2927_v38 = vmul.f32 %v4648_v36, %v2921_v37  ;;  %v4383_v39 = vpop.f32.mrb[49].mxu1 }
0x190a   : > { %v2924_v40 = vpop.f32.mrb[50].mxu1 }
0x190b   : > { %v2928_v41 = vpack.c.bf16 %v2927_v38, %v2927_v38  ;;  %v4384_v42 = vpop.f32.mrb[51].mxu1 }
0x190d   : > { %4388 = vmatmul.mubr.msk.bf16.vlgmr.msra.gmra.mrb[44].mxu1 %vm683_vm3, %v2928_v41 }
0x190e   : > { %4407 = vmatprep.mubr.msk.bf16.mxu1 %vm4745_vm0, %v4744_v1 }
0x19e0   : > { %v5411_v50 = vpop.f32.mrb[44].mxu1 }
0x19e1   : > { %v4389_v44 = vpop.f32.mrb[45].mxu1  ;;  %v2973_v43 = vsel %vm581_vm1, %v5411_v50, 0.0 }
0x19e2   : > { %2974 = vadd.xlane.f32.xlu1 %v2973_v43  ;;  %v2969_v45 = vpop.f32.mrb[46].mxu1 }
0x19e3   : > { %v4390_v46 = vpop.f32.mrb[47].mxu1 }
0x1a6f   : > { %v2975_v47 = vpop.xlane.xlu1 %2974 }
0x1a70   : > { %v2976_v49 = vmul.f32 0.03125, %v2975_v47 }
0x1a72   : > { %v2977_v13 = vsub.f32 %v5411_v50, %v2976_v49 }
0x1a74   : > { %v2978_v52 = vmul.f32 %v2977_v13, %v2977_v13 }
0x1a76   : > { %v2979_v14 = vsel %vm581_vm1, %v2978_v52, 0.0 }
0x1a77   : > { %2980 = vadd.xlane.f32.xlu0 %v2979_v14 }
0x1b04   : > { %v2981_v54 = vpop.xlane.xlu0 %2980 }
0x1b05   : > { %v2982_v55 = vmul.f32 0.03125, %v2981_v54 }
0x1b07   : > { %v2983_v58 = vadd.f32 1e-05, %v2982_v55 }
0x1b09   : > { %4649 = vrsqrt.f32 %v2983_v58 }
0x1b13   : > { %v4650_v59 = vpop.eup %4649 }
0x1b14   : > { %v2985_v61 = vmul.f32 %v4650_v59, %v2977_v13 }
0x1b16   : > { %v2986_v57 = vmul.f32 %v4676_v62, %v2985_v61 }
0x1b18   : > { %v2987_v27 = vadd.f32 %v4677_v0, %v2986_v57 }
0x1b1a   : > { %v2988_v3 = vpack.c.bf16 %v2987_v27, %v2987_v27 }
0x1b1c   : > { %4396 = vmatmul.mubr.msk.bf16.vlgmr.msra.gmra.mrb[96].mxu0 %vm581_vm1, %v2988_v3 }
0x1b1d   : > { %4401 = vmatprep.mubr.msk.bf16.mxu0 %vm4745_vm0, %v4744_v1 }
0x1bef   : > { %v3026_v48 = vpop.f32.mrb[96].mxu0 }
0x1bf0   : > { %v5426_v22 = vpack.c.bf16 %v3026_v48, %v3026_v48  ;;  %v4397_v4 = vpop.f32.mrb[97].mxu0 }
0x1bf1   : > { %v3029_v5 = vpop.f32.mrb[98].mxu0 }
0x1bf2   : > { %3094 = vrot.lane.b32.xlu0 %v5426_v22, %s5667_s1  ;;  %3034 = vrot.lane.b32.xlu1 %v5426_v22, %s5663_s27  ;;  %v4398_v6 = vpop.f32.mrb[99].mxu0 }
0x1bf6   : > { %3146 = vrot.lane.b32.xlu1 %v5426_v22, %s5666_s30  ;;  %s3801_s30 = sshll.u32 %s5342_s24, 4  ;;  %s5559_s30 = int_to_ptr.vmem [resolvable:$true] %s3801_s30 }
0x1bfa   : > { %3144 = vrot.lane.b32.xlu1 %v5426_v22, %s5664_s25 }
0x1c64   : > { %v3095_v7 = vpop.permute.xlu0 %3094  ;;  %v3035_v9 = vpop.permute.xlu1 %3034 }
0x1c65   : > { %v3100_v21 = vsel %vm911_vm6, %v3095_v7, 0  ;;  %v3040_v8 = vsel %vm683_vm3, %v3035_v9, 0 }
0x1c66   : > { %4400 = vmatpush3.bf16.xpose.msra.mxu0 %v3040_v8  ;;  %4406 = vmatpush3.bf16.msra.mxu1 %v3100_v21 }
0x1c67   : > { %4411 = vmatprep.subr.bf16.mxu0 %v4744_v1  ;;  %4417 = vmatprep.subr.bf16.mxu1 %v4744_v1 }
0x1c68   : > { %v3147_v25 = vpop.permute.xlu1 %3146 }
0x1c69   : > { %v3152_v26 = vsel %vm683_vm3, %v3147_v25, 0 }
0x1c6c   : > { %v3145_v29 = vpop.permute.xlu1 %3144 }
0x1c6d   : > { %4402 = vmatmul.mubr.msk.bf16.vlgmr.msra.gmra.mrb[100].mxu0 %vm683_vm3, %v5426_v22 }
0x1c6e   : > { %4412 = vmatpush3.bf16.xpose.msra.mxu0 %v3152_v26  ;;  %4413 = vmatprep.mubr.msk.bf16.mxu0 %vm4745_vm0, %v4744_v1 }
0x1c6f   : > { %4423 = vmatprep.subr.bf16.mxu0 %v4744_v1 }
0x1c75   : > { %4414 = vmatmul.mubr.msk.bf16.vlgmr.msra.gmra.mrb[104].mxu0 %vm683_vm3, %v3145_v29 }
0x1c76   : > { %4424 = vmatpush3.bf16.msra.mxu0 %v5119_v2  ;;  %4425 = vmatprep.mubr.msk.bf16.mxu0 %vm4745_vm0, %v4744_v1 }
0x1c77   : > { %4435 = vmatprep.subr.bf16.mxu0 %v4744_v1 }
0x1d40   : > { %v3076_v30 = vpop.f32.mrb[100].mxu0 }
0x1d41   : > { %v3082_v23 = vmul.f32 0.35355338, %v3076_v30  ;;  %v4403_v28 = vpop.f32.mrb[101].mxu0 }
0x1d42   : > { %v3079_v31 = vpop.f32.mrb[102].mxu0 }
0x1d43   : > { %v4404_v32 = vpop.f32.mrb[103].mxu0  ;;  %v3083_v34 = vsel %vm683_vm3, %v3082_v23, -inf }
0x1d44   : > { %3084 = vmax.xlane.f32.xlu1 %v3083_v34 }
0x1d48   : > { %v3188_v35 = vpop.f32.mrb[104].mxu0 }
0x1d49   : > { %v3194_v33 = vmul.f32 0.35355338, %v3188_v35  ;;  %v4415_v36 = vpop.f32.mrb[105].mxu0 }
0x1d4a   : > { %v3191_v37 = vpop.f32.mrb[106].mxu0 }
0x1d4b   : > { %v4416_v38 = vpop.f32.mrb[107].mxu0  ;;  %v3195_v2 = vsel %vm683_vm3, %v3194_v33, -inf }
0x1d4c   : > { %3196 = vmax.xlane.f32.xlu0 %v3195_v2 }
0x1d55   : > { %3344 = vrot.lane.b32.xlu1 %v5426_v22, %s5665_s20  ;;  %s3974_s20 = sshll.u32 %s4860_s22, 7 }
0x1d59   : > { %3342 = vrot.lane.b32.xlu1 %v5426_v22, %s5660_s17  ;;  %s5669_s17 = smov 48  }
0x1d62   : > { %3206 = vrot.lane.b32.xlu0 %v5426_v22, %s5668_s0  ;;  %s5557_s0 = scalar_lea.hbm %s5623_s15, %s3974_s20 }
0x1dd1   : > { %v3085_v39 = vpop.xlane.xlu1 %3084 }
0x1dd2   : > { %v3086_v40 = vsub.f32 %v3082_v23, %v3085_v39 }
0x1dd4   : > { %v3087_v41 = vmul.f32 1.442695, %v3086_v40 }
0x1dd5   : > { %v3345_v55 = vpop.permute.xlu1 %3344 }
0x1dd6   : > { %4651 = vpow2.f32 %v3087_v41  ;;  %v3350_v29 = vsel %vm683_vm3, %v3345_v55, 0 }
0x1dd9   : > { %v3197_v42 = vpop.xlane.xlu0 %3196  ;;  %v3343_v58 = vpop.permute.xlu1 %3342 }
0x1dda   : > { %v3198_v44 = vsub.f32 %v3194_v33, %v3197_v42 }
0x1ddc   : > { %v3199_v43 = vmul.f32 1.442695, %v3198_v44 }
0x1ddd   : > { %v3207_v46 = vpop.permute.xlu0 %3206 }
0x1dde   : > { %4653 = vpow2.f32 %v3199_v43  ;;  %v3212_v13 = vsel %vm911_vm6, %v3207_v46, 0 }
0x1de0   : > { %v4652_v45 = vpop.eup %4651 }
0x1de1   : > { %v3089_v47 = vsel %vm683_vm3, %v4652_v45, 0.0  ;;  %v3093_v49 = vpack.c.bf16 %v4652_v45, %v4652_v45 }
0x1de2   : > { %3090 = vadd.xlane.f32.xlu1 %v3089_v47 }
0x1de3   : > { %4408 = vmatmul.mubr.msk.bf16.vlgmr.msra.gmra.mrb[52].mxu1 %vm683_vm3, %v3093_v49 }
0x1de4   : > { %4418 = vmatpush3.bf16.msra.mxu1 %v3212_v13  ;;  %4419 = vmatprep.mubr.msk.bf16.mxu1 %vm4745_vm0, %v4744_v1 }
0x1de5   : > { %4429 = vmatprep.subr.bf16.mxu1 %v4744_v1 }
0x1de8   : > { %v4654_v52 = vpop.eup %4653 }
0x1de9   : > { %v3201_v14 = vsel %vm683_vm3, %v4654_v52, 0.0  ;;  %v3205_v54 = vpack.c.bf16 %v4654_v52, %v4654_v52 }
0x1dea   : > { %3202 = vadd.xlane.f32.xlu0 %v3201_v14 }
0x1deb   : > { %4420 = vmatmul.mubr.msk.bf16.vlgmr.msra.gmra.mrb[56].mxu1 %vm683_vm3, %v3205_v54 }
0x1dec   : > { %4430 = vmatpush3.bf16.msra.mxu1 %v5112_v63  ;;  %4431 = vmatprep.mubr.msk.bf16.mxu1 %vm4745_vm0, %v4744_v1 }
0x1ded   : > { %4441 = vmatprep.subr.bf16.mxu1 %v4744_v1 }
0x1df3   : > { %3498 = vrot.lane.b32.xlu1 %v5426_v22, %s5662_s29  ;;  %s4757_s29 = smov [#allocation2]  }
0x1df4   : > { %s4684_s27 = sshll.u32 %s4757_s29, 4  ;;  %s4685_s27 = int_to_ptr.vmem [resolvable:$false] %s4684_s27 }
0x1df5   : > { %s4686_s25 = scalar_lea.vmem %s4685_s27, 256  ;;  %p4687_p0 = scmp.lt.s32.totalorder %s5559_s30, %s4685_s27 }
0x1e00   : > { %3404 = vrot.lane.b32.xlu0 %v5426_v22, %s5669_s17  ;;  %s5671_s17 = sand.u32 1, %s4734_s19  }
0x1e01   : > { %s5565_s22 = scalar_lea.sflag [#allocation3], %s5671_s17 }
0x1e6f   : > { %v3091_v59 = vpop.xlane.xlu1 %3090 }
0x1e70   : > { %4655 = vrcp.f32 %v3091_v59 }
0x1e73   : > { %v3499_v13 = vpop.permute.xlu1 %3498 }
0x1e77   : > { %v3203_v61 = vpop.xlane.xlu0 %3202 }
0x1e78   : > { %4657 = vrcp.f32 %v3203_v61 }
0x1e7a   : > { %v4656_v62 = vpop.eup %4655 }
0x1e7b   : > { %v3405_v27 = vpop.permute.xlu0 %3404 }
0x1e7c   : > { %v3410_v5 = vsel %vm911_vm6, %v3405_v27, 0 }
0x1e82   : > { %v4658_v6 = vpop.eup %4657 }
0x1eb6   : > { %v3136_v57 = vpop.f32.mrb[52].mxu1 }
0x1eb7   : > { %v3142_v63 = vmul.f32 %v4656_v62, %v3136_v57  ;;  %v4409_v0 = vpop.f32.mrb[53].mxu1 }
0x1eb8   : > { %v3139_v3 = vpop.f32.mrb[54].mxu1 }
0x1eb9   : > { %v3143_v48 = vpack.c.bf16 %v3142_v63, %v3142_v63  ;;  %v4410_v4 = vpop.f32.mrb[55].mxu1 }
0x1ebb   : > { %4432 = vmatmul.mubr.msk.bf16.vlgmr.msra.gmra.mrb[60].mxu1 %vm683_vm3, %v3143_v48 }
0x1ebc   : > { %4442 = vmatpush3.bf16.msra.mxu1 %v3410_v5  ;;  %4443 = vmatprep.mubr.msk.bf16.mxu1 %vm4745_vm0, %v4744_v1 }
0x1ebd   : > { %4453 = vmatprep.subr.bf16.mxu1 %v4744_v1 }
0x1ebe   : > { %v3248_v7 = vpop.f32.mrb[56].mxu1 }
0x1ebf   : > { %v3254_v9 = vmul.f32 %v4658_v6, %v3248_v7  ;;  %v4421_v21 = vpop.f32.mrb[57].mxu1 }
0x1ec0   : > { %v3251_v8 = vpop.f32.mrb[58].mxu1 }
0x1ec1   : > { %v3255_v25 = vpack.c.bf16 %v3254_v9, %v3254_v9  ;;  %v4422_v26 = vpop.f32.mrb[59].mxu1 }
0x1ec3   : > { %4426 = vmatmul.mubr.msk.bf16.vlgmr.msra.gmra.mrb[108].mxu0 %vm683_vm3, %v3255_v25 }
0x1ec4   : > { %4436 = vmatpush3.bf16.xpose.msra.mxu0 %v3350_v29  ;;  %4437 = vmatprep.mubr.msk.bf16.mxu0 %vm4745_vm0, %v4744_v1 }
0x1ec5   : > { %4447 = vmatprep.subr.bf16.mxu0 %v4744_v1 }
0x1ecb   : > { %4438 = vmatmul.mubr.msk.bf16.vlgmr.msra.gmra.mrb[112].mxu0 %vm683_vm3, %v3343_v58 }
0x1ecc   : > { %4448 = vmatpush3.bf16.msra.mxu0 %v5159_v56  ;;  %4449 = vmatprep.mubr.msk.bf16.mxu0 %vm4745_vm0, %v4744_v1 }
0x1ecd   : > { %4459 = vmatprep.subr.bf16.mxu0 %v4744_v1 }
0x1f8e   : > { %v3336_v30 = vpop.f32.mrb[60].mxu1 }
0x1f8f   : > { %v4433_v23 = vpop.f32.mrb[61].mxu1 }
0x1f90   : > { %v3339_v28 = vpop.f32.mrb[62].mxu1 }
0x1f91   : > { %v4434_v31 = vpop.f32.mrb[63].mxu1 }
0x1f96   : > { %v3293_v32 = vpop.f32.mrb[108].mxu0 }
0x1f97   : > { %v5490_v34 = vadd.f32 %v3336_v30, %v3293_v32  ;;  %v4427_v35 = vpop.f32.mrb[109].mxu0 }
0x1f98   : > { %v3296_v33 = vpop.f32.mrb[110].mxu0 }
0x1f99   : > { %v4428_v36 = vpop.f32.mrb[111].mxu0 }
0x1f9e   : > { %v3386_v37 = vpop.f32.mrb[112].mxu0 }
0x1f9f   : > { %v3392_v38 = vmul.f32 0.35355338, %v3386_v37  ;;  %v4439_v2 = vpop.f32.mrb[113].mxu0 }
0x1fa0   : > { %v3389_v39 = vpop.f32.mrb[114].mxu0 }
0x1fa1   : > { %v4440_v56 = vpop.f32.mrb[115].mxu0  ;;  %v3393_v40 = vsel %vm683_vm3, %v3392_v38, -inf }
0x1fa2   : > { %3394 = vmax.xlane.f32.xlu0 %v3393_v40 }
0x1fb8   : > { %3500 = vrot.lane.b32.xlu0 %v5426_v22, %s5661_s23  ;;  %s5670_s23 = smov 40  }
0x202f   : > { %v3395_v41 = vpop.xlane.xlu0 %3394 }
0x2030   : > { %v3396_v42 = vsub.f32 %v3392_v38, %v3395_v41 }
0x2032   : > { %v3397_v44 = vmul.f32 1.442695, %v3396_v42  ;;  %v4679_v42 = vld [vmem:[%s5618_s10] ss:$0 sm:$0xff] }
0x2033   : > { %v3501_v45 = vpop.permute.xlu0 %3500 }
0x2034   : > { %4659 = vpow2.f32 %v3397_v44  ;;  %v3506_v49 = vsel %vm683_vm3, %v3501_v45, 0 }
0x203e   : > { %v4660_v43 = vpop.eup %4659 }
0x203f   : > { %v3399_v46 = vsel %vm683_vm3, %v4660_v43, 0.0  ;;  %v3403_v47 = vpack.c.bf16 %v4660_v43, %v4660_v43 }
0x2040   : > { %3400 = vadd.xlane.f32.xlu0 %v3399_v46 }
0x2041   : > { %4444 = vmatmul.mubr.msk.bf16.vlgmr.msra.gmra.mrb[64].mxu1 %vm683_vm3, %v3403_v47 }
0x2042   : > { %4454 = vmatpush3.bf16.xpose.msra.mxu1 %v3506_v49  ;;  %4455 = vmatprep.mubr.msk.bf16.mxu1 %vm4745_vm0, %v4744_v1 }
0x2043   : > { %4465 = vmatprep.subr.bf16.mxu1 %v4744_v1 }
0x2049   : > { %4456 = vmatmul.mubr.msk.bf16.vlgmr.msra.gmra.mrb[68].mxu1 %vm683_vm3, %v3499_v13 }
0x204a   : > { %4466 = vmatpush3.bf16.msra.mxu1 %v5177_v24  ;;  %4467 = vmatprep.mubr.msk.bf16.mxu1 %vm4745_vm0, %v4744_v1 }
0x204b   : > { %4479 = vmatprep.subr.bf16.mxu1 %v4744_v1 }
0x2056   : > { %3560 = vrot.lane.b32.xlu0 %v5426_v22, %s5670_s23  ;;  %s4680_s23 = scalar_lea.vmem %s5559_s30, 128 }
0x2057   : > { %p4681_p11 = scmp.ne.s32.totalorder %s5559_s30, %s4680_s23  ;;  %p4688_p1 = scmp.lt.s32.totalorder %s4686_s25, %s4680_s23 }
0x2059   : > { %p4682_p12 = pnand %p4681_p11, %p4877_p5  ;;  %p4689_p2 = por %p4688_p1, %p4687_p0 }
0x205b   : > { %p4683_p13 = pneg %p4682_p12 }
0x205d   : > { %p4690_p3 = pnand %p4689_p2, %p4683_p13 }
0x20cd   : > { %v3401_v52 = vpop.xlane.xlu0 %3400 }
0x20ce   : > { %4661 = vrcp.f32 %v3401_v52 }
0x20d1   : > { %v3561_v59 = vpop.permute.xlu0 %3560 }
0x20d2   : > { %v3566_v24 = vsel %vm911_vm6, %v3561_v59, 0 }
0x20d8   : > { %v4662_v14 = vpop.eup %4661 }
0x2114   : > { %v3446_v54 = vpop.f32.mrb[64].mxu1 }
0x2115   : > { %v3452_v55 = vmul.f32 %v4662_v14, %v3446_v54  ;;  %v4445_v58 = vpop.f32.mrb[65].mxu1 }
0x2116   : > { %v3449_v61 = vpop.f32.mrb[66].mxu1 }
0x2117   : > { %v3453_v62 = vpack.c.bf16 %v3452_v55, %v3452_v55  ;;  %v4446_v57 = vpop.f32.mrb[67].mxu1 }
0x2119   : > { %4450 = vmatmul.mubr.msk.bf16.vlgmr.msra.gmra.mrb[116].mxu0 %vm683_vm3, %v3453_v62 }
0x211a   : > { %4460 = vmatpush3.bf16.msra.mxu0 %v3566_v24  ;;  %4461 = vmatprep.mubr.msk.bf16.mxu0 %vm4745_vm0, %v4744_v1 }
0x211b   : > { %4471 = vmatprep.subr.bf16.mxu0 %v4744_v1 }
0x211c   : > { %v3542_v22 = vpop.f32.mrb[68].mxu1 }
0x211d   : > { %v3548_v63 = vmul.f32 0.35355338, %v3542_v22  ;;  %v4457_v0 = vpop.f32.mrb[69].mxu1 }
0x211e   : > { %v3545_v27 = vpop.f32.mrb[70].mxu1 }
0x211f   : > { %v4458_v3 = vpop.f32.mrb[71].mxu1  ;;  %v3549_v48 = vsel %vm683_vm3, %v3548_v63, -inf }
0x2120   : > { %3550 = vmax.xlane.f32.xlu1 %v3549_v48 }
0x21ad   : > { %v3551_v4 = vpop.xlane.xlu1 %3550 }
0x21ae   : > { %v3552_v5 = vsub.f32 %v3548_v63, %v3551_v4 }
0x21b0   : > { %v3553_v6 = vmul.f32 1.442695, %v3552_v5 }
0x21b2   : > { %4663 = vpow2.f32 %v3553_v6 }
0x21bc   : > { %v4664_v7 = vpop.eup %4663 }
0x21bd   : > { %v3555_v9 = vsel %vm683_vm3, %v4664_v7, 0.0  ;;  %v3559_v21 = vpack.c.bf16 %v4664_v7, %v4664_v7 }
0x21be   : > { %3556 = vadd.xlane.f32.xlu1 %v3555_v9 }
0x21bf   : > { %4462 = vmatmul.mubr.msk.bf16.vlgmr.msra.gmra.mrb[120].mxu0 %vm683_vm3, %v3559_v21 }
0x21c0   : > { %4472 = vmatpush3.bf16.msra.mxu0 %v5195_v51  ;;  %4475 = vmatprep.mubr.msk.bf16.mxu0 %vm4745_vm0, %v4744_v1 }
0x21c1   : > { %4473 = vmatprep.subr.bf16.mxu0 %v4744_v1 }
0x21c4   : > { %4474 = vmatpush3.bf16.msra.mxu0 %v5201_v60 }
0x21ec   : > { %v3491_v8 = vpop.f32.mrb[116].mxu0 }
0x21ed   : > { %v3497_v25 = vadd.f32 %v3491_v8, %v5490_v34  ;;  %v4451_v26 = vpop.f32.mrb[117].mxu0 }
0x21ee   : > { %v3494_v29 = vpop.f32.mrb[118].mxu0 }
0x21ef   : > { %v4452_v30 = vpop.f32.mrb[119].mxu0 }
0x224b   : > { %v3557_v23 = vpop.xlane.xlu1 %3556 }
0x224c   : > { %4665 = vrcp.f32 %v3557_v23 }
0x2256   : > { %v4666_v28 = vpop.eup %4665 }
0x2292   : > { %v3602_v31 = vpop.f32.mrb[120].mxu0 }
0x2293   : > { %v3608_v32 = vmul.f32 %v4666_v28, %v3602_v31  ;;  %v4463_v35 = vpop.f32.mrb[121].mxu0 }
0x2294   : > { %v3605_v51 = vpop.f32.mrb[122].mxu0 }
0x2295   : > { %v3609_v33 = vpack.c.bf16 %v3608_v32, %v3608_v32  ;;  %v4464_v36 = vpop.f32.mrb[123].mxu0 }
0x2297   : > { %4468 = vmatmul.mubr.msk.bf16.vlgmr.msra.gmra.mrb[72].mxu1 %vm683_vm3, %v3609_v33 }
0x2298   : > { %4480 = vmatpush3.bf16.msra.mxu1 %v5238_v10  ;;  %4495 = vmatprep.mubr.msk.bf16.mxu1 %vm4745_vm0, %v4744_v1 }
0x2299   : > { %4481 = vmatprep.subr.bf16.mxu1 %v4744_v1 }
0x229c   : > { %4482 = vmatpush3.bf16.msra.mxu1 %v5245_v11 }
0x229d   : > { %4483 = vmatprep.subr.bf16.mxu1 %v4744_v1 }
0x22a0   : > { %4484 = vmatpush3.bf16.msra.mxu1 %v5252_v12 }
0x22a1   : > { %4485 = vmatprep.subr.bf16.mxu1 %v4744_v1 }
0x22a4   : > { %4486 = vmatpush3.bf16.msra.mxu1 %v5259_v15 }
0x22a5   : > { %4487 = vmatprep.subr.bf16.mxu1 %v4744_v1 }
0x22a8   : > { %4488 = vmatpush3.bf16.msra.mxu1 %v5266_v16 }
0x22a9   : > { %4489 = vmatprep.subr.bf16.mxu1 %v4744_v1 }
0x22ac   : > { %4490 = vmatpush3.bf16.msra.mxu1 %v5273_v17 }
0x22ad   : > { %4491 = vmatprep.subr.bf16.mxu1 %v4744_v1 }
0x22b0   : > { %4492 = vmatpush3.bf16.msra.mxu1 %v5280_v18 }
0x22b1   : > { %4493 = vmatprep.subr.bf16.mxu1 %v4744_v1 }
0x22b4   : > { %4494 = vmatpush3.bf16.msra.mxu1 %v5287_v19 }
0x236a   : > { %v3647_v60 = vpop.f32.mrb[72].mxu1 }
0x236b   : > { %v3653_v10 = vadd.f32 %v3647_v60, %v3497_v25  ;;  %v4469_v11 = vpop.f32.mrb[73].mxu1 }
0x236c   : > { %v3650_v12 = vpop.f32.mrb[74].mxu1 }
0x236d   : > { %v3654_v15 = vadd.f32 %v3653_v10, %v5411_v50  ;;  %v4470_v34 = vpop.f32.mrb[75].mxu1  ;;  %v4678_v50 = vld [vmem:[%s5617_s9] ss:$0 sm:$0xff] }
0x236f   : > { %v3655_v16 = vsel %vm581_vm1, %v3654_v15, 0.0 }
0x2370   : > { %3656 = vadd.xlane.f32.xlu0 %v3655_v16 }
0x23fd   : > { %v3657_v37 = vpop.xlane.xlu0 %3656 }
0x23fe   : > { %v3658_v17 = vmul.f32 0.03125, %v3657_v37 }
0x2400   : > { %v3659_v38 = vsub.f32 %v3654_v15, %v3658_v17 }
0x2402   : > { %v3660_v2 = vmul.f32 %v3659_v38, %v3659_v38 }
0x2404   : > { %v3661_v18 = vsel %vm581_vm1, %v3660_v2, 0.0 }
0x2405   : > { %3662 = vadd.xlane.f32.xlu1 %v3661_v18 }
0x2492   : > { %v3663_v1 = vpop.xlane.xlu1 %3662 }
0x2493   : > { %v3664_v39 = vmul.f32 0.03125, %v3663_v1 }
0x2495   : > { %v3665_v19 = vadd.f32 1e-05, %v3664_v39 }
0x2497   : > { %4667 = vrsqrt.f32 %v3665_v19 }
0x24a1   : > { %v4668_v56 = vpop.eup %4667 }
0x24a2   : > { %v3667_v40 = vmul.f32 %v4668_v56, %v3659_v38 }
0x24a4   : > { %v3668_v41 = vmul.f32 %v4678_v50, %v3667_v40 }
0x24a6   : > { %v3669_v44 = vadd.f32 %v4679_v42, %v3668_v41 }
0x24a8   : > { %v3670_v43 = vpack.c.bf16 %v3669_v44, %v3669_v44 }
0x24aa   : > { %4476 = vmatmul.mubr.msk.bf16.vlgmr.msra.gmra.mrb[124].mxu0 %vm581_vm1, %v3670_v43 }
0x257d   : > { %v3708_v45 = vpop.f32.mrb[124].mxu0 }
0x257e   : > { %v3709_v46 = vadd.f32 %v5294_v20, %v3708_v45  ;;  %v4477_v47 = vpop.f32.mrb[125].mxu0 }
0x257f   : > { %v3711_v49 = vpop.f32.mrb[126].mxu0 }
0x2580   : > { %v3715_v13 = vmul.f32 0.70710677, %v3709_v46  ;;  %v4478_v52 = vpop.f32.mrb[127].mxu0  ;;  %v3714_v21 = vmul.f32 0.5, %v3709_v46 }
0x2582   : > { %v3716_v14 = vand.u32 2147483647, %v3715_v13  ;;  %vm3736_vm9 = vcmp.ge.f32.partialorder %v3715_v13, 0.0 }
0x2584   : > { %v3717_v54 = vmul.f32 0.3275911, %v3716_v14  ;;  %v3730_v58 = vsub.f32 0.0, %v3716_v14 }
0x2586   : > { %v3718_v55 = vadd.f32 1.0, %v3717_v54  ;;  %v3731_v61 = vmul.f32 %v3730_v58, %v3716_v14 }
0x2588   : > { %4669 = vrcp.f32 %v3718_v55  ;;  %v3732_v24 = vmul.f32 1.442695, %v3731_v61 }
0x258a   : > { %4671 = vpow2.f32 %v3732_v24 }
0x2592   : > { %v4670_v59 = vpop.eup %4669 }
0x2593   : > { %v3721_v62 = vmul.f32 1.0614054, %v4670_v59 }
0x2594   : > { %v4672_v4 = vpop.eup %4671 }
0x2595   : > { %v3722_v57 = vadd.f32 -1.4531521, %v3721_v62 }
0x2597   : > { %v3723_v22 = vmul.f32 %v4670_v59, %v3722_v57 }
0x2599   : > { %v3724_v63 = vadd.f32 1.4214138, %v3723_v22 }
0x259b   : > { %v3725_v0 = vmul.f32 %v4670_v59, %v3724_v63 }
0x259d   : > { %v3726_v27 = vadd.f32 -0.28449672, %v3725_v0 }
0x259f   : > { %v3727_v20 = vmul.f32 %v4670_v59, %v3726_v27 }
0x25a1   : > { %v3728_v3 = vadd.f32 0.2548296, %v3727_v20 }
0x25a3   : > { %v3729_v48 = vmul.f32 %v4670_v59, %v3728_v3 }
0x25a5   : > { %v3734_v5 = vmul.f32 %v4672_v4, %v3729_v48 }
0x25a7   : > { %v3735_v6 = vsub.f32 1.0, %v3734_v5 }
0x25a9   : > { %v3737_v7 = vsub.f32 0.0, %v3735_v6 }
0x25ab   : > { %v3738_v9 = vsel %vm3736_vm9, %v3735_v6, %v3737_v7 }
0x25ac   : > { %v3739_v8 = vadd.f32 1.0, %v3738_v9 }
0x25ae   : > { %v3740_v25 = vmul.f32 %v3739_v8, %v3714_v21 }
0x25b0   : > { %v3741_v26 = vpack.c.bf16 %v3740_v25, %v3740_v25 }
0x25b2   : > { %4496 = vmatmul.mubr.bf16.vlgmr.msra.gmra.mrb[76].mxu1 %v3741_v26 }
0x2685   : > { %v3776_v29 = vpop.f32.mrb[76].mxu1 }
0x2686   : > { %v3782_v30 = vadd.f32 %v3776_v29, %v3654_v15  ;;  %v4497_v23 = vpop.f32.mrb[77].mxu1 }
0x2687   : > { %v3779_v28 = vpop.f32.mrb[78].mxu1 }
0x2688   : > { %v3783_v31 = vadd.f32 %v5332_v53, %v3782_v30  ;;  %v4498_v32 = vpop.f32.mrb[79].mxu1 }
0x268a   : > { %v3784_v35 = vpack.c.bf16 %v3783_v31, %v3783_v31 }
0x268c   : > { %3967 = vst.msk [vmem:[%s5342_s24 + $0x4] sm:$0xf] %vm2252_vm8, %v3784_v35 }
0x268d   : > { %4693 = shalt.err (!%p4690_p3)
}
0x268e   : > { %s4694_s24 = scalar_lea.hbm %s5557_s0, 128  ;;  %s4698_s26 = scalar_lea.hbm %s5623_s15, 256 }
0x268f   : > { %p4695_p4 = scmp.ne.s32.totalorder %s5557_s0, %s4694_s24  ;;  %p4699_p9 = scmp.lt.u32.totalorder %s5557_s0, %s5623_s15 }
0x2690   : > { %p4700_p10 = scmp.lt.u32.totalorder %s4698_s26, %s4694_s24  ;;  %p4702_p12 = scmp.lt.u32.totalorder %s4694_s24, %s5557_s0 }
0x2691   : > { %p4696_p7 = pnand %p4695_p4, %p4877_p5 }
0x2692   : > { %p4701_p11 = por %p4700_p10, %p4699_p9 }
0x2693   : > { %p4697_p8 = pneg %p4696_p7 }
0x2694   : > { %p4703_p13 = por %p4702_p12, %p4701_p11 }
0x2696   : > { %p4704_p0 = pnand %p4703_p13, %p4697_p8 }
0x2698   : > { %4707 = shalt.err (!%p4704_p0)
}
0x2699   : > { %s4758_s23 = smov 4  }
0x269a   : > { %4523 = dma.vmem_to_hbm [thread:$0]  (%p4877_p5), %s5559_s30, 128, %s5557_s0, %s5565_s22, %s5667_s1, %s5667_s1, %s4758_s23  }
0x269b PF: > { %s5672_s29 = sld [smem:[#allocation5_spill]]  ;;  %p4529_p1 = scmp.ge.s32.totalorder %s4742_s21, 2 }
0x269d   : > { %p4526_p2 = pnand %p4529_p1, %p4881_p6 }
0x26a1   : > { %s3816_s25 = sand.u32 1, %s5672_s29  }
0x26a2   : > { %s3817_s24 = scalar_lea.sflag [#allocation3], %s3816_s25 }
0x26a3   : > { %4725 = dma.done.wait (!%p4526_p2), %s3817_s24, 128  }
0x26a4   : > { %4727 = vsyncadd (!%p4526_p2), %s3817_s24, 4294967168  ;;  %s5674_s21 = sld [smem:[#allocation7_spill]]  ;;  %s5675_s28 = sld [smem:[#allocation6_spill]] }
0x26a5   : > { %s5676_s20 = sld [smem:[#allocation8_spill]]  ;;  %s5677_s18 = smov %s4734_s19 }
0x26aa   : > { %p25_p3 = scmp.ge.s32.totalorder %s5674_s21, 4   ;;  %s5678_s19 = smov %s5675_s28 }
0x26ac   :  { %27 = sbr.rel (!%p25_p3) target bundleno = 6 (0x6), region = 121 }
0x26b3   :  { %3822 = vsyncpa [#allocation3], 1 }
0x26b4   :  { %3824 = vsyncpa [#allocation3 + $0x1], 1 }

</bundles_post_ra>
